<compile_context>
chip_gen: v7x
topology: tpu7x:2x2x1
jax: 0.10.0
libtpu: 0.0.40
codegen_flags: <defaults>
</compile_context>

<pallas_src>
import functools

import numpy as np
import jax
import jax.numpy as jnp
from jax.experimental import pallas as pl
from jax.experimental.pallas import tpu as pltpu

HEADS, DIM_HEAD, MLP_DIM, DEPTH = 8, 64, 12, 2

_LAYER_KEYS = ("ln1_g", "ln1_b", "w_q_pad", "w_k_rows", "w_v_rows", "w_o", "b_o",
               "ln2_g", "ln2_b", "w_ff1", "b_ff1", "w_ff2", "b_ff2")


# ---------------------------------------------------------------------------
# Helpers
# ---------------------------------------------------------------------------

def _fb(shape):
    """Full-block BlockSpec for a grid=(1,) kernel."""
    return pl.BlockSpec(shape, lambda *_: (0,) * len(shape))


def _ln(x, g, b, eps=1e-5):
    """Row-wise LayerNorm (biased variance, like torch.nn.LayerNorm)."""
    mu = jnp.mean(x, axis=-1, keepdims=True)
    xc = x - mu
    var = jnp.mean(xc * xc, axis=-1, keepdims=True)
    return xc * jax.lax.rsqrt(var + eps) * g + b


def build_tap_masks(H, W):
    """mask[k, y*W+x] = 1 iff the 3x3 tap k = (dy+1)*3 + (dx+1) reads a valid
    (non-padded) input pixel for output pixel (y, x) with padding=1."""
    HW = H * W
    idx = np.arange(HW)
    y, x = idx // W, idx % W
    masks = np.zeros((9, HW), dtype=np.float32)
    k = 0
    for dy in (-1, 0, 1):
        for dx in (-1, 0, 1):
            valid = (y + dy >= 0) & (y + dy < H) & (x + dx >= 0) & (x + dx < W)
            masks[k, valid] = 1.0
            k += 1
    return masks


# ---------------------------------------------------------------------------
# The single fused kernel
# ---------------------------------------------------------------------------

def _ae_kernel(*refs, heads, dim_head, depth, n_valid, size):
    nin = len(refs) - 2
    (x_ref, e1w, e1b, e2w, e2b, e3w, e3b, m24, wemb, base) = refs[:10]
    layer_refs = refs[10:10 + 13 * depth]
    (hg, hb, sel, upw, upb, w9, smb, tapm, decw) = refs[10 + 13 * depth:nin]
    abu_ref, rec_ref = refs[nin], refs[nin + 1]

    f32 = jnp.float32
    Cz = wemb.shape[0]
    n_pad = base.shape[0]
    HW = x_ref.shape[1]
    scale = dim_head ** -0.5

    # ---------------- encoder: 3x (1x1 conv + folded eval-BN), LeakyReLU x2 --------
    # TODO(synk): training-mode Dropout(0.25) RNG masking not implemented (eval mode).
    x = x_ref[...]                                              # (L, HW) token-ordered pixels
    h = jnp.dot(e1w[...], x, preferred_element_type=f32) + e1b[...]
    h = jnp.maximum(h, 0.01 * h)                                # LeakyReLU(0.01)
    h = jnp.dot(e2w[...], h, preferred_element_type=f32) + e2b[...]
    h = jnp.maximum(h, 0.01 * h)
    z = jnp.dot(e3w[...], h, preferred_element_type=f32) + e3b[...]   # (Cz, HW)

    # ---------------- patch embed + cls + pos (token gather folded into weights) ----
    # seq[1+t] += sum_c sum_p z[c, t*p2+p] * pe_w[p*Cz+c, :]; rows 0 / >n_valid come
    # from `base` (cls+pos / zeros).  mask24 gates pixels of token t onto row 1+t.
    seq = base[...]                                             # (n_pad, Dv)
    m = m24[...]                                                # (n_pad, HW) 0/1
    for c in range(Cz):
        seq = seq + jnp.dot(m * z[c:c + 1, :], wemb[c],
                            preferred_element_type=f32)

    # ---------------- transformer: depth x (PreNorm MHSA + PreNorm FF) --------------
    col = jax.lax.broadcasted_iota(jnp.int32, (n_pad, n_pad), 1)
    kmask = col < n_valid                                       # mask padded key tokens

    for l in range(depth):
        (ln1g, ln1b, wqp, wkr, wvr, wo, bo,
         ln2g, ln2b, wf1, bf1, wf2, bf2) = layer_refs[l * 13:(l + 1) * 13]

        y = _ln(seq, ln1g[...], ln1b[...])
        # Q: each head padded into its own 128-lane tile -> aligned lane slices.
        q_all = jnp.dot(y, wqp[...], preferred_element_type=f32)       # (n_pad, heads*128)
        # K,V: produced transposed (inner, n_pad) -> aligned sublane slices per head.
        kT = jax.lax.dot_general(wkr[...], y, (((1,), (1,)), ((), ())),
                                 preferred_element_type=f32)           # (inner, n_pad)
        vT = jax.lax.dot_general(wvr[...], y, (((1,), (1,)), ((), ())),
                                 preferred_element_type=f32)           # (inner, n_pad)

        outs = []
        for hh in range(heads):
            qh = q_all[:, hh * 128: hh * 128 + dim_head]                # (n_pad, dh)
            kTh = kT[hh * dim_head:(hh + 1) * dim_head, :]              # (dh, n_pad)
            vTh = vT[hh * dim_head:(hh + 1) * dim_head, :]              # (dh, n_pad)
            s = jnp.dot(qh, kTh, preferred_element_type=f32) * scale    # (n_pad, n_pad)
            s = jnp.where(kmask, s, -1e30)
            mx = jnp.max(s, axis=-1, keepdims=True)
            e = jnp.exp(s - mx)
            p_attn = e * pl.reciprocal(jnp.sum(e, axis=-1, keepdims=True), approx=True)
            outs.append(jax.lax.dot_general(p_attn, vTh, (((1,), (1,)), ((), ())),
                                            preferred_element_type=f32))  # (n_pad, dh)
        o_cat = jnp.concatenate(outs, axis=1)                           # (n_pad, inner)
        seq = seq + jnp.dot(o_cat, wo[...], preferred_element_type=f32) + bo[...]

        y = _ln(seq, ln2g[...], ln2b[...])
        h1 = jnp.dot(y, wf1[...], preferred_element_type=f32) + bf1[...]
        # TODO(synk): tanh-approx GELU; PyTorch nn.GELU default is exact erf.
        c0 = 0.7978845608028654  # sqrt(2/pi)
        h1 = 0.5 * h1 * (1.0 + jnp.tanh(c0 * (h1 + 0.044715 * h1 * h1 * h1)))
        seq = seq + jnp.dot(h1, wf2[...], preferred_element_type=f32) + bf2[...]

    # ---------------- tail: head-LN -> upscale -> 3x3 smooth -> softmax -> decoder --
    cls = _ln(seq[0:1, :], hg[...], hb[...])                    # (1, Dv) cls pooling
    # upscale Linear(dim, HW) applied to each of the P chunks of cls (row_sel gate +
    # row-replicated weight, both built once at init).
    e_sel = sel[...] * cls                                      # (P, Dv)
    abu = jnp.dot(e_sel, upw[...], preferred_element_type=f32) + upb[...]   # (P, HW)

    # 3x3 conv (padding=1) via lane rolls + boundary masks + per-tap channel mixes.
    # pltpu.roll follows np.roll: result[j] = x[(j - shift) mod N]; with shift = -s
    # (s = dy*W + dx) the rolled row holds the (y+dy, x+dx) neighbour at pixel (y, x).
    conv = jnp.zeros_like(abu) + smb[...]                       # bias (P,1) broadcast
    masks = tapm[...]                                           # (9, HW) 0/1
    W = size
    k = 0
    for dy in (-1, 0, 1):
        for dx in (-1, 0, 1):
            s = dy * W + dx
            shifted = abu if s == 0 else pltpu.roll(abu, (-s) % HW, 1)
            conv = conv + jnp.dot(w9[k], shifted * masks[k:k + 1, :],
                                  preferred_element_type=f32)
            k += 1

    # softmax over the channel (P) axis
    mx = jnp.max(conv, axis=0, keepdims=True)
    ex = jnp.exp(conv - mx)
    abu_sm = ex * pl.reciprocal(jnp.sum(ex, axis=0, keepdims=True), approx=True)
    abu_ref[...] = abu_sm                                       # (P, HW) lane-dense

    # decoder: 1x1 conv (no bias) + ReLU, channels-first
    rec_ref[...] = jnp.maximum(
        jnp.dot(decw[...], abu_sm, preferred_element_type=f32), 0.0)   # (L, HW)


# ---------------------------------------------------------------------------
# Parameters (deterministic synthetic init; layouts pre-arranged for the kernel)
# ---------------------------------------------------------------------------

def init_params(key, *, P, L, size, patch, dim):
    Cz = dim * P // patch ** 2          # encoder output channels
    Dv = dim * P                        # ViT embedding dim
    inner = HEADS * DIM_HEAD
    nh = size // patch
    npatch = nh * nh
    n_tok = npatch + 1
    n_pad = ((n_tok + 7) // 8) * 8      # pad token count to a multiple of 8
    HW = size * size
    p2 = patch * patch

    keys = iter(jax.random.split(key, 64))

    def nrm(shape, scale=0.1):
        return (scale * jax.random.normal(next(keys), shape)).astype(jnp.float32)

    def conv1x1_bn(cin, cout):
        # Conv2d(1x1) + eval-mode BatchNorm2d folded, channels-first (cout, cin).
        w = nrm((cout, cin))
        b = nrm((cout,), 0.01)
        gamma = 1.0 + nrm((cout,), 0.01)
        beta = nrm((cout,), 0.01)
        rmean = jnp.zeros((cout,), jnp.float32)
        rvar = jnp.ones((cout,), jnp.float32)
        s = gamma * jax.lax.rsqrt(rvar + 1e-5)
        return w * s[:, None], ((b - rmean) * s + beta).reshape(cout, 1)

    p = {}
    p["enc1_w"], p["enc1_b"] = conv1x1_bn(L, 128)
    p["enc2_w"], p["enc2_b"] = conv1x1_bn(128, 64)
    p["enc3_w"], p["enc3_b"] = conv1x1_bn(64, Cz)

    # ViT patch embedding Linear(patch_dim, Dv) + cls token + pos embedding.
    pe_w = nrm((p2 * Cz, Dv))           # transposed torch weight (patch_dim, Dv)
    pe_b = nrm((Dv,), 0.01)
    pos = nrm((n_tok, Dv))
    cls = nrm((Dv,))

    base = np.zeros((n_pad, Dv), np.float32)
    base[0] = np.asarray(cls + pos[0])
    base[1:n_tok] = np.asarray(pe_b[None, :] + pos[1:])
    p["base"] = jnp.asarray(base)

    # Per-channel embed weight with the within-token position gather folded in:
    # w_emb[c, j, :] = pe_w[(j % p2)*Cz + c, :]  (j = token-ordered pixel column).
    jcol = np.arange(HW)
    pe_w_np = np.asarray(pe_w)
    w_emb = np.zeros((Cz, HW, Dv), np.float32)
    for c in range(Cz):
        w_emb[c] = pe_w_np[(jcol % p2) * Cz + c, :]
    p["w_emb"] = jnp.asarray(w_emb)

    # Token gate: row 1+t picks the p2 pixels of token t; rows 0 / pad rows are zero.
    mask24 = np.zeros((n_pad, HW), np.float32)
    for t in range(npatch):
        mask24[1 + t, t * p2:(t + 1) * p2] = 1.0
    p["mask24"] = jnp.asarray(mask24)

    layers = []
    for _ in range(DEPTH):
        wq_t = np.asarray(nrm((Dv, inner)))                     # (in, out) layout for Q
        wq_pad = np.zeros((Dv, HEADS * 128), np.float32)        # each head in its own
        for hh in range(HEADS):                                 # 128-lane tile
            wq_pad[:, hh * 128: hh * 128 + DIM_HEAD] = \
                wq_t[:, hh * DIM_HEAD:(hh + 1) * DIM_HEAD]
        layers.append(dict(
            ln1_g=jnp.ones((1, Dv), jnp.float32), ln1_b=jnp.zeros((1, Dv), jnp.float32),
            w_q_pad=jnp.asarray(wq_pad),
            w_k_rows=nrm((inner, Dv)),                          # torch (out,in) rows -> K^T
            w_v_rows=nrm((inner, Dv)),
            w_o=nrm((inner, Dv)),                               # to_out weight^T
            b_o=nrm((1, Dv), 0.01),
            ln2_g=jnp.ones((1, Dv), jnp.float32), ln2_b=jnp.zeros((1, Dv), jnp.float32),
            w_ff1=nrm((Dv, MLP_DIM)), b_ff1=nrm((1, MLP_DIM), 0.01),
            w_ff2=nrm((MLP_DIM, Dv)), b_ff2=nrm((1, Dv), 0.01),
        ))
    p["layers"] = layers

    p["head_ln_g"] = jnp.ones((1, Dv), jnp.float32)
    p["head_ln_b"] = jnp.zeros((1, Dv), jnp.float32)

    # upscale Linear(dim, size**2): chunk selector + row-replicated weight (init-time).
    up_w = nrm((dim, HW))
    p["up_w_rep"] = jnp.tile(up_w, (P, 1))                      # (Dv, HW), built ONCE
    p["up_b"] = nrm((1, HW), 0.01)
    p["sel"] = jnp.asarray(
        (np.arange(Dv)[None, :] // dim == np.arange(P)[:, None]).astype(np.float32))

    # smooth Conv2d(P, P, 3x3, pad=1): per-tap channel mixes + boundary masks.
    w_sm = np.asarray(nrm((P, P, 3, 3)))                        # torch (Cout, Cin, kh, kw)
    p["sm_w9"] = jnp.asarray(w_sm.transpose(2, 3, 0, 1).reshape(9, P, P))
    p["sm_b"] = nrm((P,), 0.01).reshape(P, 1)
    p["tap_mask"] = jnp.asarray(build_tap_masks(size, size))

    # decoder Conv2d(P, L, 1x1, bias=False), channels-first (L, P)
    p["dec_w"] = nrm((L, P))
    return p


# ---------------------------------------------------------------------------
# Forward pass (single pallas_call)
# ---------------------------------------------------------------------------

def autoencoder_forward(params, x, *, P, L, size, patch, dim):
    H = W = size
    HW = H * W
    nh = size // patch
    npatch = nh * nh
    n_valid = npatch + 1

    # Pre-permute pixels to (token, within-patch-position) order.  Legal because the
    # encoder is purely per-pixel; this is what lets the whole forward live in one
    # kernel with no in-kernel transposes (tail outputs stay image row-major).
    x_perm = (x[0].reshape(L, nh, patch, nh, patch)
              .transpose(0, 1, 3, 2, 4).reshape(L, HW))

    args = [x_perm,
            params["enc1_w"], params["enc1_b"], params["enc2_w"], params["enc2_b"],
            params["enc3_w"], params["enc3_b"],
            params["mask24"], params["w_emb"], params["base"]]
    for lyr in params["layers"]:
        args += [lyr[k] for k in _LAYER_KEYS]
    args += [params["head_ln_g"], params["head_ln_b"], params["sel"],
             params["up_w_rep"], params["up_b"], params["sm_w9"], params["sm_b"],
             params["tap_mask"], params["dec_w"]]

    kern = functools.partial(_ae_kernel, heads=HEADS, dim_head=DIM_HEAD, depth=DEPTH,
                             n_valid=n_valid, size=size)
    abu_sm, rec = pl.pallas_call(
        kern,
        out_shape=(jax.ShapeDtypeStruct((P, HW), jnp.float32),
                   jax.ShapeDtypeStruct((L, HW), jnp.float32)),
        grid=(1,),
        in_specs=[_fb(a.shape) for a in args],
        out_specs=(_fb((P, HW)), _fb((L, HW))),
    )(*args)

    abu_est = abu_sm.reshape(1, P, H, W)        # free reshapes (lane-dense, row-major)
    re_result = rec.reshape(1, L, H, W)
    return abu_est, re_result


# ---------------------------------------------------------------------------

if __name__ == "__main__":
    # Config consistent with the module's constraints:
    #   encoder out channels = dim*P/patch^2 = 4, ViT dim = dim*P = 64, 16+1 tokens.
    P, L, size, patch, dim = 4, 8, 16, 4, 16

    key = jax.random.PRNGKey(0)
    k_in, k_par = jax.random.split(key)
    x = jax.random.normal(k_in, (1, L, size, size), dtype=jnp.float32)  # batch=1 (module)
    params = init_params(k_par, P=P, L=L, size=size, patch=patch, dim=dim)

    fwd = jax.jit(functools.partial(autoencoder_forward,
                                    P=P, L=L, size=size, patch=patch, dim=dim))
    abu_est, re_result = fwd(params, x)
    jax.block_until_ready((abu_est, re_result))

    assert abu_est.shape == (1, P, size, size)
    assert re_result.shape == (1, L, size, size)
    assert bool(jnp.all(jnp.isfinite(abu_est))) and bool(jnp.all(jnp.isfinite(re_result)))
    print("KERNEL_OK")
</pallas_src>

<mosaic_0001>
module attributes {stable_mosaic.version = 11 : i64} {
  func.func @_ae_kernel(%arg0: i32, %arg1: memref<8x256xf32, #tpu.memory_space<vmem>>, %arg2: memref<128x8xf32, #tpu.memory_space<vmem>>, %arg3: memref<128x1xf32, #tpu.memory_space<vmem>>, %arg4: memref<64x128xf32, #tpu.memory_space<vmem>>, %arg5: memref<64x1xf32, #tpu.memory_space<vmem>>, %arg6: memref<4x64xf32, #tpu.memory_space<vmem>>, %arg7: memref<4x1xf32, #tpu.memory_space<vmem>>, %arg8: memref<24x256xf32, #tpu.memory_space<vmem>>, %arg9: memref<4x256x64xf32, #tpu.memory_space<vmem>>, %arg10: memref<24x64xf32, #tpu.memory_space<vmem>>, %arg11: memref<1x64xf32, #tpu.memory_space<vmem>>, %arg12: memref<1x64xf32, #tpu.memory_space<vmem>>, %arg13: memref<64x1024xf32, #tpu.memory_space<vmem>>, %arg14: memref<512x64xf32, #tpu.memory_space<vmem>>, %arg15: memref<512x64xf32, #tpu.memory_space<vmem>>, %arg16: memref<512x64xf32, #tpu.memory_space<vmem>>, %arg17: memref<1x64xf32, #tpu.memory_space<vmem>>, %arg18: memref<1x64xf32, #tpu.memory_space<vmem>>, %arg19: memref<1x64xf32, #tpu.memory_space<vmem>>, %arg20: memref<64x12xf32, #tpu.memory_space<vmem>>, %arg21: memref<1x12xf32, #tpu.memory_space<vmem>>, %arg22: memref<12x64xf32, #tpu.memory_space<vmem>>, %arg23: memref<1x64xf32, #tpu.memory_space<vmem>>, %arg24: memref<1x64xf32, #tpu.memory_space<vmem>>, %arg25: memref<1x64xf32, #tpu.memory_space<vmem>>, %arg26: memref<64x1024xf32, #tpu.memory_space<vmem>>, %arg27: memref<512x64xf32, #tpu.memory_space<vmem>>, %arg28: memref<512x64xf32, #tpu.memory_space<vmem>>, %arg29: memref<512x64xf32, #tpu.memory_space<vmem>>, %arg30: memref<1x64xf32, #tpu.memory_space<vmem>>, %arg31: memref<1x64xf32, #tpu.memory_space<vmem>>, %arg32: memref<1x64xf32, #tpu.memory_space<vmem>>, %arg33: memref<64x12xf32, #tpu.memory_space<vmem>>, %arg34: memref<1x12xf32, #tpu.memory_space<vmem>>, %arg35: memref<12x64xf32, #tpu.memory_space<vmem>>, %arg36: memref<1x64xf32, #tpu.memory_space<vmem>>, %arg37: memref<1x64xf32, #tpu.memory_space<vmem>>, %arg38: memref<1x64xf32, #tpu.memory_space<vmem>>, %arg39: memref<4x64xf32, #tpu.memory_space<vmem>>, %arg40: memref<64x256xf32, #tpu.memory_space<vmem>>, %arg41: memref<1x256xf32, #tpu.memory_space<vmem>>, %arg42: memref<9x4x4xf32, #tpu.memory_space<vmem>>, %arg43: memref<4x1xf32, #tpu.memory_space<vmem>>, %arg44: memref<9x256xf32, #tpu.memory_space<vmem>>, %arg45: memref<8x4xf32, #tpu.memory_space<vmem>>, %arg46: memref<4x256xf32, #tpu.memory_space<vmem>>, %arg47: memref<8x256xf32, #tpu.memory_space<vmem>>) attributes {dimension_semantics = [#tpu.dimension_semantics<arbitrary>], iteration_bounds = array<i64: 1>, scalar_prefetch = 0 : i64, scratch_operands = 0 : i64, tpu.core_type = #tpu.core_type<tc>, window_params = [{pipeline_mode = #tpu.pipeline_mode<synchronous>, transform_indices = @transform_0, window_bounds = array<i64: 8, 256>}, {pipeline_mode = #tpu.pipeline_mode<synchronous>, transform_indices = @transform_1, window_bounds = array<i64: 128, 8>}, {pipeline_mode = #tpu.pipeline_mode<synchronous>, transform_indices = @transform_2, window_bounds = array<i64: 128, 1>}, {pipeline_mode = #tpu.pipeline_mode<synchronous>, transform_indices = @transform_3, window_bounds = array<i64: 64, 128>}, {pipeline_mode = #tpu.pipeline_mode<synchronous>, transform_indices = @transform_4, window_bounds = array<i64: 64, 1>}, {pipeline_mode = #tpu.pipeline_mode<synchronous>, transform_indices = @transform_5, window_bounds = array<i64: 4, 64>}, {pipeline_mode = #tpu.pipeline_mode<synchronous>, transform_indices = @transform_6, window_bounds = array<i64: 4, 1>}, {pipeline_mode = #tpu.pipeline_mode<synchronous>, transform_indices = @transform_7, window_bounds = array<i64: 24, 256>}, {pipeline_mode = #tpu.pipeline_mode<synchronous>, transform_indices = @transform_8, window_bounds = array<i64: 4, 256, 64>}, {pipeline_mode = #tpu.pipeline_mode<synchronous>, transform_indices = @transform_9, window_bounds = array<i64: 24, 64>}, {pipeline_mode = #tpu.pipeline_mode<synchronous>, transform_indices = @transform_10, window_bounds = array<i64: 1, 64>}, {pipeline_mode = #tpu.pipeline_mode<synchronous>, transform_indices = @transform_11, window_bounds = array<i64: 1, 64>}, {pipeline_mode = #tpu.pipeline_mode<synchronous>, transform_indices = @transform_12, window_bounds = array<i64: 64, 1024>}, {pipeline_mode = #tpu.pipeline_mode<synchronous>, transform_indices = @transform_13, window_bounds = array<i64: 512, 64>}, {pipeline_mode = #tpu.pipeline_mode<synchronous>, transform_indices = @transform_14, window_bounds = array<i64: 512, 64>}, {pipeline_mode = #tpu.pipeline_mode<synchronous>, transform_indices = @transform_15, window_bounds = array<i64: 512, 64>}, {pipeline_mode = #tpu.pipeline_mode<synchronous>, transform_indices = @transform_16, window_bounds = array<i64: 1, 64>}, {pipeline_mode = #tpu.pipeline_mode<synchronous>, transform_indices = @transform_17, window_bounds = array<i64: 1, 64>}, {pipeline_mode = #tpu.pipeline_mode<synchronous>, transform_indices = @transform_18, window_bounds = array<i64: 1, 64>}, {pipeline_mode = #tpu.pipeline_mode<synchronous>, transform_indices = @transform_19, window_bounds = array<i64: 64, 12>}, {pipeline_mode = #tpu.pipeline_mode<synchronous>, transform_indices = @transform_20, window_bounds = array<i64: 1, 12>}, {pipeline_mode = #tpu.pipeline_mode<synchronous>, transform_indices = @transform_21, window_bounds = array<i64: 12, 64>}, {pipeline_mode = #tpu.pipeline_mode<synchronous>, transform_indices = @transform_22, window_bounds = array<i64: 1, 64>}, {pipeline_mode = #tpu.pipeline_mode<synchronous>, transform_indices = @transform_23, window_bounds = array<i64: 1, 64>}, {pipeline_mode = #tpu.pipeline_mode<synchronous>, transform_indices = @transform_24, window_bounds = array<i64: 1, 64>}, {pipeline_mode = #tpu.pipeline_mode<synchronous>, transform_indices = @transform_25, window_bounds = array<i64: 64, 1024>}, {pipeline_mode = #tpu.pipeline_mode<synchronous>, transform_indices = @transform_26, window_bounds = array<i64: 512, 64>}, {pipeline_mode = #tpu.pipeline_mode<synchronous>, transform_indices = @transform_27, window_bounds = array<i64: 512, 64>}, {pipeline_mode = #tpu.pipeline_mode<synchronous>, transform_indices = @transform_28, window_bounds = array<i64: 512, 64>}, {pipeline_mode = #tpu.pipeline_mode<synchronous>, transform_indices = @transform_29, window_bounds = array<i64: 1, 64>}, {pipeline_mode = #tpu.pipeline_mode<synchronous>, transform_indices = @transform_30, window_bounds = array<i64: 1, 64>}, {pipeline_mode = #tpu.pipeline_mode<synchronous>, transform_indices = @transform_31, window_bounds = array<i64: 1, 64>}, {pipeline_mode = #tpu.pipeline_mode<synchronous>, transform_indices = @transform_32, window_bounds = array<i64: 64, 12>}, {pipeline_mode = #tpu.pipeline_mode<synchronous>, transform_indices = @transform_33, window_bounds = array<i64: 1, 12>}, {pipeline_mode = #tpu.pipeline_mode<synchronous>, transform_indices = @transform_34, window_bounds = array<i64: 12, 64>}, {pipeline_mode = #tpu.pipeline_mode<synchronous>, transform_indices = @transform_35, window_bounds = array<i64: 1, 64>}, {pipeline_mode = #tpu.pipeline_mode<synchronous>, transform_indices = @transform_36, window_bounds = array<i64: 1, 64>}, {pipeline_mode = #tpu.pipeline_mode<synchronous>, transform_indices = @transform_37, window_bounds = array<i64: 1, 64>}, {pipeline_mode = #tpu.pipeline_mode<synchronous>, transform_indices = @transform_38, window_bounds = array<i64: 4, 64>}, {pipeline_mode = #tpu.pipeline_mode<synchronous>, transform_indices = @transform_39, window_bounds = array<i64: 64, 256>}, {pipeline_mode = #tpu.pipeline_mode<synchronous>, transform_indices = @transform_40, window_bounds = array<i64: 1, 256>}, {pipeline_mode = #tpu.pipeline_mode<synchronous>, transform_indices = @transform_41, window_bounds = array<i64: 9, 4, 4>}, {pipeline_mode = #tpu.pipeline_mode<synchronous>, transform_indices = @transform_42, window_bounds = array<i64: 4, 1>}, {pipeline_mode = #tpu.pipeline_mode<synchronous>, transform_indices = @transform_43, window_bounds = array<i64: 9, 256>}, {pipeline_mode = #tpu.pipeline_mode<synchronous>, transform_indices = @transform_44, window_bounds = array<i64: 8, 4>}, {pipeline_mode = #tpu.pipeline_mode<synchronous>, transform_indices = @transform_45, window_bounds = array<i64: 4, 256>}, {pipeline_mode = #tpu.pipeline_mode<synchronous>, transform_indices = @transform_46, window_bounds = array<i64: 8, 256>}]} {
    %c0 = arith.constant 0 : index
    %c0_0 = arith.constant 0 : index
    %0 = vector.load %arg1[%c0, %c0_0] : memref<8x256xf32, #tpu.memory_space<vmem>>, vector<8x256xf32>
    %c0_1 = arith.constant 0 : index
    %c0_2 = arith.constant 0 : index
    %1 = vector.load %arg2[%c0_1, %c0_2] : memref<128x8xf32, #tpu.memory_space<vmem>>, vector<128x8xf32>
    %cst = arith.constant dense<0.000000e+00> : vector<128x256xf32>
    %2 = tpu.matmul %1, %0, %cst {dimension_numbers = #tpu.dot_dimension_numbers<[1], [0], [0], [1], [0, 0, 1, 1], [], []>} : vector<128x8xf32>, vector<8x256xf32>, vector<128x256xf32> -> vector<128x256xf32>
    %c0_3 = arith.constant 0 : index
    %c0_4 = arith.constant 0 : index
    %3 = vector.load %arg3[%c0_3, %c0_4] : memref<128x1xf32, #tpu.memory_space<vmem>>, vector<128x1xf32>
    %4 = vector.broadcast %3 : vector<128x1xf32> to vector<128x256xf32>
    %5 = arith.addf %2, %4 : vector<128x256xf32>
    %cst_5 = arith.constant 0.00999999977 : f32
    %6 = vector.broadcast %cst_5 : f32 to vector<128x256xf32>
    %7 = arith.mulf %6, %5 : vector<128x256xf32>
    %8 = arith.maximumf %5, %7 : vector<128x256xf32>
    %c0_6 = arith.constant 0 : index
    %c0_7 = arith.constant 0 : index
    %9 = vector.load %arg4[%c0_6, %c0_7] : memref<64x128xf32, #tpu.memory_space<vmem>>, vector<64x128xf32>
    %cst_8 = arith.constant dense<0.000000e+00> : vector<64x256xf32>
    %10 = tpu.matmul %9, %8, %cst_8 {dimension_numbers = #tpu.dot_dimension_numbers<[1], [0], [0], [1], [0, 0, 1, 1], [], []>} : vector<64x128xf32>, vector<128x256xf32>, vector<64x256xf32> -> vector<64x256xf32>
    %c0_9 = arith.constant 0 : index
    %c0_10 = arith.constant 0 : index
    %11 = vector.load %arg5[%c0_9, %c0_10] : memref<64x1xf32, #tpu.memory_space<vmem>>, vector<64x1xf32>
    %12 = vector.broadcast %11 : vector<64x1xf32> to vector<64x256xf32>
    %13 = arith.addf %10, %12 : vector<64x256xf32>
    %cst_11 = arith.constant 0.00999999977 : f32
    %14 = vector.broadcast %cst_11 : f32 to vector<64x256xf32>
    %15 = arith.mulf %14, %13 : vector<64x256xf32>
    %16 = arith.maximumf %13, %15 : vector<64x256xf32>
    %c0_12 = arith.constant 0 : index
    %c0_13 = arith.constant 0 : index
    %17 = vector.load %arg6[%c0_12, %c0_13] : memref<4x64xf32, #tpu.memory_space<vmem>>, vector<4x64xf32>
    %cst_14 = arith.constant dense<0.000000e+00> : vector<4x256xf32>
    %18 = tpu.matmul %17, %16, %cst_14 {dimension_numbers = #tpu.dot_dimension_numbers<[1], [0], [0], [1], [0, 0, 1, 1], [], []>} : vector<4x64xf32>, vector<64x256xf32>, vector<4x256xf32> -> vector<4x256xf32>
    %c0_15 = arith.constant 0 : index
    %c0_16 = arith.constant 0 : index
    %19 = vector.load %arg7[%c0_15, %c0_16] : memref<4x1xf32, #tpu.memory_space<vmem>>, vector<4x1xf32>
    %20 = vector.broadcast %19 : vector<4x1xf32> to vector<4x256xf32>
    %21 = arith.addf %18, %20 : vector<4x256xf32>
    %c0_17 = arith.constant 0 : index
    %c0_18 = arith.constant 0 : index
    %22 = vector.load %arg10[%c0_17, %c0_18] : memref<24x64xf32, #tpu.memory_space<vmem>>, vector<24x64xf32>
    %c0_19 = arith.constant 0 : index
    %c0_20 = arith.constant 0 : index
    %23 = vector.load %arg8[%c0_19, %c0_20] : memref<24x256xf32, #tpu.memory_space<vmem>>, vector<24x256xf32>
    %24 = vector.extract_strided_slice %21 {offsets = [0, 0], sizes = [1, 256], strides = [1, 1]} : vector<4x256xf32> to vector<1x256xf32>
    %25 = vector.broadcast %24 : vector<1x256xf32> to vector<24x256xf32>
    %26 = arith.mulf %23, %25 : vector<24x256xf32>
    %c0_21 = arith.constant 0 : index
    %c0_22 = arith.constant 0 : index
    %c0_23 = arith.constant 0 : index
    %27 = vector.load %arg9[%c0_21, %c0_22, %c0_23] : memref<4x256x64xf32, #tpu.memory_space<vmem>>, vector<1x256x64xf32>
    %28 = vector.shape_cast %27 : vector<1x256x64xf32> to vector<256x64xf32>
    %cst_24 = arith.constant dense<0.000000e+00> : vector<24x64xf32>
    %29 = tpu.matmul %26, %28, %cst_24 {dimension_numbers = #tpu.dot_dimension_numbers<[1], [0], [0], [1], [0, 0, 1, 1], [], []>} : vector<24x256xf32>, vector<256x64xf32>, vector<24x64xf32> -> vector<24x64xf32>
    %30 = arith.addf %22, %29 : vector<24x64xf32>
    %31 = vector.extract_strided_slice %21 {offsets = [1, 0], sizes = [1, 256], strides = [1, 1]} : vector<4x256xf32> to vector<1x256xf32>
    %32 = vector.broadcast %31 : vector<1x256xf32> to vector<24x256xf32>
    %33 = arith.mulf %23, %32 : vector<24x256xf32>
    %c1 = arith.constant 1 : index
    %c0_25 = arith.constant 0 : index
    %c0_26 = arith.constant 0 : index
    %34 = vector.load %arg9[%c1, %c0_25, %c0_26] : memref<4x256x64xf32, #tpu.memory_space<vmem>>, vector<1x256x64xf32>
    %35 = vector.shape_cast %34 : vector<1x256x64xf32> to vector<256x64xf32>
    %cst_27 = arith.constant dense<0.000000e+00> : vector<24x64xf32>
    %36 = tpu.matmul %33, %35, %cst_27 {dimension_numbers = #tpu.dot_dimension_numbers<[1], [0], [0], [1], [0, 0, 1, 1], [], []>} : vector<24x256xf32>, vector<256x64xf32>, vector<24x64xf32> -> vector<24x64xf32>
    %37 = arith.addf %30, %36 : vector<24x64xf32>
    %38 = vector.extract_strided_slice %21 {offsets = [2, 0], sizes = [1, 256], strides = [1, 1]} : vector<4x256xf32> to vector<1x256xf32>
    %39 = vector.broadcast %38 : vector<1x256xf32> to vector<24x256xf32>
    %40 = arith.mulf %23, %39 : vector<24x256xf32>
    %c2 = arith.constant 2 : index
    %c0_28 = arith.constant 0 : index
    %c0_29 = arith.constant 0 : index
    %41 = vector.load %arg9[%c2, %c0_28, %c0_29] : memref<4x256x64xf32, #tpu.memory_space<vmem>>, vector<1x256x64xf32>
    %42 = vector.shape_cast %41 : vector<1x256x64xf32> to vector<256x64xf32>
    %cst_30 = arith.constant dense<0.000000e+00> : vector<24x64xf32>
    %43 = tpu.matmul %40, %42, %cst_30 {dimension_numbers = #tpu.dot_dimension_numbers<[1], [0], [0], [1], [0, 0, 1, 1], [], []>} : vector<24x256xf32>, vector<256x64xf32>, vector<24x64xf32> -> vector<24x64xf32>
    %44 = arith.addf %37, %43 : vector<24x64xf32>
    %45 = vector.extract_strided_slice %21 {offsets = [3, 0], sizes = [1, 256], strides = [1, 1]} : vector<4x256xf32> to vector<1x256xf32>
    %46 = vector.broadcast %45 : vector<1x256xf32> to vector<24x256xf32>
    %47 = arith.mulf %23, %46 : vector<24x256xf32>
    %c3 = arith.constant 3 : index
    %c0_31 = arith.constant 0 : index
    %c0_32 = arith.constant 0 : index
    %48 = vector.load %arg9[%c3, %c0_31, %c0_32] : memref<4x256x64xf32, #tpu.memory_space<vmem>>, vector<1x256x64xf32>
    %49 = vector.shape_cast %48 : vector<1x256x64xf32> to vector<256x64xf32>
    %cst_33 = arith.constant dense<0.000000e+00> : vector<24x64xf32>
    %50 = tpu.matmul %47, %49, %cst_33 {dimension_numbers = #tpu.dot_dimension_numbers<[1], [0], [0], [1], [0, 0, 1, 1], [], []>} : vector<24x256xf32>, vector<256x64xf32>, vector<24x64xf32> -> vector<24x64xf32>
    %51 = arith.addf %44, %50 : vector<24x64xf32>
    %52 = tpu.iota {dimensions = array<i32: 1>} : vector<24x24xi32>
    %c17_i32 = arith.constant 17 : i32
    %53 = vector.broadcast %c17_i32 : i32 to vector<24x24xi32>
    %54 = arith.cmpi slt, %52, %53 : vector<24x24xi32>
    %c0_34 = arith.constant 0 : index
    %c0_35 = arith.constant 0 : index
    %55 = vector.load %arg11[%c0_34, %c0_35] : memref<1x64xf32, #tpu.memory_space<vmem>>, vector<1x64xf32>
    %c0_36 = arith.constant 0 : index
    %c0_37 = arith.constant 0 : index
    %56 = vector.load %arg12[%c0_36, %c0_37] : memref<1x64xf32, #tpu.memory_space<vmem>>, vector<1x64xf32>
    %cst_38 = arith.constant dense<0.000000e+00> : vector<24xf32>
    %57 = vector.multi_reduction <add>, %51, %cst_38 [1] : vector<24x64xf32> to vector<24xf32>
    %58 = vector.shape_cast %57 : vector<24xf32> to vector<24x1xf32>
    %cst_39 = arith.constant 6.400000e+01 : f32
    %59 = vector.broadcast %cst_39 : f32 to vector<24x1xf32>
    %60 = arith.divf %58, %59 : vector<24x1xf32>
    %61 = vector.broadcast %60 : vector<24x1xf32> to vector<24x64xf32>
    %62 = arith.subf %51, %61 : vector<24x64xf32>
    %63 = arith.mulf %62, %62 : vector<24x64xf32>
    %cst_40 = arith.constant dense<0.000000e+00> : vector<24xf32>
    %64 = vector.multi_reduction <add>, %63, %cst_40 [1] : vector<24x64xf32> to vector<24xf32>
    %65 = vector.shape_cast %64 : vector<24xf32> to vector<24x1xf32>
    %cst_41 = arith.constant 6.400000e+01 : f32
    %66 = vector.broadcast %cst_41 : f32 to vector<24x1xf32>
    %67 = arith.divf %65, %66 : vector<24x1xf32>
    %cst_42 = arith.constant 9.99999974E-6 : f32
    %68 = vector.broadcast %cst_42 : f32 to vector<24x1xf32>
    %69 = arith.addf %67, %68 : vector<24x1xf32>
    %70 = math.rsqrt %69 : vector<24x1xf32>
    %71 = vector.broadcast %70 : vector<24x1xf32> to vector<24x64xf32>
    %72 = arith.mulf %62, %71 : vector<24x64xf32>
    %73 = vector.broadcast %55 : vector<1x64xf32> to vector<24x64xf32>
    %74 = arith.mulf %72, %73 : vector<24x64xf32>
    %75 = vector.broadcast %56 : vector<1x64xf32> to vector<24x64xf32>
    %76 = arith.addf %74, %75 : vector<24x64xf32>
    %c0_43 = arith.constant 0 : index
    %c0_44 = arith.constant 0 : index
    %77 = vector.load %arg13[%c0_43, %c0_44] : memref<64x1024xf32, #tpu.memory_space<vmem>>, vector<64x1024xf32>
    %cst_45 = arith.constant dense<0.000000e+00> : vector<24x1024xf32>
    %78 = tpu.matmul %76, %77, %cst_45 {dimension_numbers = #tpu.dot_dimension_numbers<[1], [0], [0], [1], [0, 0, 1, 1], [], []>} : vector<24x64xf32>, vector<64x1024xf32>, vector<24x1024xf32> -> vector<24x1024xf32>
    %c0_46 = arith.constant 0 : index
    %c0_47 = arith.constant 0 : index
    %79 = vector.load %arg14[%c0_46, %c0_47] : memref<512x64xf32, #tpu.memory_space<vmem>>, vector<512x64xf32>
    %cst_48 = arith.constant dense<0.000000e+00> : vector<512x24xf32>
    %80 = tpu.matmul %79, %76, %cst_48 {dimension_numbers = #tpu.dot_dimension_numbers<[1], [1], [0], [0], [0, 0, 1, 0], [], []>} : vector<512x64xf32>, vector<24x64xf32>, vector<512x24xf32> -> vector<512x24xf32>
    %c0_49 = arith.constant 0 : index
    %c0_50 = arith.constant 0 : index
    %81 = vector.load %arg15[%c0_49, %c0_50] : memref<512x64xf32, #tpu.memory_space<vmem>>, vector<512x64xf32>
    %cst_51 = arith.constant dense<0.000000e+00> : vector<512x24xf32>
    %82 = tpu.matmul %81, %76, %cst_51 {dimension_numbers = #tpu.dot_dimension_numbers<[1], [1], [0], [0], [0, 0, 1, 0], [], []>} : vector<512x64xf32>, vector<24x64xf32>, vector<512x24xf32> -> vector<512x24xf32>
    %83 = vector.extract_strided_slice %78 {offsets = [0, 0], sizes = [24, 64], strides = [1, 1]} : vector<24x1024xf32> to vector<24x64xf32>
    %84 = vector.extract_strided_slice %80 {offsets = [0, 0], sizes = [64, 24], strides = [1, 1]} : vector<512x24xf32> to vector<64x24xf32>
    %85 = vector.extract_strided_slice %82 {offsets = [0, 0], sizes = [64, 24], strides = [1, 1]} : vector<512x24xf32> to vector<64x24xf32>
    %cst_52 = arith.constant dense<0.000000e+00> : vector<24x24xf32>
    %86 = tpu.matmul %83, %84, %cst_52 {dimension_numbers = #tpu.dot_dimension_numbers<[1], [0], [0], [1], [0, 0, 1, 1], [], []>} : vector<24x64xf32>, vector<64x24xf32>, vector<24x24xf32> -> vector<24x24xf32>
    %cst_53 = arith.constant 1.250000e-01 : f32
    %87 = vector.broadcast %cst_53 : f32 to vector<24x24xf32>
    %88 = arith.mulf %86, %87 : vector<24x24xf32>
    %cst_54 = arith.constant -1.000000e+30 : f32
    %89 = vector.broadcast %cst_54 : f32 to vector<24x24xf32>
    %90 = arith.select %54, %88, %89 : vector<24x24xi1>, vector<24x24xf32>
    %cst_55 = arith.constant dense<0xFF800000> : vector<24xf32>
    %91 = vector.multi_reduction <maximumf>, %90, %cst_55 [1] : vector<24x24xf32> to vector<24xf32>
    %92 = vector.shape_cast %91 : vector<24xf32> to vector<24x1xf32>
    %93 = vector.broadcast %92 : vector<24x1xf32> to vector<24x24xf32>
    %94 = arith.subf %90, %93 : vector<24x24xf32>
    %95 = math.exp %94 : vector<24x24xf32>
    %cst_56 = arith.constant dense<0.000000e+00> : vector<24xf32>
    %96 = vector.multi_reduction <add>, %95, %cst_56 [1] : vector<24x24xf32> to vector<24xf32>
    %97 = vector.shape_cast %96 : vector<24xf32> to vector<24x1xf32>
    %98 = tpu.reciprocal %97 {approx = true} : vector<24x1xf32> -> vector<24x1xf32>
    %99 = vector.broadcast %98 : vector<24x1xf32> to vector<24x24xf32>
    %100 = arith.mulf %95, %99 : vector<24x24xf32>
    %cst_57 = arith.constant dense<0.000000e+00> : vector<24x64xf32>
    %101 = tpu.matmul %100, %85, %cst_57 {dimension_numbers = #tpu.dot_dimension_numbers<[1], [1], [0], [0], [0, 0, 1, 0], [], []>} : vector<24x24xf32>, vector<64x24xf32>, vector<24x64xf32> -> vector<24x64xf32>
    %102 = vector.extract_strided_slice %78 {offsets = [0, 128], sizes = [24, 64], strides = [1, 1]} : vector<24x1024xf32> to vector<24x64xf32>
    %103 = vector.extract_strided_slice %80 {offsets = [64, 0], sizes = [64, 24], strides = [1, 1]} : vector<512x24xf32> to vector<64x24xf32>
    %104 = vector.extract_strided_slice %82 {offsets = [64, 0], sizes = [64, 24], strides = [1, 1]} : vector<512x24xf32> to vector<64x24xf32>
    %cst_58 = arith.constant dense<0.000000e+00> : vector<24x24xf32>
    %105 = tpu.matmul %102, %103, %cst_58 {dimension_numbers = #tpu.dot_dimension_numbers<[1], [0], [0], [1], [0, 0, 1, 1], [], []>} : vector<24x64xf32>, vector<64x24xf32>, vector<24x24xf32> -> vector<24x24xf32>
    %cst_59 = arith.constant 1.250000e-01 : f32
    %106 = vector.broadcast %cst_59 : f32 to vector<24x24xf32>
    %107 = arith.mulf %105, %106 : vector<24x24xf32>
    %cst_60 = arith.constant -1.000000e+30 : f32
    %108 = vector.broadcast %cst_60 : f32 to vector<24x24xf32>
    %109 = arith.select %54, %107, %108 : vector<24x24xi1>, vector<24x24xf32>
    %cst_61 = arith.constant dense<0xFF800000> : vector<24xf32>
    %110 = vector.multi_reduction <maximumf>, %109, %cst_61 [1] : vector<24x24xf32> to vector<24xf32>
    %111 = vector.shape_cast %110 : vector<24xf32> to vector<24x1xf32>
    %112 = vector.broadcast %111 : vector<24x1xf32> to vector<24x24xf32>
    %113 = arith.subf %109, %112 : vector<24x24xf32>
    %114 = math.exp %113 : vector<24x24xf32>
    %cst_62 = arith.constant dense<0.000000e+00> : vector<24xf32>
    %115 = vector.multi_reduction <add>, %114, %cst_62 [1] : vector<24x24xf32> to vector<24xf32>
    %116 = vector.shape_cast %115 : vector<24xf32> to vector<24x1xf32>
    %117 = tpu.reciprocal %116 {approx = true} : vector<24x1xf32> -> vector<24x1xf32>
    %118 = vector.broadcast %117 : vector<24x1xf32> to vector<24x24xf32>
    %119 = arith.mulf %114, %118 : vector<24x24xf32>
    %cst_63 = arith.constant dense<0.000000e+00> : vector<24x64xf32>
    %120 = tpu.matmul %119, %104, %cst_63 {dimension_numbers = #tpu.dot_dimension_numbers<[1], [1], [0], [0], [0, 0, 1, 0], [], []>} : vector<24x24xf32>, vector<64x24xf32>, vector<24x64xf32> -> vector<24x64xf32>
    %121 = vector.extract_strided_slice %78 {offsets = [0, 256], sizes = [24, 64], strides = [1, 1]} : vector<24x1024xf32> to vector<24x64xf32>
    %122 = vector.extract_strided_slice %80 {offsets = [128, 0], sizes = [64, 24], strides = [1, 1]} : vector<512x24xf32> to vector<64x24xf32>
    %123 = vector.extract_strided_slice %82 {offsets = [128, 0], sizes = [64, 24], strides = [1, 1]} : vector<512x24xf32> to vector<64x24xf32>
    %cst_64 = arith.constant dense<0.000000e+00> : vector<24x24xf32>
    %124 = tpu.matmul %121, %122, %cst_64 {dimension_numbers = #tpu.dot_dimension_numbers<[1], [0], [0], [1], [0, 0, 1, 1], [], []>} : vector<24x64xf32>, vector<64x24xf32>, vector<24x24xf32> -> vector<24x24xf32>
    %cst_65 = arith.constant 1.250000e-01 : f32
    %125 = vector.broadcast %cst_65 : f32 to vector<24x24xf32>
    %126 = arith.mulf %124, %125 : vector<24x24xf32>
    %cst_66 = arith.constant -1.000000e+30 : f32
    %127 = vector.broadcast %cst_66 : f32 to vector<24x24xf32>
    %128 = arith.select %54, %126, %127 : vector<24x24xi1>, vector<24x24xf32>
    %cst_67 = arith.constant dense<0xFF800000> : vector<24xf32>
    %129 = vector.multi_reduction <maximumf>, %128, %cst_67 [1] : vector<24x24xf32> to vector<24xf32>
    %130 = vector.shape_cast %129 : vector<24xf32> to vector<24x1xf32>
    %131 = vector.broadcast %130 : vector<24x1xf32> to vector<24x24xf32>
    %132 = arith.subf %128, %131 : vector<24x24xf32>
    %133 = math.exp %132 : vector<24x24xf32>
    %cst_68 = arith.constant dense<0.000000e+00> : vector<24xf32>
    %134 = vector.multi_reduction <add>, %133, %cst_68 [1] : vector<24x24xf32> to vector<24xf32>
    %135 = vector.shape_cast %134 : vector<24xf32> to vector<24x1xf32>
    %136 = tpu.reciprocal %135 {approx = true} : vector<24x1xf32> -> vector<24x1xf32>
    %137 = vector.broadcast %136 : vector<24x1xf32> to vector<24x24xf32>
    %138 = arith.mulf %133, %137 : vector<24x24xf32>
    %cst_69 = arith.constant dense<0.000000e+00> : vector<24x64xf32>
    %139 = tpu.matmul %138, %123, %cst_69 {dimension_numbers = #tpu.dot_dimension_numbers<[1], [1], [0], [0], [0, 0, 1, 0], [], []>} : vector<24x24xf32>, vector<64x24xf32>, vector<24x64xf32> -> vector<24x64xf32>
    %140 = vector.extract_strided_slice %78 {offsets = [0, 384], sizes = [24, 64], strides = [1, 1]} : vector<24x1024xf32> to vector<24x64xf32>
    %141 = vector.extract_strided_slice %80 {offsets = [192, 0], sizes = [64, 24], strides = [1, 1]} : vector<512x24xf32> to vector<64x24xf32>
    %142 = vector.extract_strided_slice %82 {offsets = [192, 0], sizes = [64, 24], strides = [1, 1]} : vector<512x24xf32> to vector<64x24xf32>
    %cst_70 = arith.constant dense<0.000000e+00> : vector<24x24xf32>
    %143 = tpu.matmul %140, %141, %cst_70 {dimension_numbers = #tpu.dot_dimension_numbers<[1], [0], [0], [1], [0, 0, 1, 1], [], []>} : vector<24x64xf32>, vector<64x24xf32>, vector<24x24xf32> -> vector<24x24xf32>
    %cst_71 = arith.constant 1.250000e-01 : f32
    %144 = vector.broadcast %cst_71 : f32 to vector<24x24xf32>
    %145 = arith.mulf %143, %144 : vector<24x24xf32>
    %cst_72 = arith.constant -1.000000e+30 : f32
    %146 = vector.broadcast %cst_72 : f32 to vector<24x24xf32>
    %147 = arith.select %54, %145, %146 : vector<24x24xi1>, vector<24x24xf32>
    %cst_73 = arith.constant dense<0xFF800000> : vector<24xf32>
    %148 = vector.multi_reduction <maximumf>, %147, %cst_73 [1] : vector<24x24xf32> to vector<24xf32>
    %149 = vector.shape_cast %148 : vector<24xf32> to vector<24x1xf32>
    %150 = vector.broadcast %149 : vector<24x1xf32> to vector<24x24xf32>
    %151 = arith.subf %147, %150 : vector<24x24xf32>
    %152 = math.exp %151 : vector<24x24xf32>
    %cst_74 = arith.constant dense<0.000000e+00> : vector<24xf32>
    %153 = vector.multi_reduction <add>, %152, %cst_74 [1] : vector<24x24xf32> to vector<24xf32>
    %154 = vector.shape_cast %153 : vector<24xf32> to vector<24x1xf32>
    %155 = tpu.reciprocal %154 {approx = true} : vector<24x1xf32> -> vector<24x1xf32>
    %156 = vector.broadcast %155 : vector<24x1xf32> to vector<24x24xf32>
    %157 = arith.mulf %152, %156 : vector<24x24xf32>
    %cst_75 = arith.constant dense<0.000000e+00> : vector<24x64xf32>
    %158 = tpu.matmul %157, %142, %cst_75 {dimension_numbers = #tpu.dot_dimension_numbers<[1], [1], [0], [0], [0, 0, 1, 0], [], []>} : vector<24x24xf32>, vector<64x24xf32>, vector<24x64xf32> -> vector<24x64xf32>
    %159 = vector.extract_strided_slice %78 {offsets = [0, 512], sizes = [24, 64], strides = [1, 1]} : vector<24x1024xf32> to vector<24x64xf32>
    %160 = vector.extract_strided_slice %80 {offsets = [256, 0], sizes = [64, 24], strides = [1, 1]} : vector<512x24xf32> to vector<64x24xf32>
    %161 = vector.extract_strided_slice %82 {offsets = [256, 0], sizes = [64, 24], strides = [1, 1]} : vector<512x24xf32> to vector<64x24xf32>
    %cst_76 = arith.constant dense<0.000000e+00> : vector<24x24xf32>
    %162 = tpu.matmul %159, %160, %cst_76 {dimension_numbers = #tpu.dot_dimension_numbers<[1], [0], [0], [1], [0, 0, 1, 1], [], []>} : vector<24x64xf32>, vector<64x24xf32>, vector<24x24xf32> -> vector<24x24xf32>
    %cst_77 = arith.constant 1.250000e-01 : f32
    %163 = vector.broadcast %cst_77 : f32 to vector<24x24xf32>
    %164 = arith.mulf %162, %163 : vector<24x24xf32>
    %cst_78 = arith.constant -1.000000e+30 : f32
    %165 = vector.broadcast %cst_78 : f32 to vector<24x24xf32>
    %166 = arith.select %54, %164, %165 : vector<24x24xi1>, vector<24x24xf32>
    %cst_79 = arith.constant dense<0xFF800000> : vector<24xf32>
    %167 = vector.multi_reduction <maximumf>, %166, %cst_79 [1] : vector<24x24xf32> to vector<24xf32>
    %168 = vector.shape_cast %167 : vector<24xf32> to vector<24x1xf32>
    %169 = vector.broadcast %168 : vector<24x1xf32> to vector<24x24xf32>
    %170 = arith.subf %166, %169 : vector<24x24xf32>
    %171 = math.exp %170 : vector<24x24xf32>
    %cst_80 = arith.constant dense<0.000000e+00> : vector<24xf32>
    %172 = vector.multi_reduction <add>, %171, %cst_80 [1] : vector<24x24xf32> to vector<24xf32>
    %173 = vector.shape_cast %172 : vector<24xf32> to vector<24x1xf32>
    %174 = tpu.reciprocal %173 {approx = true} : vector<24x1xf32> -> vector<24x1xf32>
    %175 = vector.broadcast %174 : vector<24x1xf32> to vector<24x24xf32>
    %176 = arith.mulf %171, %175 : vector<24x24xf32>
    %cst_81 = arith.constant dense<0.000000e+00> : vector<24x64xf32>
    %177 = tpu.matmul %176, %161, %cst_81 {dimension_numbers = #tpu.dot_dimension_numbers<[1], [1], [0], [0], [0, 0, 1, 0], [], []>} : vector<24x24xf32>, vector<64x24xf32>, vector<24x64xf32> -> vector<24x64xf32>
    %178 = vector.extract_strided_slice %78 {offsets = [0, 640], sizes = [24, 64], strides = [1, 1]} : vector<24x1024xf32> to vector<24x64xf32>
    %179 = vector.extract_strided_slice %80 {offsets = [320, 0], sizes = [64, 24], strides = [1, 1]} : vector<512x24xf32> to vector<64x24xf32>
    %180 = vector.extract_strided_slice %82 {offsets = [320, 0], sizes = [64, 24], strides = [1, 1]} : vector<512x24xf32> to vector<64x24xf32>
    %cst_82 = arith.constant dense<0.000000e+00> : vector<24x24xf32>
    %181 = tpu.matmul %178, %179, %cst_82 {dimension_numbers = #tpu.dot_dimension_numbers<[1], [0], [0], [1], [0, 0, 1, 1], [], []>} : vector<24x64xf32>, vector<64x24xf32>, vector<24x24xf32> -> vector<24x24xf32>
    %cst_83 = arith.constant 1.250000e-01 : f32
    %182 = vector.broadcast %cst_83 : f32 to vector<24x24xf32>
    %183 = arith.mulf %181, %182 : vector<24x24xf32>
    %cst_84 = arith.constant -1.000000e+30 : f32
    %184 = vector.broadcast %cst_84 : f32 to vector<24x24xf32>
    %185 = arith.select %54, %183, %184 : vector<24x24xi1>, vector<24x24xf32>
    %cst_85 = arith.constant dense<0xFF800000> : vector<24xf32>
    %186 = vector.multi_reduction <maximumf>, %185, %cst_85 [1] : vector<24x24xf32> to vector<24xf32>
    %187 = vector.shape_cast %186 : vector<24xf32> to vector<24x1xf32>
    %188 = vector.broadcast %187 : vector<24x1xf32> to vector<24x24xf32>
    %189 = arith.subf %185, %188 : vector<24x24xf32>
    %190 = math.exp %189 : vector<24x24xf32>
    %cst_86 = arith.constant dense<0.000000e+00> : vector<24xf32>
    %191 = vector.multi_reduction <add>, %190, %cst_86 [1] : vector<24x24xf32> to vector<24xf32>
    %192 = vector.shape_cast %191 : vector<24xf32> to vector<24x1xf32>
    %193 = tpu.reciprocal %192 {approx = true} : vector<24x1xf32> -> vector<24x1xf32>
    %194 = vector.broadcast %193 : vector<24x1xf32> to vector<24x24xf32>
    %195 = arith.mulf %190, %194 : vector<24x24xf32>
    %cst_87 = arith.constant dense<0.000000e+00> : vector<24x64xf32>
    %196 = tpu.matmul %195, %180, %cst_87 {dimension_numbers = #tpu.dot_dimension_numbers<[1], [1], [0], [0], [0, 0, 1, 0], [], []>} : vector<24x24xf32>, vector<64x24xf32>, vector<24x64xf32> -> vector<24x64xf32>
    %197 = vector.extract_strided_slice %78 {offsets = [0, 768], sizes = [24, 64], strides = [1, 1]} : vector<24x1024xf32> to vector<24x64xf32>
    %198 = vector.extract_strided_slice %80 {offsets = [384, 0], sizes = [64, 24], strides = [1, 1]} : vector<512x24xf32> to vector<64x24xf32>
    %199 = vector.extract_strided_slice %82 {offsets = [384, 0], sizes = [64, 24], strides = [1, 1]} : vector<512x24xf32> to vector<64x24xf32>
    %cst_88 = arith.constant dense<0.000000e+00> : vector<24x24xf32>
    %200 = tpu.matmul %197, %198, %cst_88 {dimension_numbers = #tpu.dot_dimension_numbers<[1], [0], [0], [1], [0, 0, 1, 1], [], []>} : vector<24x64xf32>, vector<64x24xf32>, vector<24x24xf32> -> vector<24x24xf32>
    %cst_89 = arith.constant 1.250000e-01 : f32
    %201 = vector.broadcast %cst_89 : f32 to vector<24x24xf32>
    %202 = arith.mulf %200, %201 : vector<24x24xf32>
    %cst_90 = arith.constant -1.000000e+30 : f32
    %203 = vector.broadcast %cst_90 : f32 to vector<24x24xf32>
    %204 = arith.select %54, %202, %203 : vector<24x24xi1>, vector<24x24xf32>
    %cst_91 = arith.constant dense<0xFF800000> : vector<24xf32>
    %205 = vector.multi_reduction <maximumf>, %204, %cst_91 [1] : vector<24x24xf32> to vector<24xf32>
    %206 = vector.shape_cast %205 : vector<24xf32> to vector<24x1xf32>
    %207 = vector.broadcast %206 : vector<24x1xf32> to vector<24x24xf32>
    %208 = arith.subf %204, %207 : vector<24x24xf32>
    %209 = math.exp %208 : vector<24x24xf32>
    %cst_92 = arith.constant dense<0.000000e+00> : vector<24xf32>
    %210 = vector.multi_reduction <add>, %209, %cst_92 [1] : vector<24x24xf32> to vector<24xf32>
    %211 = vector.shape_cast %210 : vector<24xf32> to vector<24x1xf32>
    %212 = tpu.reciprocal %211 {approx = true} : vector<24x1xf32> -> vector<24x1xf32>
    %213 = vector.broadcast %212 : vector<24x1xf32> to vector<24x24xf32>
    %214 = arith.mulf %209, %213 : vector<24x24xf32>
    %cst_93 = arith.constant dense<0.000000e+00> : vector<24x64xf32>
    %215 = tpu.matmul %214, %199, %cst_93 {dimension_numbers = #tpu.dot_dimension_numbers<[1], [1], [0], [0], [0, 0, 1, 0], [], []>} : vector<24x24xf32>, vector<64x24xf32>, vector<24x64xf32> -> vector<24x64xf32>
    %216 = vector.extract_strided_slice %78 {offsets = [0, 896], sizes = [24, 64], strides = [1, 1]} : vector<24x1024xf32> to vector<24x64xf32>
    %217 = vector.extract_strided_slice %80 {offsets = [448, 0], sizes = [64, 24], strides = [1, 1]} : vector<512x24xf32> to vector<64x24xf32>
    %218 = vector.extract_strided_slice %82 {offsets = [448, 0], sizes = [64, 24], strides = [1, 1]} : vector<512x24xf32> to vector<64x24xf32>
    %cst_94 = arith.constant dense<0.000000e+00> : vector<24x24xf32>
    %219 = tpu.matmul %216, %217, %cst_94 {dimension_numbers = #tpu.dot_dimension_numbers<[1], [0], [0], [1], [0, 0, 1, 1], [], []>} : vector<24x64xf32>, vector<64x24xf32>, vector<24x24xf32> -> vector<24x24xf32>
    %cst_95 = arith.constant 1.250000e-01 : f32
    %220 = vector.broadcast %cst_95 : f32 to vector<24x24xf32>
    %221 = arith.mulf %219, %220 : vector<24x24xf32>
    %cst_96 = arith.constant -1.000000e+30 : f32
    %222 = vector.broadcast %cst_96 : f32 to vector<24x24xf32>
    %223 = arith.select %54, %221, %222 : vector<24x24xi1>, vector<24x24xf32>
    %cst_97 = arith.constant dense<0xFF800000> : vector<24xf32>
    %224 = vector.multi_reduction <maximumf>, %223, %cst_97 [1] : vector<24x24xf32> to vector<24xf32>
    %225 = vector.shape_cast %224 : vector<24xf32> to vector<24x1xf32>
    %226 = vector.broadcast %225 : vector<24x1xf32> to vector<24x24xf32>
    %227 = arith.subf %223, %226 : vector<24x24xf32>
    %228 = math.exp %227 : vector<24x24xf32>
    %cst_98 = arith.constant dense<0.000000e+00> : vector<24xf32>
    %229 = vector.multi_reduction <add>, %228, %cst_98 [1] : vector<24x24xf32> to vector<24xf32>
    %230 = vector.shape_cast %229 : vector<24xf32> to vector<24x1xf32>
    %231 = tpu.reciprocal %230 {approx = true} : vector<24x1xf32> -> vector<24x1xf32>
    %232 = vector.broadcast %231 : vector<24x1xf32> to vector<24x24xf32>
    %233 = arith.mulf %228, %232 : vector<24x24xf32>
    %cst_99 = arith.constant dense<0.000000e+00> : vector<24x64xf32>
    %234 = tpu.matmul %233, %218, %cst_99 {dimension_numbers = #tpu.dot_dimension_numbers<[1], [1], [0], [0], [0, 0, 1, 0], [], []>} : vector<24x24xf32>, vector<64x24xf32>, vector<24x64xf32> -> vector<24x64xf32>
    %235 = tpu.concatenate %101, %120, %139, %158, %177, %196, %215, %234 in 1 : vector<24x64xf32>, vector<24x64xf32>, vector<24x64xf32>, vector<24x64xf32>, vector<24x64xf32>, vector<24x64xf32>, vector<24x64xf32>, vector<24x64xf32> -> vector<24x512xf32>
    %c0_100 = arith.constant 0 : index
    %c0_101 = arith.constant 0 : index
    %236 = vector.load %arg16[%c0_100, %c0_101] : memref<512x64xf32, #tpu.memory_space<vmem>>, vector<512x64xf32>
    %cst_102 = arith.constant dense<0.000000e+00> : vector<24x64xf32>
    %237 = tpu.matmul %235, %236, %cst_102 {dimension_numbers = #tpu.dot_dimension_numbers<[1], [0], [0], [1], [0, 0, 1, 1], [], []>} : vector<24x512xf32>, vector<512x64xf32>, vector<24x64xf32> -> vector<24x64xf32>
    %238 = arith.addf %51, %237 : vector<24x64xf32>
    %c0_103 = arith.constant 0 : index
    %c0_104 = arith.constant 0 : index
    %239 = vector.load %arg17[%c0_103, %c0_104] : memref<1x64xf32, #tpu.memory_space<vmem>>, vector<1x64xf32>
    %240 = vector.broadcast %239 : vector<1x64xf32> to vector<24x64xf32>
    %241 = arith.addf %238, %240 : vector<24x64xf32>
    %c0_105 = arith.constant 0 : index
    %c0_106 = arith.constant 0 : index
    %242 = vector.load %arg18[%c0_105, %c0_106] : memref<1x64xf32, #tpu.memory_space<vmem>>, vector<1x64xf32>
    %c0_107 = arith.constant 0 : index
    %c0_108 = arith.constant 0 : index
    %243 = vector.load %arg19[%c0_107, %c0_108] : memref<1x64xf32, #tpu.memory_space<vmem>>, vector<1x64xf32>
    %cst_109 = arith.constant dense<0.000000e+00> : vector<24xf32>
    %244 = vector.multi_reduction <add>, %241, %cst_109 [1] : vector<24x64xf32> to vector<24xf32>
    %245 = vector.shape_cast %244 : vector<24xf32> to vector<24x1xf32>
    %cst_110 = arith.constant 6.400000e+01 : f32
    %246 = vector.broadcast %cst_110 : f32 to vector<24x1xf32>
    %247 = arith.divf %245, %246 : vector<24x1xf32>
    %248 = vector.broadcast %247 : vector<24x1xf32> to vector<24x64xf32>
    %249 = arith.subf %241, %248 : vector<24x64xf32>
    %250 = arith.mulf %249, %249 : vector<24x64xf32>
    %cst_111 = arith.constant dense<0.000000e+00> : vector<24xf32>
    %251 = vector.multi_reduction <add>, %250, %cst_111 [1] : vector<24x64xf32> to vector<24xf32>
    %252 = vector.shape_cast %251 : vector<24xf32> to vector<24x1xf32>
    %cst_112 = arith.constant 6.400000e+01 : f32
    %253 = vector.broadcast %cst_112 : f32 to vector<24x1xf32>
    %254 = arith.divf %252, %253 : vector<24x1xf32>
    %cst_113 = arith.constant 9.99999974E-6 : f32
    %255 = vector.broadcast %cst_113 : f32 to vector<24x1xf32>
    %256 = arith.addf %254, %255 : vector<24x1xf32>
    %257 = math.rsqrt %256 : vector<24x1xf32>
    %258 = vector.broadcast %257 : vector<24x1xf32> to vector<24x64xf32>
    %259 = arith.mulf %249, %258 : vector<24x64xf32>
    %260 = vector.broadcast %242 : vector<1x64xf32> to vector<24x64xf32>
    %261 = arith.mulf %259, %260 : vector<24x64xf32>
    %262 = vector.broadcast %243 : vector<1x64xf32> to vector<24x64xf32>
    %263 = arith.addf %261, %262 : vector<24x64xf32>
    %c0_114 = arith.constant 0 : index
    %c0_115 = arith.constant 0 : index
    %264 = vector.load %arg20[%c0_114, %c0_115] : memref<64x12xf32, #tpu.memory_space<vmem>>, vector<64x12xf32>
    %cst_116 = arith.constant dense<0.000000e+00> : vector<24x12xf32>
    %265 = tpu.matmul %263, %264, %cst_116 {dimension_numbers = #tpu.dot_dimension_numbers<[1], [0], [0], [1], [0, 0, 1, 1], [], []>} : vector<24x64xf32>, vector<64x12xf32>, vector<24x12xf32> -> vector<24x12xf32>
    %c0_117 = arith.constant 0 : index
    %c0_118 = arith.constant 0 : index
    %266 = vector.load %arg21[%c0_117, %c0_118] : memref<1x12xf32, #tpu.memory_space<vmem>>, vector<1x12xf32>
    %267 = vector.broadcast %266 : vector<1x12xf32> to vector<24x12xf32>
    %268 = arith.addf %265, %267 : vector<24x12xf32>
    %cst_119 = arith.constant 5.000000e-01 : f32
    %269 = vector.broadcast %cst_119 : f32 to vector<24x12xf32>
    %270 = arith.mulf %269, %268 : vector<24x12xf32>
    %cst_120 = arith.constant 4.471500e-02 : f32
    %271 = vector.broadcast %cst_120 : f32 to vector<24x12xf32>
    %272 = arith.mulf %271, %268 : vector<24x12xf32>
    %273 = arith.mulf %272, %268 : vector<24x12xf32>
    %274 = arith.mulf %273, %268 : vector<24x12xf32>
    %275 = arith.addf %268, %274 : vector<24x12xf32>
    %cst_121 = arith.constant 0.797884583 : f32
    %276 = vector.broadcast %cst_121 : f32 to vector<24x12xf32>
    %277 = arith.mulf %276, %275 : vector<24x12xf32>
    %278 = math.tanh %277 : vector<24x12xf32>
    %cst_122 = arith.constant 1.000000e+00 : f32
    %279 = vector.broadcast %cst_122 : f32 to vector<24x12xf32>
    %280 = arith.addf %279, %278 : vector<24x12xf32>
    %281 = arith.mulf %270, %280 : vector<24x12xf32>
    %c0_123 = arith.constant 0 : index
    %c0_124 = arith.constant 0 : index
    %282 = vector.load %arg22[%c0_123, %c0_124] : memref<12x64xf32, #tpu.memory_space<vmem>>, vector<12x64xf32>
    %cst_125 = arith.constant dense<0.000000e+00> : vector<24x64xf32>
    %283 = tpu.matmul %281, %282, %cst_125 {dimension_numbers = #tpu.dot_dimension_numbers<[1], [0], [0], [1], [0, 0, 1, 1], [], []>} : vector<24x12xf32>, vector<12x64xf32>, vector<24x64xf32> -> vector<24x64xf32>
    %284 = arith.addf %241, %283 : vector<24x64xf32>
    %c0_126 = arith.constant 0 : index
    %c0_127 = arith.constant 0 : index
    %285 = vector.load %arg23[%c0_126, %c0_127] : memref<1x64xf32, #tpu.memory_space<vmem>>, vector<1x64xf32>
    %286 = vector.broadcast %285 : vector<1x64xf32> to vector<24x64xf32>
    %287 = arith.addf %284, %286 : vector<24x64xf32>
    %c0_128 = arith.constant 0 : index
    %c0_129 = arith.constant 0 : index
    %288 = vector.load %arg24[%c0_128, %c0_129] : memref<1x64xf32, #tpu.memory_space<vmem>>, vector<1x64xf32>
    %c0_130 = arith.constant 0 : index
    %c0_131 = arith.constant 0 : index
    %289 = vector.load %arg25[%c0_130, %c0_131] : memref<1x64xf32, #tpu.memory_space<vmem>>, vector<1x64xf32>
    %cst_132 = arith.constant dense<0.000000e+00> : vector<24xf32>
    %290 = vector.multi_reduction <add>, %287, %cst_132 [1] : vector<24x64xf32> to vector<24xf32>
    %291 = vector.shape_cast %290 : vector<24xf32> to vector<24x1xf32>
    %cst_133 = arith.constant 6.400000e+01 : f32
    %292 = vector.broadcast %cst_133 : f32 to vector<24x1xf32>
    %293 = arith.divf %291, %292 : vector<24x1xf32>
    %294 = vector.broadcast %293 : vector<24x1xf32> to vector<24x64xf32>
    %295 = arith.subf %287, %294 : vector<24x64xf32>
    %296 = arith.mulf %295, %295 : vector<24x64xf32>
    %cst_134 = arith.constant dense<0.000000e+00> : vector<24xf32>
    %297 = vector.multi_reduction <add>, %296, %cst_134 [1] : vector<24x64xf32> to vector<24xf32>
    %298 = vector.shape_cast %297 : vector<24xf32> to vector<24x1xf32>
    %cst_135 = arith.constant 6.400000e+01 : f32
    %299 = vector.broadcast %cst_135 : f32 to vector<24x1xf32>
    %300 = arith.divf %298, %299 : vector<24x1xf32>
    %cst_136 = arith.constant 9.99999974E-6 : f32
    %301 = vector.broadcast %cst_136 : f32 to vector<24x1xf32>
    %302 = arith.addf %300, %301 : vector<24x1xf32>
    %303 = math.rsqrt %302 : vector<24x1xf32>
    %304 = vector.broadcast %303 : vector<24x1xf32> to vector<24x64xf32>
    %305 = arith.mulf %295, %304 : vector<24x64xf32>
    %306 = vector.broadcast %288 : vector<1x64xf32> to vector<24x64xf32>
    %307 = arith.mulf %305, %306 : vector<24x64xf32>
    %308 = vector.broadcast %289 : vector<1x64xf32> to vector<24x64xf32>
    %309 = arith.addf %307, %308 : vector<24x64xf32>
    %c0_137 = arith.constant 0 : index
    %c0_138 = arith.constant 0 : index
    %310 = vector.load %arg26[%c0_137, %c0_138] : memref<64x1024xf32, #tpu.memory_space<vmem>>, vector<64x1024xf32>
    %cst_139 = arith.constant dense<0.000000e+00> : vector<24x1024xf32>
    %311 = tpu.matmul %309, %310, %cst_139 {dimension_numbers = #tpu.dot_dimension_numbers<[1], [0], [0], [1], [0, 0, 1, 1], [], []>} : vector<24x64xf32>, vector<64x1024xf32>, vector<24x1024xf32> -> vector<24x1024xf32>
    %c0_140 = arith.constant 0 : index
    %c0_141 = arith.constant 0 : index
    %312 = vector.load %arg27[%c0_140, %c0_141] : memref<512x64xf32, #tpu.memory_space<vmem>>, vector<512x64xf32>
    %cst_142 = arith.constant dense<0.000000e+00> : vector<512x24xf32>
    %313 = tpu.matmul %312, %309, %cst_142 {dimension_numbers = #tpu.dot_dimension_numbers<[1], [1], [0], [0], [0, 0, 1, 0], [], []>} : vector<512x64xf32>, vector<24x64xf32>, vector<512x24xf32> -> vector<512x24xf32>
    %c0_143 = arith.constant 0 : index
    %c0_144 = arith.constant 0 : index
    %314 = vector.load %arg28[%c0_143, %c0_144] : memref<512x64xf32, #tpu.memory_space<vmem>>, vector<512x64xf32>
    %cst_145 = arith.constant dense<0.000000e+00> : vector<512x24xf32>
    %315 = tpu.matmul %314, %309, %cst_145 {dimension_numbers = #tpu.dot_dimension_numbers<[1], [1], [0], [0], [0, 0, 1, 0], [], []>} : vector<512x64xf32>, vector<24x64xf32>, vector<512x24xf32> -> vector<512x24xf32>
    %316 = vector.extract_strided_slice %311 {offsets = [0, 0], sizes = [24, 64], strides = [1, 1]} : vector<24x1024xf32> to vector<24x64xf32>
    %317 = vector.extract_strided_slice %313 {offsets = [0, 0], sizes = [64, 24], strides = [1, 1]} : vector<512x24xf32> to vector<64x24xf32>
    %318 = vector.extract_strided_slice %315 {offsets = [0, 0], sizes = [64, 24], strides = [1, 1]} : vector<512x24xf32> to vector<64x24xf32>
    %cst_146 = arith.constant dense<0.000000e+00> : vector<24x24xf32>
    %319 = tpu.matmul %316, %317, %cst_146 {dimension_numbers = #tpu.dot_dimension_numbers<[1], [0], [0], [1], [0, 0, 1, 1], [], []>} : vector<24x64xf32>, vector<64x24xf32>, vector<24x24xf32> -> vector<24x24xf32>
    %cst_147 = arith.constant 1.250000e-01 : f32
    %320 = vector.broadcast %cst_147 : f32 to vector<24x24xf32>
    %321 = arith.mulf %319, %320 : vector<24x24xf32>
    %cst_148 = arith.constant -1.000000e+30 : f32
    %322 = vector.broadcast %cst_148 : f32 to vector<24x24xf32>
    %323 = arith.select %54, %321, %322 : vector<24x24xi1>, vector<24x24xf32>
    %cst_149 = arith.constant dense<0xFF800000> : vector<24xf32>
    %324 = vector.multi_reduction <maximumf>, %323, %cst_149 [1] : vector<24x24xf32> to vector<24xf32>
    %325 = vector.shape_cast %324 : vector<24xf32> to vector<24x1xf32>
    %326 = vector.broadcast %325 : vector<24x1xf32> to vector<24x24xf32>
    %327 = arith.subf %323, %326 : vector<24x24xf32>
    %328 = math.exp %327 : vector<24x24xf32>
    %cst_150 = arith.constant dense<0.000000e+00> : vector<24xf32>
    %329 = vector.multi_reduction <add>, %328, %cst_150 [1] : vector<24x24xf32> to vector<24xf32>
    %330 = vector.shape_cast %329 : vector<24xf32> to vector<24x1xf32>
    %331 = tpu.reciprocal %330 {approx = true} : vector<24x1xf32> -> vector<24x1xf32>
    %332 = vector.broadcast %331 : vector<24x1xf32> to vector<24x24xf32>
    %333 = arith.mulf %328, %332 : vector<24x24xf32>
    %cst_151 = arith.constant dense<0.000000e+00> : vector<24x64xf32>
    %334 = tpu.matmul %333, %318, %cst_151 {dimension_numbers = #tpu.dot_dimension_numbers<[1], [1], [0], [0], [0, 0, 1, 0], [], []>} : vector<24x24xf32>, vector<64x24xf32>, vector<24x64xf32> -> vector<24x64xf32>
    %335 = vector.extract_strided_slice %311 {offsets = [0, 128], sizes = [24, 64], strides = [1, 1]} : vector<24x1024xf32> to vector<24x64xf32>
    %336 = vector.extract_strided_slice %313 {offsets = [64, 0], sizes = [64, 24], strides = [1, 1]} : vector<512x24xf32> to vector<64x24xf32>
    %337 = vector.extract_strided_slice %315 {offsets = [64, 0], sizes = [64, 24], strides = [1, 1]} : vector<512x24xf32> to vector<64x24xf32>
    %cst_152 = arith.constant dense<0.000000e+00> : vector<24x24xf32>
    %338 = tpu.matmul %335, %336, %cst_152 {dimension_numbers = #tpu.dot_dimension_numbers<[1], [0], [0], [1], [0, 0, 1, 1], [], []>} : vector<24x64xf32>, vector<64x24xf32>, vector<24x24xf32> -> vector<24x24xf32>
    %cst_153 = arith.constant 1.250000e-01 : f32
    %339 = vector.broadcast %cst_153 : f32 to vector<24x24xf32>
    %340 = arith.mulf %338, %339 : vector<24x24xf32>
    %cst_154 = arith.constant -1.000000e+30 : f32
    %341 = vector.broadcast %cst_154 : f32 to vector<24x24xf32>
    %342 = arith.select %54, %340, %341 : vector<24x24xi1>, vector<24x24xf32>
    %cst_155 = arith.constant dense<0xFF800000> : vector<24xf32>
    %343 = vector.multi_reduction <maximumf>, %342, %cst_155 [1] : vector<24x24xf32> to vector<24xf32>
    %344 = vector.shape_cast %343 : vector<24xf32> to vector<24x1xf32>
    %345 = vector.broadcast %344 : vector<24x1xf32> to vector<24x24xf32>
    %346 = arith.subf %342, %345 : vector<24x24xf32>
    %347 = math.exp %346 : vector<24x24xf32>
    %cst_156 = arith.constant dense<0.000000e+00> : vector<24xf32>
    %348 = vector.multi_reduction <add>, %347, %cst_156 [1] : vector<24x24xf32> to vector<24xf32>
    %349 = vector.shape_cast %348 : vector<24xf32> to vector<24x1xf32>
    %350 = tpu.reciprocal %349 {approx = true} : vector<24x1xf32> -> vector<24x1xf32>
    %351 = vector.broadcast %350 : vector<24x1xf32> to vector<24x24xf32>
    %352 = arith.mulf %347, %351 : vector<24x24xf32>
    %cst_157 = arith.constant dense<0.000000e+00> : vector<24x64xf32>
    %353 = tpu.matmul %352, %337, %cst_157 {dimension_numbers = #tpu.dot_dimension_numbers<[1], [1], [0], [0], [0, 0, 1, 0], [], []>} : vector<24x24xf32>, vector<64x24xf32>, vector<24x64xf32> -> vector<24x64xf32>
    %354 = vector.extract_strided_slice %311 {offsets = [0, 256], sizes = [24, 64], strides = [1, 1]} : vector<24x1024xf32> to vector<24x64xf32>
    %355 = vector.extract_strided_slice %313 {offsets = [128, 0], sizes = [64, 24], strides = [1, 1]} : vector<512x24xf32> to vector<64x24xf32>
    %356 = vector.extract_strided_slice %315 {offsets = [128, 0], sizes = [64, 24], strides = [1, 1]} : vector<512x24xf32> to vector<64x24xf32>
    %cst_158 = arith.constant dense<0.000000e+00> : vector<24x24xf32>
    %357 = tpu.matmul %354, %355, %cst_158 {dimension_numbers = #tpu.dot_dimension_numbers<[1], [0], [0], [1], [0, 0, 1, 1], [], []>} : vector<24x64xf32>, vector<64x24xf32>, vector<24x24xf32> -> vector<24x24xf32>
    %cst_159 = arith.constant 1.250000e-01 : f32
    %358 = vector.broadcast %cst_159 : f32 to vector<24x24xf32>
    %359 = arith.mulf %357, %358 : vector<24x24xf32>
    %cst_160 = arith.constant -1.000000e+30 : f32
    %360 = vector.broadcast %cst_160 : f32 to vector<24x24xf32>
    %361 = arith.select %54, %359, %360 : vector<24x24xi1>, vector<24x24xf32>
    %cst_161 = arith.constant dense<0xFF800000> : vector<24xf32>
    %362 = vector.multi_reduction <maximumf>, %361, %cst_161 [1] : vector<24x24xf32> to vector<24xf32>
    %363 = vector.shape_cast %362 : vector<24xf32> to vector<24x1xf32>
    %364 = vector.broadcast %363 : vector<24x1xf32> to vector<24x24xf32>
    %365 = arith.subf %361, %364 : vector<24x24xf32>
    %366 = math.exp %365 : vector<24x24xf32>
    %cst_162 = arith.constant dense<0.000000e+00> : vector<24xf32>
    %367 = vector.multi_reduction <add>, %366, %cst_162 [1] : vector<24x24xf32> to vector<24xf32>
    %368 = vector.shape_cast %367 : vector<24xf32> to vector<24x1xf32>
    %369 = tpu.reciprocal %368 {approx = true} : vector<24x1xf32> -> vector<24x1xf32>
    %370 = vector.broadcast %369 : vector<24x1xf32> to vector<24x24xf32>
    %371 = arith.mulf %366, %370 : vector<24x24xf32>
    %cst_163 = arith.constant dense<0.000000e+00> : vector<24x64xf32>
    %372 = tpu.matmul %371, %356, %cst_163 {dimension_numbers = #tpu.dot_dimension_numbers<[1], [1], [0], [0], [0, 0, 1, 0], [], []>} : vector<24x24xf32>, vector<64x24xf32>, vector<24x64xf32> -> vector<24x64xf32>
    %373 = vector.extract_strided_slice %311 {offsets = [0, 384], sizes = [24, 64], strides = [1, 1]} : vector<24x1024xf32> to vector<24x64xf32>
    %374 = vector.extract_strided_slice %313 {offsets = [192, 0], sizes = [64, 24], strides = [1, 1]} : vector<512x24xf32> to vector<64x24xf32>
    %375 = vector.extract_strided_slice %315 {offsets = [192, 0], sizes = [64, 24], strides = [1, 1]} : vector<512x24xf32> to vector<64x24xf32>
    %cst_164 = arith.constant dense<0.000000e+00> : vector<24x24xf32>
    %376 = tpu.matmul %373, %374, %cst_164 {dimension_numbers = #tpu.dot_dimension_numbers<[1], [0], [0], [1], [0, 0, 1, 1], [], []>} : vector<24x64xf32>, vector<64x24xf32>, vector<24x24xf32> -> vector<24x24xf32>
    %cst_165 = arith.constant 1.250000e-01 : f32
    %377 = vector.broadcast %cst_165 : f32 to vector<24x24xf32>
    %378 = arith.mulf %376, %377 : vector<24x24xf32>
    %cst_166 = arith.constant -1.000000e+30 : f32
    %379 = vector.broadcast %cst_166 : f32 to vector<24x24xf32>
    %380 = arith.select %54, %378, %379 : vector<24x24xi1>, vector<24x24xf32>
    %cst_167 = arith.constant dense<0xFF800000> : vector<24xf32>
    %381 = vector.multi_reduction <maximumf>, %380, %cst_167 [1] : vector<24x24xf32> to vector<24xf32>
    %382 = vector.shape_cast %381 : vector<24xf32> to vector<24x1xf32>
    %383 = vector.broadcast %382 : vector<24x1xf32> to vector<24x24xf32>
    %384 = arith.subf %380, %383 : vector<24x24xf32>
    %385 = math.exp %384 : vector<24x24xf32>
    %cst_168 = arith.constant dense<0.000000e+00> : vector<24xf32>
    %386 = vector.multi_reduction <add>, %385, %cst_168 [1] : vector<24x24xf32> to vector<24xf32>
    %387 = vector.shape_cast %386 : vector<24xf32> to vector<24x1xf32>
    %388 = tpu.reciprocal %387 {approx = true} : vector<24x1xf32> -> vector<24x1xf32>
    %389 = vector.broadcast %388 : vector<24x1xf32> to vector<24x24xf32>
    %390 = arith.mulf %385, %389 : vector<24x24xf32>
    %cst_169 = arith.constant dense<0.000000e+00> : vector<24x64xf32>
    %391 = tpu.matmul %390, %375, %cst_169 {dimension_numbers = #tpu.dot_dimension_numbers<[1], [1], [0], [0], [0, 0, 1, 0], [], []>} : vector<24x24xf32>, vector<64x24xf32>, vector<24x64xf32> -> vector<24x64xf32>
    %392 = vector.extract_strided_slice %311 {offsets = [0, 512], sizes = [24, 64], strides = [1, 1]} : vector<24x1024xf32> to vector<24x64xf32>
    %393 = vector.extract_strided_slice %313 {offsets = [256, 0], sizes = [64, 24], strides = [1, 1]} : vector<512x24xf32> to vector<64x24xf32>
    %394 = vector.extract_strided_slice %315 {offsets = [256, 0], sizes = [64, 24], strides = [1, 1]} : vector<512x24xf32> to vector<64x24xf32>
    %cst_170 = arith.constant dense<0.000000e+00> : vector<24x24xf32>
    %395 = tpu.matmul %392, %393, %cst_170 {dimension_numbers = #tpu.dot_dimension_numbers<[1], [0], [0], [1], [0, 0, 1, 1], [], []>} : vector<24x64xf32>, vector<64x24xf32>, vector<24x24xf32> -> vector<24x24xf32>
    %cst_171 = arith.constant 1.250000e-01 : f32
    %396 = vector.broadcast %cst_171 : f32 to vector<24x24xf32>
    %397 = arith.mulf %395, %396 : vector<24x24xf32>
    %cst_172 = arith.constant -1.000000e+30 : f32
    %398 = vector.broadcast %cst_172 : f32 to vector<24x24xf32>
    %399 = arith.select %54, %397, %398 : vector<24x24xi1>, vector<24x24xf32>
    %cst_173 = arith.constant dense<0xFF800000> : vector<24xf32>
    %400 = vector.multi_reduction <maximumf>, %399, %cst_173 [1] : vector<24x24xf32> to vector<24xf32>
    %401 = vector.shape_cast %400 : vector<24xf32> to vector<24x1xf32>
    %402 = vector.broadcast %401 : vector<24x1xf32> to vector<24x24xf32>
    %403 = arith.subf %399, %402 : vector<24x24xf32>
    %404 = math.exp %403 : vector<24x24xf32>
    %cst_174 = arith.constant dense<0.000000e+00> : vector<24xf32>
    %405 = vector.multi_reduction <add>, %404, %cst_174 [1] : vector<24x24xf32> to vector<24xf32>
    %406 = vector.shape_cast %405 : vector<24xf32> to vector<24x1xf32>
    %407 = tpu.reciprocal %406 {approx = true} : vector<24x1xf32> -> vector<24x1xf32>
    %408 = vector.broadcast %407 : vector<24x1xf32> to vector<24x24xf32>
    %409 = arith.mulf %404, %408 : vector<24x24xf32>
    %cst_175 = arith.constant dense<0.000000e+00> : vector<24x64xf32>
    %410 = tpu.matmul %409, %394, %cst_175 {dimension_numbers = #tpu.dot_dimension_numbers<[1], [1], [0], [0], [0, 0, 1, 0], [], []>} : vector<24x24xf32>, vector<64x24xf32>, vector<24x64xf32> -> vector<24x64xf32>
    %411 = vector.extract_strided_slice %311 {offsets = [0, 640], sizes = [24, 64], strides = [1, 1]} : vector<24x1024xf32> to vector<24x64xf32>
    %412 = vector.extract_strided_slice %313 {offsets = [320, 0], sizes = [64, 24], strides = [1, 1]} : vector<512x24xf32> to vector<64x24xf32>
    %413 = vector.extract_strided_slice %315 {offsets = [320, 0], sizes = [64, 24], strides = [1, 1]} : vector<512x24xf32> to vector<64x24xf32>
    %cst_176 = arith.constant dense<0.000000e+00> : vector<24x24xf32>
    %414 = tpu.matmul %411, %412, %cst_176 {dimension_numbers = #tpu.dot_dimension_numbers<[1], [0], [0], [1], [0, 0, 1, 1], [], []>} : vector<24x64xf32>, vector<64x24xf32>, vector<24x24xf32> -> vector<24x24xf32>
    %cst_177 = arith.constant 1.250000e-01 : f32
    %415 = vector.broadcast %cst_177 : f32 to vector<24x24xf32>
    %416 = arith.mulf %414, %415 : vector<24x24xf32>
    %cst_178 = arith.constant -1.000000e+30 : f32
    %417 = vector.broadcast %cst_178 : f32 to vector<24x24xf32>
    %418 = arith.select %54, %416, %417 : vector<24x24xi1>, vector<24x24xf32>
    %cst_179 = arith.constant dense<0xFF800000> : vector<24xf32>
    %419 = vector.multi_reduction <maximumf>, %418, %cst_179 [1] : vector<24x24xf32> to vector<24xf32>
    %420 = vector.shape_cast %419 : vector<24xf32> to vector<24x1xf32>
    %421 = vector.broadcast %420 : vector<24x1xf32> to vector<24x24xf32>
    %422 = arith.subf %418, %421 : vector<24x24xf32>
    %423 = math.exp %422 : vector<24x24xf32>
    %cst_180 = arith.constant dense<0.000000e+00> : vector<24xf32>
    %424 = vector.multi_reduction <add>, %423, %cst_180 [1] : vector<24x24xf32> to vector<24xf32>
    %425 = vector.shape_cast %424 : vector<24xf32> to vector<24x1xf32>
    %426 = tpu.reciprocal %425 {approx = true} : vector<24x1xf32> -> vector<24x1xf32>
    %427 = vector.broadcast %426 : vector<24x1xf32> to vector<24x24xf32>
    %428 = arith.mulf %423, %427 : vector<24x24xf32>
    %cst_181 = arith.constant dense<0.000000e+00> : vector<24x64xf32>
    %429 = tpu.matmul %428, %413, %cst_181 {dimension_numbers = #tpu.dot_dimension_numbers<[1], [1], [0], [0], [0, 0, 1, 0], [], []>} : vector<24x24xf32>, vector<64x24xf32>, vector<24x64xf32> -> vector<24x64xf32>
    %430 = vector.extract_strided_slice %311 {offsets = [0, 768], sizes = [24, 64], strides = [1, 1]} : vector<24x1024xf32> to vector<24x64xf32>
    %431 = vector.extract_strided_slice %313 {offsets = [384, 0], sizes = [64, 24], strides = [1, 1]} : vector<512x24xf32> to vector<64x24xf32>
    %432 = vector.extract_strided_slice %315 {offsets = [384, 0], sizes = [64, 24], strides = [1, 1]} : vector<512x24xf32> to vector<64x24xf32>
    %cst_182 = arith.constant dense<0.000000e+00> : vector<24x24xf32>
    %433 = tpu.matmul %430, %431, %cst_182 {dimension_numbers = #tpu.dot_dimension_numbers<[1], [0], [0], [1], [0, 0, 1, 1], [], []>} : vector<24x64xf32>, vector<64x24xf32>, vector<24x24xf32> -> vector<24x24xf32>
    %cst_183 = arith.constant 1.250000e-01 : f32
    %434 = vector.broadcast %cst_183 : f32 to vector<24x24xf32>
    %435 = arith.mulf %433, %434 : vector<24x24xf32>
    %cst_184 = arith.constant -1.000000e+30 : f32
    %436 = vector.broadcast %cst_184 : f32 to vector<24x24xf32>
    %437 = arith.select %54, %435, %436 : vector<24x24xi1>, vector<24x24xf32>
    %cst_185 = arith.constant dense<0xFF800000> : vector<24xf32>
    %438 = vector.multi_reduction <maximumf>, %437, %cst_185 [1] : vector<24x24xf32> to vector<24xf32>
    %439 = vector.shape_cast %438 : vector<24xf32> to vector<24x1xf32>
    %440 = vector.broadcast %439 : vector<24x1xf32> to vector<24x24xf32>
    %441 = arith.subf %437, %440 : vector<24x24xf32>
    %442 = math.exp %441 : vector<24x24xf32>
    %cst_186 = arith.constant dense<0.000000e+00> : vector<24xf32>
    %443 = vector.multi_reduction <add>, %442, %cst_186 [1] : vector<24x24xf32> to vector<24xf32>
    %444 = vector.shape_cast %443 : vector<24xf32> to vector<24x1xf32>
    %445 = tpu.reciprocal %444 {approx = true} : vector<24x1xf32> -> vector<24x1xf32>
    %446 = vector.broadcast %445 : vector<24x1xf32> to vector<24x24xf32>
    %447 = arith.mulf %442, %446 : vector<24x24xf32>
    %cst_187 = arith.constant dense<0.000000e+00> : vector<24x64xf32>
    %448 = tpu.matmul %447, %432, %cst_187 {dimension_numbers = #tpu.dot_dimension_numbers<[1], [1], [0], [0], [0, 0, 1, 0], [], []>} : vector<24x24xf32>, vector<64x24xf32>, vector<24x64xf32> -> vector<24x64xf32>
    %449 = vector.extract_strided_slice %311 {offsets = [0, 896], sizes = [24, 64], strides = [1, 1]} : vector<24x1024xf32> to vector<24x64xf32>
    %450 = vector.extract_strided_slice %313 {offsets = [448, 0], sizes = [64, 24], strides = [1, 1]} : vector<512x24xf32> to vector<64x24xf32>
    %451 = vector.extract_strided_slice %315 {offsets = [448, 0], sizes = [64, 24], strides = [1, 1]} : vector<512x24xf32> to vector<64x24xf32>
    %cst_188 = arith.constant dense<0.000000e+00> : vector<24x24xf32>
    %452 = tpu.matmul %449, %450, %cst_188 {dimension_numbers = #tpu.dot_dimension_numbers<[1], [0], [0], [1], [0, 0, 1, 1], [], []>} : vector<24x64xf32>, vector<64x24xf32>, vector<24x24xf32> -> vector<24x24xf32>
    %cst_189 = arith.constant 1.250000e-01 : f32
    %453 = vector.broadcast %cst_189 : f32 to vector<24x24xf32>
    %454 = arith.mulf %452, %453 : vector<24x24xf32>
    %cst_190 = arith.constant -1.000000e+30 : f32
    %455 = vector.broadcast %cst_190 : f32 to vector<24x24xf32>
    %456 = arith.select %54, %454, %455 : vector<24x24xi1>, vector<24x24xf32>
    %cst_191 = arith.constant dense<0xFF800000> : vector<24xf32>
    %457 = vector.multi_reduction <maximumf>, %456, %cst_191 [1] : vector<24x24xf32> to vector<24xf32>
    %458 = vector.shape_cast %457 : vector<24xf32> to vector<24x1xf32>
    %459 = vector.broadcast %458 : vector<24x1xf32> to vector<24x24xf32>
    %460 = arith.subf %456, %459 : vector<24x24xf32>
    %461 = math.exp %460 : vector<24x24xf32>
    %cst_192 = arith.constant dense<0.000000e+00> : vector<24xf32>
    %462 = vector.multi_reduction <add>, %461, %cst_192 [1] : vector<24x24xf32> to vector<24xf32>
    %463 = vector.shape_cast %462 : vector<24xf32> to vector<24x1xf32>
    %464 = tpu.reciprocal %463 {approx = true} : vector<24x1xf32> -> vector<24x1xf32>
    %465 = vector.broadcast %464 : vector<24x1xf32> to vector<24x24xf32>
    %466 = arith.mulf %461, %465 : vector<24x24xf32>
    %cst_193 = arith.constant dense<0.000000e+00> : vector<24x64xf32>
    %467 = tpu.matmul %466, %451, %cst_193 {dimension_numbers = #tpu.dot_dimension_numbers<[1], [1], [0], [0], [0, 0, 1, 0], [], []>} : vector<24x24xf32>, vector<64x24xf32>, vector<24x64xf32> -> vector<24x64xf32>
    %468 = tpu.concatenate %334, %353, %372, %391, %410, %429, %448, %467 in 1 : vector<24x64xf32>, vector<24x64xf32>, vector<24x64xf32>, vector<24x64xf32>, vector<24x64xf32>, vector<24x64xf32>, vector<24x64xf32>, vector<24x64xf32> -> vector<24x512xf32>
    %c0_194 = arith.constant 0 : index
    %c0_195 = arith.constant 0 : index
    %469 = vector.load %arg29[%c0_194, %c0_195] : memref<512x64xf32, #tpu.memory_space<vmem>>, vector<512x64xf32>
    %cst_196 = arith.constant dense<0.000000e+00> : vector<24x64xf32>
    %470 = tpu.matmul %468, %469, %cst_196 {dimension_numbers = #tpu.dot_dimension_numbers<[1], [0], [0], [1], [0, 0, 1, 1], [], []>} : vector<24x512xf32>, vector<512x64xf32>, vector<24x64xf32> -> vector<24x64xf32>
    %471 = arith.addf %287, %470 : vector<24x64xf32>
    %c0_197 = arith.constant 0 : index
    %c0_198 = arith.constant 0 : index
    %472 = vector.load %arg30[%c0_197, %c0_198] : memref<1x64xf32, #tpu.memory_space<vmem>>, vector<1x64xf32>
    %473 = vector.broadcast %472 : vector<1x64xf32> to vector<24x64xf32>
    %474 = arith.addf %471, %473 : vector<24x64xf32>
    %c0_199 = arith.constant 0 : index
    %c0_200 = arith.constant 0 : index
    %475 = vector.load %arg31[%c0_199, %c0_200] : memref<1x64xf32, #tpu.memory_space<vmem>>, vector<1x64xf32>
    %c0_201 = arith.constant 0 : index
    %c0_202 = arith.constant 0 : index
    %476 = vector.load %arg32[%c0_201, %c0_202] : memref<1x64xf32, #tpu.memory_space<vmem>>, vector<1x64xf32>
    %cst_203 = arith.constant dense<0.000000e+00> : vector<24xf32>
    %477 = vector.multi_reduction <add>, %474, %cst_203 [1] : vector<24x64xf32> to vector<24xf32>
    %478 = vector.shape_cast %477 : vector<24xf32> to vector<24x1xf32>
    %cst_204 = arith.constant 6.400000e+01 : f32
    %479 = vector.broadcast %cst_204 : f32 to vector<24x1xf32>
    %480 = arith.divf %478, %479 : vector<24x1xf32>
    %481 = vector.broadcast %480 : vector<24x1xf32> to vector<24x64xf32>
    %482 = arith.subf %474, %481 : vector<24x64xf32>
    %483 = arith.mulf %482, %482 : vector<24x64xf32>
    %cst_205 = arith.constant dense<0.000000e+00> : vector<24xf32>
    %484 = vector.multi_reduction <add>, %483, %cst_205 [1] : vector<24x64xf32> to vector<24xf32>
    %485 = vector.shape_cast %484 : vector<24xf32> to vector<24x1xf32>
    %cst_206 = arith.constant 6.400000e+01 : f32
    %486 = vector.broadcast %cst_206 : f32 to vector<24x1xf32>
    %487 = arith.divf %485, %486 : vector<24x1xf32>
    %cst_207 = arith.constant 9.99999974E-6 : f32
    %488 = vector.broadcast %cst_207 : f32 to vector<24x1xf32>
    %489 = arith.addf %487, %488 : vector<24x1xf32>
    %490 = math.rsqrt %489 : vector<24x1xf32>
    %491 = vector.broadcast %490 : vector<24x1xf32> to vector<24x64xf32>
    %492 = arith.mulf %482, %491 : vector<24x64xf32>
    %493 = vector.broadcast %475 : vector<1x64xf32> to vector<24x64xf32>
    %494 = arith.mulf %492, %493 : vector<24x64xf32>
    %495 = vector.broadcast %476 : vector<1x64xf32> to vector<24x64xf32>
    %496 = arith.addf %494, %495 : vector<24x64xf32>
    %c0_208 = arith.constant 0 : index
    %c0_209 = arith.constant 0 : index
    %497 = vector.load %arg33[%c0_208, %c0_209] : memref<64x12xf32, #tpu.memory_space<vmem>>, vector<64x12xf32>
    %cst_210 = arith.constant dense<0.000000e+00> : vector<24x12xf32>
    %498 = tpu.matmul %496, %497, %cst_210 {dimension_numbers = #tpu.dot_dimension_numbers<[1], [0], [0], [1], [0, 0, 1, 1], [], []>} : vector<24x64xf32>, vector<64x12xf32>, vector<24x12xf32> -> vector<24x12xf32>
    %c0_211 = arith.constant 0 : index
    %c0_212 = arith.constant 0 : index
    %499 = vector.load %arg34[%c0_211, %c0_212] : memref<1x12xf32, #tpu.memory_space<vmem>>, vector<1x12xf32>
    %500 = vector.broadcast %499 : vector<1x12xf32> to vector<24x12xf32>
    %501 = arith.addf %498, %500 : vector<24x12xf32>
    %cst_213 = arith.constant 5.000000e-01 : f32
    %502 = vector.broadcast %cst_213 : f32 to vector<24x12xf32>
    %503 = arith.mulf %502, %501 : vector<24x12xf32>
    %cst_214 = arith.constant 4.471500e-02 : f32
    %504 = vector.broadcast %cst_214 : f32 to vector<24x12xf32>
    %505 = arith.mulf %504, %501 : vector<24x12xf32>
    %506 = arith.mulf %505, %501 : vector<24x12xf32>
    %507 = arith.mulf %506, %501 : vector<24x12xf32>
    %508 = arith.addf %501, %507 : vector<24x12xf32>
    %cst_215 = arith.constant 0.797884583 : f32
    %509 = vector.broadcast %cst_215 : f32 to vector<24x12xf32>
    %510 = arith.mulf %509, %508 : vector<24x12xf32>
    %511 = math.tanh %510 : vector<24x12xf32>
    %cst_216 = arith.constant 1.000000e+00 : f32
    %512 = vector.broadcast %cst_216 : f32 to vector<24x12xf32>
    %513 = arith.addf %512, %511 : vector<24x12xf32>
    %514 = arith.mulf %503, %513 : vector<24x12xf32>
    %c0_217 = arith.constant 0 : index
    %c0_218 = arith.constant 0 : index
    %515 = vector.load %arg35[%c0_217, %c0_218] : memref<12x64xf32, #tpu.memory_space<vmem>>, vector<12x64xf32>
    %cst_219 = arith.constant dense<0.000000e+00> : vector<24x64xf32>
    %516 = tpu.matmul %514, %515, %cst_219 {dimension_numbers = #tpu.dot_dimension_numbers<[1], [0], [0], [1], [0, 0, 1, 1], [], []>} : vector<24x12xf32>, vector<12x64xf32>, vector<24x64xf32> -> vector<24x64xf32>
    %517 = arith.addf %474, %516 : vector<24x64xf32>
    %c0_220 = arith.constant 0 : index
    %c0_221 = arith.constant 0 : index
    %518 = vector.load %arg36[%c0_220, %c0_221] : memref<1x64xf32, #tpu.memory_space<vmem>>, vector<1x64xf32>
    %519 = vector.broadcast %518 : vector<1x64xf32> to vector<24x64xf32>
    %520 = arith.addf %517, %519 : vector<24x64xf32>
    %521 = vector.extract_strided_slice %520 {offsets = [0, 0], sizes = [1, 64], strides = [1, 1]} : vector<24x64xf32> to vector<1x64xf32>
    %c0_222 = arith.constant 0 : index
    %c0_223 = arith.constant 0 : index
    %522 = vector.load %arg37[%c0_222, %c0_223] : memref<1x64xf32, #tpu.memory_space<vmem>>, vector<1x64xf32>
    %c0_224 = arith.constant 0 : index
    %c0_225 = arith.constant 0 : index
    %523 = vector.load %arg38[%c0_224, %c0_225] : memref<1x64xf32, #tpu.memory_space<vmem>>, vector<1x64xf32>
    %cst_226 = arith.constant dense<0.000000e+00> : vector<1xf32>
    %524 = vector.multi_reduction <add>, %521, %cst_226 [1] : vector<1x64xf32> to vector<1xf32>
    %525 = vector.shape_cast %524 : vector<1xf32> to vector<1x1xf32>
    %cst_227 = arith.constant 6.400000e+01 : f32
    %526 = vector.broadcast %cst_227 : f32 to vector<1x1xf32>
    %527 = arith.divf %525, %526 : vector<1x1xf32>
    %528 = vector.broadcast %527 : vector<1x1xf32> to vector<1x64xf32>
    %529 = arith.subf %521, %528 : vector<1x64xf32>
    %530 = arith.mulf %529, %529 : vector<1x64xf32>
    %cst_228 = arith.constant dense<0.000000e+00> : vector<1xf32>
    %531 = vector.multi_reduction <add>, %530, %cst_228 [1] : vector<1x64xf32> to vector<1xf32>
    %532 = vector.shape_cast %531 : vector<1xf32> to vector<1x1xf32>
    %cst_229 = arith.constant 6.400000e+01 : f32
    %533 = vector.broadcast %cst_229 : f32 to vector<1x1xf32>
    %534 = arith.divf %532, %533 : vector<1x1xf32>
    %cst_230 = arith.constant 9.99999974E-6 : f32
    %535 = vector.broadcast %cst_230 : f32 to vector<1x1xf32>
    %536 = arith.addf %534, %535 : vector<1x1xf32>
    %537 = math.rsqrt %536 : vector<1x1xf32>
    %538 = vector.broadcast %537 : vector<1x1xf32> to vector<1x64xf32>
    %539 = arith.mulf %529, %538 : vector<1x64xf32>
    %540 = arith.mulf %539, %522 : vector<1x64xf32>
    %541 = arith.addf %540, %523 : vector<1x64xf32>
    %c0_231 = arith.constant 0 : index
    %c0_232 = arith.constant 0 : index
    %542 = vector.load %arg39[%c0_231, %c0_232] : memref<4x64xf32, #tpu.memory_space<vmem>>, vector<4x64xf32>
    %543 = vector.broadcast %541 : vector<1x64xf32> to vector<4x64xf32>
    %544 = arith.mulf %542, %543 : vector<4x64xf32>
    %c0_233 = arith.constant 0 : index
    %c0_234 = arith.constant 0 : index
    %545 = vector.load %arg40[%c0_233, %c0_234] : memref<64x256xf32, #tpu.memory_space<vmem>>, vector<64x256xf32>
    %cst_235 = arith.constant dense<0.000000e+00> : vector<4x256xf32>
    %546 = tpu.matmul %544, %545, %cst_235 {dimension_numbers = #tpu.dot_dimension_numbers<[1], [0], [0], [1], [0, 0, 1, 1], [], []>} : vector<4x64xf32>, vector<64x256xf32>, vector<4x256xf32> -> vector<4x256xf32>
    %c0_236 = arith.constant 0 : index
    %c0_237 = arith.constant 0 : index
    %547 = vector.load %arg41[%c0_236, %c0_237] : memref<1x256xf32, #tpu.memory_space<vmem>>, vector<1x256xf32>
    %548 = vector.broadcast %547 : vector<1x256xf32> to vector<4x256xf32>
    %549 = arith.addf %546, %548 : vector<4x256xf32>
    %cst_238 = arith.constant 0.000000e+00 : f32
    %550 = vector.broadcast %cst_238 : f32 to vector<4x256xf32>
    %c0_239 = arith.constant 0 : index
    %c0_240 = arith.constant 0 : index
    %551 = vector.load %arg43[%c0_239, %c0_240] : memref<4x1xf32, #tpu.memory_space<vmem>>, vector<4x1xf32>
    %552 = vector.broadcast %551 : vector<4x1xf32> to vector<4x256xf32>
    %553 = arith.addf %550, %552 : vector<4x256xf32>
    %c0_241 = arith.constant 0 : index
    %c0_242 = arith.constant 0 : index
    %554 = vector.load %arg44[%c0_241, %c0_242] : memref<9x256xf32, #tpu.memory_space<vmem>>, vector<9x256xf32>
    %c17_i32_243 = arith.constant 17 : i32
    %555 = tpu.dynamic_rotate %549 by %c17_i32_243 dim 1 : vector<4x256xf32>, i32 -> vector<4x256xf32>
    %c0_244 = arith.constant 0 : index
    %c0_245 = arith.constant 0 : index
    %c0_246 = arith.constant 0 : index
    %556 = vector.load %arg42[%c0_244, %c0_245, %c0_246] : memref<9x4x4xf32, #tpu.memory_space<vmem>>, vector<1x4x4xf32>
    %557 = vector.shape_cast %556 : vector<1x4x4xf32> to vector<4x4xf32>
    %558 = vector.extract_strided_slice %554 {offsets = [0, 0], sizes = [1, 256], strides = [1, 1]} : vector<9x256xf32> to vector<1x256xf32>
    %559 = vector.broadcast %558 : vector<1x256xf32> to vector<4x256xf32>
    %560 = arith.mulf %555, %559 : vector<4x256xf32>
    %cst_247 = arith.constant dense<0.000000e+00> : vector<4x256xf32>
    %561 = tpu.matmul %557, %560, %cst_247 {dimension_numbers = #tpu.dot_dimension_numbers<[1], [0], [0], [1], [0, 0, 1, 1], [], []>} : vector<4x4xf32>, vector<4x256xf32>, vector<4x256xf32> -> vector<4x256xf32>
    %562 = arith.addf %553, %561 : vector<4x256xf32>
    %c16_i32 = arith.constant 16 : i32
    %563 = tpu.dynamic_rotate %549 by %c16_i32 dim 1 : vector<4x256xf32>, i32 -> vector<4x256xf32>
    %c1_248 = arith.constant 1 : index
    %c0_249 = arith.constant 0 : index
    %c0_250 = arith.constant 0 : index
    %564 = vector.load %arg42[%c1_248, %c0_249, %c0_250] : memref<9x4x4xf32, #tpu.memory_space<vmem>>, vector<1x4x4xf32>
    %565 = vector.shape_cast %564 : vector<1x4x4xf32> to vector<4x4xf32>
    %566 = vector.extract_strided_slice %554 {offsets = [1, 0], sizes = [1, 256], strides = [1, 1]} : vector<9x256xf32> to vector<1x256xf32>
    %567 = vector.broadcast %566 : vector<1x256xf32> to vector<4x256xf32>
    %568 = arith.mulf %563, %567 : vector<4x256xf32>
    %cst_251 = arith.constant dense<0.000000e+00> : vector<4x256xf32>
    %569 = tpu.matmul %565, %568, %cst_251 {dimension_numbers = #tpu.dot_dimension_numbers<[1], [0], [0], [1], [0, 0, 1, 1], [], []>} : vector<4x4xf32>, vector<4x256xf32>, vector<4x256xf32> -> vector<4x256xf32>
    %570 = arith.addf %562, %569 : vector<4x256xf32>
    %c15_i32 = arith.constant 15 : i32
    %571 = tpu.dynamic_rotate %549 by %c15_i32 dim 1 : vector<4x256xf32>, i32 -> vector<4x256xf32>
    %c2_252 = arith.constant 2 : index
    %c0_253 = arith.constant 0 : index
    %c0_254 = arith.constant 0 : index
    %572 = vector.load %arg42[%c2_252, %c0_253, %c0_254] : memref<9x4x4xf32, #tpu.memory_space<vmem>>, vector<1x4x4xf32>
    %573 = vector.shape_cast %572 : vector<1x4x4xf32> to vector<4x4xf32>
    %574 = vector.extract_strided_slice %554 {offsets = [2, 0], sizes = [1, 256], strides = [1, 1]} : vector<9x256xf32> to vector<1x256xf32>
    %575 = vector.broadcast %574 : vector<1x256xf32> to vector<4x256xf32>
    %576 = arith.mulf %571, %575 : vector<4x256xf32>
    %cst_255 = arith.constant dense<0.000000e+00> : vector<4x256xf32>
    %577 = tpu.matmul %573, %576, %cst_255 {dimension_numbers = #tpu.dot_dimension_numbers<[1], [0], [0], [1], [0, 0, 1, 1], [], []>} : vector<4x4xf32>, vector<4x256xf32>, vector<4x256xf32> -> vector<4x256xf32>
    %578 = arith.addf %570, %577 : vector<4x256xf32>
    %c1_i32 = arith.constant 1 : i32
    %579 = tpu.dynamic_rotate %549 by %c1_i32 dim 1 : vector<4x256xf32>, i32 -> vector<4x256xf32>
    %c3_256 = arith.constant 3 : index
    %c0_257 = arith.constant 0 : index
    %c0_258 = arith.constant 0 : index
    %580 = vector.load %arg42[%c3_256, %c0_257, %c0_258] : memref<9x4x4xf32, #tpu.memory_space<vmem>>, vector<1x4x4xf32>
    %581 = vector.shape_cast %580 : vector<1x4x4xf32> to vector<4x4xf32>
    %582 = vector.extract_strided_slice %554 {offsets = [3, 0], sizes = [1, 256], strides = [1, 1]} : vector<9x256xf32> to vector<1x256xf32>
    %583 = vector.broadcast %582 : vector<1x256xf32> to vector<4x256xf32>
    %584 = arith.mulf %579, %583 : vector<4x256xf32>
    %cst_259 = arith.constant dense<0.000000e+00> : vector<4x256xf32>
    %585 = tpu.matmul %581, %584, %cst_259 {dimension_numbers = #tpu.dot_dimension_numbers<[1], [0], [0], [1], [0, 0, 1, 1], [], []>} : vector<4x4xf32>, vector<4x256xf32>, vector<4x256xf32> -> vector<4x256xf32>
    %586 = arith.addf %578, %585 : vector<4x256xf32>
    %c4 = arith.constant 4 : index
    %c0_260 = arith.constant 0 : index
    %c0_261 = arith.constant 0 : index
    %587 = vector.load %arg42[%c4, %c0_260, %c0_261] : memref<9x4x4xf32, #tpu.memory_space<vmem>>, vector<1x4x4xf32>
    %588 = vector.shape_cast %587 : vector<1x4x4xf32> to vector<4x4xf32>
    %589 = vector.extract_strided_slice %554 {offsets = [4, 0], sizes = [1, 256], strides = [1, 1]} : vector<9x256xf32> to vector<1x256xf32>
    %590 = vector.broadcast %589 : vector<1x256xf32> to vector<4x256xf32>
    %591 = arith.mulf %549, %590 : vector<4x256xf32>
    %cst_262 = arith.constant dense<0.000000e+00> : vector<4x256xf32>
    %592 = tpu.matmul %588, %591, %cst_262 {dimension_numbers = #tpu.dot_dimension_numbers<[1], [0], [0], [1], [0, 0, 1, 1], [], []>} : vector<4x4xf32>, vector<4x256xf32>, vector<4x256xf32> -> vector<4x256xf32>
    %593 = arith.addf %586, %592 : vector<4x256xf32>
    %c255_i32 = arith.constant 255 : i32
    %594 = tpu.dynamic_rotate %549 by %c255_i32 dim 1 : vector<4x256xf32>, i32 -> vector<4x256xf32>
    %c5 = arith.constant 5 : index
    %c0_263 = arith.constant 0 : index
    %c0_264 = arith.constant 0 : index
    %595 = vector.load %arg42[%c5, %c0_263, %c0_264] : memref<9x4x4xf32, #tpu.memory_space<vmem>>, vector<1x4x4xf32>
    %596 = vector.shape_cast %595 : vector<1x4x4xf32> to vector<4x4xf32>
    %597 = vector.extract_strided_slice %554 {offsets = [5, 0], sizes = [1, 256], strides = [1, 1]} : vector<9x256xf32> to vector<1x256xf32>
    %598 = vector.broadcast %597 : vector<1x256xf32> to vector<4x256xf32>
    %599 = arith.mulf %594, %598 : vector<4x256xf32>
    %cst_265 = arith.constant dense<0.000000e+00> : vector<4x256xf32>
    %600 = tpu.matmul %596, %599, %cst_265 {dimension_numbers = #tpu.dot_dimension_numbers<[1], [0], [0], [1], [0, 0, 1, 1], [], []>} : vector<4x4xf32>, vector<4x256xf32>, vector<4x256xf32> -> vector<4x256xf32>
    %601 = arith.addf %593, %600 : vector<4x256xf32>
    %c241_i32 = arith.constant 241 : i32
    %602 = tpu.dynamic_rotate %549 by %c241_i32 dim 1 : vector<4x256xf32>, i32 -> vector<4x256xf32>
    %c6 = arith.constant 6 : index
    %c0_266 = arith.constant 0 : index
    %c0_267 = arith.constant 0 : index
    %603 = vector.load %arg42[%c6, %c0_266, %c0_267] : memref<9x4x4xf32, #tpu.memory_space<vmem>>, vector<1x4x4xf32>
    %604 = vector.shape_cast %603 : vector<1x4x4xf32> to vector<4x4xf32>
    %605 = vector.extract_strided_slice %554 {offsets = [6, 0], sizes = [1, 256], strides = [1, 1]} : vector<9x256xf32> to vector<1x256xf32>
    %606 = vector.broadcast %605 : vector<1x256xf32> to vector<4x256xf32>
    %607 = arith.mulf %602, %606 : vector<4x256xf32>
    %cst_268 = arith.constant dense<0.000000e+00> : vector<4x256xf32>
    %608 = tpu.matmul %604, %607, %cst_268 {dimension_numbers = #tpu.dot_dimension_numbers<[1], [0], [0], [1], [0, 0, 1, 1], [], []>} : vector<4x4xf32>, vector<4x256xf32>, vector<4x256xf32> -> vector<4x256xf32>
    %609 = arith.addf %601, %608 : vector<4x256xf32>
    %c240_i32 = arith.constant 240 : i32
    %610 = tpu.dynamic_rotate %549 by %c240_i32 dim 1 : vector<4x256xf32>, i32 -> vector<4x256xf32>
    %c7 = arith.constant 7 : index
    %c0_269 = arith.constant 0 : index
    %c0_270 = arith.constant 0 : index
    %611 = vector.load %arg42[%c7, %c0_269, %c0_270] : memref<9x4x4xf32, #tpu.memory_space<vmem>>, vector<1x4x4xf32>
    %612 = vector.shape_cast %611 : vector<1x4x4xf32> to vector<4x4xf32>
    %613 = vector.extract_strided_slice %554 {offsets = [7, 0], sizes = [1, 256], strides = [1, 1]} : vector<9x256xf32> to vector<1x256xf32>
    %614 = vector.broadcast %613 : vector<1x256xf32> to vector<4x256xf32>
    %615 = arith.mulf %610, %614 : vector<4x256xf32>
    %cst_271 = arith.constant dense<0.000000e+00> : vector<4x256xf32>
    %616 = tpu.matmul %612, %615, %cst_271 {dimension_numbers = #tpu.dot_dimension_numbers<[1], [0], [0], [1], [0, 0, 1, 1], [], []>} : vector<4x4xf32>, vector<4x256xf32>, vector<4x256xf32> -> vector<4x256xf32>
    %617 = arith.addf %609, %616 : vector<4x256xf32>
    %c239_i32 = arith.constant 239 : i32
    %618 = tpu.dynamic_rotate %549 by %c239_i32 dim 1 : vector<4x256xf32>, i32 -> vector<4x256xf32>
    %c8 = arith.constant 8 : index
    %c0_272 = arith.constant 0 : index
    %c0_273 = arith.constant 0 : index
    %619 = vector.load %arg42[%c8, %c0_272, %c0_273] : memref<9x4x4xf32, #tpu.memory_space<vmem>>, vector<1x4x4xf32>
    %620 = vector.shape_cast %619 : vector<1x4x4xf32> to vector<4x4xf32>
    %621 = vector.extract_strided_slice %554 {offsets = [8, 0], sizes = [1, 256], strides = [1, 1]} : vector<9x256xf32> to vector<1x256xf32>
    %622 = vector.broadcast %621 : vector<1x256xf32> to vector<4x256xf32>
    %623 = arith.mulf %618, %622 : vector<4x256xf32>
    %cst_274 = arith.constant dense<0.000000e+00> : vector<4x256xf32>
    %624 = tpu.matmul %620, %623, %cst_274 {dimension_numbers = #tpu.dot_dimension_numbers<[1], [0], [0], [1], [0, 0, 1, 1], [], []>} : vector<4x4xf32>, vector<4x256xf32>, vector<4x256xf32> -> vector<4x256xf32>
    %625 = arith.addf %617, %624 : vector<4x256xf32>
    %cst_275 = arith.constant dense<0xFF800000> : vector<256xf32>
    %626 = vector.multi_reduction <maximumf>, %625, %cst_275 [0] : vector<4x256xf32> to vector<256xf32>
    %627 = vector.shape_cast %626 : vector<256xf32> to vector<1x256xf32>
    %628 = vector.broadcast %627 : vector<1x256xf32> to vector<4x256xf32>
    %629 = arith.subf %625, %628 : vector<4x256xf32>
    %630 = math.exp %629 : vector<4x256xf32>
    %cst_276 = arith.constant dense<0.000000e+00> : vector<256xf32>
    %631 = vector.multi_reduction <add>, %630, %cst_276 [0] : vector<4x256xf32> to vector<256xf32>
    %632 = vector.shape_cast %631 : vector<256xf32> to vector<1x256xf32>
    %633 = tpu.reciprocal %632 {approx = true} : vector<1x256xf32> -> vector<1x256xf32>
    %634 = vector.broadcast %633 : vector<1x256xf32> to vector<4x256xf32>
    %635 = arith.mulf %630, %634 : vector<4x256xf32>
    %c0_277 = arith.constant 0 : index
    %c0_278 = arith.constant 0 : index
    %636 = vector.load %arg46[%c0_277, %c0_278] : memref<4x256xf32, #tpu.memory_space<vmem>>, vector<4x256xf32>
    tpu.vector_store %arg46[%c0_277, %c0_278], %635 {strides = array<i32>} : memref<4x256xf32, #tpu.memory_space<vmem>>, vector<4x256xf32>,
    %c0_279 = arith.constant 0 : index
    %c0_280 = arith.constant 0 : index
    %637 = vector.load %arg45[%c0_279, %c0_280] : memref<8x4xf32, #tpu.memory_space<vmem>>, vector<8x4xf32>
    %cst_281 = arith.constant dense<0.000000e+00> : vector<8x256xf32>
    %638 = tpu.matmul %637, %635, %cst_281 {dimension_numbers = #tpu.dot_dimension_numbers<[1], [0], [0], [1], [0, 0, 1, 1], [], []>} : vector<8x4xf32>, vector<4x256xf32>, vector<8x256xf32> -> vector<8x256xf32>
    %cst_282 = arith.constant 0.000000e+00 : f32
    %639 = vector.broadcast %cst_282 : f32 to vector<8x256xf32>
    %640 = arith.maximumf %638, %639 : vector<8x256xf32>
    %c0_283 = arith.constant 0 : index
    %c0_284 = arith.constant 0 : index
    %641 = vector.load %arg47[%c0_283, %c0_284] : memref<8x256xf32, #tpu.memory_space<vmem>>, vector<8x256xf32>
    tpu.vector_store %arg47[%c0_283, %c0_284], %640 {strides = array<i32>} : memref<8x256xf32, #tpu.memory_space<vmem>>, vector<8x256xf32>,
    return
  }
  func.func @transform_0(%arg0: i32) -> (i32, i32) {
    %c0_i32 = arith.constant 0 : i32
    %c0_i32_0 = arith.constant 0 : i32
    %c0_i32_1 = arith.constant 0 : i32
    return %c0_i32, %c0_i32_0 : i32, i32
  }
  func.func @transform_1(%arg0: i32) -> (i32, i32) {
    %c0_i32 = arith.constant 0 : i32
    %c0_i32_0 = arith.constant 0 : i32
    %c0_i32_1 = arith.constant 0 : i32
    return %c0_i32, %c0_i32_0 : i32, i32
  }
  func.func @transform_2(%arg0: i32) -> (i32, i32) {
    %c0_i32 = arith.constant 0 : i32
    %c0_i32_0 = arith.constant 0 : i32
    %c0_i32_1 = arith.constant 0 : i32
    return %c0_i32, %c0_i32_0 : i32, i32
  }
  func.func @transform_3(%arg0: i32) -> (i32, i32) {
    %c0_i32 = arith.constant 0 : i32
    %c0_i32_0 = arith.constant 0 : i32
    %c0_i32_1 = arith.constant 0 : i32
    return %c0_i32, %c0_i32_0 : i32, i32
  }
  func.func @transform_4(%arg0: i32) -> (i32, i32) {
    %c0_i32 = arith.constant 0 : i32
    %c0_i32_0 = arith.constant 0 : i32
    %c0_i32_1 = arith.constant 0 : i32
    return %c0_i32, %c0_i32_0 : i32, i32
  }
  func.func @transform_5(%arg0: i32) -> (i32, i32) {
    %c0_i32 = arith.constant 0 : i32
    %c0_i32_0 = arith.constant 0 : i32
    %c0_i32_1 = arith.constant 0 : i32
    return %c0_i32, %c0_i32_0 : i32, i32
  }
  func.func @transform_6(%arg0: i32) -> (i32, i32) {
    %c0_i32 = arith.constant 0 : i32
    %c0_i32_0 = arith.constant 0 : i32
    %c0_i32_1 = arith.constant 0 : i32
    return %c0_i32, %c0_i32_0 : i32, i32
  }
  func.func @transform_7(%arg0: i32) -> (i32, i32) {
    %c0_i32 = arith.constant 0 : i32
    %c0_i32_0 = arith.constant 0 : i32
    %c0_i32_1 = arith.constant 0 : i32
    return %c0_i32, %c0_i32_0 : i32, i32
  }
  func.func @transform_8(%arg0: i32) -> (i32, i32, i32) {
    %c0_i32 = arith.constant 0 : i32
    %c0_i32_0 = arith.constant 0 : i32
    %c0_i32_1 = arith.constant 0 : i32
    %c0_i32_2 = arith.constant 0 : i32
    return %c0_i32, %c0_i32_0, %c0_i32_1 : i32, i32, i32
  }
  func.func @transform_9(%arg0: i32) -> (i32, i32) {
    %c0_i32 = arith.constant 0 : i32
    %c0_i32_0 = arith.constant 0 : i32
    %c0_i32_1 = arith.constant 0 : i32
    return %c0_i32, %c0_i32_0 : i32, i32
  }
  func.func @transform_10(%arg0: i32) -> (i32, i32) {
    %c0_i32 = arith.constant 0 : i32
    %c0_i32_0 = arith.constant 0 : i32
    %c0_i32_1 = arith.constant 0 : i32
    return %c0_i32, %c0_i32_0 : i32, i32
  }
  func.func @transform_11(%arg0: i32) -> (i32, i32) {
    %c0_i32 = arith.constant 0 : i32
    %c0_i32_0 = arith.constant 0 : i32
    %c0_i32_1 = arith.constant 0 : i32
    return %c0_i32, %c0_i32_0 : i32, i32
  }
  func.func @transform_12(%arg0: i32) -> (i32, i32) {
    %c0_i32 = arith.constant 0 : i32
    %c0_i32_0 = arith.constant 0 : i32
    %c0_i32_1 = arith.constant 0 : i32
    return %c0_i32, %c0_i32_0 : i32, i32
  }
  func.func @transform_13(%arg0: i32) -> (i32, i32) {
    %c0_i32 = arith.constant 0 : i32
    %c0_i32_0 = arith.constant 0 : i32
    %c0_i32_1 = arith.constant 0 : i32
    return %c0_i32, %c0_i32_0 : i32, i32
  }
  func.func @transform_14(%arg0: i32) -> (i32, i32) {
    %c0_i32 = arith.constant 0 : i32
    %c0_i32_0 = arith.constant 0 : i32
    %c0_i32_1 = arith.constant 0 : i32
    return %c0_i32, %c0_i32_0 : i32, i32
  }
  func.func @transform_15(%arg0: i32) -> (i32, i32) {
    %c0_i32 = arith.constant 0 : i32
    %c0_i32_0 = arith.constant 0 : i32
    %c0_i32_1 = arith.constant 0 : i32
    return %c0_i32, %c0_i32_0 : i32, i32
  }
  func.func @transform_16(%arg0: i32) -> (i32, i32) {
    %c0_i32 = arith.constant 0 : i32
    %c0_i32_0 = arith.constant 0 : i32
    %c0_i32_1 = arith.constant 0 : i32
    return %c0_i32, %c0_i32_0 : i32, i32
  }
  func.func @transform_17(%arg0: i32) -> (i32, i32) {
    %c0_i32 = arith.constant 0 : i32
    %c0_i32_0 = arith.constant 0 : i32
    %c0_i32_1 = arith.constant 0 : i32
    return %c0_i32, %c0_i32_0 : i32, i32
  }
  func.func @transform_18(%arg0: i32) -> (i32, i32) {
    %c0_i32 = arith.constant 0 : i32
    %c0_i32_0 = arith.constant 0 : i32
    %c0_i32_1 = arith.constant 0 : i32
    return %c0_i32, %c0_i32_0 : i32, i32
  }
  func.func @transform_19(%arg0: i32) -> (i32, i32) {
    %c0_i32 = arith.constant 0 : i32
    %c0_i32_0 = arith.constant 0 : i32
    %c0_i32_1 = arith.constant 0 : i32
    return %c0_i32, %c0_i32_0 : i32, i32
  }
  func.func @transform_20(%arg0: i32) -> (i32, i32) {
    %c0_i32 = arith.constant 0 : i32
    %c0_i32_0 = arith.constant 0 : i32
    %c0_i32_1 = arith.constant 0 : i32
    return %c0_i32, %c0_i32_0 : i32, i32
  }
  func.func @transform_21(%arg0: i32) -> (i32, i32) {
    %c0_i32 = arith.constant 0 : i32
    %c0_i32_0 = arith.constant 0 : i32
    %c0_i32_1 = arith.constant 0 : i32
    return %c0_i32, %c0_i32_0 : i32, i32
  }
  func.func @transform_22(%arg0: i32) -> (i32, i32) {
    %c0_i32 = arith.constant 0 : i32
    %c0_i32_0 = arith.constant 0 : i32
    %c0_i32_1 = arith.constant 0 : i32
    return %c0_i32, %c0_i32_0 : i32, i32
  }
  func.func @transform_23(%arg0: i32) -> (i32, i32) {
    %c0_i32 = arith.constant 0 : i32
    %c0_i32_0 = arith.constant 0 : i32
    %c0_i32_1 = arith.constant 0 : i32
    return %c0_i32, %c0_i32_0 : i32, i32
  }
  func.func @transform_24(%arg0: i32) -> (i32, i32) {
    %c0_i32 = arith.constant 0 : i32
    %c0_i32_0 = arith.constant 0 : i32
    %c0_i32_1 = arith.constant 0 : i32
    return %c0_i32, %c0_i32_0 : i32, i32
  }
  func.func @transform_25(%arg0: i32) -> (i32, i32) {
    %c0_i32 = arith.constant 0 : i32
    %c0_i32_0 = arith.constant 0 : i32
    %c0_i32_1 = arith.constant 0 : i32
    return %c0_i32, %c0_i32_0 : i32, i32
  }
  func.func @transform_26(%arg0: i32) -> (i32, i32) {
    %c0_i32 = arith.constant 0 : i32
    %c0_i32_0 = arith.constant 0 : i32
    %c0_i32_1 = arith.constant 0 : i32
    return %c0_i32, %c0_i32_0 : i32, i32
  }
  func.func @transform_27(%arg0: i32) -> (i32, i32) {
    %c0_i32 = arith.constant 0 : i32
    %c0_i32_0 = arith.constant 0 : i32
    %c0_i32_1 = arith.constant 0 : i32
    return %c0_i32, %c0_i32_0 : i32, i32
  }
  func.func @transform_28(%arg0: i32) -> (i32, i32) {
    %c0_i32 = arith.constant 0 : i32
    %c0_i32_0 = arith.constant 0 : i32
    %c0_i32_1 = arith.constant 0 : i32
    return %c0_i32, %c0_i32_0 : i32, i32
  }
  func.func @transform_29(%arg0: i32) -> (i32, i32) {
    %c0_i32 = arith.constant 0 : i32
    %c0_i32_0 = arith.constant 0 : i32
    %c0_i32_1 = arith.constant 0 : i32
    return %c0_i32, %c0_i32_0 : i32, i32
  }
  func.func @transform_30(%arg0: i32) -> (i32, i32) {
    %c0_i32 = arith.constant 0 : i32
    %c0_i32_0 = arith.constant 0 : i32
    %c0_i32_1 = arith.constant 0 : i32
    return %c0_i32, %c0_i32_0 : i32, i32
  }
  func.func @transform_31(%arg0: i32) -> (i32, i32) {
    %c0_i32 = arith.constant 0 : i32
    %c0_i32_0 = arith.constant 0 : i32
    %c0_i32_1 = arith.constant 0 : i32
    return %c0_i32, %c0_i32_0 : i32, i32
  }
  func.func @transform_32(%arg0: i32) -> (i32, i32) {
    %c0_i32 = arith.constant 0 : i32
    %c0_i32_0 = arith.constant 0 : i32
    %c0_i32_1 = arith.constant 0 : i32
    return %c0_i32, %c0_i32_0 : i32, i32
  }
  func.func @transform_33(%arg0: i32) -> (i32, i32) {
    %c0_i32 = arith.constant 0 : i32
    %c0_i32_0 = arith.constant 0 : i32
    %c0_i32_1 = arith.constant 0 : i32
    return %c0_i32, %c0_i32_0 : i32, i32
  }
  func.func @transform_34(%arg0: i32) -> (i32, i32) {
    %c0_i32 = arith.constant 0 : i32
    %c0_i32_0 = arith.constant 0 : i32
    %c0_i32_1 = arith.constant 0 : i32
    return %c0_i32, %c0_i32_0 : i32, i32
  }
  func.func @transform_35(%arg0: i32) -> (i32, i32) {
    %c0_i32 = arith.constant 0 : i32
    %c0_i32_0 = arith.constant 0 : i32
    %c0_i32_1 = arith.constant 0 : i32
    return %c0_i32, %c0_i32_0 : i32, i32
  }
  func.func @transform_36(%arg0: i32) -> (i32, i32) {
    %c0_i32 = arith.constant 0 : i32
    %c0_i32_0 = arith.constant 0 : i32
    %c0_i32_1 = arith.constant 0 : i32
    return %c0_i32, %c0_i32_0 : i32, i32
  }
  func.func @transform_37(%arg0: i32) -> (i32, i32) {
    %c0_i32 = arith.constant 0 : i32
    %c0_i32_0 = arith.constant 0 : i32
    %c0_i32_1 = arith.constant 0 : i32
    return %c0_i32, %c0_i32_0 : i32, i32
  }
  func.func @transform_38(%arg0: i32) -> (i32, i32) {
    %c0_i32 = arith.constant 0 : i32
    %c0_i32_0 = arith.constant 0 : i32
    %c0_i32_1 = arith.constant 0 : i32
    return %c0_i32, %c0_i32_0 : i32, i32
  }
  func.func @transform_39(%arg0: i32) -> (i32, i32) {
    %c0_i32 = arith.constant 0 : i32
    %c0_i32_0 = arith.constant 0 : i32
    %c0_i32_1 = arith.constant 0 : i32
    return %c0_i32, %c0_i32_0 : i32, i32
  }
  func.func @transform_40(%arg0: i32) -> (i32, i32) {
    %c0_i32 = arith.constant 0 : i32
    %c0_i32_0 = arith.constant 0 : i32
    %c0_i32_1 = arith.constant 0 : i32
    return %c0_i32, %c0_i32_0 : i32, i32
  }
  func.func @transform_41(%arg0: i32) -> (i32, i32, i32) {
    %c0_i32 = arith.constant 0 : i32
    %c0_i32_0 = arith.constant 0 : i32
    %c0_i32_1 = arith.constant 0 : i32
    %c0_i32_2 = arith.constant 0 : i32
    return %c0_i32, %c0_i32_0, %c0_i32_1 : i32, i32, i32
  }
  func.func @transform_42(%arg0: i32) -> (i32, i32) {
    %c0_i32 = arith.constant 0 : i32
    %c0_i32_0 = arith.constant 0 : i32
    %c0_i32_1 = arith.constant 0 : i32
    return %c0_i32, %c0_i32_0 : i32, i32
  }
  func.func @transform_43(%arg0: i32) -> (i32, i32) {
    %c0_i32 = arith.constant 0 : i32
    %c0_i32_0 = arith.constant 0 : i32
    %c0_i32_1 = arith.constant 0 : i32
    return %c0_i32, %c0_i32_0 : i32, i32
  }
  func.func @transform_44(%arg0: i32) -> (i32, i32) {
    %c0_i32 = arith.constant 0 : i32
    %c0_i32_0 = arith.constant 0 : i32
    %c0_i32_1 = arith.constant 0 : i32
    return %c0_i32, %c0_i32_0 : i32, i32
  }
  func.func @transform_45(%arg0: i32) -> (i32, i32) {
    %c0_i32 = arith.constant 0 : i32
    %c0_i32_0 = arith.constant 0 : i32
    %c0_i32_1 = arith.constant 0 : i32
    return %c0_i32, %c0_i32_0 : i32, i32
  }
  func.func @transform_46(%arg0: i32) -> (i32, i32) {
    %c0_i32 = arith.constant 0 : i32
    %c0_i32_0 = arith.constant 0 : i32
    %c0_i32_1 = arith.constant 0 : i32
    return %c0_i32, %c0_i32_0 : i32, i32
  }
}

</mosaic_0001>

<bundles_post_ra>
// kernel: autoencoder_forward.1
= control target key start
LH: loop header
LB: loop body
LE: loop exit
PB: predicated region body
PF: predicated region fallthrough
CT: control target
= control target key end

     0   :  { %v19144_v0 = vmov 0.0   ;;  %s15434_s6 = smov 1   ;;  %v15435_v1 = vmov 0   ;;  %s15436_s10 = smov 2   ;;  %vm303_vm0 = vcmask 64512   ;;  %vm785_vm1 = vcmask 523264   ;;  %s19143_s0 = inlined_call_operand.smem [shape: u32[47], index: -1, kind: input, shape index: {}] }
   0x1   :  { %s1_s5 = sld [smem:[%s19143_s0]]   ;;  %416 = vmatprep.mubr.f32.mxu0 %v19144_v0  ;;  %464 = vmatprep.mubr.f32.mxu1 %v19144_v0  ;;  %s15437_s14 = smov 4   ;;  %vm15971_vm2 = vmpackc.low %vm785_vm1, %vm785_vm1  ;;  %vm15449_vm3 = vmmov 0   ;;  %vm3233_vm5 = vcmask 195584   ;;  %vm5566_vm7 = vcmask 1043456   ;;  %vm15458_vm8 = vmmov 1  }
   0x2   :  { %s15503_s9 = sld [smem:[%s19143_s0 + %s15434_s6]]   ;;  %15133 = vset.pattern.permute.xlu0 %v15435_v1  ;;  %15134 = vset.pattern.permute.xlu1 %v15435_v1  ;;  %s15438_s18 = smov 6   ;;  %vm16550_vm6 = vmpackc.low %vm3233_vm5, %vm3233_vm5  ;;  %vm5556_vm10 = vcmask 97280   ;;  %vm9927_vm11 = vcmask 516096   ;;  %vm10079_vm13 = vcmask 31744  }
   0x3   :  { %s15508_s13 = sld [smem:[%s19143_s0 + %s15436_s10]]   ;;  %s15439_s22 = smov 3   ;;  %vm17411_vm9 = vmpackc.low %vm5566_vm7, %vm15458_vm8 }
   0x4   :  { %s11100_s17 = sld [smem:[%s19143_s0 + %s15437_s14]]   ;;  %s15440_s26 = smov 8  }
   0x5   :  { %s11102_s21 = sld [smem:[%s19143_s0 + %s15438_s18]]   ;;  %s15441_s30 = smov 5  }
   0x6   :  { %s11099_s25 = sld [smem:[%s19143_s0 + %s15439_s22]]   ;;  %s15442_s4 = smov 7  }
   0x7   :  { %v190_v2 = vld [vmem:[%s1_s5 + $0x8] sm:$0xff]  ;;  %v189_v3 = vld [vmem:[%s1_s5] sm:$0xff]  ;;  %s15625_s29 = sld [smem:[%s19143_s0 + %s15440_s26]]   ;;  %s15460_s5 = smov 22  }
   0x8   :  { %v191_v4 = vld [vmem:[%s15503_s9] sm:$0xff]  ;;  %352 = vmatprep.subr.mxu0 %v190_v2  ;;  %15057 = vmatprep.subr.mxu1 %v190_v2  ;;  %v192_v6 = vld [vmem:[%s15503_s9 + $0x8] sm:$0xff]  ;;  %v193_v10 = vld [vmem:[%s15503_s9 + $0x10] sm:$0xff]  ;;  %s11101_s3 = sld [smem:[%s19143_s0 + %s15441_s30]]   ;;  %s15461_s11 = smov 25  }
   0x9   :  { %v199_v5 = vld [vmem:[%s15503_s9 + $0x40] sm:$0xff]  ;;  %353 = vmatpush1.msra.mxu0 %v189_v3  ;;  %15058 = vmatpush1.msra.mxu1 %v189_v3  ;;  %v200_v7 = vld [vmem:[%s15503_s9 + $0x48] sm:$0xff]  ;;  %v209_v9 = vld [vmem:[%s15508_s13 + $0x10] sm:$0xff]  ;;  %s15702_s8 = sld [smem:[%s19143_s0 + %s15442_s4]]   ;;  %s15452_s4 = smov 15  }
   0xa   :  { %11143 = vmatmul.mubr.msk.f32.vlgmr.msra.gmra.mrb[0].mxu0 %vm303_vm0, %v191_v4  ;;  %11151 = vmatmul.mubr.msk.f32.vlgmr.msra.gmra.mrb[0].mxu1 %vm303_vm0, %v199_v5  ;;  %v207_v8 = vld [vmem:[%s15508_s13] sm:$0xff]  ;;  %v201_v11 = vld [vmem:[%s15503_s9 + $0x50] sm:$0xff]  ;;  %v208_v12 = vld [vmem:[%s15508_s13 + $0x8] sm:$0xff]  ;;  %s11118_s10 = sld [smem:[%s19143_s0 + %s15460_s5]]   ;;  %s15462_s15 = smov 23  }
   0xb   :  { %422 = vmatprep.mubr.f32.mxu0 %v19144_v0  ;;  %470 = vmatprep.mubr.f32.mxu1 %v19144_v0  ;;  %v210_v13 = vld [vmem:[%s15508_s13 + $0x18] sm:$0xff]  ;;  %v211_v16 = vld [vmem:[%s15508_s13 + $0x20] sm:$0xff]  ;;  %v212_v17 = vld [vmem:[%s15508_s13 + $0x28] sm:$0xff]  ;;  %s17467_s14 = sld [smem:[%s19143_s0 + %s15461_s11]]   ;;  %s15469_s18 = smov 30  }
   0xc   :  { %225 = vperm.xlu0 %15133, %v207_v8   ;;  %235 = vperm.xlu1 %15134, %v209_v9   ;;  %v194_v14 = vld [vmem:[%s15503_s9 + $0x18] sm:$0xff]  ;;  %v195_v18 = vld [vmem:[%s15503_s9 + $0x20] sm:$0xff]  ;;  %v213_v20 = vld [vmem:[%s15508_s13 + $0x30] sm:$0xff]  ;;  %s11119_s19 = sld [smem:[%s19143_s0 + %s15462_s15]]   ;;  %s15470_s22 = smov 31  }
   0xd   :  { %v202_v15 = vld [vmem:[%s15503_s9 + $0x58] sm:$0xff]  ;;  %v203_v19 = vld [vmem:[%s15503_s9 + $0x60] sm:$0xff]  ;;  %v196_v22 = vld [vmem:[%s15503_s9 + $0x28] sm:$0xff]  ;;  %s15471_s26 = smov 34   ;;  %s15472_s30 = smov 33  }
   0xe   :  { %11144 = vmatmul.mubr.msk.f32.gmra.mrb[2].mxu0 %vm303_vm0, %v192_v6  ;;  %11152 = vmatmul.mubr.msk.f32.gmra.mrb[2].mxu1 %vm303_vm0, %v200_v7  ;;  %v214_v21 = vld [vmem:[%s15508_s13 + $0x38] sm:$0xff]  ;;  %v204_v23 = vld [vmem:[%s15503_s9 + $0x68] sm:$0xff]  ;;  %v215_v24 = vld [vmem:[%s15508_s13 + $0x40] sm:$0xff]  ;;  %s11129_s5 = sld [smem:[%s19143_s0 + %s15472_s30]]   ;;  %s15473_s7 = smov 35  }
   0xf   :  { %428 = vmatprep.mubr.f32.mxu0 %v19144_v0  ;;  %476 = vmatprep.mubr.f32.mxu1 %v19144_v0  ;;  %v216_v25 = vld [vmem:[%s15508_s13 + $0x48] sm:$0xff]  ;;  %v197_v26 = vld [vmem:[%s15503_s9 + $0x30] sm:$0xff]  ;;  %v218_v29 = vld [vmem:[%s15508_s13 + $0x58] sm:$0xff]  ;;  %s15474_s11 = smov 39   ;;  %s15475_s15 = smov 36  }
  0x10   :  { %230 = vperm.xlu0 %15133, %v208_v12   ;;  %240 = vperm.xlu1 %15134, %v210_v13   ;;  %v205_v27 = vld [vmem:[%s15503_s9 + $0x70] sm:$0xff]  ;;  %v198_v30 = vld [vmem:[%s15503_s9 + $0x38] sm:$0xff]  ;;  %v219_v32 = vld [vmem:[%s15508_s13 + $0x60] sm:$0xff] }
  0x11   :  { %v217_v28 = vld [vmem:[%s15508_s13 + $0x50] sm:$0xff]  ;;  %v206_v31 = vld [vmem:[%s15503_s9 + $0x78] sm:$0xff]  ;;  %v220_v33 = vld [vmem:[%s15508_s13 + $0x68] sm:$0xff]  ;;  %s15443_s9 = smov 9  }
  0x12   :  { %11145 = vmatmul.mubr.msk.f32.gmra.mrb[4].mxu0 %vm303_vm0, %v193_v10  ;;  %11153 = vmatmul.mubr.msk.f32.gmra.mrb[4].mxu1 %vm303_vm0, %v201_v11  ;;  %v221_v34 = vld [vmem:[%s15508_s13 + $0x70] sm:$0xff]  ;;  %v222_v35 = vld [vmem:[%s15508_s13 + $0x78] sm:$0xff]  ;;  %v585_v36 = vld [vmem:[%s11100_s17] sm:$0xff]  ;;  %s11105_s12 = sld [smem:[%s19143_s0 + %s15443_s9]]   ;;  %s15444_s13 = smov 12  }
  0x13   :  { %434 = vmatprep.mubr.f32.mxu0 %v19144_v0  ;;  %482 = vmatprep.mubr.f32.mxu1 %v19144_v0  ;;  %v586_v37 = vld [vmem:[%s11100_s17 + $0x8] sm:$0xff]  ;;  %v587_v38 = vld [vmem:[%s11100_s17 + $0x10] sm:$0xff]  ;;  %v588_v39 = vld [vmem:[%s11100_s17 + $0x18] sm:$0xff]  ;;  %s15899_s16 = sld [smem:[%s19143_s0 + %s15444_s13]]   ;;  %s15453_s9 = smov 16  }
  0x14   :  { %245 = vperm.xlu0 %15133, %v211_v16   ;;  %250 = vperm.xlu1 %15134, %v212_v17   ;;  %v589_v40 = vld [vmem:[%s11100_s17 + $0x20] sm:$0xff]  ;;  %v590_v41 = vld [vmem:[%s11100_s17 + $0x28] sm:$0xff]  ;;  %v591_v42 = vld [vmem:[%s11100_s17 + $0x30] sm:$0xff]  ;;  %s15454_s13 = smov 19  }
  0x15   :  { %v592_v43 = vld [vmem:[%s11100_s17 + $0x38] sm:$0xff]  ;;  %v779_v44 = vld [vmem:[%s11102_s21] sm:$0xf]  ;;  %s15445_s17 = smov 10   ;;  %s15446_s21 = smov 11  }
  0x16   :  { %11146 = vmatmul.mubr.msk.f32.gmra.mrb[6].mxu0 %vm303_vm0, %v194_v14  ;;  %11154 = vmatmul.mubr.msk.f32.gmra.mrb[6].mxu1 %vm303_vm0, %v202_v15  ;;  %s11106_s20 = sld [smem:[%s19143_s0 + %s15445_s17]]   ;;  %s15455_s17 = smov 17  }
  0x17   :  { %440 = vmatprep.mubr.f32.mxu0 %v19144_v0  ;;  %488 = vmatprep.mubr.f32.mxu1 %v19144_v0  ;;  %s11107_s24 = sld [smem:[%s19143_s0 + %s15446_s21]]   ;;  %s15456_s21 = smov 18  }
  0x18   :  { %255 = vperm.xlu0 %15133, %v213_v20   ;;  %260 = vperm.xlu1 %15134, %v214_v21  }
  0x1a   :  { %11147 = vmatmul.mubr.msk.f32.gmra.mrb[8].mxu0 %vm303_vm0, %v195_v18  ;;  %11155 = vmatmul.mubr.msk.f32.gmra.mrb[8].mxu1 %vm303_vm0, %v203_v19 }
  0x1b   :  { %446 = vmatprep.mubr.f32.mxu0 %v19144_v0  ;;  %494 = vmatprep.mubr.f32.mxu1 %v19144_v0 }
  0x1c   :  { %265 = vperm.xlu0 %15133, %v215_v24   ;;  %270 = vperm.xlu1 %15134, %v216_v25  }
  0x1e   :  { %11148 = vmatmul.mubr.msk.f32.gmra.mrb[10].mxu0 %vm303_vm0, %v196_v22  ;;  %11156 = vmatmul.mubr.msk.f32.gmra.mrb[10].mxu1 %vm303_vm0, %v204_v23 }
  0x1f   :  { %452 = vmatprep.mubr.f32.mxu0 %v19144_v0  ;;  %500 = vmatprep.mubr.f32.mxu1 %v19144_v0 }
  0x20   :  { %275 = vperm.xlu0 %15133, %v217_v28   ;;  %280 = vperm.xlu1 %15134, %v218_v29  }
  0x22   :  { %11149 = vmatmul.mubr.msk.f32.gmra.mrb[12].mxu0 %vm303_vm0, %v197_v26  ;;  %11157 = vmatmul.mubr.msk.f32.gmra.mrb[12].mxu1 %vm303_vm0, %v205_v27 }
  0x23   :  { %458 = vmatprep.mubr.f32.mxu0 %v19144_v0  ;;  %506 = vmatprep.mubr.f32.mxu1 %v19144_v0 }
  0x24   :  { %285 = vperm.xlu0 %15133, %v219_v32   ;;  %290 = vperm.xlu1 %15134, %v220_v33  }
  0x26   :  { %11150 = vmatmul.mubr.msk.f32.gmra.mrb[14].mxu0 %vm303_vm0, %v198_v30  ;;  %11158 = vmatmul.mubr.msk.f32.gmra.mrb[14].mxu1 %vm303_vm0, %v206_v31 }
  0x27   :  { %697 = vmatprep.mubr.f32.mxu1 %v19144_v0 }
  0x28   :  { %295 = vperm.xlu0 %15133, %v221_v34   ;;  %300 = vperm.xlu1 %15134, %v222_v35  }
  0x2c   :  { %595 = vperm.xlu0 %15133, %v585_v36   ;;  %600 = vperm.xlu1 %15134, %v586_v37  }
  0x30   :  { %605 = vperm.xlu0 %15133, %v587_v38   ;;  %610 = vperm.xlu1 %15134, %v588_v39  }
  0x34   :  { %615 = vperm.xlu0 %15133, %v589_v40   ;;  %620 = vperm.xlu1 %15134, %v590_v41  }
  0x38   :  { %625 = vperm.xlu0 %15133, %v591_v42   ;;  %630 = vperm.xlu1 %15134, %v592_v43  }
  0x3c   :  { %782 = vperm.xlu0 %15133, %v779_v44  }
  0x8b   :  { %v226_v45 = vpop.permute.xlu0 %225  ;;  %v236_v46 = vpop.permute.xlu1 %235 }
  0x8f   :  { %v231_v47 = vpop.permute.xlu0 %230  ;;  %v15579_v48 = vpop.permute.xlu1 %240 }
  0x93   :  { %v15581_v49 = vpop.permute.xlu0 %245  ;;  %v15583_v50 = vpop.permute.xlu1 %250 }
  0x97   :  { %v15585_v51 = vpop.permute.xlu0 %255  ;;  %v15587_v52 = vpop.permute.xlu1 %260 }
  0x9b   :  { %v266_v53 = vpop.permute.xlu0 %265  ;;  %v271_v62 = vpop.permute.xlu1 %270 }
  0x9f   :  { %v276_v12 = vpop.permute.xlu0 %275  ;;  %v281_v33 = vpop.permute.xlu1 %280 }
  0xdd   :  { %v418_v54 = vpop.f32.mrb[0].mxu0  ;;  %v466_v55 = vpop.f32.mrb[0].mxu1 }
  0xde   :  { %v419_v56 = vadd.f32 %v418_v54, %v226_v45  ;;  %v420_v57 = vpop.f32.mrb[1].mxu0  ;;  %v467_v58 = vadd.f32 %v466_v55, %v266_v53  ;;  %v468_v59 = vpop.f32.mrb[1].mxu1 }
  0xdf   :  { %v421_v60 = vadd.f32 %v420_v57, %v226_v45  ;;  %v469_v61 = vadd.f32 %v468_v59, %v266_v53  ;;  %v286_v55 = vpop.permute.xlu0 %285 }
  0xe0   :  { %v513_v63 = vmul.f32 0.01, %v419_v56  ;;  %v529_v1 = vmul.f32 0.01, %v467_v58 }
  0xe1   :  { %v514_v2 = vmul.f32 0.01, %v421_v60  ;;  %v424_v3 = vpop.f32.mrb[2].mxu0  ;;  %v530_v4 = vmul.f32 0.01, %v469_v61  ;;  %v472_v5 = vpop.f32.mrb[2].mxu1 }
  0xe2   :  { %v425_v6 = vadd.f32 %v424_v3, %v231_v47  ;;  %v426_v7 = vpop.f32.mrb[3].mxu0  ;;  %v473_v8 = vadd.f32 %v472_v5, %v271_v62  ;;  %v474_v9 = vpop.f32.mrb[3].mxu1  ;;  %v545_v13 = vmax.f32 %v419_v56, %v513_v63  ;;  %v561_v15 = vmax.f32 %v467_v58, %v529_v1 }
  0xe3   :  { %v427_v10 = vadd.f32 %v426_v7, %v231_v47  ;;  %v475_v11 = vadd.f32 %v474_v9, %v271_v62  ;;  %v546_v17 = vmax.f32 %v421_v60, %v514_v2  ;;  %v562_v19 = vmax.f32 %v469_v61, %v530_v4 }
  0xe4   :  { %v515_v14 = vmul.f32 0.01, %v425_v6  ;;  %v531_v16 = vmul.f32 0.01, %v473_v8 }
  0xe5   :  { %v516_v18 = vmul.f32 0.01, %v427_v10  ;;  %v430_v20 = vpop.f32.mrb[4].mxu0  ;;  %v532_v21 = vmul.f32 0.01, %v475_v11  ;;  %v478_v22 = vpop.f32.mrb[4].mxu1 }
  0xe6   :  { %v547_v23 = vmax.f32 %v425_v6, %v515_v14  ;;  %v431_v24 = vadd.f32 %v430_v20, %v236_v46  ;;  %v563_v25 = vmax.f32 %v473_v8, %v531_v16  ;;  %v432_v26 = vpop.f32.mrb[5].mxu0  ;;  %v479_v27 = vadd.f32 %v478_v22, %v276_v12  ;;  %v480_v28 = vpop.f32.mrb[5].mxu1 }
  0xe7   :  { %v548_v29 = vmax.f32 %v427_v10, %v516_v18  ;;  %v433_v30 = vadd.f32 %v432_v26, %v236_v46  ;;  %v564_v31 = vmax.f32 %v475_v11, %v532_v21  ;;  %v481_v32 = vadd.f32 %v480_v28, %v276_v12  ;;  %v291_v12 = vpop.permute.xlu1 %290  ;;  %v296_v28 = vpop.permute.xlu0 %295 }
  0xe8   :  { %v517_v34 = vmul.f32 0.01, %v431_v24  ;;  %v533_v35 = vmul.f32 0.01, %v479_v27  ;;  %v14107_v36 = vpack.c.bf16 %v547_v23, %v545_v13  ;;  %v15589_v37 = vpack.c.bf16 %v563_v25, %v561_v15 }
  0xe9   :  { %v518_v38 = vmul.f32 0.01, %v433_v30  ;;  %v534_v39 = vmul.f32 0.01, %v481_v32  ;;  %v436_v40 = vpop.f32.mrb[6].mxu0  ;;  %v484_v41 = vpop.f32.mrb[6].mxu1  ;;  %v14105_v42 = vpack.c.bf16 %v548_v29, %v546_v17  ;;  %v15591_v43 = vpack.c.bf16 %v564_v31, %v562_v19 }
  0xea   :  { %v437_v44 = vadd.f32 %v436_v40, %v15579_v48  ;;  %v485_v45 = vadd.f32 %v484_v41, %v281_v33  ;;  %v438_v47 = vpop.f32.mrb[7].mxu0  ;;  %v486_v46 = vpop.f32.mrb[7].mxu1  ;;  %v549_v56 = vmax.f32 %v431_v24, %v517_v34  ;;  %v565_v57 = vmax.f32 %v479_v27, %v533_v35 }
  0xeb   :  { %v439_v53 = vadd.f32 %v438_v47, %v15579_v48  ;;  %v487_v54 = vadd.f32 %v486_v46, %v281_v33  ;;  %14106 = vmatprep.subr.bf16.mxu1 %v14105_v42  ;;  %v550_v60 = vmax.f32 %v433_v30, %v518_v38  ;;  %v566_v61 = vmax.f32 %v481_v32, %v534_v39 }
  0xec   :  { %v519_v58 = vmul.f32 0.01, %v437_v44  ;;  %v535_v59 = vmul.f32 0.01, %v485_v45  ;;  %14108 = vmatpush1.bf16.msra.mxu1 %v14107_v36 }
  0xed   :  { %v520_v62 = vmul.f32 0.01, %v439_v53  ;;  %v536_v63 = vmul.f32 0.01, %v487_v54  ;;  %v442_v1 = vpop.f32.mrb[8].mxu0  ;;  %v490_v2 = vpop.f32.mrb[8].mxu1 }
  0xee   :  { %v551_v3 = vmax.f32 %v437_v44, %v519_v58  ;;  %v567_v4 = vmax.f32 %v485_v45, %v535_v59  ;;  %v443_v5 = vadd.f32 %v442_v1, %v15581_v49  ;;  %v491_v6 = vadd.f32 %v490_v2, %v286_v55  ;;  %v444_v48 = vpop.f32.mrb[9].mxu0  ;;  %v492_v7 = vpop.f32.mrb[9].mxu1 }
  0xef   :  { %v552_v8 = vmax.f32 %v439_v53, %v520_v62  ;;  %v568_v9 = vmax.f32 %v487_v54, %v536_v63  ;;  %v445_v10 = vadd.f32 %v444_v48, %v15581_v49  ;;  %v493_v11 = vadd.f32 %v492_v7, %v286_v55  ;;  %v301_v55 = vpop.permute.xlu1 %300 }
  0xf0   :  { %v521_v13 = vmul.f32 0.01, %v443_v5  ;;  %v537_v14 = vmul.f32 0.01, %v491_v6  ;;  %v14111_v15 = vpack.c.bf16 %v551_v3, %v549_v56  ;;  %v15597_v16 = vpack.c.bf16 %v567_v4, %v565_v57 }
  0xf1   :  { %v522_v17 = vmul.f32 0.01, %v445_v10  ;;  %v538_v18 = vmul.f32 0.01, %v493_v11  ;;  %v448_v19 = vpop.f32.mrb[10].mxu0  ;;  %v496_v20 = vpop.f32.mrb[10].mxu1  ;;  %v14109_v21 = vpack.c.bf16 %v552_v8, %v550_v60  ;;  %v15599_v22 = vpack.c.bf16 %v568_v9, %v566_v61 }
  0xf2   :  { %v449_v23 = vadd.f32 %v448_v19, %v15583_v50  ;;  %v497_v24 = vadd.f32 %v496_v20, %v291_v12  ;;  %v450_v25 = vpop.f32.mrb[11].mxu0  ;;  %v498_v26 = vpop.f32.mrb[11].mxu1  ;;  %v553_v29 = vmax.f32 %v443_v5, %v521_v13  ;;  %v569_v30 = vmax.f32 %v491_v6, %v537_v14 }
  0xf3   :  { %v451_v49 = vadd.f32 %v450_v25, %v15583_v50  ;;  %v499_v27 = vadd.f32 %v498_v26, %v291_v12  ;;  %14110 = vmatprep.subr.bf16.mxu1 %v14109_v21  ;;  %v554_v33 = vmax.f32 %v445_v10, %v522_v17  ;;  %v570_v34 = vmax.f32 %v493_v11, %v538_v18  ;;  %v582_v25 = vld [vmem:[%s11099_s25 + $0x28] sm:$0xff]  ;;  %v583_v26 = vld [vmem:[%s11099_s25 + $0x30] sm:$0xff] }
  0xf4   :  { %v523_v31 = vmul.f32 0.01, %v449_v23  ;;  %v539_v32 = vmul.f32 0.01, %v497_v24  ;;  %14112 = vmatpush1.bf16.msra.mxu1 %v14111_v15 }
  0xf5   :  { %v524_v35 = vmul.f32 0.01, %v451_v49  ;;  %v540_v36 = vmul.f32 0.01, %v499_v27  ;;  %v454_v38 = vpop.f32.mrb[12].mxu0  ;;  %v502_v39 = vpop.f32.mrb[12].mxu1 }
  0xf6   :  { %v555_v40 = vmax.f32 %v449_v23, %v523_v31  ;;  %v571_v41 = vmax.f32 %v497_v24, %v539_v32  ;;  %v455_v42 = vadd.f32 %v454_v38, %v15585_v51  ;;  %v503_v44 = vadd.f32 %v502_v39, %v296_v28  ;;  %v456_v50 = vpop.f32.mrb[13].mxu0  ;;  %v504_v45 = vpop.f32.mrb[13].mxu1  ;;  %v884_v31 = vld [vmem:[%s15625_s29 + $0x8] sm:$0xff]  ;;  %v886_v38 = vld [vmem:[%s15625_s29 + $0x18] sm:$0xff] }
  0xf7   :  { %v556_v47 = vmax.f32 %v451_v49, %v524_v35  ;;  %v572_v46 = vmax.f32 %v499_v27, %v540_v36  ;;  %v457_v53 = vadd.f32 %v456_v50, %v15585_v51  ;;  %v505_v54 = vadd.f32 %v504_v45, %v296_v28  ;;  %v584_v49 = vld [vmem:[%s11099_s25 + $0x38] sm:$0xff]  ;;  %v899_v27 = vld [vmem:[%s15625_s29 + $0x80] sm:$0xff]  ;;  %v900_v28 = vld [vmem:[%s15625_s29 + $0x88] sm:$0xff] }
  0xf8   :  { %v14115_v56 = vpack.c.bf16 %v555_v40, %v553_v29  ;;  %v14131_v57 = vpack.c.bf16 %v571_v41, %v569_v30  ;;  %v525_v62 = vmul.f32 0.01, %v455_v42  ;;  %v541_v63 = vmul.f32 0.01, %v503_v44  ;;  %v883_v30 = vld [vmem:[%s15625_s29] sm:$0xff]  ;;  %v885_v36 = vld [vmem:[%s15625_s29 + $0x10] sm:$0xff] }
  0xf9   :  { %v460_v58 = vpop.f32.mrb[14].mxu0  ;;  %v508_v59 = vpop.f32.mrb[14].mxu1  ;;  %v14113_v60 = vpack.c.bf16 %v556_v47, %v554_v33  ;;  %v14129_v61 = vpack.c.bf16 %v572_v46, %v570_v34  ;;  %v526_v5 = vmul.f32 0.01, %v457_v53  ;;  %v542_v6 = vmul.f32 0.01, %v505_v54 }
  0xfa   :  { %v461_v1 = vadd.f32 %v460_v58, %v15587_v52  ;;  %v509_v2 = vadd.f32 %v508_v59, %v301_v55  ;;  %v462_v3 = vpop.f32.mrb[15].mxu0  ;;  %v510_v4 = vpop.f32.mrb[15].mxu1  ;;  %v557_v11 = vmax.f32 %v455_v42, %v525_v62  ;;  %v573_v12 = vmax.f32 %v503_v44, %v541_v63  ;;  %v901_v33 = vld [vmem:[%s15625_s29 + $0x90] sm:$0xff]  ;;  %v902_v34 = vld [vmem:[%s15625_s29 + $0x98] sm:$0xff]  ;;  %v903_v40 = vld [vmem:[%s15625_s29 + $0xa0] sm:$0xff] }
  0xfb   :  { %v463_v48 = vadd.f32 %v462_v3, %v15587_v52  ;;  %v511_v51 = vadd.f32 %v510_v4, %v301_v55  ;;  %14114 = vmatprep.subr.bf16.mxu1 %v14113_v60  ;;  %v558_v15 = vmax.f32 %v457_v53, %v526_v5  ;;  %v574_v17 = vmax.f32 %v505_v54, %v542_v6  ;;  %v577_v52 = vld [vmem:[%s11099_s25] sm:$0xff]  ;;  %v904_v41 = vld [vmem:[%s15625_s29 + $0xa8] sm:$0xff]  ;;  %v905_v47 = vld [vmem:[%s15625_s29 + $0xb0] sm:$0xff]  ;;  %v596_v6 = vpop.permute.xlu0 %595 }
  0xfc   :  { %v527_v7 = vmul.f32 0.01, %v461_v1  ;;  %v543_v8 = vmul.f32 0.01, %v509_v2  ;;  %14116 = vmatpush1.bf16.msra.mxu1 %v14115_v56  ;;  %v14153_v29 = vpack.c.bf16 %v900_v28, %v899_v27  ;;  %v14155_v32 = vpack.c.bf16 %v884_v31, %v883_v30  ;;  %v887_v44 = vld [vmem:[%s15625_s29 + $0x20] sm:$0xff]  ;;  %v888_v50 = vld [vmem:[%s15625_s29 + $0x28] sm:$0xff] }
  0xfd   :  { %v528_v9 = vmul.f32 0.01, %v463_v48  ;;  %v544_v10 = vmul.f32 0.01, %v511_v51  ;;  %v14157_v35 = vpack.c.bf16 %v902_v34, %v901_v33  ;;  %v14159_v39 = vpack.c.bf16 %v886_v38, %v885_v36  ;;  %v906_v46 = vld [vmem:[%s15625_s29 + $0xb8] sm:$0xff]  ;;  %v889_v54 = vld [vmem:[%s15625_s29 + $0x30] sm:$0xff] }
  0xfe   :  { %v559_v13 = vmax.f32 %v461_v1, %v527_v7  ;;  %v575_v14 = vmax.f32 %v509_v2, %v543_v8  ;;  %14154 = vmatprep.subr.bf16.mxu0 %v14153_v29  ;;  %v14161_v42 = vpack.c.bf16 %v904_v41, %v903_v40  ;;  %v14163_v45 = vpack.c.bf16 %v888_v50, %v887_v44  ;;  %v890_v55 = vld [vmem:[%s15625_s29 + $0x38] sm:$0xff]  ;;  %v907_v56 = vld [vmem:[%s15625_s29 + $0xc0] sm:$0xff]  ;;  %v909_v62 = vld [vmem:[%s15625_s29 + $0xd0] sm:$0xff] }
  0xff   :  { %v560_v18 = vmax.f32 %v463_v48, %v528_v9  ;;  %v576_v19 = vmax.f32 %v511_v51, %v544_v10  ;;  %14156 = vmatpush3.bf16.msra.mxu0 %v14155_v32  ;;  %v14165_v53 = vpack.c.bf16 %v906_v46, %v905_v47  ;;  %v14167_v58 = vpack.c.bf16 %v890_v55, %v889_v54  ;;  %v891_v60 = vld [vmem:[%s15625_s29 + $0x40] sm:$0xff]  ;;  %v910_v63 = vld [vmem:[%s15625_s29 + $0xd8] sm:$0xff]  ;;  %v893_v3 = vld [vmem:[%s15625_s29 + $0x50] sm:$0xff]  ;;  %v601_v9 = vpop.permute.xlu1 %600 }
 0x100   :  { %v14119_v20 = vpack.c.bf16 %v559_v13, %v557_v11  ;;  %v14135_v21 = vpack.c.bf16 %v575_v14, %v573_v12  ;;  %14158 = vmatprep.subr.bf16.mxu0 %v14157_v35  ;;  %v14173_v2 = vpack.c.bf16 %v910_v63, %v909_v62  ;;  %v894_v4 = vld [vmem:[%s15625_s29 + $0x58] sm:$0xff] }
 0x101   :  { %v14117_v23 = vpack.c.bf16 %v560_v18, %v558_v15  ;;  %v14133_v24 = vpack.c.bf16 %v576_v19, %v574_v17  ;;  %v14175_v5 = vpack.c.bf16 %v894_v4, %v893_v3  ;;  %v606_v18 = vpop.permute.xlu0 %605 }
 0x103   :  { %14118 = vmatprep.subr.bf16.mxu1 %v14117_v23  ;;  %14160 = vmatpush3.bf16.msra.mxu0 %v14159_v39 }
 0x104   :  { %14120 = vmatpush1.bf16.msra.mxu1 %v14119_v20  ;;  %14162 = vmatprep.subr.bf16.mxu0 %v14161_v42 }
 0x105   :  { %14122 = vmatprep.subr.bf16.mxu1 %v15591_v43  ;;  %v578_v43 = vld [vmem:[%s11099_s25 + $0x8] sm:$0xff]  ;;  %v616_v33 = vpop.permute.xlu0 %615 }
 0x107   :  { %14164 = vmatpush3.bf16.msra.mxu0 %v14163_v45 }
 0x108   :  { %14124 = vmatpush1.bf16.msra.mxu1 %v15589_v37  ;;  %v579_v37 = vld [vmem:[%s11099_s25 + $0x10] sm:$0xff]  ;;  %14166 = vmatprep.subr.bf16.mxu0 %v14165_v53 }
 0x109   :  { %14126 = vmatprep.subr.bf16.mxu1 %v15599_v22  ;;  %v581_v22 = vld [vmem:[%s11099_s25 + $0x20] sm:$0xff] }
 0x10b   :  { %14168 = vmatpush3.bf16.msra.mxu0 %v14167_v58 }
 0x10c   :  { %14128 = vmatpush1.bf16.msra.mxu1 %v15597_v16  ;;  %v580_v16 = vld [vmem:[%s11099_s25 + $0x18] sm:$0xff]  ;;  %s15447_s25 = smov 13  }
 0x10d   :  { %14130 = vmatprep.subr.bf16.mxu1 %v14129_v61  ;;  %v892_v61 = vld [vmem:[%s15625_s29 + $0x48] sm:$0xff]  ;;  %s15960_s28 = sld [smem:[%s19143_s0 + %s15447_s25]]   ;;  %s15457_s25 = smov 21  }
 0x10e   :  { %v14171_v1 = vpack.c.bf16 %v892_v61, %v891_v60 }
 0x110   :  { %14132 = vmatpush1.bf16.msra.mxu1 %v14131_v57  ;;  %v908_v57 = vld [vmem:[%s15625_s29 + $0xc8] sm:$0xff] }
 0x111   :  { %14134 = vmatprep.subr.bf16.mxu1 %v14133_v24  ;;  %v14169_v59 = vpack.c.bf16 %v908_v57, %v907_v56 }
 0x113   :  { %14170 = vmatprep.subr.bf16.mxu0 %v14169_v59  ;;  %v626_v59 = vpop.permute.xlu0 %625 }
 0x114   :  { %14136 = vmatpush1.bf16.msra.mxu1 %v14135_v21  ;;  %14172 = vmatpush3.bf16.msra.mxu0 %v14171_v1 }
 0x115   :  { %14174 = vmatprep.subr.bf16.mxu0 %v14173_v2 }
 0x117   :  { %698 = vmatmul.mubr.f32.vlgmr.msra.gmra.mrb[16].mxu1 %v577_v52 }
 0x118   :  { %703 = vmatprep.mubr.f32.mxu1 %v19144_v0  ;;  %14176 = vmatpush3.bf16.msra.mxu0 %v14175_v5 }
 0x11b   :  { %704 = vmatmul.mubr.f32.gmra.mrb[18].mxu1 %v578_v43 }
 0x11c   :  { %709 = vmatprep.mubr.f32.mxu1 %v19144_v0 }
 0x11f   :  { %710 = vmatmul.mubr.f32.gmra.mrb[20].mxu1 %v579_v37 }
 0x120   :  { %715 = vmatprep.mubr.f32.mxu1 %v19144_v0 }
 0x123   :  { %716 = vmatmul.mubr.f32.gmra.mrb[22].mxu1 %v580_v16 }
 0x124   :  { %721 = vmatprep.mubr.f32.mxu1 %v19144_v0 }
 0x127   :  { %722 = vmatmul.mubr.f32.gmra.mrb[24].mxu1 %v581_v22 }
 0x128   :  { %727 = vmatprep.mubr.f32.mxu1 %v19144_v0 }
 0x12b   :  { %728 = vmatmul.mubr.f32.gmra.mrb[26].mxu1 %v582_v25  ;;  %v611_v25 = vpop.permute.xlu1 %610 }
 0x12c   :  { %733 = vmatprep.mubr.f32.mxu1 %v19144_v0 }
 0x12f   :  { %734 = vmatmul.mubr.f32.gmra.mrb[28].mxu1 %v583_v26  ;;  %v621_v45 = vpop.permute.xlu1 %620 }
 0x130   :  { %739 = vmatprep.mubr.f32.mxu1 %v19144_v0 }
 0x133   :  { %740 = vmatmul.mubr.f32.gmra.mrb[30].mxu1 %v584_v49 }
 0x134   :  { %853 = vmatprep.mubr.f32.mxu1 %v19144_v0 }
 0x1ea   :  { %v699_v48 = vpop.f32.mrb[16].mxu1 }
 0x1eb   :  { %v700_v51 = vadd.f32 %v699_v48, %v596_v6  ;;  %v701_v7 = vpop.f32.mrb[17].mxu1  ;;  %v631_v48 = vpop.permute.xlu1 %630 }
 0x1ec   :  { %v702_v8 = vadd.f32 %v701_v7, %v596_v6 }
 0x1ed   :  { %v746_v11 = vmul.f32 0.01, %v700_v51 }
 0x1ee   :  { %v705_v10 = vpop.f32.mrb[18].mxu1  ;;  %v747_v14 = vmul.f32 0.01, %v702_v8 }
 0x1ef   :  { %v706_v12 = vadd.f32 %v705_v10, %v601_v9  ;;  %v707_v13 = vpop.f32.mrb[19].mxu1  ;;  %v762_v21 = vmax.f32 %v700_v51, %v746_v11 }
 0x1f0   :  { %v708_v15 = vadd.f32 %v707_v13, %v601_v9  ;;  %v763_v43 = vmax.f32 %v702_v8, %v747_v14 }
 0x1f1   :  { %v748_v17 = vmul.f32 0.01, %v706_v12 }
 0x1f2   :  { %v749_v19 = vmul.f32 0.01, %v708_v15  ;;  %v711_v20 = vpop.f32.mrb[20].mxu1 }
 0x1f3   :  { %v764_v23 = vmax.f32 %v706_v12, %v748_v17  ;;  %v712_v24 = vadd.f32 %v711_v20, %v606_v18  ;;  %v713_v52 = vpop.f32.mrb[21].mxu1 }
 0x1f4   :  { %v765_v37 = vmax.f32 %v708_v15, %v749_v19  ;;  %v714_v16 = vadd.f32 %v713_v52, %v606_v18  ;;  %v11176_v18 = vld [vmem:[%s15625_s29 + $0x180] sm:$0xff]  ;;  %v11177_v19 = vld [vmem:[%s15625_s29 + $0x188] sm:$0xff] }
 0x1f5   :  { %v14139_v22 = vpack.c.bf16 %v764_v23, %v762_v21  ;;  %v750_v27 = vmul.f32 0.01, %v712_v24  ;;  %v14185_v52 = vpack.c.bf16 %v11177_v19, %v11176_v18 }
 0x1f6   :  { %v717_v26 = vpop.f32.mrb[22].mxu1  ;;  %v14137_v49 = vpack.c.bf16 %v765_v37, %v763_v43  ;;  %v751_v30 = vmul.f32 0.01, %v714_v16  ;;  %v11160_v43 = vld [vmem:[%s15625_s29 + $0x100] sm:$0xff]  ;;  %v11161_v37 = vld [vmem:[%s15625_s29 + $0x108] sm:$0xff] }
 0x1f7   :  { %v718_v28 = vadd.f32 %v717_v26, %v611_v25  ;;  %v719_v29 = vpop.f32.mrb[23].mxu1  ;;  %v766_v36 = vmax.f32 %v712_v24, %v750_v27  ;;  %v14187_v26 = vpack.c.bf16 %v11161_v37, %v11160_v43  ;;  %v11162_v27 = vld [vmem:[%s15625_s29 + $0x110] sm:$0xff]  ;;  %v19148_v37 = vlaneseq }
 0x1f8   :  { %v720_v31 = vadd.f32 %v719_v29, %v611_v25  ;;  %14138 = vmatprep.subr.bf16.mxu1 %v14137_v49  ;;  %v767_v41 = vmax.f32 %v714_v16, %v751_v30  ;;  %v11178_v16 = vld [vmem:[%s15625_s29 + $0x190] sm:$0xff]  ;;  %v778_v25 = vld [vmem:[%s11101_s3] sm:$0xf]  ;;  %v11181_v30 = vld [vmem:[%s15625_s29 + $0x1a8] sm:$0xff]  ;;  %s15451_s3 = smov 64  }
 0x1f9   :  { %v752_v32 = vmul.f32 0.01, %v718_v28  ;;  %14140 = vmatpush1.bf16.msra.mxu1 %v14139_v22  ;;  %v11179_v22 = vld [vmem:[%s15625_s29 + $0x198] sm:$0xff]  ;;  %v11180_v29 = vld [vmem:[%s15625_s29 + $0x1a0] sm:$0xff] }
 0x1fa   :  { %v753_v34 = vmul.f32 0.01, %v720_v31  ;;  %v723_v35 = vpop.f32.mrb[24].mxu1  ;;  %v14189_v49 = vpack.c.bf16 %v11179_v22, %v11178_v16  ;;  %v15705_v16 = vshrl.u32 %v19148_v37, 7 }
 0x1fb   :  { %v768_v38 = vmax.f32 %v718_v28, %v752_v32  ;;  %v724_v39 = vadd.f32 %v723_v35, %v616_v33  ;;  %v725_v40 = vpop.f32.mrb[25].mxu1  ;;  %v11163_v28 = vld [vmem:[%s15625_s29 + $0x118] sm:$0xff]  ;;  %v14193_v32 = vpack.c.bf16 %v11181_v30, %v11180_v29  ;;  %v11182_v35 = vld [vmem:[%s15625_s29 + $0x1b0] sm:$0xff]  ;;  %v15718_v30 = vld [vmem:[%s15702_s8 + $0x8] sm:$0xff] }
 0x1fc   :  { %v769_v42 = vmax.f32 %v720_v31, %v753_v34  ;;  %v726_v44 = vadd.f32 %v725_v40, %v616_v33  ;;  %v14191_v31 = vpack.c.bf16 %v11163_v28, %v11162_v27  ;;  %v11164_v33 = vld [vmem:[%s15625_s29 + $0x120] sm:$0xff]  ;;  %v11165_v34 = vld [vmem:[%s15625_s29 + $0x128] sm:$0xff]  ;;  %v11166_v40 = vld [vmem:[%s15625_s29 + $0x130] sm:$0xff]  ;;  %19228 = vst [vmem:[#allocation2_spill] sm:$0xff] %v15705_v16  ;;  %v15708_v22 = vsub.s32 0, %v15705_v16 }
 0x1fd   :  { %v14143_v50 = vpack.c.bf16 %v768_v38, %v766_v36  ;;  %v754_v53 = vmul.f32 0.01, %v724_v39  ;;  %v11183_v36 = vld [vmem:[%s15625_s29 + $0x1b8] sm:$0xff]  ;;  %v14195_v38 = vpack.c.bf16 %v11165_v34, %v11164_v33  ;;  %v11193_v34 = vld [vmem:[%s15625_s29 + $0x208] sm:$0xff] }
 0x1fe   :  { %v729_v47 = vpop.f32.mrb[26].mxu1  ;;  %v14141_v46 = vpack.c.bf16 %v769_v42, %v767_v41  ;;  %v755_v56 = vmul.f32 0.01, %v726_v44  ;;  %v11167_v41 = vld [vmem:[%s15625_s29 + $0x138] sm:$0xff]  ;;  %v11184_v42 = vld [vmem:[%s15625_s29 + $0x1c0] sm:$0xff]  ;;  %19229 = vst [vmem:[#allocation3_spill] sm:$0xff] %v15708_v22 }
 0x1ff   :  { %v730_v54 = vadd.f32 %v729_v47, %v621_v45  ;;  %v731_v55 = vpop.f32.mrb[27].mxu1  ;;  %v770_v62 = vmax.f32 %v724_v39, %v754_v53  ;;  %v14197_v39 = vpack.c.bf16 %v11183_v36, %v11182_v35  ;;  %v11168_v47 = vld [vmem:[%s15625_s29 + $0x140] sm:$0xff]  ;;  %v11186_v53 = vld [vmem:[%s15625_s29 + $0x1d0] sm:$0xff]  ;;  %v11225_v36 = vld [vmem:[%s15625_s29 + $0x308] sm:$0xff] }
 0x200   :  { %v732_v57 = vadd.f32 %v731_v55, %v621_v45  ;;  %14142 = vmatprep.subr.bf16.mxu1 %v14141_v46  ;;  %v771_v3 = vmax.f32 %v726_v44, %v755_v56  ;;  %v11185_v44 = vld [vmem:[%s15625_s29 + $0x1c8] sm:$0xff]  ;;  %v11224_v35 = vld [vmem:[%s15625_s29 + $0x300] sm:$0xff] }
 0x201   :  { %v756_v58 = vmul.f32 0.01, %v730_v54  ;;  %14144 = vmatpush1.bf16.msra.mxu1 %v14143_v50  ;;  %v14199_v50 = vpack.c.bf16 %v11167_v41, %v11166_v40  ;;  %v14201_v45 = vpack.c.bf16 %v11185_v44, %v11184_v42  ;;  %v11169_v46 = vld [vmem:[%s15625_s29 + $0x148] sm:$0xff]  ;;  %v15737_v40 = vld [vmem:[%s15702_s8] sm:$0xff]  ;;  %v11210_v41 = vld [vmem:[%s15625_s29 + $0x290] sm:$0xff] }
 0x202   :  { %v757_v60 = vmul.f32 0.01, %v732_v57  ;;  %v735_v61 = vpop.f32.mrb[28].mxu1  ;;  %v14203_v55 = vpack.c.bf16 %v11169_v46, %v11168_v47  ;;  %v11211_v42 = vld [vmem:[%s15625_s29 + $0x298] sm:$0xff]  ;;  %v11242_v44 = vld [vmem:[%s15625_s29 + $0x390] sm:$0xff] }
 0x203   :  { %v772_v63 = vmax.f32 %v730_v54, %v756_v58  ;;  %v736_v1 = vadd.f32 %v735_v61, %v626_v59  ;;  %v737_v2 = vpop.f32.mrb[29].mxu1  ;;  %v11187_v54 = vld [vmem:[%s15625_s29 + $0x1d8] sm:$0xff]  ;;  %v912_v61 = vld [vmem:[%s15625_s29 + $0xe8] sm:$0xff] }
 0x204   :  { %v773_v4 = vmax.f32 %v732_v57, %v757_v60  ;;  %v738_v5 = vadd.f32 %v737_v2, %v626_v59  ;;  %v14205_v56 = vpack.c.bf16 %v11187_v54, %v11186_v53  ;;  %v11170_v57 = vld [vmem:[%s15625_s29 + $0x150] sm:$0xff]  ;;  %v11171_v58 = vld [vmem:[%s15625_s29 + $0x158] sm:$0xff]  ;;  %v911_v60 = vld [vmem:[%s15625_s29 + $0xe0] sm:$0xff]  ;;  %v14251_v53 = vpack.c.bf16 %v11225_v36, %v11224_v35 }
 0x205   :  { %v14147_v6 = vpack.c.bf16 %v772_v63, %v770_v62  ;;  %v758_v8 = vmul.f32 0.01, %v736_v1  ;;  %v14207_v59 = vpack.c.bf16 %v11171_v58, %v11170_v57  ;;  %v11188_v62 = vld [vmem:[%s15625_s29 + $0x1e0] sm:$0xff]  ;;  %v14177_v63 = vpack.c.bf16 %v912_v61, %v911_v60  ;;  %v15746_v54 = vld [vmem:[%s15702_s8 + $0x18] sm:$0xff] }
 0x206   :  { %v741_v51 = vpop.f32.mrb[30].mxu1  ;;  %v14145_v7 = vpack.c.bf16 %v773_v4, %v771_v3  ;;  %v759_v11 = vmul.f32 0.01, %v738_v5  ;;  %v895_v2 = vld [vmem:[%s15625_s29 + $0x60] sm:$0xff]  ;;  %v896_v3 = vld [vmem:[%s15625_s29 + $0x68] sm:$0xff]  ;;  %v11195_v58 = vld [vmem:[%s15625_s29 + $0x218] sm:$0xff] }
 0x207   :  { %v742_v9 = vadd.f32 %v741_v51, %v631_v48  ;;  %v743_v10 = vpop.f32.mrb[31].mxu1  ;;  %v774_v15 = vmax.f32 %v736_v1, %v758_v8  ;;  %v11189_v1 = vld [vmem:[%s15625_s29 + $0x1e8] sm:$0xff]  ;;  %14178 = vmatprep.subr.bf16.mxu0 %v14177_v63  ;;  %v914_v8 = vld [vmem:[%s15625_s29 + $0xf8] sm:$0xff]  ;;  %v15757_v61 = vsub.s32 2, %v15705_v16 }
 0x208   :  { %v744_v12 = vadd.f32 %v743_v10, %v631_v48  ;;  %14146 = vmatprep.subr.bf16.mxu1 %v14145_v7  ;;  %v775_v20 = vmax.f32 %v738_v5, %v759_v11  ;;  %v14209_v4 = vpack.c.bf16 %v11189_v1, %v11188_v62  ;;  %v14179_v5 = vpack.c.bf16 %v896_v3, %v895_v2  ;;  %v11173_v48 = vld [vmem:[%s15625_s29 + $0x168] sm:$0xff]  ;;  %v913_v7 = vld [vmem:[%s15625_s29 + $0xf0] sm:$0xff]  ;;  %v11191_v11 = vld [vmem:[%s15625_s29 + $0x1f8] sm:$0xff] }
 0x209   :  { %v760_v13 = vmul.f32 0.01, %v742_v9  ;;  %14148 = vmatpush1.bf16.msra.mxu1 %v14147_v6  ;;  %v11172_v6 = vld [vmem:[%s15625_s29 + $0x160] sm:$0xff]  ;;  %v11190_v10 = vld [vmem:[%s15625_s29 + $0x1f0] sm:$0xff]  ;;  %v11227_v60 = vld [vmem:[%s15625_s29 + $0x318] sm:$0xff]  ;;  %19231 = vst [vmem:[#allocation5_spill] sm:$0xff] %v15757_v61  ;;  %v14221_v62 = vpack.c.bf16 %v11211_v42, %v11210_v41 }
 0x20a   :  { %v761_v14 = vmul.f32 0.01, %v744_v12  ;;  %v14211_v51 = vpack.c.bf16 %v11173_v48, %v11172_v6  ;;  %14180 = vmatpush3.bf16.msra.mxu0 %v14179_v5  ;;  %v15760_v1 = vld [vmem:[%s15702_s8 + $0x10] sm:$0xff]  ;;  %v11212_v2 = vld [vmem:[%s15625_s29 + $0x2a0] sm:$0xff]  ;;  %v15764_v3 = vsub.s32 3, %v15705_v16  ;;  %v11213_v6 = vld [vmem:[%s15625_s29 + $0x2a8] sm:$0xff] }
 0x20b   :  { %v776_v17 = vmax.f32 %v742_v9, %v760_v13  ;;  %v14181_v9 = vpack.c.bf16 %v914_v8, %v913_v7  ;;  %v14213_v13 = vpack.c.bf16 %v11191_v11, %v11190_v10  ;;  %v11244_v48 = vld [vmem:[%s15625_s29 + $0x3a0] sm:$0xff]  ;;  %v11199_v35 = vld [vmem:[%s15625_s29 + $0x238] sm:$0xff] }
 0x20c   :  { %v777_v21 = vmax.f32 %v744_v12, %v761_v14  ;;  %v897_v12 = vld [vmem:[%s15625_s29 + $0x70] sm:$0xff]  ;;  %v898_v14 = vld [vmem:[%s15625_s29 + $0x78] sm:$0xff]  ;;  %19232 = vst [vmem:[#allocation6_spill] sm:$0xff] %v15764_v3  ;;  %v11196_v10 = vld [vmem:[%s15625_s29 + $0x220] sm:$0xff] }
 0x20d   :  { %v14151_v23 = vpack.c.bf16 %v776_v17, %v774_v15  ;;  %v11174_v15 = vld [vmem:[%s15625_s29 + $0x170] sm:$0xff]  ;;  %v11175_v17 = vld [vmem:[%s15625_s29 + $0x178] sm:$0xff]  ;;  %14182 = vmatprep.subr.bf16.mxu0 %v14181_v9  ;;  %v14183_v18 = vpack.c.bf16 %v898_v14, %v897_v12  ;;  %v15772_v9 = vld [vmem:[%s15702_s8 + $0x28] sm:$0xff] }
 0x20e   :  { %v14149_v24 = vpack.c.bf16 %v777_v21, %v775_v20  ;;  %v14215_v19 = vpack.c.bf16 %v11175_v17, %v11174_v15  ;;  %v11208_v20 = vld [vmem:[%s15625_s29 + $0x280] sm:$0xff]  ;;  %v11209_v21 = vld [vmem:[%s15625_s29 + $0x288] sm:$0xff]  ;;  %v14225_v17 = vpack.c.bf16 %v11213_v6, %v11212_v2  ;;  %v11251_v2 = vld [vmem:[%s15625_s29 + $0x3d8] sm:$0xff] }
 0x20f   :  { %14184 = vmatpush3.bf16.msra.mxu0 %v14183_v18  ;;  %v11228_v14 = vld [vmem:[%s15625_s29 + $0x320] sm:$0xff]  ;;  %v11229_v15 = vld [vmem:[%s15625_s29 + $0x328] sm:$0xff]  ;;  %v11202_v6 = vld [vmem:[%s15625_s29 + $0x250] sm:$0xff] }
 0x210   :  { %14150 = vmatprep.subr.bf16.mxu1 %v14149_v24  ;;  %v14217_v24 = vpack.c.bf16 %v11209_v21, %v11208_v20  ;;  %v11214_v21 = vld [vmem:[%s15625_s29 + $0x2b0] sm:$0xff]  ;;  %v11216_v41 = vld [vmem:[%s15625_s29 + $0x2c0] sm:$0xff] }
 0x211   :  { %14152 = vmatpush1.bf16.msra.mxu1 %v14151_v23  ;;  %v11240_v23 = vld [vmem:[%s15625_s29 + $0x380] sm:$0xff] }
 0x212   :  { %14186 = vmatprep.subr.bf16.mxu1 %v14185_v52  ;;  %v11241_v52 = vld [vmem:[%s15625_s29 + $0x388] sm:$0xff]  ;;  %14218 = vmatprep.subr.bf16.mxu0 %v14217_v24 }
 0x213   :  { %v14249_v43 = vpack.c.bf16 %v11241_v52, %v11240_v23 }
 0x214   :  { %11159 = vmatmul.mubr.msk.f32.vlgmr.msra.gmra.mrb[32].mxu1 %vm785_vm1, %v778_v25  ;;  %v15711_v25 = vsub.s32 1, %v15705_v16 }
 0x215   :  { %14188 = vmatpush3.bf16.msra.mxu1 %v14187_v26  ;;  %v783_v26 = vpop.permute.xlu0 %782 }
 0x216   :  { %14190 = vmatprep.subr.bf16.mxu1 %v14189_v49  ;;  %19230 = vst [vmem:[#allocation4_spill] sm:$0xff] %v15711_v25 }
 0x219   :  { %14192 = vmatpush3.bf16.msra.mxu1 %v14191_v31  ;;  %v11192_v31 = vld [vmem:[%s15625_s29 + $0x200] sm:$0xff] }
 0x21a   :  { %14194 = vmatprep.subr.bf16.mxu1 %v14193_v32  ;;  %v14219_v46 = vpack.c.bf16 %v11193_v34, %v11192_v31  ;;  %v14259_v31 = vpack.c.bf16 %v11229_v15, %v11228_v14  ;;  %v11198_v34 = vld [vmem:[%s15625_s29 + $0x230] sm:$0xff]  ;;  %v11253_v14 = vld [vmem:[%s15625_s29 + $0x3e8] sm:$0xff] }
 0x21d   :  { %14196 = vmatpush3.bf16.msra.mxu1 %v14195_v38 }
 0x21e   :  { %14198 = vmatprep.subr.bf16.mxu1 %v14197_v39 }
 0x221   :  { %14200 = vmatpush3.bf16.msra.mxu1 %v14199_v50  ;;  %v11243_v50 = vld [vmem:[%s15625_s29 + $0x398] sm:$0xff] }
 0x222   :  { %14202 = vmatprep.subr.bf16.mxu1 %v14201_v45  ;;  %v14253_v63 = vpack.c.bf16 %v11243_v50, %v11242_v44  ;;  %v11217_v50 = vld [vmem:[%s15625_s29 + $0x2c8] sm:$0xff] }
 0x225   :  { %14204 = vmatpush3.bf16.msra.mxu1 %v14203_v55  ;;  %v11194_v55 = vld [vmem:[%s15625_s29 + $0x210] sm:$0xff] }
 0x226   :  { %14206 = vmatprep.subr.bf16.mxu1 %v14205_v56  ;;  %v14223_v7 = vpack.c.bf16 %v11195_v58, %v11194_v55  ;;  %v11200_v55 = vld [vmem:[%s15625_s29 + $0x240] sm:$0xff] }
 0x229   :  { %14208 = vmatpush3.bf16.msra.mxu1 %v14207_v59  ;;  %v11226_v59 = vld [vmem:[%s15625_s29 + $0x310] sm:$0xff] }
 0x22a   :  { %14210 = vmatprep.subr.bf16.mxu1 %v14209_v4  ;;  %v14255_v8 = vpack.c.bf16 %v11227_v60, %v11226_v59  ;;  %v11232_v59 = vld [vmem:[%s15625_s29 + $0x340] sm:$0xff]  ;;  %v11233_v60 = vld [vmem:[%s15625_s29 + $0x348] sm:$0xff] }
 0x22d   :  { %14212 = vmatpush3.bf16.msra.mxu1 %v14211_v51  ;;  %v11245_v51 = vld [vmem:[%s15625_s29 + $0x3a8] sm:$0xff] }
 0x22e   :  { %14214 = vmatprep.subr.bf16.mxu1 %v14213_v13  ;;  %v11197_v13 = vld [vmem:[%s15625_s29 + $0x228] sm:$0xff]  ;;  %v14257_v18 = vpack.c.bf16 %v11245_v51, %v11244_v48  ;;  %v11203_v48 = vld [vmem:[%s15625_s29 + $0x258] sm:$0xff] }
 0x22f   :  { %v14239_v15 = vpack.c.bf16 %v11203_v48, %v11202_v6 }
 0x231   :  { %14216 = vmatpush3.bf16.msra.mxu1 %v14215_v19  ;;  %v15783_v19 = vld [vmem:[%s15702_s8 + $0x20] sm:$0xff]  ;;  %s17254_s8 = sld [smem:[%s19143_s0 + %s15452_s4]]  }
 0x232   :  { %14250 = vmatprep.subr.bf16.mxu1 %v14249_v43  ;;  %v11215_v43 = vld [vmem:[%s15625_s29 + $0x2b8] sm:$0xff] }
 0x233   :  { %v14229_v42 = vpack.c.bf16 %v11215_v43, %v11214_v21  ;;  %v11205_v21 = vld [vmem:[%s15625_s29 + $0x268] sm:$0xff]  ;;  %v11236_v43 = vld [vmem:[%s15625_s29 + $0x360] sm:$0xff] }
 0x2e7   :  { %v855_v49 = vpop.f32.mrb[32].mxu1 }
 0x2e8   :  { %v15713_v27 = vadd.f32 %v855_v49, %v783_v26  ;;  %v857_v28 = vpop.f32.mrb[33].mxu1  ;;  %v11247_v49 = vld [vmem:[%s15625_s29 + $0x3b8] sm:$0xff] }
 0x2e9   :  { %v15715_v29 = vadd.f32 %v857_v28, %v783_v26  ;;  %v11246_v26 = vld [vmem:[%s15625_s29 + $0x3b0] sm:$0xff]  ;;  %v14227_v28 = vpack.c.bf16 %v11197_v13, %v11196_v10  ;;  %v11235_v10 = vld [vmem:[%s15625_s29 + $0x358] sm:$0xff]  ;;  %v11252_v13 = vld [vmem:[%s15625_s29 + $0x3e0] sm:$0xff] }
 0x2ea   :  { %v15723_v32 = vrot.slane %v15713_v27, %v15708_v22  ;;  %v15727_v33 = vrot.slane %v15713_v27, %v15711_v25  ;;  %v14261_v44 = vpack.c.bf16 %v11247_v49, %v11246_v26  ;;  %v11237_v26 = vld [vmem:[%s15625_s29 + $0x368] sm:$0xff]  ;;  %v11222_v49 = vld [vmem:[%s15625_s29 + $0x2f0] sm:$0xff] }
 0x2eb   :  { %v876_v38 = vrot.slane %v15715_v29, %v15708_v22  ;;  %v1005_v39 = vrot.slane %v15715_v29, %v15711_v25  ;;  %v15787_v20 = vrot.slane %v15715_v29, %v15757_v61  ;;  %v15794_v52 = vrot.slane %v15715_v29, %v15764_v3 }
 0x2ec   :  { %v877_v56 = vmul.f32 %v15723_v32, %v15737_v40  ;;  %v1006_v57 = vmul.f32 %v15727_v33, %v15737_v40  ;;  %v879_v11 = vmul.f32 %v15723_v32, %v15760_v1  ;;  %v1008_v12 = vmul.f32 %v15727_v33, %v15760_v1 }
 0x2ed   :  { %v878_v45 = vmul.f32 %v876_v38, %v15718_v30  ;;  %v1007_v47 = vmul.f32 %v1005_v39, %v15718_v30  ;;  %v880_v4 = vmul.f32 %v876_v38, %v15746_v54  ;;  %v1009_v5 = vmul.f32 %v1005_v39, %v15746_v54 }
 0x2ee   :  { %v882_v23 = vmul.f32 %v876_v38, %v15772_v9  ;;  %v1011_v24 = vmul.f32 %v1005_v39, %v15772_v9  ;;  %v881_v36 = vmul.f32 %v15723_v32, %v15783_v19  ;;  %v1010_v29 = vmul.f32 %v15727_v33, %v15783_v19  ;;  %v11230_v38 = vld [vmem:[%s15625_s29 + $0x330] sm:$0xff]  ;;  %v11231_v39 = vld [vmem:[%s15625_s29 + $0x338] sm:$0xff] }
 0x2ef   :  { %979 = vmatprep.mubr.f32.mxu0 %v878_v45  ;;  %1109 = vmatprep.mubr.f32.mxu1 %v1007_v47  ;;  %v11248_v45 = vld [vmem:[%s15625_s29 + $0x3c0] sm:$0xff]  ;;  %v11249_v47 = vld [vmem:[%s15625_s29 + $0x3c8] sm:$0xff]  ;;  %v1137_v32 = vmul.f32 %v15787_v20, %v15718_v30  ;;  %v1267_v33 = vmul.f32 %v15794_v52, %v15718_v30  ;;  %v11219_v30 = vld [vmem:[%s15625_s29 + $0x2d8] sm:$0xff] }
 0x2f0   :  { %980 = vmatmul.mubr.f32.vlgmr.msra.gmra.mrb[16].mxu0 %v877_v56  ;;  %1110 = vmatmul.mubr.f32.vlgmr.msra.gmra.mrb[34].mxu1 %v1006_v57  ;;  %v11201_v56 = vld [vmem:[%s15625_s29 + $0x248] sm:$0xff]  ;;  %v14233_v57 = vpack.c.bf16 %v11217_v50, %v11216_v41  ;;  %v14265_v58 = vpack.c.bf16 %v11249_v47, %v11248_v45  ;;  %v11207_v41 = vld [vmem:[%s15625_s29 + $0x278] sm:$0xff]  ;;  %v1131_v47 = vrot.slane %v15713_v27, %v15757_v61 }
 0x2f1   :  { %14220 = vmatpush3.bf16.msra.mxu0 %v14219_v46  ;;  %14252 = vmatpush3.bf16.msra.mxu1 %v14251_v53  ;;  %v14231_v46 = vpack.c.bf16 %v11199_v35, %v11198_v34  ;;  %v14263_v53 = vpack.c.bf16 %v11231_v39, %v11230_v38  ;;  %v11255_v34 = vld [vmem:[%s15625_s29 + $0x3f8] sm:$0xff] }
 0x2f2   :  { %984 = vmatprep.mubr.f32.mxu0 %v880_v4  ;;  %1114 = vmatprep.mubr.f32.mxu1 %v1009_v5  ;;  %v14235_v4 = vpack.c.bf16 %v11201_v56, %v11200_v55  ;;  %v14267_v5 = vpack.c.bf16 %v11233_v60, %v11232_v59  ;;  %v1269_v55 = vmul.f32 %v15794_v52, %v15746_v54 }
 0x2f3   :  { %14222 = vmatprep.subr.bf16.mxu0 %v14221_v62  ;;  %14254 = vmatprep.subr.bf16.mxu1 %v14253_v63  ;;  %v11218_v62 = vld [vmem:[%s15625_s29 + $0x2d0] sm:$0xff] }
 0x2f4   :  { %985 = vmatmul.mubr.f32.gmra.mrb[18].mxu0 %v879_v11  ;;  %1115 = vmatmul.mubr.f32.gmra.mrb[36].mxu1 %v1008_v12  ;;  %v11250_v63 = vld [vmem:[%s15625_s29 + $0x3d0] sm:$0xff]  ;;  %v14237_v51 = vpack.c.bf16 %v11219_v30, %v11218_v62  ;;  %v11220_v11 = vld [vmem:[%s15625_s29 + $0x2e0] sm:$0xff]  ;;  %v11221_v12 = vld [vmem:[%s15625_s29 + $0x2e8] sm:$0xff] }
 0x2f5   :  { %14224 = vmatpush3.bf16.msra.mxu0 %v14223_v7  ;;  %14256 = vmatpush3.bf16.msra.mxu1 %v14255_v8  ;;  %v14269_v7 = vpack.c.bf16 %v11251_v2, %v11250_v63  ;;  %v11234_v8 = vld [vmem:[%s15625_s29 + $0x350] sm:$0xff]  ;;  %v861_v2 = vld [vmem:[%s11105_s12 + $0x8] sm:$0xff] }
 0x2f6   :  { %989 = vmatprep.mubr.f32.mxu0 %v882_v23  ;;  %1119 = vmatprep.mubr.f32.mxu1 %v1011_v24  ;;  %v14241_v23 = vpack.c.bf16 %v11221_v12, %v11220_v11  ;;  %v14273_v24 = vpack.c.bf16 %v11253_v14, %v11252_v13  ;;  %v862_v11 = vld [vmem:[%s11105_s12 + $0x10] sm:$0xff] }
 0x2f7   :  { %14226 = vmatprep.subr.bf16.mxu0 %v14225_v17  ;;  %14258 = vmatprep.subr.bf16.mxu1 %v14257_v18  ;;  %v14271_v17 = vpack.c.bf16 %v11235_v10, %v11234_v8  ;;  %v11204_v18 = vld [vmem:[%s15625_s29 + $0x260] sm:$0xff] }
 0x2f8   :  { %990 = vmatmul.mubr.f32.gmra.mrb[20].mxu0 %v881_v36  ;;  %1120 = vmatmul.mubr.f32.gmra.mrb[38].mxu1 %v1010_v29  ;;  %v14243_v35 = vpack.c.bf16 %v11205_v21, %v11204_v18  ;;  %v14275_v36 = vpack.c.bf16 %v11237_v26, %v11236_v43  ;;  %v11206_v29 = vld [vmem:[%s15625_s29 + $0x270] sm:$0xff] }
 0x2f9   :  { %14228 = vmatpush3.bf16.msra.mxu0 %v14227_v28  ;;  %14260 = vmatpush3.bf16.msra.mxu1 %v14259_v31  ;;  %v11223_v28 = vld [vmem:[%s15625_s29 + $0x2f8] sm:$0xff]  ;;  %v11254_v31 = vld [vmem:[%s15625_s29 + $0x3f0] sm:$0xff]  ;;  %v14247_v50 = vpack.c.bf16 %v11207_v41, %v11206_v29 }
 0x2fa   :  { %1239 = vmatprep.mubr.f32.mxu0 %v1137_v32  ;;  %1369 = vmatprep.mubr.f32.mxu1 %v1267_v33  ;;  %v14245_v38 = vpack.c.bf16 %v11223_v28, %v11222_v49  ;;  %v14277_v39 = vpack.c.bf16 %v11255_v34, %v11254_v31  ;;  %v1261_v32 = vrot.slane %v15713_v27, %v15764_v3 }
 0x2fb   :  { %14230 = vmatprep.subr.bf16.mxu0 %v14229_v42  ;;  %14262 = vmatprep.subr.bf16.mxu1 %v14261_v44  ;;  %v11238_v42 = vld [vmem:[%s15625_s29 + $0x370] sm:$0xff]  ;;  %v11239_v44 = vld [vmem:[%s15625_s29 + $0x378] sm:$0xff]  ;;  %v1136_v33 = vmul.f32 %v1131_v47, %v15737_v40  ;;  %v1138_v27 = vmul.f32 %v1131_v47, %v15760_v1  ;;  %s15450_s29 = smov 14  }
 0x2fc   :  { %v14279_v45 = vpack.c.bf16 %v11239_v44, %v11238_v42  ;;  %v1268_v56 = vmul.f32 %v1261_v32, %v15760_v1  ;;  %s16391_s2 = sld [smem:[%s19143_s0 + %s15450_s29]]   ;;  %s15459_s29 = smov 20  }
 0x2fd   :  { %14232 = vmatpush3.bf16.msra.mxu0 %v14231_v46  ;;  %14264 = vmatpush3.bf16.msra.mxu1 %v14263_v53  ;;  %v1266_v46 = vmul.f32 %v1261_v32, %v15737_v40  ;;  %v1139_v53 = vmul.f32 %v15787_v20, %v15746_v54  ;;  %v1271_v40 = vmul.f32 %v15794_v52, %v15772_v9 }
 0x2fe   :  { %14234 = vmatprep.subr.bf16.mxu0 %v14233_v57  ;;  %14266 = vmatprep.subr.bf16.mxu1 %v14265_v58  ;;  %v1141_v57 = vmul.f32 %v15787_v20, %v15772_v9  ;;  %v1140_v54 = vmul.f32 %v1131_v47, %v15783_v19  ;;  %v1270_v58 = vmul.f32 %v1261_v32, %v15783_v19  ;;  %v860_v20 = vld [vmem:[%s11105_s12] sm:$0xff]  ;;  %s11112_s12 = sld [smem:[%s19143_s0 + %s15453_s9]]  }
 0x301   :  { %14236 = vmatpush3.bf16.msra.mxu0 %v14235_v4  ;;  %14268 = vmatpush3.bf16.msra.mxu1 %v14267_v5 }
 0x302   :  { %14238 = vmatprep.subr.bf16.mxu0 %v14237_v51  ;;  %14270 = vmatprep.subr.bf16.mxu1 %v14269_v7  ;;  %v2499_v25 = vld [vmem:[%s16391_s2 + $0x10] sm:$0xff]  ;;  %v2501_v22 = vld [vmem:[%s16391_s2 + $0x20] sm:$0xff] }
 0x305   :  { %14240 = vmatpush3.bf16.msra.mxu0 %v14239_v15  ;;  %14272 = vmatpush3.bf16.msra.mxu1 %v14271_v17 }
 0x306   :  { %14242 = vmatprep.subr.bf16.mxu0 %v14241_v23  ;;  %14274 = vmatprep.subr.bf16.mxu1 %v14273_v24 }
 0x309   :  { %14244 = vmatpush3.bf16.msra.mxu0 %v14243_v35  ;;  %14276 = vmatpush3.bf16.msra.mxu1 %v14275_v36 }
 0x30a   :  { %14246 = vmatprep.subr.bf16.mxu0 %v14245_v38  ;;  %14278 = vmatprep.subr.bf16.mxu1 %v14277_v39 }
 0x30d   :  { %14248 = vmatpush3.bf16.msra.mxu0 %v14247_v50  ;;  %14280 = vmatpush3.bf16.msra.mxu1 %v14279_v45 }
 0x310   :  { %1240 = vmatmul.mubr.f32.vlgmr.msra.gmra.mrb[22].mxu0 %v1136_v33  ;;  %1370 = vmatmul.mubr.f32.vlgmr.msra.gmra.mrb[40].mxu1 %v1266_v46 }
 0x311   :  { %1244 = vmatprep.mubr.f32.mxu0 %v1139_v53  ;;  %1374 = vmatprep.mubr.f32.mxu1 %v1269_v55 }
 0x314   :  { %1245 = vmatmul.mubr.f32.gmra.mrb[24].mxu0 %v1138_v27  ;;  %1375 = vmatmul.mubr.f32.gmra.mrb[42].mxu1 %v1268_v56 }
 0x315   :  { %1249 = vmatprep.mubr.f32.mxu0 %v1141_v57  ;;  %1379 = vmatprep.mubr.f32.mxu1 %v1271_v40 }
 0x318   :  { %1250 = vmatmul.mubr.f32.gmra.mrb[26].mxu0 %v1140_v54  ;;  %1380 = vmatmul.mubr.f32.gmra.mrb[44].mxu1 %v1270_v58 }
 0x319   :  { %1588 = vmatprep.mubr.f32.mxu0 %v19144_v0  ;;  %1754 = vmatprep.mubr.f32.mxu1 %v19144_v0 }
 0x3c3   :  { %v11873_v1 = vpop.f32.mrb[16].mxu0  ;;  %v11914_v9 = vpop.f32.mrb[34].mxu1 }
 0x3c4   :  { %v11874_v52 = vpop.f32.mrb[17].mxu0  ;;  %v11915_v59 = vpop.f32.mrb[35].mxu1 }
 0x3c5   :  { %v11875_v60 = vadd.f32 %v11874_v52, %v11873_v1  ;;  %v11916_v62 = vadd.f32 %v11915_v59, %v11914_v9 }
 0x3c7   :  { %v995_v30 = vadd.f32 %v11875_v60, %v860_v20  ;;  %v11876_v19 = vpop.f32.mrb[18].mxu0  ;;  %v11917_v63 = vpop.f32.mrb[36].mxu1 }
 0x3c8   :  { %v11877_v4 = vpop.f32.mrb[19].mxu0  ;;  %v11918_v5 = vpop.f32.mrb[37].mxu1 }
 0x3c9   :  { %v1125_v6 = vadd.f32 %v11916_v62, %v995_v30  ;;  %v11878_v48 = vadd.f32 %v11877_v4, %v11876_v19  ;;  %v11919_v51 = vadd.f32 %v11918_v5, %v11917_v63  ;;  %v1452_v5 = vld [vmem:[%s15899_s16 + $0x8] sm:$0xff] }
 0x3cb   :  { %v996_v7 = vadd.f32 %v11878_v48, %v861_v2  ;;  %v11879_v8 = vpop.f32.mrb[20].mxu0  ;;  %v11920_v10 = vpop.f32.mrb[38].mxu1 }
 0x3cc   :  { %v11880_v12 = vpop.f32.mrb[21].mxu0  ;;  %v11921_v13 = vpop.f32.mrb[39].mxu1 }
 0x3cd   :  { %v1126_v14 = vadd.f32 %v11919_v51, %v996_v7  ;;  %v11881_v15 = vadd.f32 %v11880_v12, %v11879_v8  ;;  %v11922_v17 = vadd.f32 %v11921_v13, %v11920_v10  ;;  %v1451_v51 = vld [vmem:[%s15899_s16] sm:$0xff]  ;;  %v1456_v8 = vld [vmem:[%s15899_s16 + $0x28] sm:$0xff] }
 0x3ce   :  { %v1459_v7 = vld [vmem:[%s15899_s16 + $0x40] sm:$0xff] }
 0x3cf   :  { %v997_v18 = vadd.f32 %v11881_v15, %v862_v11  ;;  %v14283_v10 = vpack.c.bf16 %v1459_v7, %v1451_v51  ;;  %v1464_v11 = vld [vmem:[%s15899_s16 + $0x68] sm:$0xff]  ;;  %v1455_v12 = vld [vmem:[%s15899_s16 + $0x20] sm:$0xff] }
 0x3d0   :  { %v1463_v13 = vld [vmem:[%s15899_s16 + $0x60] sm:$0xff] }
 0x3d1   :  { %v1127_v21 = vadd.f32 %v11922_v17, %v997_v18  ;;  %v14315_v15 = vpack.c.bf16 %v1463_v13, %v1455_v12  ;;  %v1468_v17 = vld [vmem:[%s15899_s16 + $0x88] sm:$0xff] }
 0x3d2   :  { %v1476_v18 = vld [vmem:[%s15899_s16 + $0xc8] sm:$0xff] }
 0x3e3   :  { %v11955_v23 = vpop.f32.mrb[22].mxu0  ;;  %v11996_v24 = vpop.f32.mrb[40].mxu1 }
 0x3e4   :  { %v11956_v43 = vpop.f32.mrb[23].mxu0  ;;  %v11997_v26 = vpop.f32.mrb[41].mxu1 }
 0x3e5   :  { %v11957_v49 = vadd.f32 %v11956_v43, %v11955_v23  ;;  %v11998_v28 = vadd.f32 %v11997_v26, %v11996_v24  ;;  %v1467_v23 = vld [vmem:[%s15899_s16 + $0x80] sm:$0xff]  ;;  %v1472_v43 = vld [vmem:[%s15899_s16 + $0xa8] sm:$0xff] }
 0x3e6   :  { %v1475_v24 = vld [vmem:[%s15899_s16 + $0xc0] sm:$0xff] }
 0x3e7   :  { %v1255_v31 = vadd.f32 %v11957_v49, %v1125_v6  ;;  %v11958_v34 = vpop.f32.mrb[24].mxu0  ;;  %v11999_v35 = vpop.f32.mrb[42].mxu1  ;;  %v1460_v6 = vld [vmem:[%s15899_s16 + $0x48] sm:$0xff]  ;;  %v14287_v26 = vpack.c.bf16 %v1475_v24, %v1467_v23  ;;  %v1470_v23 = vld [vmem:[%s15899_s16 + $0x98] sm:$0xff] }
 0x3e8   :  { %v11959_v36 = vpop.f32.mrb[25].mxu0  ;;  %v12000_v29 = vpop.f32.mrb[43].mxu1  ;;  %v14281_v48 = vpack.c.bf16 %v1460_v6, %v1452_v5  ;;  %v1480_v49 = vld [vmem:[%s15899_s16 + $0xe8] sm:$0xff]  ;;  %v1478_v24 = vld [vmem:[%s15899_s16 + $0xd8] sm:$0xff] }
 0x3e9   :  { %v11960_v38 = vadd.f32 %v11959_v36, %v11958_v34  ;;  %v12001_v39 = vadd.f32 %v12000_v29, %v11999_v35  ;;  %v15866_v41 = vadd.f32 %v11998_v28, %v1255_v31  ;;  %v1471_v28 = vld [vmem:[%s15899_s16 + $0xa0] sm:$0xff]  ;;  %v14317_v34 = vpack.c.bf16 %v1480_v49, %v1472_v43  ;;  %v1484_v36 = vld [vmem:[%s15899_s16 + $0x108] sm:$0xff] }
 0x3ea   :  { %14282 = vmatprep.subr.bf16.mxu0 %v14281_v48  ;;  %v1479_v31 = vld [vmem:[%s15899_s16 + $0xe0] sm:$0xff]  ;;  %v1492_v29 = vld [vmem:[%s15899_s16 + $0x148] sm:$0xff] }
 0x3eb   :  { %19233 = vst [vmem:[#allocation7_spill] sm:$0xff] %v15866_v41  ;;  %v1256_v42 = vadd.f32 %v11960_v38, %v1126_v14  ;;  %v11961_v44 = vpop.f32.mrb[26].mxu0  ;;  %v12002_v50 = vpop.f32.mrb[44].mxu1  ;;  %v1393_v45 = vsel %vm785_vm1, %v15866_v41, 0.0  ;;  %v14313_v14 = vpack.c.bf16 %v1464_v11, %v1456_v8  ;;  %14284 = vmatpush1.bf16.msra.mxu0 %v14283_v10  ;;  %v14319_v35 = vpack.c.bf16 %v1479_v31, %v1471_v28 }
 0x3ec   :  { %v11962_v47 = vpop.f32.mrb[27].mxu0  ;;  %v12003_v32 = vpop.f32.mrb[45].mxu1  ;;  %1394 = vadd.xlane.f32.xlu1 %v1393_v45  ;;  %v14289_v38 = vpack.c.bf16 %v1492_v29, %v1484_v36  ;;  %v1496_v45 = vld [vmem:[%s15899_s16 + $0x168] sm:$0xff]  ;;  %v1477_v36 = vld [vmem:[%s15899_s16 + $0xd0] sm:$0xff]  ;;  %v1486_v29 = vld [vmem:[%s15899_s16 + $0x118] sm:$0xff] }
 0x3ed   :  { %v11963_v33 = vadd.f32 %v11962_v47, %v11961_v44  ;;  %v12004_v46 = vadd.f32 %v12003_v32, %v12002_v50  ;;  %v15870_v53 = vadd.f32 %v12001_v39, %v1256_v42  ;;  %14314 = vmatprep.subr.bf16.mxu1 %v14313_v14  ;;  %v1483_v39 = vld [vmem:[%s15899_s16 + $0x100] sm:$0xff]  ;;  %v1488_v44 = vld [vmem:[%s15899_s16 + $0x128] sm:$0xff] }
 0x3ee   :  { %14316 = vmatpush1.bf16.msra.mxu1 %v14315_v15  ;;  %v1491_v42 = vld [vmem:[%s15899_s16 + $0x140] sm:$0xff] }
 0x3ef   :  { %19234 = vst [vmem:[#allocation8_spill] sm:$0xff] %v15870_v53  ;;  %v1257_v55 = vadd.f32 %v11963_v33, %v1127_v21  ;;  %v1396_v27 = vsel %vm785_vm1, %v15870_v53, 0.0  ;;  %v14285_v21 = vpack.c.bf16 %v1476_v18, %v1468_v17  ;;  %14318 = vmatprep.subr.bf16.mxu1 %v14317_v34  ;;  %v14291_v50 = vpack.c.bf16 %v1491_v42, %v1483_v39  ;;  %v1487_v47 = vld [vmem:[%s15899_s16 + $0x120] sm:$0xff]  ;;  %v1453_v17 = vld [vmem:[%s15899_s16 + $0x10] sm:$0xff] }
 0x3f0   :  { %1397 = vadd.xlane.f32.xlu0 %v1396_v27  ;;  %v1495_v32 = vld [vmem:[%s15899_s16 + $0x160] sm:$0xff]  ;;  %v14321_v33 = vpack.c.bf16 %v1496_v45, %v1488_v44  ;;  %v1508_v27 = vld [vmem:[%s15899_s16 + $0x1c8] sm:$0xff]  ;;  %v1461_v18 = vld [vmem:[%s15899_s16 + $0x50] sm:$0xff]  ;;  %v14301_v34 = vpack.c.bf16 %v1478_v24, %v1470_v23 }
 0x3f1   :  { %v15874_v56 = vadd.f32 %v12004_v46, %v1257_v55  ;;  %14286 = vmatprep.subr.bf16.mxu0 %v14285_v21  ;;  %v14323_v46 = vpack.c.bf16 %v1495_v32, %v1487_v47  ;;  %v1500_v55 = vld [vmem:[%s15899_s16 + $0x188] sm:$0xff]  ;;  %v11256_v14 = vld [vmem:[%s11106_s20] ss:$0 sm:$0xff]  ;;  %v14299_v49 = vpack.c.bf16 %v1461_v18, %v1453_v17  ;;  %v1485_v45 = vld [vmem:[%s15899_s16 + $0x110] sm:$0xff]  ;;  %v19236_v32 = vmov 0  ;;  %s11113_s20 = sld [smem:[%s19143_s0 + %s15455_s17]]  }
 0x3f2   :  { %14288 = vmatpush1.bf16.msra.mxu0 %v14287_v26  ;;  %14320 = vmatpush1.bf16.msra.mxu1 %v14319_v35  ;;  %v11257_v21 = vld [vmem:[%s11107_s24] ss:$0 sm:$0xff]  ;;  %v1469_v35 = vld [vmem:[%s15899_s16 + $0x90] sm:$0xff]  ;;  %v19237_v32 = vsel %vm15971_vm2, 4294967295, %v19236_v32  ;;  %v1859_v17 = vld [vmem:[%s15960_s28 + $0x18] sm:$0xff]  ;;  %s11114_s24 = sld [smem:[%s19143_s0 + %s15456_s21]]  }
 0x3f3   :  { %19235 = vst [vmem:[#allocation9_spill] sm:$0xff] %v15874_v56  ;;  %v1399_v57 = vsel %vm785_vm1, %v15874_v56, 0.0  ;;  %14290 = vmatprep.subr.bf16.mxu0 %v14289_v38  ;;  %14322 = vmatprep.subr.bf16.mxu1 %v14321_v33  ;;  %v1494_v38 = vld [vmem:[%s15899_s16 + $0x158] sm:$0xff]  ;;  %v14303_v39 = vpack.c.bf16 %v1477_v36, %v1469_v35  ;;  %v1493_v47 = vld [vmem:[%s15899_s16 + $0x150] sm:$0xff]  ;;  %19238 = vst [vmem:[#allocation10_spill] sm:$0xff] %v19237_v32  ;;  %s11126_s21 = sld [smem:[%s19143_s0 + %s15469_s18]]   ;;  %s15486_s18 = smov 44  }
 0x3f4   :  { %1400 = vadd.xlane.f32.xlu0 %v1399_v57  ;;  %v14293_v57 = vpack.c.bf16 %v1508_v27, %v1500_v55  ;;  %v1502_v33 = vld [vmem:[%s15899_s16 + $0x198] sm:$0xff]  ;;  %v14307_v27 = vpack.c.bf16 %v1493_v47, %v1485_v45  ;;  %v1860_v23 = vld [vmem:[%s15960_s28 + $0x20] sm:$0xff]  ;;  %v1873_v45 = vld [vmem:[%s15960_s28 + $0x88] sm:$0xff] }
 0x3f5   :  { %v1506_v18 = vld [vmem:[%s15899_s16 + $0x1b8] sm:$0xff]  ;;  %v1874_v47 = vld [vmem:[%s15960_s28 + $0x90] sm:$0xff]  ;;  %v2502_v32 = vld [vmem:[%s16391_s2 + $0x28] sm:$0xff] }
 0x3f6   :  { %14292 = vmatpush1.bf16.msra.mxu0 %v14291_v50  ;;  %14324 = vmatpush1.bf16.msra.mxu1 %v14323_v46  ;;  %v14305_v50 = vpack.c.bf16 %v1494_v38, %v1486_v29  ;;  %v1510_v46 = vld [vmem:[%s15899_s16 + $0x1d8] sm:$0xff]  ;;  %v1864_v29 = vld [vmem:[%s15960_s28 + $0x40] sm:$0xff]  ;;  %v1865_v38 = vld [vmem:[%s15960_s28 + $0x48] sm:$0xff] }
 0x3f7   :  { %14294 = vmatprep.subr.bf16.mxu0 %v14293_v57  ;;  %v1863_v36 = vld [vmem:[%s15960_s28 + $0x38] sm:$0xff] }
 0x479   :  { %v1395_v40 = vpop.xlane.xlu1 %1394 }
 0x47a   :  { %v1403_v54 = vmul.f32 0.015625, %v1395_v40  ;;  %v1499_v40 = vld [vmem:[%s15899_s16 + $0x180] sm:$0xff] }
 0x47c   :  { %v15879_v58 = vsub.f32 %v15866_v41, %v1403_v54  ;;  %v1507_v54 = vld [vmem:[%s15899_s16 + $0x1c0] sm:$0xff] }
 0x47d   :  { %v1398_v1 = vpop.xlane.xlu0 %1397 }
 0x47e   :  { %v1404_v9 = vmul.f32 0.015625, %v1398_v1  ;;  %v1409_v20 = vmul.f32 %v15879_v58, %v15879_v58  ;;  %v1504_v1 = vld [vmem:[%s15899_s16 + $0x1a8] sm:$0xff] }
 0x480   :  { %v15884_v52 = vsub.f32 %v15870_v53, %v1404_v9  ;;  %v1412_v59 = vsel %vm785_vm1, %v1409_v20, 0.0  ;;  %v14295_v9 = vpack.c.bf16 %v1507_v54, %v1499_v40  ;;  %v1512_v20 = vld [vmem:[%s15899_s16 + $0x1e8] sm:$0xff]  ;;  %v14309_v40 = vpack.c.bf16 %v1510_v46, %v1502_v33  ;;  %v1501_v54 = vld [vmem:[%s15899_s16 + $0x190] sm:$0xff]  ;;  %v1875_v33 = vld [vmem:[%s15960_s28 + $0x98] sm:$0xff] }
 0x481   :  { %v1401_v60 = vpop.xlane.xlu0 %1400  ;;  %1413 = vadd.xlane.f32.xlu1 %v1412_v59  ;;  %v1503_v59 = vld [vmem:[%s15899_s16 + $0x1a0] sm:$0xff]  ;;  %v2507_v53 = vld [vmem:[%s16391_s2 + $0x50] sm:$0xff] }
 0x482   :  { %v1405_v62 = vmul.f32 0.015625, %v1401_v60  ;;  %v1410_v30 = vmul.f32 %v15884_v52, %v15884_v52  ;;  %v1511_v60 = vld [vmem:[%s15899_s16 + $0x1e0] sm:$0xff]  ;;  %14296 = vmatpush1.bf16.msra.mxu0 %v14295_v9  ;;  %v1458_v9 = vld [vmem:[%s15899_s16 + $0x38] sm:$0xff] }
 0x483   :  { %v1876_v46 = vld [vmem:[%s15960_s28 + $0xa0] sm:$0xff] }
 0x484   :  { %v15890_v19 = vsub.f32 %v15874_v56, %v1405_v62  ;;  %v1415_v63 = vsel %vm785_vm1, %v1410_v30, 0.0  ;;  %v14325_v62 = vpack.c.bf16 %v1512_v20, %v1504_v1  ;;  %v14327_v30 = vpack.c.bf16 %v1511_v60, %v1503_v59  ;;  %v1509_v1 = vld [vmem:[%s15899_s16 + $0x1d0] sm:$0xff]  ;;  %v1466_v20 = vld [vmem:[%s15899_s16 + $0x78] sm:$0xff]  ;;  %v1856_v59 = vld [vmem:[%s15960_s28] sm:$0xff] }
 0x485   :  { %1416 = vadd.xlane.f32.xlu0 %v1415_v63  ;;  %v1454_v63 = vld [vmem:[%s15899_s16 + $0x18] sm:$0xff]  ;;  %v14311_v60 = vpack.c.bf16 %v1509_v1, %v1501_v54  ;;  %v1882_v54 = vld [vmem:[%s15960_s28 + $0xd0] sm:$0xff] }
 0x486   :  { %v1411_v2 = vmul.f32 %v15890_v19, %v15890_v19  ;;  %14326 = vmatprep.subr.bf16.mxu1 %v14325_v62  ;;  %v14329_v62 = vpack.c.bf16 %v1466_v20, %v1458_v9  ;;  %v1883_v1 = vld [vmem:[%s15960_s28 + $0xd8] sm:$0xff]  ;;  %v1884_v9 = vld [vmem:[%s15960_s28 + $0xe0] sm:$0xff]  ;;  %v1885_v20 = vld [vmem:[%s15960_s28 + $0xe8] sm:$0xff] }
 0x487   :  { %14328 = vmatpush1.bf16.msra.mxu1 %v14327_v30  ;;  %v1457_v30 = vld [vmem:[%s15899_s16 + $0x30] sm:$0xff] }
 0x488   :  { %v1418_v4 = vsel %vm785_vm1, %v1411_v2, 0.0  ;;  %v1462_v2 = vld [vmem:[%s15899_s16 + $0x58] sm:$0xff]  ;;  %v2503_v56 = vld [vmem:[%s16391_s2 + $0x30] sm:$0xff] }
 0x489   :  { %1419 = vadd.xlane.f32.xlu1 %v1418_v4  ;;  %v14297_v4 = vpack.c.bf16 %v1462_v2, %v1454_v63  ;;  %v1465_v63 = vld [vmem:[%s15899_s16 + $0x70] sm:$0xff]  ;;  %v1474_v2 = vld [vmem:[%s15899_s16 + $0xb8] sm:$0xff] }
 0x48b   :  { %14298 = vmatprep.subr.bf16.mxu0 %v14297_v4  ;;  %v1482_v4 = vld [vmem:[%s15899_s16 + $0xf8] sm:$0xff] }
 0x50e   :  { %v1414_v5 = vpop.xlane.xlu1 %1413 }
 0x50f   :  { %v1421_v6 = vmul.f32 0.015625, %v1414_v5  ;;  %v14331_v5 = vpack.c.bf16 %v1465_v63, %v1457_v30  ;;  %v1889_v30 = vld [vmem:[%s15960_s28 + $0x108] sm:$0xff]  ;;  %v1890_v63 = vld [vmem:[%s15960_s28 + $0x110] sm:$0xff] }
 0x511   :  { %v1424_v48 = vadd.f32 1e-05, %v1421_v6  ;;  %v14333_v6 = vpack.c.bf16 %v1482_v4, %v1474_v2  ;;  %v1891_v2 = vld [vmem:[%s15960_s28 + $0x118] sm:$0xff]  ;;  %v1892_v4 = vld [vmem:[%s15960_s28 + $0x120] sm:$0xff] }
 0x512   :  { %v1417_v51 = vpop.xlane.xlu0 %1416 }
 0x513   :  { %15195 = vrsqrt.f32 %v1424_v48  ;;  %v1422_v7 = vmul.f32 0.015625, %v1417_v51  ;;  %v1473_v48 = vld [vmem:[%s15899_s16 + $0xb0] sm:$0xff] }
 0x514   :  { %v1481_v51 = vld [vmem:[%s15899_s16 + $0xf0] sm:$0xff] }
 0x515   :  { %v1425_v8 = vadd.f32 1e-05, %v1422_v7  ;;  %v1857_v7 = vld [vmem:[%s15960_s28 + $0x8] sm:$0xff] }
 0x516   :  { %v1420_v10 = vpop.xlane.xlu1 %1419 }
 0x517   :  { %15197 = vrsqrt.f32 %v1425_v8  ;;  %v1423_v11 = vmul.f32 0.015625, %v1420_v10  ;;  %v1490_v8 = vld [vmem:[%s15899_s16 + $0x138] sm:$0xff] }
 0x518   :  { %v1498_v10 = vld [vmem:[%s15899_s16 + $0x178] sm:$0xff] }
 0x519   :  { %v1426_v12 = vadd.f32 1e-05, %v1423_v11  ;;  %v1858_v11 = vld [vmem:[%s15960_s28 + $0x10] sm:$0xff] }
 0x51b   :  { %15199 = vrsqrt.f32 %v1426_v12  ;;  %v14335_v12 = vpack.c.bf16 %v1481_v51, %v1473_v48  ;;  %v1895_v48 = vld [vmem:[%s15960_s28 + $0x138] sm:$0xff]  ;;  %v1896_v51 = vld [vmem:[%s15960_s28 + $0x140] sm:$0xff] }
 0x51d   :  { %v15196_v13 = vpop.eup %15195 }
 0x51e   :  { %v1430_v15 = vmul.f32 %v15196_v13, %v15879_v58  ;;  %v14337_v13 = vpack.c.bf16 %v1498_v10, %v1490_v8  ;;  %v1898_v8 = vld [vmem:[%s15960_s28 + $0x150] sm:$0xff]  ;;  %v1899_v10 = vld [vmem:[%s15960_s28 + $0x158] sm:$0xff] }
 0x520   :  { %v1439_v43 = vmul.f32 %v11256_v14, %v1430_v15  ;;  %v1497_v15 = vld [vmem:[%s15899_s16 + $0x170] sm:$0xff] }
 0x521   :  { %v15198_v26 = vpop.eup %15197 }
 0x522   :  { %v1431_v28 = vmul.f32 %v15198_v26, %v15884_v52  ;;  %v15947_v31 = vadd.f32 %v11257_v21, %v1439_v43  ;;  %v1505_v26 = vld [vmem:[%s15899_s16 + $0x1b0] sm:$0xff] }
 0x524   :  { %11258 = vmatmul.mubr.msk.f32.vlgmr.msra.gmra.mrb[28].mxu0 %vm785_vm1, %v15947_v31  ;;  %11264 = vmatmul.mubr.msk.f32.vlgmr.msra.gmra.mrb[46].mxu1 %vm785_vm1, %v15947_v31  ;;  %v1440_v58 = vmul.f32 %v11256_v14, %v1431_v28  ;;  %v1861_v28 = vld [vmem:[%s15960_s28 + $0x28] sm:$0xff] }
 0x525   :  { %v15200_v52 = vpop.eup %15199  ;;  %14300 = vmatpush1.bf16.msra.mxu0 %v14299_v49  ;;  %1594 = vmatprep.mubr.f32.mxu0 %v19144_v0  ;;  %v1513_v49 = vld [vmem:[%s15899_s16 + $0x1f0] sm:$0xff] }
 0x526   :  { %v1432_v42 = vmul.f32 %v15200_v52, %v15890_v19  ;;  %14302 = vmatprep.subr.bf16.mxu0 %v14301_v34  ;;  %1760 = vmatprep.mubr.f32.mxu1 %v19144_v0  ;;  %v15965_v44 = vadd.f32 %v11257_v21, %v1440_v58  ;;  %v1862_v34 = vld [vmem:[%s15960_s28 + $0x30] sm:$0xff]  ;;  %v14343_v35 = vpack.c.bf16 %v1513_v49, %v1505_v26  ;;  %v1867_v52 = vld [vmem:[%s15960_s28 + $0x58] sm:$0xff] }
 0x527   :  { %v1866_v58 = vld [vmem:[%s15960_s28 + $0x50] sm:$0xff]  ;;  %v1911_v49 = vld [vmem:[%s15960_s28 + $0x1b8] sm:$0xff] }
 0x528   :  { %v1441_v19 = vmul.f32 %v11256_v14, %v1432_v42  ;;  %11259 = vmatmul.mubr.msk.f32.gmra.mrb[30].mxu0 %vm785_vm1, %v15965_v44  ;;  %11265 = vmatmul.mubr.msk.f32.gmra.mrb[48].mxu1 %vm785_vm1, %v15965_v44  ;;  %v15983_v55 = vpack.c.bf16 %v15965_v44, %v15947_v31  ;;  %v1489_v14 = vld [vmem:[%s15899_s16 + $0x130] sm:$0xff] }
 0x529   :  { %14304 = vmatpush1.bf16.msra.mxu0 %v14303_v39  ;;  %1600 = vmatprep.mubr.f32.mxu0 %v19144_v0  ;;  %v14339_v24 = vpack.c.bf16 %v1497_v15, %v1489_v14  ;;  %v1868_v39 = vld [vmem:[%s15960_s28 + $0x60] sm:$0xff]  ;;  %v1870_v42 = vld [vmem:[%s15960_s28 + $0x70] sm:$0xff]  ;;  %v19146_v14 = vmov 0.0|0.0   ;;  %v1903_v15 = vld [vmem:[%s15960_s28 + $0x178] sm:$0xff] }
 0x52a   :  { %v15986_v57 = vadd.f32 %v11257_v21, %v1441_v19  ;;  %14347 = vmatprep.subr.msk.bf16.mxu1 %vm15971_vm2, %v15983_v55  ;;  %14306 = vmatprep.subr.bf16.mxu0 %v14305_v50  ;;  %v1514_v21 = vld [vmem:[%s15899_s16 + $0x1f8] sm:$0xff]  ;;  %v1872_v50 = vld [vmem:[%s15960_s28 + $0x80] sm:$0xff]  ;;  %v1877_v19 = vld [vmem:[%s15960_s28 + $0xa8] sm:$0xff]  ;;  %s11115_s16 = sld [smem:[%s19143_s0 + %s15454_s13]]   ;;  %s15468_s13 = smov 32  }
 0x52b   :  { %1766 = vmatprep.mubr.f32.mxu1 %v19144_v0  ;;  %14350 = vmatpush3.bf16.xpose.msk.msra.mxu1 %vm15971_vm2, %v15983_v55  ;;  %v14341_v43 = vpack.c.bf16 %v1514_v21, %v1506_v18  ;;  %v1905_v18 = vld [vmem:[%s15960_s28 + $0x188] sm:$0xff]  ;;  %v1906_v21 = vld [vmem:[%s15960_s28 + $0x190] sm:$0xff] }
 0x52c   :  { %11260 = vmatmul.mubr.msk.f32.gmra.mrb[32].mxu0 %vm785_vm1, %v15986_v57  ;;  %11266 = vmatmul.mubr.msk.f32.gmra.mrb[50].mxu1 %vm785_vm1, %v15986_v57  ;;  %v1910_v26 = vld [vmem:[%s15960_s28 + $0x1b0] sm:$0xff] }
 0x52d   :  { %14308 = vmatpush1.bf16.msra.mxu0 %v14307_v27  ;;  %12825 = vmatprep.subr.msk.mxu1 %vm785_vm1, %v15986_v57  ;;  %v1879_v27 = vld [vmem:[%s15960_s28 + $0xb8] sm:$0xff] }
 0x52e   :  { %14310 = vmatprep.subr.bf16.mxu0 %v14309_v40  ;;  %1671 = vmatprep.mubr.f32.mxu0 %v19144_v0  ;;  %v1881_v40 = vld [vmem:[%s15960_s28 + $0xc8] sm:$0xff] }
 0x52f   :  { %12827 = vmatprep.mubr.msk.f32.mxu1 %vm785_vm1, %v1856_v59  ;;  %v1886_v59 = vld [vmem:[%s15960_s28 + $0xf0] sm:$0xff] }
 0x531   :  { %14312 = vmatpush1.bf16.msra.mxu0 %v14311_v60  ;;  %v1887_v60 = vld [vmem:[%s15960_s28 + $0xf8] sm:$0xff] }
 0x532   :  { %14330 = vmatprep.subr.bf16.mxu0 %v14329_v62  ;;  %v1888_v62 = vld [vmem:[%s15960_s28 + $0x100] sm:$0xff] }
 0x533   :  { %12826 = vmatpush3.xpose.msk.msra.mxu1 %vm785_vm1, %v15986_v57 }
 0x534   :  { %11261 = vmatmul.mubr.msk.f32.vlgmr.msra.gmra.mrb[34].mxu0 %vm785_vm1, %v15947_v31  ;;  %14357 = vmatprep.subr.bf16.mxu1 %v19146_v14 }
 0x535   :  { %14332 = vmatpush1.bf16.msra.mxu0 %v14331_v5  ;;  %1677 = vmatprep.mubr.f32.mxu0 %v19144_v0  ;;  %v1893_v5 = vld [vmem:[%s15960_s28 + $0x128] sm:$0xff] }
 0x536   :  { %12828 = vmatmul.mubr.msk.f32.vlgmr.msra.gmra.mrb[52].mxu1 %vm785_vm1, %v1857_v7  ;;  %14334 = vmatprep.subr.bf16.mxu0 %v14333_v6  ;;  %v1894_v6 = vld [vmem:[%s15960_s28 + $0x130] sm:$0xff]  ;;  %v1897_v7 = vld [vmem:[%s15960_s28 + $0x148] sm:$0xff] }
 0x537   :  { %12830 = vmatprep.mubr.msk.f32.mxu1 %vm785_vm1, %v1858_v11  ;;  %v1900_v11 = vld [vmem:[%s15960_s28 + $0x160] sm:$0xff] }
 0x538   :  { %11262 = vmatmul.mubr.msk.f32.gmra.mrb[36].mxu0 %vm785_vm1, %v15965_v44 }
 0x539   :  { %14336 = vmatpush1.bf16.msra.mxu0 %v14335_v12  ;;  %1683 = vmatprep.mubr.f32.mxu0 %v19144_v0  ;;  %v1901_v12 = vld [vmem:[%s15960_s28 + $0x168] sm:$0xff] }
 0x53a   :  { %12831 = vmatmul.mubr.msk.f32.gmra.mrb[54].mxu1 %vm785_vm1, %v1859_v17  ;;  %14338 = vmatprep.subr.bf16.mxu0 %v14337_v13  ;;  %v1902_v13 = vld [vmem:[%s15960_s28 + $0x170] sm:$0xff]  ;;  %v1904_v17 = vld [vmem:[%s15960_s28 + $0x180] sm:$0xff] }
 0x53b   :  { %12833 = vmatprep.mubr.msk.f32.mxu1 %vm785_vm1, %v1860_v23  ;;  %v1907_v23 = vld [vmem:[%s15960_s28 + $0x198] sm:$0xff] }
 0x53c   :  { %11263 = vmatmul.mubr.msk.f32.gmra.mrb[38].mxu0 %vm785_vm1, %v15986_v57 }
 0x53d   :  { %14340 = vmatpush1.bf16.msra.mxu0 %v14339_v24  ;;  %1837 = vmatprep.mubr.f32.mxu0 %v19144_v0  ;;  %v1908_v24 = vld [vmem:[%s15960_s28 + $0x1a0] sm:$0xff] }
 0x53e   :  { %12834 = vmatmul.mubr.msk.f32.gmra.mrb[56].mxu1 %vm785_vm1, %v1861_v28  ;;  %14342 = vmatprep.subr.bf16.mxu0 %v14341_v43  ;;  %v1909_v43 = vld [vmem:[%s15960_s28 + $0x1a8] sm:$0xff]  ;;  %v1912_v28 = vld [vmem:[%s15960_s28 + $0x1c0] sm:$0xff] }
 0x53f   :  { %12836 = vmatprep.mubr.msk.f32.mxu1 %vm785_vm1, %v1862_v34  ;;  %v1913_v34 = vld [vmem:[%s15960_s28 + $0x1c8] sm:$0xff] }
 0x541   :  { %14344 = vmatpush1.bf16.msra.mxu0 %v14343_v35  ;;  %v1914_v35 = vld [vmem:[%s15960_s28 + $0x1d0] sm:$0xff] }
 0x542   :  { %14353 = vmatprep.subr.msk.bf16.mxu0 %vm15971_vm2, %v15983_v55  ;;  %12837 = vmatmul.mubr.msk.f32.gmra.mrb[58].mxu1 %vm785_vm1, %v1863_v36  ;;  %v1915_v36 = vld [vmem:[%s15960_s28 + $0x1d8] sm:$0xff] }
 0x543   :  { %12839 = vmatprep.mubr.msk.f32.mxu1 %vm785_vm1, %v1864_v29  ;;  %v1916_v29 = vld [vmem:[%s15960_s28 + $0x1e0] sm:$0xff] }
 0x544   :  { %11267 = vmatmul.mubr.msk.f32.vlgmr.msra.gmra.mrb[40].mxu0 %vm785_vm1, %v15947_v31  ;;  %v1869_v31 = vld [vmem:[%s15960_s28 + $0x68] sm:$0xff] }
 0x545   :  { %1843 = vmatprep.mubr.f32.mxu0 %v19144_v0 }
 0x546   :  { %12840 = vmatmul.mubr.msk.f32.gmra.mrb[60].mxu1 %vm785_vm1, %v1865_v38  ;;  %v1917_v38 = vld [vmem:[%s15960_s28 + $0x1e8] sm:$0xff] }
 0x547   :  { %12842 = vmatprep.mubr.msk.f32.mxu1 %vm785_vm1, %v1866_v58  ;;  %v1918_v58 = vld [vmem:[%s15960_s28 + $0x1f0] sm:$0xff] }
 0x548   :  { %11268 = vmatmul.mubr.msk.f32.gmra.mrb[42].mxu0 %vm785_vm1, %v15965_v44  ;;  %v1871_v44 = vld [vmem:[%s15960_s28 + $0x78] sm:$0xff] }
 0x549   :  { %1849 = vmatprep.mubr.f32.mxu0 %v19144_v0 }
 0x54a   :  { %14356 = vmatpush3.bf16.xpose.msk.msra.mxu0 %vm15971_vm2, %v15983_v55  ;;  %12843 = vmatmul.mubr.msk.f32.gmra.mrb[62].mxu1 %vm785_vm1, %v1867_v52  ;;  %v1878_v55 = vld [vmem:[%s15960_s28 + $0xb0] sm:$0xff]  ;;  %v1919_v52 = vld [vmem:[%s15960_s28 + $0x1f8] sm:$0xff] }
 0x54b   :  { %12927 = vmatprep.subr.msk.mxu0 %vm785_vm1, %v15986_v57  ;;  %12845 = vmatprep.mubr.msk.f32.mxu1 %vm785_vm1, %v1868_v39 }
 0x54c   :  { %11269 = vmatmul.mubr.msk.f32.gmra.mrb[44].mxu0 %vm785_vm1, %v15986_v57 }
 0x54e   :  { %12846 = vmatmul.mubr.msk.f32.gmra.mrb[64].mxu1 %vm785_vm1, %v1869_v31 }
 0x54f   :  { %12848 = vmatprep.mubr.msk.f32.mxu1 %vm785_vm1, %v1870_v42 }
 0x552   :  { %12928 = vmatpush3.xpose.msk.msra.mxu0 %vm785_vm1, %v15986_v57  ;;  %12849 = vmatmul.mubr.msk.f32.gmra.mrb[66].mxu1 %vm785_vm1, %v1871_v44  ;;  %v1880_v57 = vld [vmem:[%s15960_s28 + $0xc0] sm:$0xff]  ;;  %s11117_s28 = sld [smem:[%s19143_s0 + %s15457_s25]]  }
 0x553   :  { %12851 = vmatprep.mubr.msk.f32.mxu1 %vm785_vm1, %v1872_v50  ;;  %14369 = vmatprep.subr.bf16.mxu0 %v19146_v14  ;;  %s11127_s25 = sld [smem:[%s19143_s0 + %s15470_s22]]   ;;  %s15487_s22 = smov 45  }
 0x556   :  { %12852 = vmatmul.mubr.msk.f32.gmra.mrb[68].mxu1 %vm785_vm1, %v1873_v45 }
 0x557   :  { %12854 = vmatprep.mubr.msk.f32.mxu1 %vm785_vm1, %v1874_v47 }
 0x55a   :  { %12855 = vmatmul.mubr.msk.f32.gmra.mrb[70].mxu1 %vm785_vm1, %v1875_v33 }
 0x55b   :  { %12857 = vmatprep.mubr.msk.f32.mxu1 %vm785_vm1, %v1876_v46 }
 0x55e   :  { %12858 = vmatmul.mubr.msk.f32.gmra.mrb[72].mxu1 %vm785_vm1, %v1877_v19 }
 0x55f   :  { %12860 = vmatprep.mubr.msk.f32.mxu1 %vm785_vm1, %v1878_v55 }
 0x562   :  { %12861 = vmatmul.mubr.msk.f32.gmra.mrb[74].mxu1 %vm785_vm1, %v1879_v27 }
 0x563   :  { %12863 = vmatprep.mubr.msk.f32.mxu1 %vm785_vm1, %v1880_v57 }
 0x566   :  { %12864 = vmatmul.mubr.msk.f32.gmra.mrb[76].mxu1 %vm785_vm1, %v1881_v40 }
 0x567   :  { %12866 = vmatprep.mubr.msk.f32.mxu1 %vm785_vm1, %v1882_v54 }
 0x56a   :  { %12867 = vmatmul.mubr.msk.f32.gmra.mrb[78].mxu1 %vm785_vm1, %v1883_v1 }
 0x56b   :  { %12869 = vmatprep.mubr.msk.f32.mxu1 %vm785_vm1, %v1884_v9 }
 0x56e   :  { %12870 = vmatmul.mubr.msk.f32.gmra.mrb[80].mxu1 %vm785_vm1, %v1885_v20 }
 0x56f   :  { %12872 = vmatprep.mubr.msk.f32.mxu1 %vm785_vm1, %v1886_v59 }
 0x572   :  { %12873 = vmatmul.mubr.msk.f32.gmra.mrb[82].mxu1 %vm785_vm1, %v1887_v60 }
 0x573   :  { %12875 = vmatprep.mubr.msk.f32.mxu1 %vm785_vm1, %v1888_v62 }
 0x576   :  { %12876 = vmatmul.mubr.msk.f32.gmra.mrb[84].mxu1 %vm785_vm1, %v1889_v30 }
 0x577   :  { %12878 = vmatprep.mubr.msk.f32.mxu1 %vm785_vm1, %v1890_v63 }
 0x57a   :  { %12879 = vmatmul.mubr.msk.f32.gmra.mrb[86].mxu1 %vm785_vm1, %v1891_v2 }
 0x57b   :  { %12881 = vmatprep.mubr.msk.f32.mxu1 %vm785_vm1, %v1892_v4 }
 0x57e   :  { %12882 = vmatmul.mubr.msk.f32.gmra.mrb[88].mxu1 %vm785_vm1, %v1893_v5 }
 0x57f   :  { %12884 = vmatprep.mubr.msk.f32.mxu1 %vm785_vm1, %v1894_v6 }
 0x582   :  { %12885 = vmatmul.mubr.msk.f32.gmra.mrb[90].mxu1 %vm785_vm1, %v1895_v48 }
 0x583   :  { %12887 = vmatprep.mubr.msk.f32.mxu1 %vm785_vm1, %v1896_v51 }
 0x586   :  { %12888 = vmatmul.mubr.msk.f32.gmra.mrb[92].mxu1 %vm785_vm1, %v1897_v7 }
 0x587   :  { %12890 = vmatprep.mubr.msk.f32.mxu1 %vm785_vm1, %v1898_v8 }
 0x58a   :  { %12891 = vmatmul.mubr.msk.f32.gmra.mrb[94].mxu1 %vm785_vm1, %v1899_v10 }
 0x58b   :  { %12893 = vmatprep.mubr.msk.f32.mxu1 %vm785_vm1, %v1900_v11 }
 0x58e   :  { %12894 = vmatmul.mubr.msk.f32.gmra.mrb[96].mxu1 %vm785_vm1, %v1901_v12 }
 0x58f   :  { %12896 = vmatprep.mubr.msk.f32.mxu1 %vm785_vm1, %v1902_v13 }
 0x592   :  { %12897 = vmatmul.mubr.msk.f32.gmra.mrb[98].mxu1 %vm785_vm1, %v1903_v15 }
 0x593   :  { %12899 = vmatprep.mubr.msk.f32.mxu1 %vm785_vm1, %v1904_v17 }
 0x596   :  { %12900 = vmatmul.mubr.msk.f32.gmra.mrb[100].mxu1 %vm785_vm1, %v1905_v18 }
 0x597   :  { %12902 = vmatprep.mubr.msk.f32.mxu1 %vm785_vm1, %v1906_v21 }
 0x59a   :  { %12903 = vmatmul.mubr.msk.f32.gmra.mrb[102].mxu1 %vm785_vm1, %v1907_v23 }
 0x59b   :  { %12905 = vmatprep.mubr.msk.f32.mxu1 %vm785_vm1, %v1908_v24 }
 0x59e   :  { %12906 = vmatmul.mubr.msk.f32.gmra.mrb[104].mxu1 %vm785_vm1, %v1909_v43 }
 0x59f   :  { %12908 = vmatprep.mubr.msk.f32.mxu1 %vm785_vm1, %v1910_v26 }
 0x5a2   :  { %12909 = vmatmul.mubr.msk.f32.gmra.mrb[106].mxu1 %vm785_vm1, %v1911_v49 }
 0x5a3   :  { %12911 = vmatprep.mubr.msk.f32.mxu1 %vm785_vm1, %v1912_v28 }
 0x5a6   :  { %12912 = vmatmul.mubr.msk.f32.gmra.mrb[108].mxu1 %vm785_vm1, %v1913_v34 }
 0x5a7   :  { %12914 = vmatprep.mubr.msk.f32.mxu1 %vm785_vm1, %v1914_v35 }
 0x5aa   :  { %12915 = vmatmul.mubr.msk.f32.gmra.mrb[110].mxu1 %vm785_vm1, %v1915_v36 }
 0x5ab   :  { %12917 = vmatprep.mubr.msk.f32.mxu1 %vm785_vm1, %v1916_v29 }
 0x5ae   :  { %12918 = vmatmul.mubr.msk.f32.gmra.mrb[112].mxu1 %vm785_vm1, %v1917_v38 }
 0x5af   :  { %12920 = vmatprep.mubr.msk.f32.mxu1 %vm785_vm1, %v1918_v58 }
 0x5b2   :  { %12921 = vmatmul.mubr.msk.f32.gmra.mrb[114].mxu1 %vm785_vm1, %v1919_v52 }
 0x5b3   :  { %13041 = vmatprep.mubr.msk.f32.mxu1 %vm15449_vm3, %v19144_v0 }
 0x5f7   :  { %v1590_v39 = vpop.f32.mrb[28].mxu0  ;;  %v16181_v31 = vpop.f32.mrb[46].mxu1 }
 0x5f8   :  { %19239 = vst [vmem:[#allocation11_spill] sm:$0xff] %v16181_v31  ;;  %v16183_v42 = vpop.f32.mrb[29].mxu0  ;;  %v16185_v44 = vpop.f32.mrb[47].mxu1 }
 0x5f9   :  { %19240 = vst [vmem:[#allocation12_spill] sm:$0xff] %v16185_v44 }
 0x5fb   :  { %v1596_v50 = vpop.f32.mrb[30].mxu0  ;;  %v16187_v45 = vpop.f32.mrb[48].mxu1 }
 0x5fc   :  { %19241 = vst [vmem:[#allocation13_spill] sm:$0xff] %v16187_v45  ;;  %v16189_v47 = vpop.f32.mrb[31].mxu0  ;;  %v16191_v33 = vpop.f32.mrb[49].mxu1 }
 0x5fd   :  { %19242 = vst [vmem:[#allocation14_spill] sm:$0xff] %v16191_v33 }
 0x5ff   :  { %v1602_v46 = vpop.f32.mrb[32].mxu0  ;;  %v16193_v19 = vpop.f32.mrb[50].mxu1 }
 0x600   :  { %19243 = vst [vmem:[#allocation15_spill] sm:$0xff] %v16193_v19  ;;  %v16195_v55 = vpop.f32.mrb[33].mxu0  ;;  %v16197_v27 = vpop.f32.mrb[51].mxu1 }
 0x601   :  { %19244 = vst [vmem:[#allocation16_spill] sm:$0xff] %v16197_v27 }
 0x607   :  { %v16199_v57 = vpop.f32.mrb[34].mxu0 }
 0x608   :  { %v16201_v40 = vpop.f32.mrb[35].mxu0 }
 0x609   :  { %v12829_v54 = vpop.f32.mrb[52].mxu1 }
 0x60a   :  { %v2178_v1 = vpop.f32.mrb[53].mxu1 }
 0x60b   :  { %v16203_v9 = vpop.f32.mrb[36].mxu0  ;;  %v14358_v20 = vpack.c.bf16 %v12829_v54, %v2178_v1 }
 0x60c   :  { %v16205_v59 = vpop.f32.mrb[37].mxu0 }
 0x60d   :  { %v12832_v60 = vpop.f32.mrb[54].mxu1  ;;  %14359 = vmatpush3.bf16.msra.mxu1 %v14358_v20 }
 0x60e   :  { %v2188_v62 = vpop.f32.mrb[55].mxu1  ;;  %14360 = vmatprep.subr.bf16.mxu1 %v19146_v14 }
 0x60f   :  { %v16208_v30 = vpop.f32.mrb[38].mxu0  ;;  %v14361_v63 = vpack.c.bf16 %v12832_v60, %v2188_v62 }
 0x610   :  { %v16210_v2 = vpop.f32.mrb[39].mxu0 }
 0x611   :  { %v12835_v4 = vpop.f32.mrb[56].mxu1  ;;  %14362 = vmatpush3.bf16.msra.mxu1 %v14361_v63 }
 0x612   :  { %v2198_v5 = vpop.f32.mrb[57].mxu1  ;;  %14363 = vmatprep.subr.bf16.mxu1 %v19146_v14 }
 0x613   :  { %v14364_v6 = vpack.c.bf16 %v12835_v4, %v2198_v5 }
 0x615   :  { %v12838_v48 = vpop.f32.mrb[58].mxu1  ;;  %14365 = vmatpush3.bf16.msra.mxu1 %v14364_v6 }
 0x616   :  { %v2208_v51 = vpop.f32.mrb[59].mxu1  ;;  %14366 = vmatprep.subr.bf16.mxu1 %v19146_v14 }
 0x617   :  { %v16214_v7 = vpop.f32.mrb[40].mxu0  ;;  %v14367_v8 = vpack.c.bf16 %v12838_v48, %v2208_v51 }
 0x618   :  { %19245 = vst [vmem:[#allocation17_spill] sm:$0xff] %v16214_v7  ;;  %v16216_v10 = vpop.f32.mrb[41].mxu0 }
 0x619   :  { %19246 = vst [vmem:[#allocation18_spill] sm:$0xff] %v16216_v10  ;;  %v12841_v11 = vpop.f32.mrb[60].mxu1  ;;  %14368 = vmatpush3.bf16.msra.mxu1 %v14367_v8  ;;  %v2553_v10 = vld [vmem:[%s16391_s2 + $0x1c0] sm:$0xff] }
 0x61a   :  { %v2218_v12 = vpop.f32.mrb[61].mxu1  ;;  %14385 = vmatprep.subr.bf16.mxu1 %v19146_v14 }
 0x61b   :  { %v16219_v13 = vpop.f32.mrb[42].mxu0  ;;  %v14386_v15 = vpack.c.bf16 %v12841_v11, %v2218_v12 }
 0x61c   :  { %19247 = vst [vmem:[#allocation19_spill] sm:$0xff] %v16219_v13  ;;  %v16221_v17 = vpop.f32.mrb[43].mxu0  ;;  %13042 = vmatmul.mubr.msk.f32.vlgmr.msra.gmra.mrb[116].mxu1 %vm785_vm1, %v1590_v39 }
 0x61d   :  { %19248 = vst [vmem:[#allocation20_spill] sm:$0xff] %v16221_v17  ;;  %v12844_v18 = vpop.f32.mrb[62].mxu1  ;;  %14387 = vmatpush3.bf16.msra.mxu1 %v14386_v15  ;;  %13044 = vmatprep.mubr.msk.f32.mxu1 %vm15449_vm3, %v19144_v0  ;;  %v2514_v17 = vld [vmem:[%s16391_s2 + $0x88] sm:$0xff] }
 0x61e   :  { %v2228_v21 = vpop.f32.mrb[63].mxu1  ;;  %14388 = vmatprep.subr.bf16.mxu1 %v19146_v14 }
 0x61f   :  { %v16227_v23 = vpop.f32.mrb[44].mxu0  ;;  %v14389_v24 = vpack.c.bf16 %v12844_v18, %v2228_v21 }
 0x620   :  { %19249 = vst [vmem:[#allocation21_spill] sm:$0xff] %v16227_v23  ;;  %v16229_v43 = vpop.f32.mrb[45].mxu0  ;;  %13045 = vmatmul.mubr.msk.f32.gmra.mrb[118].mxu1 %vm785_vm1, %v1596_v50 }
 0x621   :  { %19250 = vst [vmem:[#allocation22_spill] sm:$0xff] %v16229_v43  ;;  %v12847_v26 = vpop.f32.mrb[64].mxu1  ;;  %14390 = vmatpush3.bf16.msra.mxu1 %v14389_v24  ;;  %13047 = vmatprep.mubr.msk.f32.mxu1 %vm15449_vm3, %v19144_v0 }
 0x622   :  { %v2238_v49 = vpop.f32.mrb[65].mxu1  ;;  %14391 = vmatprep.subr.bf16.mxu1 %v19146_v14 }
 0x623   :  { %v14392_v28 = vpack.c.bf16 %v12847_v26, %v2238_v49  ;;  %v2497_v49 = vld [vmem:[%s16391_s2] sm:$0xff] }
 0x624   :  { %13048 = vmatmul.mubr.msk.f32.gmra.mrb[120].mxu1 %vm785_vm1, %v1602_v46  ;;  %12929 = vmatprep.mubr.msk.f32.mxu0 %vm785_vm1, %v2497_v49  ;;  %v2504_v49 = vld [vmem:[%s16391_s2 + $0x38] sm:$0xff] }
 0x625   :  { %v12850_v34 = vpop.f32.mrb[66].mxu1  ;;  %14393 = vmatpush3.bf16.msra.mxu1 %v14392_v28  ;;  %13091 = vmatprep.mubr.msk.f32.mxu1 %vm15449_vm3, %v19144_v0 }
 0x626   :  { %v2248_v35 = vpop.f32.mrb[67].mxu1  ;;  %14394 = vmatprep.subr.bf16.mxu1 %v19146_v14 }
 0x627   :  { %v14395_v36 = vpack.c.bf16 %v12850_v34, %v2248_v35 }
 0x629   :  { %v12853_v29 = vpop.f32.mrb[68].mxu1  ;;  %14396 = vmatpush3.bf16.msra.mxu1 %v14395_v36 }
 0x62a   :  { %v2258_v38 = vpop.f32.mrb[69].mxu1  ;;  %14413 = vmatprep.subr.bf16.mxu1 %v19146_v14 }
 0x62b   :  { %v14414_v58 = vpack.c.bf16 %v12853_v29, %v2258_v38 }
 0x62c   :  { %13092 = vmatmul.mubr.msk.f32.vlgmr.msra.gmra.mrb[122].mxu1 %vm785_vm1, %v16183_v42 }
 0x62d   :  { %v12856_v52 = vpop.f32.mrb[70].mxu1  ;;  %14415 = vmatpush3.bf16.msra.mxu1 %v14414_v58  ;;  %13094 = vmatprep.mubr.msk.f32.mxu1 %vm15449_vm3, %v19144_v0 }
 0x62e   :  { %v2268_v39 = vpop.f32.mrb[71].mxu1  ;;  %14416 = vmatprep.subr.bf16.mxu1 %v19146_v14 }
 0x62f   :  { %v14417_v50 = vpack.c.bf16 %v12856_v52, %v2268_v39 }
 0x630   :  { %13095 = vmatmul.mubr.msk.f32.gmra.mrb[124].mxu1 %vm785_vm1, %v16189_v47 }
 0x631   :  { %v12859_v46 = vpop.f32.mrb[72].mxu1  ;;  %14418 = vmatpush3.bf16.msra.mxu1 %v14417_v50  ;;  %13097 = vmatprep.mubr.msk.f32.mxu1 %vm15449_vm3, %v19144_v0 }
 0x632   :  { %v2278_v54 = vpop.f32.mrb[73].mxu1  ;;  %14419 = vmatprep.subr.bf16.mxu1 %v19146_v14 }
 0x633   :  { %v14420_v42 = vpack.c.bf16 %v12859_v46, %v2278_v54  ;;  %v2500_v54 = vld [vmem:[%s16391_s2 + $0x18] sm:$0xff] }
 0x634   :  { %13098 = vmatmul.mubr.msk.f32.gmra.mrb[126].mxu1 %vm785_vm1, %v16195_v55 }
 0x635   :  { %v12862_v1 = vpop.f32.mrb[74].mxu1  ;;  %14421 = vmatpush3.bf16.msra.mxu1 %v14420_v42  ;;  %13141 = vmatprep.mubr.msk.f32.mxu1 %vm15449_vm3, %v19144_v0 }
 0x636   :  { %v2288_v20 = vpop.f32.mrb[75].mxu1  ;;  %14422 = vmatprep.subr.bf16.mxu1 %v19146_v14 }
 0x637   :  { %v14423_v47 = vpack.c.bf16 %v12862_v1, %v2288_v20  ;;  %v2498_v20 = vld [vmem:[%s16391_s2 + $0x8] sm:$0xff] }
 0x638   :  { %12930 = vmatmul.mubr.msk.f32.vlgmr.msra.gmra.mrb[46].mxu0 %vm785_vm1, %v2498_v20  ;;  %v2505_v20 = vld [vmem:[%s16391_s2 + $0x40] sm:$0xff] }
 0x639   :  { %14424 = vmatpush3.bf16.msra.mxu1 %v14423_v47  ;;  %v16255_v60 = vpop.f32.mrb[76].mxu1  ;;  %12932 = vmatprep.mubr.msk.f32.mxu0 %vm785_vm1, %v2499_v25  ;;  %v2506_v25 = vld [vmem:[%s16391_s2 + $0x48] sm:$0xff] }
 0x63a   :  { %v16257_v62 = vpop.f32.mrb[77].mxu1  ;;  %14425 = vmatprep.subr.bf16.mxu1 %v19146_v14 }
 0x63c   :  { %13142 = vmatmul.mubr.msk.f32.vlgmr.msra.gmra.mrb[128].mxu1 %vm785_vm1, %v16199_v57  ;;  %12933 = vmatmul.mubr.msk.f32.gmra.mrb[48].mxu0 %vm785_vm1, %v2500_v54  ;;  %v2509_v54 = vld [vmem:[%s16391_s2 + $0x60] sm:$0xff] }
 0x63d   :  { %13144 = vmatprep.mubr.msk.f32.mxu1 %vm15449_vm3, %v19144_v0  ;;  %v16266_v55 = vpop.f32.mrb[78].mxu1  ;;  %12935 = vmatprep.mubr.msk.f32.mxu0 %vm785_vm1, %v2501_v22  ;;  %v2508_v22 = vld [vmem:[%s16391_s2 + $0x58] sm:$0xff] }
 0x63e   :  { %v16268_v4 = vpop.f32.mrb[79].mxu1 }
 0x640   :  { %13145 = vmatmul.mubr.msk.f32.gmra.mrb[130].mxu1 %vm785_vm1, %v16203_v9  ;;  %12936 = vmatmul.mubr.msk.f32.gmra.mrb[50].mxu0 %vm785_vm1, %v2502_v32  ;;  %v2511_v32 = vld [vmem:[%s16391_s2 + $0x70] sm:$0xff] }
 0x641   :  { %13147 = vmatprep.mubr.msk.f32.mxu1 %vm15449_vm3, %v19144_v0  ;;  %v16276_v6 = vpop.f32.mrb[80].mxu1  ;;  %12938 = vmatprep.mubr.msk.f32.mxu0 %vm785_vm1, %v2503_v56  ;;  %v2510_v56 = vld [vmem:[%s16391_s2 + $0x68] sm:$0xff] }
 0x642   :  { %v16278_v48 = vpop.f32.mrb[81].mxu1 }
 0x644   :  { %13148 = vmatmul.mubr.msk.f32.gmra.mrb[132].mxu1 %vm785_vm1, %v16208_v30  ;;  %12939 = vmatmul.mubr.msk.f32.gmra.mrb[52].mxu0 %vm785_vm1, %v2504_v49  ;;  %v2512_v49 = vld [vmem:[%s16391_s2 + $0x78] sm:$0xff] }
 0x645   :  { %v16284_v51 = vpop.f32.mrb[82].mxu1  ;;  %13166 = vmatprep.mubr.msk.f32.mxu1 %vm15449_vm3, %v19144_v0  ;;  %12941 = vmatprep.mubr.msk.f32.mxu0 %vm785_vm1, %v2505_v20  ;;  %v19271_v20 = vlaneseq }
 0x646   :  { %v16288_v8 = vpop.f32.mrb[83].mxu1 }
 0x647   :  { %v16426_v41 = vand.u32 127, %v19271_v20 }
 0x648   :  { %12942 = vmatmul.mubr.msk.f32.gmra.mrb[54].mxu0 %vm785_vm1, %v2506_v25 }
 0x649   :  { %v16292_v11 = vpop.f32.mrb[84].mxu1  ;;  %12944 = vmatprep.mubr.msk.f32.mxu0 %vm785_vm1, %v2507_v53  ;;  %vm1390_vm4 = vcmp.lt.s32.totalorder %v16426_v41, 17  ;;  %vm10166_vm12 = vcmp.lt.s32.totalorder %v16426_v41, 16  ;;  %vm10267_vm14 = vcmp.lt.s32.totalorder %v16426_v41, 15  ;;  %vm10368_vm15 = vcmp.lt.s32.totalorder %v16426_v41, 1 }
 0x64a   :  { %v16294_v12 = vpop.f32.mrb[85].mxu1  ;;  %vm10563_vm0 = vcmp.lt.s32.totalorder %v16426_v41, 127 }
 0x64c   :  { %12945 = vmatmul.mubr.msk.f32.gmra.mrb[56].mxu0 %vm785_vm1, %v2508_v22 }
 0x64d   :  { %v16298_v18 = vpop.f32.mrb[86].mxu1  ;;  %12947 = vmatprep.mubr.msk.f32.mxu0 %vm785_vm1, %v2509_v54 }
 0x64e   :  { %v16300_v30 = vpop.f32.mrb[87].mxu1 }
 0x650   :  { %12948 = vmatmul.mubr.msk.f32.gmra.mrb[58].mxu0 %vm785_vm1, %v2510_v56 }
 0x651   :  { %v16304_v24 = vpop.f32.mrb[88].mxu1  ;;  %12950 = vmatprep.mubr.msk.f32.mxu0 %vm785_vm1, %v2511_v32 }
 0x652   :  { %19251 = vst [vmem:[#allocation23_spill] sm:$0xff] %v16304_v24  ;;  %v16306_v26 = vpop.f32.mrb[89].mxu1 }
 0x653   :  { %19252 = vst [vmem:[#allocation24_spill] sm:$0xff] %v16306_v26 }
 0x654   :  { %12951 = vmatmul.mubr.msk.f32.gmra.mrb[60].mxu0 %vm785_vm1, %v2512_v49 }
 0x655   :  { %v16310_v28 = vpop.f32.mrb[90].mxu1 }
 0x656   :  { %19253 = vst [vmem:[#allocation25_spill] sm:$0xff] %v16310_v28  ;;  %v16312_v34 = vpop.f32.mrb[91].mxu1 }
 0x657   :  { %19254 = vst [vmem:[#allocation26_spill] sm:$0xff] %v16312_v34 }
 0x659   :  { %v16316_v36 = vpop.f32.mrb[92].mxu1 }
 0x65a   :  { %v16318_v29 = vpop.f32.mrb[93].mxu1 }
 0x65d   :  { %v16322_v58 = vpop.f32.mrb[94].mxu1 }
 0x65e   :  { %v16324_v52 = vpop.f32.mrb[95].mxu1 }
 0x661   :  { %v16328_v50 = vpop.f32.mrb[96].mxu1 }
 0x662   :  { %v16330_v46 = vpop.f32.mrb[97].mxu1 }
 0x665   :  { %v16334_v42 = vpop.f32.mrb[98].mxu1 }
 0x666   :  { %v16336_v1 = vpop.f32.mrb[99].mxu1 }
 0x669   :  { %v16340_v47 = vpop.f32.mrb[100].mxu1 }
 0x66a   :  { %19255 = vst [vmem:[#allocation27_spill] sm:$0xff] %v16340_v47  ;;  %v16342_v35 = vpop.f32.mrb[101].mxu1 }
 0x66b   :  { %19256 = vst [vmem:[#allocation28_spill] sm:$0xff] %v16342_v35 }
 0x66d   :  { %v16346_v21 = vpop.f32.mrb[102].mxu1 }
 0x66e   :  { %19257 = vst [vmem:[#allocation29_spill] sm:$0xff] %v16346_v21  ;;  %v16348_v15 = vpop.f32.mrb[103].mxu1  ;;  %v2555_v21 = vld [vmem:[%s16391_s2 + $0x1d0] sm:$0xff] }
 0x66f   :  { %19258 = vst [vmem:[#allocation30_spill] sm:$0xff] %v16348_v15  ;;  %v2554_v15 = vld [vmem:[%s16391_s2 + $0x1c8] sm:$0xff] }
 0x671   :  { %v16352_v39 = vpop.f32.mrb[104].mxu1 }
 0x672   :  { %19259 = vst [vmem:[#allocation31_spill] sm:$0xff] %v16352_v39  ;;  %v16354_v38 = vpop.f32.mrb[105].mxu1  ;;  %v2547_v39 = vld [vmem:[%s16391_s2 + $0x190] sm:$0xff] }
 0x673   :  { %19260 = vst [vmem:[#allocation32_spill] sm:$0xff] %v16354_v38  ;;  %v2515_v38 = vld [vmem:[%s16391_s2 + $0x90] sm:$0xff] }
 0x675   :  { %v16358_v9 = vpop.f32.mrb[106].mxu1 }
 0x676   :  { %19261 = vst [vmem:[#allocation33_spill] sm:$0xff] %v16358_v9  ;;  %v16360_v57 = vpop.f32.mrb[107].mxu1 }
 0x677   :  { %19262 = vst [vmem:[#allocation34_spill] sm:$0xff] %v16360_v57 }
 0x679   :  { %v16364_v5 = vpop.f32.mrb[108].mxu1 }
 0x67a   :  { %19263 = vst [vmem:[#allocation35_spill] sm:$0xff] %v16364_v5  ;;  %v16366_v63 = vpop.f32.mrb[109].mxu1 }
 0x67b   :  { %19264 = vst [vmem:[#allocation36_spill] sm:$0xff] %v16366_v63 }
 0x67d   :  { %v16370_v0 = vpop.f32.mrb[110].mxu1 }
 0x67e   :  { %19265 = vst [vmem:[#allocation37_spill] sm:$0xff] %v16370_v0  ;;  %v16372_v14 = vpop.f32.mrb[111].mxu1 }
 0x67f   :  { %19266 = vst [vmem:[#allocation38_spill] sm:$0xff] %v16372_v14 }
 0x681   :  { %v16376_v37 = vpop.f32.mrb[112].mxu1 }
 0x682   :  { %19267 = vst [vmem:[#allocation39_spill] sm:$0xff] %v16376_v37  ;;  %v16378_v16 = vpop.f32.mrb[113].mxu1 }
 0x683   :  { %19268 = vst [vmem:[#allocation40_spill] sm:$0xff] %v16378_v16 }
 0x685   :  { %v16382_v3 = vpop.f32.mrb[114].mxu1 }
 0x686   :  { %19269 = vst [vmem:[#allocation41_spill] sm:$0xff] %v16382_v3  ;;  %v16384_v61 = vpop.f32.mrb[115].mxu1  ;;  %v19274_v3 = vmov 0.0|0.0  }
 0x687   :  { %19270 = vst [vmem:[#allocation42_spill] sm:$0xff] %v16384_v61 }
 0x6ef   :  { %v3213_v53 = vpop.f32.mrb[116].mxu1 }
 0x6f0   :  { %v3227_v25 = vmul.f32 0.125, %v3213_v53  ;;  %v13043_v23 = vpop.f32.mrb[117].mxu1 }
 0x6f2   :  { %v16431_v22 = vsel %vm1390_vm4, %v3227_v25, -1e+30 }
 0x6f3   :  { %v3218_v54 = vpop.f32.mrb[118].mxu1  ;;  %v3234_v56 = vsel %vm3233_vm5, %v16431_v22, -inf }
 0x6f4   :  { %v3228_v32 = vmul.f32 0.125, %v3218_v54  ;;  %3235 = vmax.xlane.f32.xlu0 %v3234_v56  ;;  %v13046_v49 = vpop.f32.mrb[119].mxu1 }
 0x6f6   :  { %v16437_v20 = vsel %vm1390_vm4, %v3228_v32, -1e+30 }
 0x6f7   :  { %v3223_v13 = vpop.f32.mrb[120].mxu1  ;;  %v3237_v23 = vsel %vm3233_vm5, %v16437_v20, -inf }
 0x6f8   :  { %v3229_v53 = vmul.f32 0.125, %v3223_v13  ;;  %3238 = vmax.xlane.f32.xlu1 %v3237_v23  ;;  %v13049_v43 = vpop.f32.mrb[121].mxu1 }
 0x6fa   :  { %v16443_v25 = vsel %vm1390_vm4, %v3229_v53, -1e+30 }
 0x6fb   :  { %v3240_v54 = vsel %vm3233_vm5, %v16443_v25, -inf }
 0x6fc   :  { %3241 = vmax.xlane.f32.xlu0 %v3240_v54 }
 0x6ff   :  { %v3455_v56 = vpop.f32.mrb[122].mxu1 }
 0x700   :  { %v3469_v49 = vmul.f32 0.125, %v3455_v56  ;;  %v13093_v7 = vpop.f32.mrb[123].mxu1 }
 0x702   :  { %v16449_v32 = vsel %vm1390_vm4, %v3469_v49, -1e+30 }
 0x703   :  { %v3460_v57 = vpop.f32.mrb[124].mxu1  ;;  %v3475_v13 = vsel %vm3233_vm5, %v16449_v32, -inf }
 0x704   :  { %v3470_v43 = vmul.f32 0.125, %v3460_v57  ;;  %3476 = vmax.xlane.f32.xlu1 %v3475_v13  ;;  %v13096_v23 = vpop.f32.mrb[125].mxu1 }
 0x706   :  { %v16455_v53 = vsel %vm1390_vm4, %v3470_v43, -1e+30 }
 0x707   :  { %v3465_v54 = vpop.f32.mrb[126].mxu1  ;;  %v3478_v7 = vsel %vm3233_vm5, %v16455_v53, -inf }
 0x708   :  { %v3471_v56 = vmul.f32 0.125, %v3465_v54  ;;  %3479 = vmax.xlane.f32.xlu0 %v3478_v7  ;;  %v13099_v49 = vpop.f32.mrb[127].mxu1 }
 0x70a   :  { %v16461_v57 = vsel %vm1390_vm4, %v3471_v56, -1e+30  ;;  %v2513_v56 = vld [vmem:[%s16391_s2 + $0x80] sm:$0xff] }
 0x70b   :  { %v3481_v13 = vsel %vm3233_vm5, %v16461_v57, -inf  ;;  %12953 = vmatprep.mubr.msk.f32.mxu0 %vm785_vm1, %v2513_v56  ;;  %v2520_v56 = vld [vmem:[%s16391_s2 + $0xb8] sm:$0xff] }
 0x70c   :  { %3482 = vmax.xlane.f32.xlu1 %v3481_v13  ;;  %12954 = vmatmul.mubr.msk.f32.gmra.mrb[62].mxu0 %vm785_vm1, %v2514_v17  ;;  %v2516_v13 = vld [vmem:[%s16391_s2 + $0x98] sm:$0xff]  ;;  %v2521_v17 = vld [vmem:[%s16391_s2 + $0xc0] sm:$0xff] }
 0x70d   :  { %12956 = vmatprep.mubr.msk.f32.mxu0 %vm785_vm1, %v2515_v38  ;;  %v2522_v38 = vld [vmem:[%s16391_s2 + $0xc8] sm:$0xff] }
 0x70f   :  { %v16465_v43 = vpop.f32.mrb[128].mxu1 }
 0x710   :  { %v13143_v23 = vpop.f32.mrb[129].mxu1  ;;  %12957 = vmatmul.mubr.msk.f32.gmra.mrb[64].mxu0 %vm785_vm1, %v2516_v13  ;;  %v2523_v13 = vld [vmem:[%s16391_s2 + $0xd0] sm:$0xff] }
 0x711   :  { %v2517_v23 = vld [vmem:[%s16391_s2 + $0xa0] sm:$0xff] }
 0x712   :  { %12959 = vmatprep.mubr.msk.f32.mxu0 %vm785_vm1, %v2517_v23  ;;  %v2524_v23 = vld [vmem:[%s16391_s2 + $0xd8] sm:$0xff] }
 0x713   :  { %v16467_v9 = vpop.f32.mrb[130].mxu1 }
 0x714   :  { %v13146_v54 = vpop.f32.mrb[131].mxu1 }
 0x715   :  { %v2518_v54 = vld [vmem:[%s16391_s2 + $0xa8] sm:$0xff] }
 0x716   :  { %12960 = vmatmul.mubr.msk.f32.gmra.mrb[66].mxu0 %vm785_vm1, %v2518_v54  ;;  %v2525_v54 = vld [vmem:[%s16391_s2 + $0xe0] sm:$0xff] }
 0x717   :  { %v16469_v7 = vpop.f32.mrb[132].mxu1 }
 0x718   :  { %v13149_v49 = vpop.f32.mrb[133].mxu1 }
 0x719   :  { %v2519_v49 = vld [vmem:[%s16391_s2 + $0xb0] sm:$0xff] }
 0x71a   :  { %12962 = vmatprep.mubr.msk.f32.mxu0 %vm785_vm1, %v2519_v49  ;;  %v2526_v49 = vld [vmem:[%s16391_s2 + $0xe8] sm:$0xff] }
 0x71b   :  { %12963 = vmatmul.mubr.msk.f32.gmra.mrb[68].mxu0 %vm785_vm1, %v2520_v56  ;;  %v2527_v56 = vld [vmem:[%s16391_s2 + $0xf0] sm:$0xff] }
 0x71c   :  { %12965 = vmatprep.mubr.msk.f32.mxu0 %vm785_vm1, %v2521_v17  ;;  %v2528_v17 = vld [vmem:[%s16391_s2 + $0xf8] sm:$0xff] }
 0x71f   :  { %12966 = vmatmul.mubr.msk.f32.gmra.mrb[70].mxu0 %vm785_vm1, %v2522_v38  ;;  %v2529_v38 = vld [vmem:[%s16391_s2 + $0x100] sm:$0xff] }
 0x720   :  { %12968 = vmatprep.mubr.msk.f32.mxu0 %vm785_vm1, %v2523_v13  ;;  %v2530_v13 = vld [vmem:[%s16391_s2 + $0x108] sm:$0xff] }
 0x723   :  { %12969 = vmatmul.mubr.msk.f32.gmra.mrb[72].mxu0 %vm785_vm1, %v2524_v23  ;;  %v2531_v23 = vld [vmem:[%s16391_s2 + $0x110] sm:$0xff] }
 0x724   :  { %12971 = vmatprep.mubr.msk.f32.mxu0 %vm785_vm1, %v2525_v54  ;;  %v2532_v54 = vld [vmem:[%s16391_s2 + $0x118] sm:$0xff] }
 0x727   :  { %12972 = vmatmul.mubr.msk.f32.gmra.mrb[74].mxu0 %vm785_vm1, %v2526_v49  ;;  %v2533_v49 = vld [vmem:[%s16391_s2 + $0x120] sm:$0xff] }
 0x728   :  { %12974 = vmatprep.mubr.msk.f32.mxu0 %vm785_vm1, %v2527_v56  ;;  %v2534_v56 = vld [vmem:[%s16391_s2 + $0x128] sm:$0xff] }
 0x72b   :  { %12975 = vmatmul.mubr.msk.f32.gmra.mrb[76].mxu0 %vm785_vm1, %v2528_v17  ;;  %v2535_v17 = vld [vmem:[%s16391_s2 + $0x130] sm:$0xff] }
 0x72c   :  { %12977 = vmatprep.mubr.msk.f32.mxu0 %vm785_vm1, %v2529_v38  ;;  %v2536_v38 = vld [vmem:[%s16391_s2 + $0x138] sm:$0xff] }
 0x72f   :  { %12978 = vmatmul.mubr.msk.f32.gmra.mrb[78].mxu0 %vm785_vm1, %v2530_v13  ;;  %v2537_v13 = vld [vmem:[%s16391_s2 + $0x140] sm:$0xff] }
 0x730   :  { %12980 = vmatprep.mubr.msk.f32.mxu0 %vm785_vm1, %v2531_v23  ;;  %v2538_v23 = vld [vmem:[%s16391_s2 + $0x148] sm:$0xff] }
 0x733   :  { %12981 = vmatmul.mubr.msk.f32.gmra.mrb[80].mxu0 %vm785_vm1, %v2532_v54  ;;  %v2539_v54 = vld [vmem:[%s16391_s2 + $0x150] sm:$0xff] }
 0x734   :  { %12983 = vmatprep.mubr.msk.f32.mxu0 %vm785_vm1, %v2533_v49  ;;  %v2540_v49 = vld [vmem:[%s16391_s2 + $0x158] sm:$0xff] }
 0x737   :  { %12984 = vmatmul.mubr.msk.f32.gmra.mrb[82].mxu0 %vm785_vm1, %v2534_v56  ;;  %v2541_v56 = vld [vmem:[%s16391_s2 + $0x160] sm:$0xff] }
 0x738   :  { %12986 = vmatprep.mubr.msk.f32.mxu0 %vm785_vm1, %v2535_v17  ;;  %v2542_v17 = vld [vmem:[%s16391_s2 + $0x168] sm:$0xff] }
 0x73b   :  { %12987 = vmatmul.mubr.msk.f32.gmra.mrb[84].mxu0 %vm785_vm1, %v2536_v38  ;;  %v2543_v38 = vld [vmem:[%s16391_s2 + $0x170] sm:$0xff] }
 0x73c   :  { %12989 = vmatprep.mubr.msk.f32.mxu0 %vm785_vm1, %v2537_v13  ;;  %v2544_v13 = vld [vmem:[%s16391_s2 + $0x178] sm:$0xff] }
 0x73f   :  { %12990 = vmatmul.mubr.msk.f32.gmra.mrb[86].mxu0 %vm785_vm1, %v2538_v23  ;;  %v2545_v23 = vld [vmem:[%s16391_s2 + $0x180] sm:$0xff] }
 0x740   :  { %12992 = vmatprep.mubr.msk.f32.mxu0 %vm785_vm1, %v2539_v54  ;;  %v2546_v54 = vld [vmem:[%s16391_s2 + $0x188] sm:$0xff] }
 0x743   :  { %12993 = vmatmul.mubr.msk.f32.gmra.mrb[88].mxu0 %vm785_vm1, %v2540_v49  ;;  %v2548_v49 = vld [vmem:[%s16391_s2 + $0x198] sm:$0xff] }
 0x744   :  { %12995 = vmatprep.mubr.msk.f32.mxu0 %vm785_vm1, %v2541_v56  ;;  %v2549_v56 = vld [vmem:[%s16391_s2 + $0x1a0] sm:$0xff] }
 0x747   :  { %12996 = vmatmul.mubr.msk.f32.gmra.mrb[90].mxu0 %vm785_vm1, %v2542_v17  ;;  %v2550_v17 = vld [vmem:[%s16391_s2 + $0x1a8] sm:$0xff] }
 0x748   :  { %12998 = vmatprep.mubr.msk.f32.mxu0 %vm785_vm1, %v2543_v38  ;;  %v2551_v38 = vld [vmem:[%s16391_s2 + $0x1b0] sm:$0xff] }
 0x74b   :  { %12999 = vmatmul.mubr.msk.f32.gmra.mrb[92].mxu0 %vm785_vm1, %v2544_v13  ;;  %v12931_v13 = vpop.f32.mrb[46].mxu0 }
 0x74c   :  { %13001 = vmatprep.mubr.msk.f32.mxu0 %vm785_vm1, %v2545_v23  ;;  %v2819_v23 = vpop.f32.mrb[47].mxu0 }
 0x74f   :  { %13002 = vmatmul.mubr.msk.f32.gmra.mrb[94].mxu0 %vm785_vm1, %v2546_v54 }
 0x750   :  { %13004 = vmatprep.mubr.msk.f32.mxu0 %vm785_vm1, %v2547_v39  ;;  %v14370_v39 = vpack.c.bf16 %v12931_v13, %v2819_v23 }
 0x752   :  { %14372 = vmatpush3.bf16.xpose.msk.msra.mxu0 %vm16550_vm6, %v14370_v39 }
 0x753   :  { %13005 = vmatmul.mubr.msk.f32.gmra.mrb[96].mxu0 %vm785_vm1, %v2548_v49  ;;  %v2552_v49 = vld [vmem:[%s16391_s2 + $0x1b8] sm:$0xff]  ;;  %14373 = vmatprep.subr.bf16.mxu0 %v19274_v3 }
 0x754   :  { %13007 = vmatprep.mubr.msk.f32.mxu0 %vm785_vm1, %v2549_v56  ;;  %v12934_v56 = vpop.f32.mrb[48].mxu0 }
 0x755   :  { %v2829_v61 = vpop.f32.mrb[49].mxu0 }
 0x756   :  { %v12937_v16 = vpop.f32.mrb[50].mxu0 }
 0x757   :  { %13008 = vmatmul.mubr.msk.f32.gmra.mrb[98].mxu0 %vm785_vm1, %v2550_v17  ;;  %v14374_v17 = vpack.c.bf16 %v12934_v56, %v2829_v61  ;;  %v2839_v37 = vpop.f32.mrb[51].mxu0 }
 0x758   :  { %13010 = vmatprep.mubr.msk.f32.mxu0 %vm785_vm1, %v2551_v38  ;;  %v14378_v38 = vpack.c.bf16 %v12937_v16, %v2839_v37 }
 0x75a   :  { %14376 = vmatpush3.bf16.xpose.msk.msra.mxu0 %vm16550_vm6, %v14374_v17 }
 0x75b   :  { %13011 = vmatmul.mubr.msk.f32.gmra.mrb[100].mxu0 %vm785_vm1, %v2552_v49  ;;  %14377 = vmatprep.subr.bf16.mxu0 %v19274_v3 }
 0x75c   :  { %13013 = vmatprep.mubr.msk.f32.mxu0 %vm785_vm1, %v2553_v10 }
 0x75f   :  { %13014 = vmatmul.mubr.msk.f32.gmra.mrb[102].mxu0 %vm785_vm1, %v2554_v15 }
 0x760   :  { %13016 = vmatprep.mubr.msk.f32.mxu0 %vm785_vm1, %v2555_v21 }
 0x762   :  { %14380 = vmatpush3.bf16.xpose.msk.msra.mxu0 %vm16550_vm6, %v14378_v38 }
 0x763   :  { %14381 = vmatprep.subr.bf16.mxu0 %v19274_v3 }
 0x781   :  { %v3236_v13 = vpop.xlane.xlu0 %3235 }
 0x782   :  { %v3243_v23 = vsub.f32 %v16431_v22, %v3236_v13 }
 0x784   :  { %v3246_v61 = vmul.f32 1.442695, %v3243_v23 }
 0x785   :  { %v3239_v39 = vpop.xlane.xlu1 %3238 }
 0x786   :  { %15201 = vpow2.f32 %v3246_v61  ;;  %v3244_v10 = vsub.f32 %v16437_v20, %v3239_v39 }
 0x788   :  { %v3248_v49 = vmul.f32 1.442695, %v3244_v10 }
 0x789   :  { %v3242_v37 = vpop.xlane.xlu0 %3241 }
 0x78a   :  { %15203 = vpow2.f32 %v3248_v49  ;;  %v3245_v16 = vsub.f32 %v16443_v25, %v3242_v37 }
 0x78c   :  { %v3250_v15 = vmul.f32 1.442695, %v3245_v16 }
 0x78e   :  { %15205 = vpow2.f32 %v3250_v15 }
 0x790   :  { %v16575_v21 = vpop.eup %15201 }
 0x791   :  { %v3477_v22 = vpop.xlane.xlu1 %3476  ;;  %v3252_v56 = vsel %vm3233_vm5, %v16575_v21, 0.0 }
 0x792   :  { %v3484_v20 = vsub.f32 %v16449_v32, %v3477_v22  ;;  %3253 = vadd.xlane.f32.xlu0 %v3252_v56  ;;  %v2556_v22 = vld [vmem:[%s16391_s2 + $0x1d8] sm:$0xff] }
 0x793   :  { %13017 = vmatmul.mubr.msk.f32.gmra.mrb[104].mxu0 %vm785_vm1, %v2556_v22  ;;  %v19275_v22 = vmov 0.0  }
 0x794   :  { %v16580_v17 = vpop.eup %15203  ;;  %v3487_v38 = vmul.f32 1.442695, %v3484_v20  ;;  %v12940_v20 = vpop.f32.mrb[52].mxu0 }
 0x795   :  { %v3480_v13 = vpop.xlane.xlu0 %3479  ;;  %v3255_v23 = vsel %vm3233_vm5, %v16580_v17, 0.0 }
 0x796   :  { %15207 = vpow2.f32 %v3487_v38  ;;  %v3485_v25 = vsub.f32 %v16455_v53, %v3480_v13  ;;  %3256 = vadd.xlane.f32.xlu1 %v3255_v23  ;;  %v2557_v13 = vld [vmem:[%s16391_s2 + $0x1e0] sm:$0xff] }
 0x797   :  { %13019 = vmatprep.mubr.msk.f32.mxu0 %vm785_vm1, %v2557_v13 }
 0x798   :  { %v16585_v61 = vpop.eup %15205  ;;  %v3489_v39 = vmul.f32 1.442695, %v3485_v25  ;;  %v2558_v25 = vld [vmem:[%s16391_s2 + $0x1e8] sm:$0xff] }
 0x799   :  { %v3483_v10 = vpop.xlane.xlu1 %3482  ;;  %v3258_v32 = vsel %vm3233_vm5, %v16585_v61, 0.0  ;;  %13020 = vmatmul.mubr.msk.f32.gmra.mrb[106].mxu0 %vm785_vm1, %v2558_v25 }
 0x79a   :  { %15209 = vpow2.f32 %v3489_v39  ;;  %v3486_v49 = vsub.f32 %v16461_v57, %v3483_v10  ;;  %3259 = vadd.xlane.f32.xlu0 %v3258_v32  ;;  %v2849_v57 = vpop.f32.mrb[53].mxu0  ;;  %v2559_v10 = vld [vmem:[%s16391_s2 + $0x1f0] sm:$0xff] }
 0x79b   :  { %v14382_v38 = vpack.c.bf16 %v12940_v20, %v2849_v57  ;;  %v16611_v32 = vpop.f32.mrb[54].mxu0  ;;  %13022 = vmatprep.mubr.msk.f32.mxu0 %vm785_vm1, %v2559_v10 }
 0x79c   :  { %v3491_v37 = vmul.f32 1.442695, %v3486_v49  ;;  %v2560_v49 = vld [vmem:[%s16391_s2 + $0x1f8] sm:$0xff]  ;;  %s11116_s2 = sld [smem:[%s19143_s0 + %s15459_s29]]  }
 0x79d   :  { %14384 = vmatpush3.bf16.xpose.msk.msra.mxu0 %vm16550_vm6, %v14382_v38  ;;  %s11130_s29 = sld [smem:[%s19143_s0 + %s15471_s26]]   ;;  %s15488_s26 = smov 46  }
 0x79e   :  { %15211 = vpow2.f32 %v3491_v37  ;;  %14397 = vmatprep.subr.bf16.mxu0 %v19274_v3  ;;  %v16616_v37 = vpop.f32.mrb[55].mxu0  ;;  %13023 = vmatmul.mubr.msk.f32.gmra.mrb[108].mxu0 %vm785_vm1, %v2560_v49 }
 0x79f   :  { %13066 = vmatprep.mubr.msk.f32.mxu0 %vm15449_vm3, %v19275_v22 }
 0x7a0   :  { %v16590_v16 = vpop.eup %15207 }
 0x7a1   :  { %v3493_v53 = vsel %vm3233_vm5, %v16590_v16, 0.0 }
 0x7a2   :  { %3494 = vadd.xlane.f32.xlu1 %v3493_v53 }
 0x7a4   :  { %v16594_v15 = vpop.eup %15209 }
 0x7a5   :  { %v3496_v56 = vsel %vm3233_vm5, %v16594_v15, 0.0 }
 0x7a6   :  { %3497 = vadd.xlane.f32.xlu0 %v3496_v56  ;;  %v16623_v56 = vpop.f32.mrb[56].mxu0 }
 0x7a7   :  { %v16625_v20 = vpop.f32.mrb[57].mxu0 }
 0x7a8   :  { %v16601_v23 = vpop.eup %15211  ;;  %v16629_v38 = vpop.f32.mrb[58].mxu0 }
 0x7a9   :  { %v3499_v39 = vsel %vm3233_vm5, %v16601_v23, 0.0  ;;  %v16631_v13 = vpop.f32.mrb[59].mxu0 }
 0x7aa   :  { %3500 = vadd.xlane.f32.xlu1 %v3499_v39  ;;  %v16635_v39 = vpop.f32.mrb[60].mxu0 }
 0x7ab   :  { %v16637_v10 = vpop.f32.mrb[61].mxu0 }
 0x7df   :  { %v12955_v53 = vpop.f32.mrb[62].mxu0 }
 0x7e0   :  { %v2899_v35 = vpop.f32.mrb[63].mxu0 }
 0x7e1   :  { %v14426_v47 = vpack.c.bf16 %v12955_v53, %v2899_v35 }
 0x7e3   :  { %14428 = vmatpush3.bf16.xpose.msk.msra.mxu1 %vm16550_vm6, %v14426_v47  ;;  %v12958_v57 = vpop.f32.mrb[64].mxu0 }
 0x7e4   :  { %v2909_v14 = vpop.f32.mrb[65].mxu0  ;;  %14429 = vmatprep.subr.bf16.mxu1 %v19274_v3 }
 0x7e5   :  { %v14430_v0 = vpack.c.bf16 %v12958_v57, %v2909_v14 }
 0x7e9   :  { %v12961_v63 = vpop.f32.mrb[66].mxu0 }
 0x7ea   :  { %v2919_v25 = vpop.f32.mrb[67].mxu0 }
 0x7eb   :  { %v14434_v5 = vpack.c.bf16 %v12961_v63, %v2919_v25  ;;  %14432 = vmatpush3.bf16.xpose.msk.msra.mxu1 %vm16550_vm6, %v14430_v0 }
 0x7ec   :  { %14433 = vmatprep.subr.bf16.mxu1 %v19274_v3 }
 0x7ee   :  { %v12964_v19 = vpop.f32.mrb[68].mxu0 }
 0x7ef   :  { %v2929_v45 = vpop.f32.mrb[69].mxu0 }
 0x7f0   :  { %v14438_v49 = vpack.c.bf16 %v12964_v19, %v2929_v45 }
 0x7f2   :  { %v16647_v35 = vpop.f32.mrb[70].mxu0 }
 0x7f3   :  { %v16649_v53 = vpop.f32.mrb[71].mxu0  ;;  %14436 = vmatpush3.bf16.xpose.msk.msra.mxu1 %vm16550_vm6, %v14434_v5 }
 0x7f4   :  { %14437 = vmatprep.subr.bf16.mxu1 %v19274_v3 }
 0x7f6   :  { %v16655_v14 = vpop.f32.mrb[72].mxu0 }
 0x7f7   :  { %v16657_v63 = vpop.f32.mrb[73].mxu0 }
 0x7fa   :  { %v16662_v45 = vpop.f32.mrb[74].mxu0 }
 0x7fb   :  { %v16664_v19 = vpop.f32.mrb[75].mxu0  ;;  %14440 = vmatpush3.bf16.xpose.msk.msra.mxu1 %vm16550_vm6, %v14438_v49 }
 0x7fc   :  { %14469 = vmatprep.subr.bf16.mxu1 %v19274_v3 }
 0x7fe   :  { %v16670_v5 = vpop.f32.mrb[76].mxu0 }
 0x7ff   :  { %v16672_v25 = vpop.f32.mrb[77].mxu0 }
 0x802   :  { %v16677_v27 = vpop.f32.mrb[78].mxu0 }
 0x803   :  { %v16679_v31 = vpop.f32.mrb[79].mxu0 }
 0x804   :  { %19276 = vst [vmem:[#allocation43_spill] sm:$0xff] %v16679_v31 }
 0x806   :  { %v16683_v49 = vpop.f32.mrb[80].mxu0 }
 0x807   :  { %v16685_v28 = vpop.f32.mrb[81].mxu0 }
 0x808   :  { %19277 = vst [vmem:[#allocation44_spill] sm:$0xff] %v16685_v28 }
 0x80a   :  { %v16689_v47 = vpop.f32.mrb[82].mxu0 }
 0x80b   :  { %v16691_v24 = vpop.f32.mrb[83].mxu0 }
 0x80c   :  { %19278 = vst [vmem:[#allocation45_spill] sm:$0xff] %v16691_v24 }
 0x80e   :  { %v16696_v31 = vpop.f32.mrb[84].mxu0 }
 0x80f   :  { %19279 = vst [vmem:[#allocation46_spill] sm:$0xff] %v16696_v31 }
 0x81f   :  { %v3254_v0 = vpop.xlane.xlu0 %3253 }
 0x820   :  { %15213 = vrcp.f32 %v3254_v0 }
 0x823   :  { %v3257_v34 = vpop.xlane.xlu1 %3256 }
 0x824   :  { %15215 = vrcp.f32 %v3257_v34  ;;  %v16698_v34 = vpop.f32.mrb[85].mxu0 }
 0x825   :  { %19280 = vst [vmem:[#allocation47_spill] sm:$0xff] %v16698_v34 }
 0x827   :  { %v3260_v26 = vpop.xlane.xlu0 %3259 }
 0x828   :  { %15217 = vrcp.f32 %v3260_v26  ;;  %v19281_v26 = vpack.c.bf16 %v16611_v32, %v16616_v37 }
 0x82a   :  { %v15214_v44 = vpop.eup %15213 }
 0x82b   :  { %v3264_v57 = vmul.f32 %v15214_v44, %v16575_v21  ;;  %v16712_v21 = vpop.f32.mrb[86].mxu0 }
 0x82d   :  { %13067 = vmatmul.mubr.msk.f32.vlgmr.msra.gmra.mrb[110].mxu0 %vm3233_vm5, %v3264_v57  ;;  %v16714_v57 = vpop.f32.mrb[87].mxu0 }
 0x82e   :  { %v15216_v28 = vpop.eup %15215  ;;  %14400 = vmatpush3.bf16.xpose.msk.msra.mxu0 %vm16550_vm6, %v19281_v26  ;;  %13069 = vmatprep.mubr.msk.f32.mxu0 %vm15449_vm3, %v19275_v22  ;;  %v16722_v26 = vpop.f32.mrb[88].mxu0 }
 0x82f   :  { %v3265_v44 = vmul.f32 %v15216_v28, %v16580_v17  ;;  %14401 = vmatprep.subr.bf16.mxu0 %v19274_v3  ;;  %v16724_v28 = vpop.f32.mrb[89].mxu0  ;;  %v3495_v0 = vpop.xlane.xlu1 %3494 }
 0x830   :  { %15219 = vrcp.f32 %v3495_v0 }
 0x831   :  { %13070 = vmatmul.mubr.msk.f32.gmra.mrb[112].mxu0 %vm3233_vm5, %v3265_v44  ;;  %v19282_v44 = vpack.c.bf16 %v16623_v56, %v16625_v20  ;;  %v19283_v20 = vpack.c.bf16 %v16629_v38, %v16631_v13  ;;  %v19286_v13 = vpack.c.bf16 %v16635_v39, %v16637_v10  ;;  %v19287_v10 = vpack.c.bf16 %v16255_v60, %v16257_v62 }
 0x832   :  { %v15218_v32 = vpop.eup %15217  ;;  %13072 = vmatprep.mubr.msk.f32.mxu0 %vm15449_vm3, %v19275_v22  ;;  %v19288_v60 = vpack.c.bf16 %v16266_v55, %v16268_v4  ;;  %v19290_v55 = vpack.c.bf16 %v16284_v51, %v16288_v8  ;;  %v19291_v4 = vpack.c.bf16 %v16647_v35, %v16649_v53  ;;  %v19294_v51 = vpack.c.bf16 %v16670_v5, %v16672_v25 }
 0x833   :  { %v3266_v37 = vmul.f32 %v15218_v32, %v16585_v61  ;;  %v16737_v61 = vpop.f32.mrb[90].mxu0 }
 0x834   :  { %v16739_v32 = vpop.f32.mrb[91].mxu0 }
 0x835   :  { %13073 = vmatmul.mubr.msk.f32.gmra.mrb[114].mxu0 %vm3233_vm5, %v3266_v37  ;;  %v16743_v17 = vpop.f32.mrb[92].mxu0 }
 0x836   :  { %14404 = vmatpush3.bf16.xpose.msk.msra.mxu0 %vm16550_vm6, %v19282_v44  ;;  %13116 = vmatprep.mubr.msk.f32.mxu0 %vm15449_vm3, %v19275_v22  ;;  %v16745_v33 = vpop.f32.mrb[93].mxu0  ;;  %v3498_v44 = vpop.xlane.xlu0 %3497 }
 0x837   :  { %14405 = vmatprep.subr.bf16.mxu0 %v19274_v3  ;;  %v16755_v34 = vpop.f32.mrb[94].mxu0  ;;  %15221 = vrcp.f32 %v3498_v44  ;;  %v3501_v24 = vpop.xlane.xlu1 %3500 }
 0x838   :  { %19284 = vst [vmem:[#allocation48_spill] sm:$0xff] %v16755_v34  ;;  %v16757_v37 = vpop.f32.mrb[95].mxu0  ;;  %15223 = vrcp.f32 %v3501_v24 }
 0x839   :  { %19285 = vst [vmem:[#allocation49_spill] sm:$0xff] %v16757_v37  ;;  %v16761_v56 = vpop.f32.mrb[96].mxu0 }
 0x83a   :  { %v16763_v0 = vpop.f32.mrb[97].mxu0  ;;  %v15220_v44 = vpop.eup %15219 }
 0x83b   :  { %v3505_v34 = vmul.f32 %v15220_v44, %v16590_v16 }
 0x83e   :  { %14408 = vmatpush3.bf16.xpose.msk.msra.mxu0 %vm16550_vm6, %v19283_v20  ;;  %v16773_v20 = vpop.f32.mrb[98].mxu0 }
 0x83f   :  { %14409 = vmatprep.subr.bf16.mxu0 %v19274_v3  ;;  %v16775_v31 = vpop.f32.mrb[99].mxu0 }
 0x840   :  { %v16780_v24 = vpop.f32.mrb[100].mxu0 }
 0x841   :  { %v15222_v38 = vpop.eup %15221  ;;  %v16783_v39 = vpop.f32.mrb[101].mxu0 }
 0x842   :  { %v3506_v37 = vmul.f32 %v15222_v38, %v16594_v15  ;;  %v15224_v16 = vpop.eup %15223  ;;  %v16794_v44 = vpop.f32.mrb[102].mxu0 }
 0x843   :  { %v3507_v15 = vmul.f32 %v15224_v16, %v16601_v23 }
 0x846   :  { %14412 = vmatpush3.bf16.xpose.msk.msra.mxu0 %vm16550_vm6, %v19286_v13 }
 0x847   :  { %14441 = vmatprep.subr.bf16.mxu0 %v19274_v3 }
 0x84d   :  { %13117 = vmatmul.mubr.msk.f32.vlgmr.msra.gmra.mrb[116].mxu0 %vm3233_vm5, %v3505_v34  ;;  %v16797_v34 = vpop.f32.mrb[103].mxu0 }
 0x84e   :  { %14443 = vmatpush3.bf16.msra.mxu0 %v19287_v10  ;;  %13119 = vmatprep.mubr.msk.f32.mxu0 %vm15449_vm3, %v19275_v22 }
 0x84f   :  { %14444 = vmatprep.subr.bf16.mxu0 %v19274_v3 }
 0x851   :  { %13120 = vmatmul.mubr.msk.f32.gmra.mrb[118].mxu0 %vm3233_vm5, %v3506_v37  ;;  %v19289_v37 = vpack.c.bf16 %v16276_v6, %v16278_v48 }
 0x852   :  { %14446 = vmatpush3.bf16.msra.mxu0 %v19288_v60  ;;  %13122 = vmatprep.mubr.msk.f32.mxu0 %vm15449_vm3, %v19275_v22 }
 0x853   :  { %14447 = vmatprep.subr.bf16.mxu0 %v19274_v3 }
 0x855   :  { %13123 = vmatmul.mubr.msk.f32.gmra.mrb[120].mxu0 %vm3233_vm5, %v3507_v15 }
 0x856   :  { %14449 = vmatpush3.bf16.msra.mxu0 %v19289_v37  ;;  %13191 = vmatprep.mubr.msk.f32.mxu0 %vm15449_vm3, %v19275_v22 }
 0x857   :  { %14450 = vmatprep.subr.bf16.mxu0 %v19274_v3 }
 0x85a   :  { %14452 = vmatpush3.bf16.msra.mxu0 %v19290_v55 }
 0x85b   :  { %14453 = vmatprep.subr.bf16.mxu0 %v19274_v3 }
 0x85d   :  { %13192 = vmatmul.mubr.msk.f32.vlgmr.msra.gmra.mrb[122].mxu0 %vm785_vm1, %v16201_v40  ;;  %v19292_v40 = vpack.c.bf16 %v16655_v14, %v16657_v63 }
 0x85e   :  { %13194 = vmatprep.mubr.msk.f32.mxu0 %vm15449_vm3, %v19275_v22 }
 0x861   :  { %13195 = vmatmul.mubr.msk.f32.gmra.mrb[124].mxu0 %vm785_vm1, %v16205_v59  ;;  %v19293_v59 = vpack.c.bf16 %v16662_v45, %v16664_v19 }
 0x862   :  { %13197 = vmatprep.mubr.msk.f32.mxu0 %vm15449_vm3, %v19275_v22 }
 0x863   :  { %14456 = vmatpush3.bf16.xpose.msk.msra.mxu0 %vm16550_vm6, %v19291_v4 }
 0x864   :  { %14457 = vmatprep.subr.bf16.mxu0 %v19274_v3 }
 0x865   :  { %13198 = vmatmul.mubr.msk.f32.gmra.mrb[126].mxu0 %vm785_vm1, %v16210_v2 }
 0x866   :  { %13216 = vmatprep.mubr.msk.f32.mxu0 %vm15449_vm3, %v19275_v22  ;;  %v16849_v2 = vpop.f32.mrb[104].mxu0 }
 0x867   :  { %v16851_v6 = vpop.f32.mrb[105].mxu0 }
 0x86b   :  { %14460 = vmatpush3.bf16.xpose.msk.msra.mxu0 %vm16550_vm6, %v19292_v40 }
 0x86c   :  { %14461 = vmatprep.subr.bf16.mxu0 %v19274_v3  ;;  %v16860_v8 = vpop.f32.mrb[106].mxu0 }
 0x86d   :  { %v16863_v23 = vpop.f32.mrb[107].mxu0 }
 0x871   :  { %v16867_v53 = vpop.f32.mrb[108].mxu0 }
 0x872   :  { %v16869_v14 = vpop.f32.mrb[109].mxu0 }
 0x873   :  { %14464 = vmatpush3.bf16.xpose.msk.msra.mxu0 %vm16550_vm6, %v19293_v59 }
 0x874   :  { %14465 = vmatprep.subr.bf16.mxu0 %v19274_v3 }
 0x87b   :  { %14468 = vmatpush3.bf16.xpose.msk.msra.mxu0 %vm16550_vm6, %v19294_v51 }
 0x87c   :  { %14497 = vmatprep.subr.bf16.mxu0 %v19274_v3 }
 0x900   :  { %v16873_v45 = vpop.f32.mrb[110].mxu0 }
 0x901   :  { %19295 = vst [vmem:[#allocation50_spill] sm:$0xff] %v16873_v45  ;;  %v13068_v19 = vpop.f32.mrb[111].mxu0 }
 0x904   :  { %v16875_v5 = vpop.f32.mrb[112].mxu0 }
 0x905   :  { %19296 = vst [vmem:[#allocation51_spill] sm:$0xff] %v16875_v5  ;;  %v13071_v25 = vpop.f32.mrb[113].mxu0 }
 0x908   :  { %v16877_v38 = vpop.f32.mrb[114].mxu0 }
 0x909   :  { %19297 = vst [vmem:[#allocation52_spill] sm:$0xff] %v16877_v38  ;;  %v13074_v10 = vpop.f32.mrb[115].mxu0 }
 0x90a   :  { %v3710_v10 = vmul.f32 0.125, %v16465_v43 }
 0x90c   :  { %v3713_v62 = vsel %vm1390_vm4, %v3710_v10, -1e+30 }
 0x920   :  { %v16879_v16 = vpop.f32.mrb[116].mxu0 }
 0x921   :  { %19298 = vst [vmem:[#allocation53_spill] sm:$0xff] %v16879_v16  ;;  %v13118_v60 = vpop.f32.mrb[117].mxu0 }
 0x924   :  { %v16881_v15 = vpop.f32.mrb[118].mxu0 }
 0x925   :  { %19299 = vst [vmem:[#allocation54_spill] sm:$0xff] %v16881_v15  ;;  %v13121_v37 = vpop.f32.mrb[119].mxu0 }
 0x928   :  { %v16883_v55 = vpop.f32.mrb[120].mxu0 }
 0x929   :  { %19300 = vst [vmem:[#allocation55_spill] sm:$0xff] %v16883_v55  ;;  %v13124_v4 = vpop.f32.mrb[121].mxu0 }
 0x930   :  { %v3937_v40 = vpop.f32.mrb[122].mxu0 }
 0x931   :  { %v3951_v59 = vmul.f32 0.125, %v3937_v40  ;;  %v13193_v51 = vpop.f32.mrb[123].mxu0  ;;  %v3711_v40 = vmul.f32 0.125, %v16467_v9 }
 0x932   :  { %v3712_v51 = vmul.f32 0.125, %v16469_v7 }
 0x933   :  { %v3954_v19 = vsel %vm1390_vm4, %v3951_v59, -1e+30  ;;  %v3714_v7 = vsel %vm1390_vm4, %v3711_v40, -1e+30 }
 0x934   :  { %v3942_v13 = vpop.f32.mrb[124].mxu0  ;;  %v3957_v25 = vsel %vm3233_vm5, %v3954_v19, -inf  ;;  %v3715_v9 = vsel %vm1390_vm4, %v3712_v51, -1e+30 }
 0x935   :  { %v3952_v63 = vmul.f32 0.125, %v3942_v13  ;;  %3958 = vmax.xlane.f32.xlu0 %v3957_v25  ;;  %v13196_v60 = vpop.f32.mrb[125].mxu0  ;;  %v3716_v13 = vsel %vm3233_vm5, %v3713_v62, -inf  ;;  %v3719_v25 = vsel %vm3233_vm5, %v3714_v7, -inf }
 0x937   :  { %v3955_v37 = vsel %vm1390_vm4, %v3952_v63, -1e+30 }
 0x938   :  { %v3947_v35 = vpop.f32.mrb[126].mxu0  ;;  %v3960_v4 = vsel %vm3233_vm5, %v3955_v37, -inf }
 0x939   :  { %v3953_v48 = vmul.f32 0.125, %v3947_v35  ;;  %3961 = vmax.xlane.f32.xlu1 %v3960_v4  ;;  %v13199_v59 = vpop.f32.mrb[127].mxu0  ;;  %v3722_v35 = vsel %vm3233_vm5, %v3715_v9, -inf }
 0x93b   :  { %v3956_v43 = vsel %vm1390_vm4, %v3953_v48, -1e+30 }
 0x93c   :  { %v3963_v63 = vsel %vm3233_vm5, %v3956_v43, -inf }
 0x93d   :  { %3717 = vmax.xlane.f32.xlu1 %v3716_v13  ;;  %3964 = vmax.xlane.f32.xlu0 %v3963_v63 }
 0x941   :  { %3723 = vmax.xlane.f32.xlu1 %v3722_v35  ;;  %3720 = vmax.xlane.f32.xlu0 %v3719_v25 }
 0x9c2   :  { %v3959_v10 = vpop.xlane.xlu0 %3958 }
 0x9c3   :  { %v3966_v48 = vsub.f32 %v3954_v19, %v3959_v10 }
 0x9c5   :  { %v3969_v60 = vmul.f32 1.442695, %v3966_v48 }
 0x9c6   :  { %v3962_v4 = vpop.xlane.xlu1 %3961 }
 0x9c7   :  { %15225 = vpow2.f32 %v3969_v60  ;;  %v3967_v59 = vsub.f32 %v3955_v37, %v3962_v4 }
 0x9c9   :  { %v3971_v13 = vmul.f32 1.442695, %v3967_v59 }
 0x9ca   :  { %v3718_v63 = vpop.xlane.xlu1 %3717  ;;  %v3965_v38 = vpop.xlane.xlu0 %3964 }
 0x9cb   :  { %15227 = vpow2.f32 %v3971_v13  ;;  %v3725_v51 = vsub.f32 %v3713_v62, %v3718_v63  ;;  %v3968_v5 = vsub.f32 %v3956_v43, %v3965_v38 }
 0x9cd   :  { %v3728_v45 = vmul.f32 1.442695, %v3725_v51  ;;  %v3973_v40 = vmul.f32 1.442695, %v3968_v5 }
 0x9ce   :  { %v3724_v55 = vpop.xlane.xlu1 %3723  ;;  %v3721_v15 = vpop.xlane.xlu0 %3720 }
 0x9cf   :  { %15229 = vpow2.f32 %v3728_v45  ;;  %v3727_v16 = vsub.f32 %v3715_v9, %v3724_v55  ;;  %v3726_v35 = vsub.f32 %v3714_v7, %v3721_v15 }
 0x9d0   :  { %15231 = vpow2.f32 %v3973_v40 }
 0x9d1   :  { %v15226_v25 = vpop.eup %15225  ;;  %v3732_v19 = vmul.f32 1.442695, %v3727_v16  ;;  %v3730_v10 = vmul.f32 1.442695, %v3726_v35 }
 0x9d2   :  { %v3975_v48 = vsel %vm3233_vm5, %v15226_v25, 0.0 }
 0x9d3   :  { %15233 = vpow2.f32 %v3732_v19  ;;  %3976 = vadd.xlane.f32.xlu0 %v3975_v48  ;;  %v19301_v19 = vpack.c.bf16 %v16316_v36, %v16318_v29  ;;  %v19302_v48 = vpack.c.bf16 %v16322_v58, %v16324_v52  ;;  %v19304_v58 = vpack.c.bf16 %v16328_v50, %v16330_v46  ;;  %v19307_v46 = vld [vmem:[#allocation12_spill] sm:$0xff] }
 0x9d4   :  { %15235 = vpow2.f32 %v3730_v10 }
 0x9d5   :  { %v15228_v37 = vpop.eup %15227 }
 0x9d6   :  { %v3978_v62 = vsel %vm3233_vm5, %v15228_v37, 0.0 }
 0x9d7   :  { %3979 = vadd.xlane.f32.xlu1 %v3978_v62 }
 0x9d9   :  { %v15230_v38 = vpop.eup %15229 }
 0x9da   :  { %v15232_v5 = vpop.eup %15231  ;;  %v3734_v43 = vsel %vm3233_vm5, %v15230_v38, 0.0 }
 0x9db   :  { %3735 = vadd.xlane.f32.xlu1 %v3734_v43  ;;  %v3981_v45 = vsel %vm3233_vm5, %v15232_v5, 0.0 }
 0x9dc   :  { %3982 = vadd.xlane.f32.xlu0 %v3981_v45  ;;  %v19313_v45 = vld [vmem:[#allocation26_spill] sm:$0xff] }
 0x9dd   :  { %v15234_v15 = vpop.eup %15233 }
 0x9de   :  { %v15236_v16 = vpop.eup %15235  ;;  %v3740_v55 = vsel %vm3233_vm5, %v15234_v15, 0.0 }
 0x9df   :  { %3741 = vadd.xlane.f32.xlu1 %v3740_v55  ;;  %v3737_v9 = vsel %vm3233_vm5, %v15236_v16, 0.0  ;;  %v19316_v55 = vld [vmem:[#allocation11_spill] sm:$0xff] }
 0x9e0   :  { %3738 = vadd.xlane.f32.xlu0 %v3737_v9  ;;  %v19317_v9 = vld [vmem:[#allocation16_spill] sm:$0xff] }
 0xa60   :  { %v3977_v7 = vpop.xlane.xlu0 %3976 }
 0xa61   :  { %15237 = vrcp.f32 %v3977_v7 }
 0xa64   :  { %v3980_v60 = vpop.xlane.xlu1 %3979 }
 0xa65   :  { %15239 = vrcp.f32 %v3980_v60  ;;  %v19321_v60 = vpack.c.bf16 %v16722_v26, %v16724_v28  ;;  %v19325_v26 = vpack.c.bf16 %v16737_v61, %v16739_v32  ;;  %v19326_v28 = vld [vmem:[#allocation45_spill] sm:$0xff]  ;;  %v19329_v61 = vld [vmem:[#allocation46_spill] sm:$0xff]  ;;  %v19330_v32 = vld [vmem:[#allocation47_spill] sm:$0xff] }
 0xa68   :  { %v3736_v4 = vpop.xlane.xlu1 %3735 }
 0xa69   :  { %15241 = vrcp.f32 %v3736_v4  ;;  %v3983_v59 = vpop.xlane.xlu0 %3982  ;;  %v19322_v4 = vld [vmem:[#allocation15_spill] sm:$0xff] }
 0xa6a   :  { %15243 = vrcp.f32 %v3983_v59 }
 0xa6b   :  { %v15238_v13 = vpop.eup %15237 }
 0xa6c   :  { %v3987_v63 = vmul.f32 %v15238_v13, %v15226_v25  ;;  %v3742_v51 = vpop.xlane.xlu1 %3741  ;;  %v19327_v13 = vpack.c.bf16 %v16689_v47, %v19326_v28 }
 0xa6d   :  { %v3739_v40 = vpop.xlane.xlu0 %3738 }
 0xa6e   :  { %15245 = vrcp.f32 %v3739_v40  ;;  %13217 = vmatmul.mubr.msk.f32.vlgmr.msra.gmra.mrb[128].mxu0 %vm3233_vm5, %v3987_v63  ;;  %v19331_v63 = vpack.c.bf16 %v19329_v61, %v19330_v32 }
 0xa6f   :  { %v15240_v35 = vpop.eup %15239  ;;  %14499 = vmatpush3.bf16.msra.mxu0 %v19301_v19  ;;  %13219 = vmatprep.mubr.msk.f32.mxu0 %vm15449_vm3, %v19275_v22  ;;  %15247 = vrcp.f32 %v3742_v51 }
 0xa70   :  { %14500 = vmatprep.subr.bf16.mxu0 %v19274_v3  ;;  %v3988_v10 = vmul.f32 %v15240_v35, %v15228_v37  ;;  %v19303_v37 = vpack.c.bf16 %v16292_v11, %v16294_v12  ;;  %v19305_v11 = vpack.c.bf16 %v16298_v18, %v16300_v30  ;;  %v19306_v12 = vpack.c.bf16 %v16334_v42, %v16336_v1  ;;  %v19309_v18 = vld [vmem:[#allocation24_spill] sm:$0xff]  ;;  %v19311_v42 = vld [vmem:[#allocation14_spill] sm:$0xff]  ;;  %v19312_v1 = vld [vmem:[#allocation25_spill] sm:$0xff] }
 0xa72   :  { %13220 = vmatmul.mubr.msk.f32.gmra.mrb[130].mxu0 %vm3233_vm5, %v3988_v10 }
 0xa73   :  { %v15242_v25 = vpop.eup %15241  ;;  %14502 = vmatpush3.bf16.msra.mxu0 %v19302_v48  ;;  %13222 = vmatprep.mubr.msk.f32.mxu0 %vm15449_vm3, %v19275_v22 }
 0xa74   :  { %v15244_v62 = vpop.eup %15243  ;;  %v3746_v36 = vmul.f32 %v15242_v25, %v15230_v38  ;;  %14503 = vmatprep.subr.bf16.mxu0 %v19274_v3 }
 0xa75   :  { %v3989_v29 = vmul.f32 %v15244_v62, %v15232_v5  ;;  %v19308_v5 = vld [vmem:[#allocation23_spill] sm:$0xff] }
 0xa76   :  { %13167 = vmatmul.mubr.msk.f32.vlgmr.msra.gmra.mrb[134].mxu1 %vm3233_vm5, %v3746_v36  ;;  %v19310_v30 = vpack.c.bf16 %v19308_v5, %v19309_v18 }
 0xa77   :  { %13223 = vmatmul.mubr.msk.f32.gmra.mrb[132].mxu0 %vm3233_vm5, %v3989_v29  ;;  %14471 = vmatpush3.bf16.msra.mxu1 %v19303_v37 }
 0xa78   :  { %v15246_v43 = vpop.eup %15245  ;;  %14505 = vmatpush3.bf16.msra.mxu0 %v19304_v58  ;;  %13169 = vmatprep.mubr.msk.f32.mxu1 %vm15449_vm3, %v19275_v22 }
 0xa79   :  { %14472 = vmatprep.subr.bf16.mxu1 %v19274_v3  ;;  %14506 = vmatprep.subr.bf16.mxu0 %v19274_v3  ;;  %v3747_v52 = vmul.f32 %v15246_v43, %v15236_v16  ;;  %v15248_v38 = vpop.eup %15247  ;;  %v19315_v16 = vpack.c.bf16 %v16712_v21, %v16714_v57  ;;  %v19318_v21 = vld [vmem:[#allocation13_spill] sm:$0xff]  ;;  %v19319_v57 = vld [vmem:[#allocation43_spill] sm:$0xff] }
 0xa7a   :  { %13291 = vmatprep.mubr.msk.f32.mxu0 %vm15449_vm3, %v19275_v22  ;;  %v3748_v50 = vmul.f32 %v15248_v38, %v15234_v15  ;;  %v19314_v15 = vpack.c.bf16 %v19312_v1, %v19313_v45  ;;  %v19320_v7 = vpack.c.bf16 %v16677_v27, %v19319_v57  ;;  %v19323_v27 = vld [vmem:[#allocation44_spill] sm:$0xff] }
 0xa7b   :  { %13170 = vmatmul.mubr.msk.f32.gmra.mrb[136].mxu1 %vm3233_vm5, %v3747_v52  ;;  %v19324_v59 = vpack.c.bf16 %v16683_v49, %v19323_v27  ;;  %v19328_v49 = vpack.c.bf16 %v16743_v17, %v16745_v33 }
 0xa7c   :  { %14474 = vmatpush3.bf16.msra.mxu1 %v19305_v11  ;;  %14508 = vmatpush3.bf16.msra.mxu0 %v19306_v12 }
 0xa7d   :  { %13172 = vmatprep.mubr.msk.f32.mxu1 %vm15449_vm3, %v19275_v22  ;;  %14475 = vmatprep.subr.bf16.mxu1 %v19274_v3 }
 0xa7e   :  { %14509 = vmatprep.subr.bf16.mxu0 %v19274_v3 }
 0xa7f   :  { %13292 = vmatmul.mubr.msk.f32.vlgmr.msra.gmra.mrb[134].mxu0 %vm785_vm1, %v19307_v46  ;;  %13173 = vmatmul.mubr.msk.f32.gmra.mrb[138].mxu1 %vm3233_vm5, %v3748_v50 }
 0xa80   :  { %14477 = vmatpush3.bf16.msra.mxu1 %v19310_v30  ;;  %13294 = vmatprep.mubr.msk.f32.mxu0 %vm15449_vm3, %v19275_v22 }
 0xa81   :  { %14478 = vmatprep.subr.bf16.mxu1 %v19274_v3  ;;  %13241 = vmatprep.mubr.msk.f32.mxu1 %vm15449_vm3, %v19275_v22 }
 0xa83   :  { %13295 = vmatmul.mubr.msk.f32.gmra.mrb[136].mxu0 %vm785_vm1, %v19311_v42 }
 0xa84   :  { %14480 = vmatpush3.bf16.msra.mxu1 %v19314_v15  ;;  %13297 = vmatprep.mubr.msk.f32.mxu0 %vm15449_vm3, %v19275_v22 }
 0xa85   :  { %14512 = vmatpush3.bf16.xpose.msk.msra.mxu0 %vm16550_vm6, %v19315_v16  ;;  %14481 = vmatprep.subr.bf16.mxu1 %v19274_v3 }
 0xa86   :  { %14513 = vmatprep.subr.bf16.mxu0 %v19274_v3 }
 0xa87   :  { %13242 = vmatmul.mubr.msk.f32.vlgmr.msra.gmra.mrb[140].mxu1 %vm785_vm1, %v19316_v55  ;;  %13298 = vmatmul.mubr.msk.f32.gmra.mrb[138].mxu0 %vm785_vm1, %v19317_v9 }
 0xa88   :  { %13244 = vmatprep.mubr.msk.f32.mxu1 %vm15449_vm3, %v19275_v22  ;;  %13316 = vmatprep.mubr.msk.f32.mxu0 %vm15449_vm3, %v19275_v22 }
 0xa8b   :  { %13245 = vmatmul.mubr.msk.f32.gmra.mrb[142].mxu1 %vm785_vm1, %v19318_v21 }
 0xa8c   :  { %13247 = vmatprep.mubr.msk.f32.mxu1 %vm15449_vm3, %v19275_v22 }
 0xa8d   :  { %14484 = vmatpush3.bf16.xpose.msk.msra.mxu1 %vm16550_vm6, %v19320_v7  ;;  %14516 = vmatpush3.bf16.xpose.msk.msra.mxu0 %vm16550_vm6, %v19321_v60 }
 0xa8e   :  { %14485 = vmatprep.subr.bf16.mxu1 %v19274_v3  ;;  %14517 = vmatprep.subr.bf16.mxu0 %v19274_v3 }
 0xa8f   :  { %13248 = vmatmul.mubr.msk.f32.gmra.mrb[144].mxu1 %vm785_vm1, %v19322_v4 }
 0xa90   :  { %13266 = vmatprep.mubr.msk.f32.mxu1 %vm15449_vm3, %v19275_v22 }
 0xa95   :  { %14488 = vmatpush3.bf16.xpose.msk.msra.mxu1 %vm16550_vm6, %v19324_v59  ;;  %14520 = vmatpush3.bf16.xpose.msk.msra.mxu0 %vm16550_vm6, %v19325_v26 }
 0xa96   :  { %14489 = vmatprep.subr.bf16.mxu1 %v19274_v3  ;;  %14521 = vmatprep.subr.bf16.mxu0 %v19274_v3 }
 0xa9d   :  { %14492 = vmatpush3.bf16.xpose.msk.msra.mxu1 %vm16550_vm6, %v19327_v13  ;;  %14524 = vmatpush3.bf16.xpose.msk.msra.mxu0 %vm16550_vm6, %v19328_v49 }
 0xa9e   :  { %14493 = vmatprep.subr.bf16.mxu1 %v19274_v3  ;;  %14553 = vmatprep.subr.bf16.mxu0 %v19274_v3 }
 0xaa5   :  { %14496 = vmatpush3.bf16.xpose.msk.msra.mxu1 %vm16550_vm6, %v19331_v63 }
 0xaa6   :  { %14525 = vmatprep.subr.bf16.mxu1 %v19274_v3 }
 0xb41   :  { %v17034_v47 = vpop.f32.mrb[128].mxu0 }
 0xb42   :  { %v13218_v51 = vpop.f32.mrb[129].mxu0 }
 0xb45   :  { %v17036_v40 = vpop.f32.mrb[130].mxu0 }
 0xb46   :  { %v13221_v33 = vpop.f32.mrb[131].mxu0 }
 0xb49   :  { %v17038_v17 = vpop.f32.mrb[134].mxu1 }
 0xb4a   :  { %v17040_v35 = vpop.f32.mrb[132].mxu0  ;;  %v13168_v19 = vpop.f32.mrb[135].mxu1 }
 0xb4b   :  { %v13224_v10 = vpop.f32.mrb[133].mxu0 }
 0xb4e   :  { %v17042_v25 = vpop.f32.mrb[136].mxu1 }
 0xb4f   :  { %v13171_v48 = vpop.f32.mrb[137].mxu1 }
 0xb52   :  { %v4419_v62 = vpop.f32.mrb[134].mxu0  ;;  %v17044_v36 = vpop.f32.mrb[138].mxu1 }
 0xb53   :  { %v4433_v29 = vmul.f32 0.125, %v4419_v62  ;;  %v13293_v37 = vpop.f32.mrb[135].mxu0  ;;  %v13174_v43 = vpop.f32.mrb[139].mxu1 }
 0xb55   :  { %v4436_v58 = vsel %vm1390_vm4, %v4433_v29, -1e+30 }
 0xb56   :  { %v4424_v52 = vpop.f32.mrb[136].mxu0  ;;  %v4439_v38 = vsel %vm3233_vm5, %v4436_v58, -inf }
 0xb57   :  { %v4434_v11 = vmul.f32 0.125, %v4424_v52  ;;  %4440 = vmax.xlane.f32.xlu0 %v4439_v38  ;;  %v13296_v12 = vpop.f32.mrb[137].mxu0 }
 0xb59   :  { %v4437_v50 = vsel %vm1390_vm4, %v4434_v11, -1e+30 }
 0xb5a   :  { %v4178_v46 = vpop.f32.mrb[140].mxu1  ;;  %v4429_v5 = vpop.f32.mrb[138].mxu0  ;;  %v4442_v18 = vsel %vm3233_vm5, %v4437_v50, -inf }
 0xb5b   :  { %v4192_v30 = vmul.f32 0.125, %v4178_v46  ;;  %v4435_v42 = vmul.f32 0.125, %v4429_v5  ;;  %v13243_v1 = vpop.f32.mrb[141].mxu1  ;;  %4443 = vmax.xlane.f32.xlu1 %v4442_v18  ;;  %v13299_v45 = vpop.f32.mrb[139].mxu0 }
 0xb5d   :  { %v4195_v15 = vsel %vm1390_vm4, %v4192_v30, -1e+30  ;;  %v4438_v16 = vsel %vm1390_vm4, %v4435_v42, -1e+30 }
 0xb5e   :  { %v4183_v55 = vpop.f32.mrb[142].mxu1  ;;  %v4198_v9 = vsel %vm3233_vm5, %v4195_v15, -inf  ;;  %v4445_v21 = vsel %vm3233_vm5, %v4438_v16, -inf }
 0xb5f   :  { %v4193_v57 = vmul.f32 0.125, %v4183_v55  ;;  %v13246_v7 = vpop.f32.mrb[143].mxu1  ;;  %4199 = vmax.xlane.f32.xlu1 %v4198_v9  ;;  %4446 = vmax.xlane.f32.xlu0 %v4445_v21 }
 0xb61   :  { %v4196_v60 = vsel %vm1390_vm4, %v4193_v57, -1e+30 }
 0xb62   :  { %v4188_v4 = vpop.f32.mrb[144].mxu1  ;;  %v4201_v27 = vsel %vm3233_vm5, %v4196_v60, -inf }
 0xb63   :  { %v4194_v59 = vmul.f32 0.125, %v4188_v4  ;;  %v13249_v26 = vpop.f32.mrb[145].mxu1  ;;  %4202 = vmax.xlane.f32.xlu0 %v4201_v27 }
 0xb65   :  { %v4197_v28 = vsel %vm1390_vm4, %v4194_v59, -1e+30 }
 0xb66   :  { %v4204_v13 = vsel %vm3233_vm5, %v4197_v28, -inf }
 0xb67   :  { %4205 = vmax.xlane.f32.xlu1 %v4204_v13  ;;  %v19333_v13 = vld [vmem:[#allocation36_spill] sm:$0xff] }
 0xbe4   :  { %v4441_v49 = vpop.xlane.xlu0 %4440 }
 0xbe5   :  { %v4448_v61 = vsub.f32 %v4436_v58, %v4441_v49 }
 0xbe7   :  { %v4451_v32 = vmul.f32 1.442695, %v4448_v61 }
 0xbe8   :  { %v4444_v63 = vpop.xlane.xlu1 %4443 }
 0xbe9   :  { %15249 = vpow2.f32 %v4451_v32  ;;  %v4449_v51 = vsub.f32 %v4437_v50, %v4444_v63 }
 0xbeb   :  { %v4453_v33 = vmul.f32 1.442695, %v4449_v51  ;;  %v19335_v51 = vld [vmem:[#allocation37_spill] sm:$0xff] }
 0xbec   :  { %v4200_v19 = vpop.xlane.xlu1 %4199  ;;  %v4447_v10 = vpop.xlane.xlu0 %4446 }
 0xbed   :  { %15251 = vpow2.f32 %v4453_v33  ;;  %v4207_v48 = vsub.f32 %v4195_v15, %v4200_v19  ;;  %v4450_v62 = vsub.f32 %v4438_v16, %v4447_v10  ;;  %v19336_v33 = vld [vmem:[#allocation38_spill] sm:$0xff] }
 0xbee   :  { %v19337_v19 = vpack.c.bf16 %v19335_v51, %v19336_v33 }
 0xbef   :  { %v4210_v29 = vmul.f32 1.442695, %v4207_v48  ;;  %v4455_v37 = vmul.f32 1.442695, %v4450_v62 }
 0xbf0   :  { %v4203_v43 = vpop.xlane.xlu0 %4202 }
 0xbf1   :  { %15253 = vpow2.f32 %v4210_v29  ;;  %v4208_v52 = vsub.f32 %v4196_v60, %v4203_v43  ;;  %v19338_v29 = vld [vmem:[#allocation27_spill] sm:$0xff] }
 0xbf2   :  { %15255 = vpow2.f32 %v4455_v37  ;;  %v19339_v37 = vld [vmem:[#allocation28_spill] sm:$0xff] }
 0xbf3   :  { %v15250_v38 = vpop.eup %15249  ;;  %v4212_v11 = vmul.f32 1.442695, %v4208_v52  ;;  %v19340_v43 = vpack.c.bf16 %v19338_v29, %v19339_v37 }
 0xbf4   :  { %v4206_v12 = vpop.xlane.xlu1 %4205  ;;  %v4457_v58 = vsel %vm3233_vm5, %v15250_v38, 0.0 }
 0xbf5   :  { %15257 = vpow2.f32 %v4212_v11  ;;  %v4209_v46 = vsub.f32 %v4197_v28, %v4206_v12  ;;  %4458 = vadd.xlane.f32.xlu0 %v4457_v58  ;;  %v19332_v28 = vld [vmem:[#allocation35_spill] sm:$0xff]  ;;  %v19342_v11 = vld [vmem:[#allocation40_spill] sm:$0xff] }
 0xbf6   :  { %v19334_v49 = vpack.c.bf16 %v19332_v28, %v19333_v13  ;;  %v19365_v13 = vpack.c.bf16 %v16849_v2, %v16851_v6  ;;  %v19368_v2 = vpack.c.bf16 %v16860_v8, %v16863_v23  ;;  %v19369_v6 = vpack.c.bf16 %v16773_v20, %v16775_v31  ;;  %v19372_v31 = vld [vmem:[#allocation53_spill] sm:$0xff] }
 0xbf7   :  { %v15252_v50 = vpop.eup %15251  ;;  %v4214_v5 = vmul.f32 1.442695, %v4209_v46 }
 0xbf8   :  { %v4460_v18 = vsel %vm3233_vm5, %v15252_v50, 0.0 }
 0xbf9   :  { %15259 = vpow2.f32 %v4214_v5  ;;  %4461 = vadd.xlane.f32.xlu1 %v4460_v18  ;;  %v19345_v5 = vld [vmem:[#allocation30_spill] sm:$0xff] }
 0xbfb   :  { %v15254_v30 = vpop.eup %15253 }
 0xbfc   :  { %v15256_v42 = vpop.eup %15255  ;;  %v4216_v1 = vsel %vm3233_vm5, %v15254_v30, 0.0 }
 0xbfd   :  { %4217 = vadd.xlane.f32.xlu1 %v4216_v1  ;;  %v4463_v45 = vsel %vm3233_vm5, %v15256_v42, 0.0 }
 0xbfe   :  { %4464 = vadd.xlane.f32.xlu0 %v4463_v45 }
 0xbff   :  { %v15258_v15 = vpop.eup %15257 }
 0xc00   :  { %v4219_v16 = vsel %vm3233_vm5, %v15258_v15, 0.0 }
 0xc02   :  { %4220 = vadd.xlane.f32.xlu0 %v4219_v16  ;;  %v19351_v16 = vld [vmem:[#allocation31_spill] sm:$0xff] }
 0xc03   :  { %v15260_v55 = vpop.eup %15259 }
 0xc04   :  { %v4222_v9 = vsel %vm3233_vm5, %v15260_v55, 0.0 }
 0xc05   :  { %4223 = vadd.xlane.f32.xlu1 %v4222_v9  ;;  %v19352_v9 = vld [vmem:[#allocation32_spill] sm:$0xff] }
 0xc82   :  { %v4459_v21 = vpop.xlane.xlu0 %4458 }
 0xc83   :  { %15261 = vrcp.f32 %v4459_v21  ;;  %v19353_v21 = vpack.c.bf16 %v19351_v16, %v19352_v9 }
 0xc86   :  { %v4462_v57 = vpop.xlane.xlu1 %4461 }
 0xc87   :  { %15263 = vrcp.f32 %v4462_v57  ;;  %v19355_v57 = vld [vmem:[#allocation33_spill] sm:$0xff] }
 0xc8a   :  { %v4218_v7 = vpop.xlane.xlu1 %4217 }
 0xc8b   :  { %15265 = vrcp.f32 %v4218_v7  ;;  %v4465_v60 = vpop.xlane.xlu0 %4464  ;;  %v19356_v7 = vld [vmem:[#allocation34_spill] sm:$0xff] }
 0xc8c   :  { %15267 = vrcp.f32 %v4465_v60  ;;  %v19357_v60 = vpack.c.bf16 %v19355_v57, %v19356_v7 }
 0xc8d   :  { %v15262_v4 = vpop.eup %15261 }
 0xc8e   :  { %v4469_v27 = vmul.f32 %v15262_v4, %v15250_v38  ;;  %v19341_v38 = vld [vmem:[#allocation39_spill] sm:$0xff]  ;;  %v19358_v4 = vpack.c.bf16 %v16794_v44, %v16797_v34  ;;  %v19362_v34 = vld [vmem:[#allocation48_spill] sm:$0xff] }
 0xc8f   :  { %v4221_v59 = vpop.xlane.xlu0 %4220  ;;  %v19343_v12 = vpack.c.bf16 %v19341_v38, %v19342_v11  ;;  %v19361_v44 = vld [vmem:[#allocation19_spill] sm:$0xff] }
 0xc90   :  { %15269 = vrcp.f32 %v4221_v59  ;;  %13317 = vmatmul.mubr.msk.f32.vlgmr.msra.gmra.mrb[140].mxu0 %vm3233_vm5, %v4469_v27  ;;  %v19359_v27 = vld [vmem:[#allocation17_spill] sm:$0xff]  ;;  %v19360_v59 = vld [vmem:[#allocation22_spill] sm:$0xff] }
 0xc91   :  { %v15264_v26 = vpop.eup %15263  ;;  %14555 = vmatpush3.bf16.msra.mxu0 %v19334_v49  ;;  %13319 = vmatprep.mubr.msk.f32.mxu0 %vm15449_vm3, %v19275_v22  ;;  %v19366_v49 = vld [vmem:[#allocation21_spill] sm:$0xff] }
 0xc92   :  { %v4224_v61 = vpop.xlane.xlu1 %4223  ;;  %14556 = vmatprep.subr.bf16.mxu0 %v19274_v3  ;;  %v4470_v32 = vmul.f32 %v15264_v26, %v15252_v50  ;;  %v19344_v50 = vld [vmem:[#allocation29_spill] sm:$0xff] }
 0xc93   :  { %15271 = vrcp.f32 %v4224_v61  ;;  %v19346_v18 = vpack.c.bf16 %v19344_v50, %v19345_v5  ;;  %v19363_v26 = vld [vmem:[#allocation49_spill] sm:$0xff]  ;;  %v19367_v61 = vpack.c.bf16 %v16761_v56, %v16763_v0  ;;  %v19370_v56 = vpack.c.bf16 %v16867_v53, %v16869_v14  ;;  %v19373_v53 = vld [vmem:[#allocation54_spill] sm:$0xff] }
 0xc94   :  { %13320 = vmatmul.mubr.msk.f32.gmra.mrb[142].mxu0 %vm3233_vm5, %v4470_v32  ;;  %v19364_v28 = vpack.c.bf16 %v19362_v34, %v19363_v26  ;;  %v19371_v0 = vpack.c.bf16 %v16780_v24, %v16783_v39  ;;  %v19374_v39 = vld [vmem:[#allocation55_spill] sm:$0xff] }
 0xc95   :  { %v15266_v63 = vpop.eup %15265  ;;  %14558 = vmatpush3.bf16.msra.mxu0 %v19337_v19  ;;  %13322 = vmatprep.mubr.msk.f32.mxu0 %vm15449_vm3, %v19275_v22 }
 0xc96   :  { %v15268_v10 = vpop.eup %15267  ;;  %v4228_v48 = vmul.f32 %v15266_v63, %v15254_v30  ;;  %14559 = vmatprep.subr.bf16.mxu0 %v19274_v3  ;;  %v19347_v30 = vld [vmem:[#allocation41_spill] sm:$0xff] }
 0xc97   :  { %v4471_v62 = vmul.f32 %v15268_v10, %v15256_v42  ;;  %v19348_v42 = vld [vmem:[#allocation42_spill] sm:$0xff] }
 0xc98   :  { %13267 = vmatmul.mubr.msk.f32.vlgmr.msra.gmra.mrb[146].mxu1 %vm3233_vm5, %v4228_v48  ;;  %v19349_v1 = vpack.c.bf16 %v19347_v30, %v19348_v42 }
 0xc99   :  { %13323 = vmatmul.mubr.msk.f32.gmra.mrb[144].mxu0 %vm3233_vm5, %v4471_v62  ;;  %14527 = vmatpush3.bf16.msra.mxu1 %v19340_v43 }
 0xc9a   :  { %v15270_v52 = vpop.eup %15269  ;;  %14561 = vmatpush3.bf16.msra.mxu0 %v19343_v12  ;;  %13269 = vmatprep.mubr.msk.f32.mxu1 %vm15449_vm3, %v19275_v22 }
 0xc9b   :  { %14528 = vmatprep.subr.bf16.mxu1 %v19274_v3  ;;  %14562 = vmatprep.subr.bf16.mxu0 %v19274_v3  ;;  %v4229_v58 = vmul.f32 %v15270_v52, %v15258_v15  ;;  %v19350_v15 = vld [vmem:[#allocation18_spill] sm:$0xff] }
 0xc9c   :  { %13391 = vmatprep.mubr.msk.f32.mxu0 %vm15449_vm3, %v19275_v22 }
 0xc9d   :  { %v15272_v46 = vpop.eup %15271  ;;  %13270 = vmatmul.mubr.msk.f32.gmra.mrb[148].mxu1 %vm3233_vm5, %v4229_v58 }
 0xc9e   :  { %14530 = vmatpush3.bf16.msra.mxu1 %v19346_v18  ;;  %14564 = vmatpush3.bf16.msra.mxu0 %v19349_v1  ;;  %v4230_v45 = vmul.f32 %v15272_v46, %v15260_v55  ;;  %v19354_v55 = vld [vmem:[#allocation20_spill] sm:$0xff] }
 0xc9f   :  { %13272 = vmatprep.mubr.msk.f32.mxu1 %vm15449_vm3, %v19275_v22  ;;  %14531 = vmatprep.subr.bf16.mxu1 %v19274_v3 }
 0xca0   :  { %14565 = vmatprep.subr.bf16.mxu0 %v19274_v3 }
 0xca1   :  { %13392 = vmatmul.mubr.msk.f32.vlgmr.msra.gmra.mrb[146].mxu0 %vm785_vm1, %v19350_v15  ;;  %13273 = vmatmul.mubr.msk.f32.gmra.mrb[150].mxu1 %vm3233_vm5, %v4230_v45 }
 0xca2   :  { %14533 = vmatpush3.bf16.msra.mxu1 %v19353_v21  ;;  %13394 = vmatprep.mubr.msk.f32.mxu0 %vm15449_vm3, %v19275_v22 }
 0xca3   :  { %14534 = vmatprep.subr.bf16.mxu1 %v19274_v3  ;;  %13341 = vmatprep.mubr.msk.f32.mxu1 %vm15449_vm3, %v19275_v22 }
 0xca5   :  { %13395 = vmatmul.mubr.msk.f32.gmra.mrb[148].mxu0 %vm785_vm1, %v19354_v55 }
 0xca6   :  { %14536 = vmatpush3.bf16.msra.mxu1 %v19357_v60  ;;  %13397 = vmatprep.mubr.msk.f32.mxu0 %vm15449_vm3, %v19275_v22 }
 0xca7   :  { %14568 = vmatpush3.bf16.xpose.msk.msra.mxu0 %vm16550_vm6, %v19358_v4  ;;  %14537 = vmatprep.subr.bf16.mxu1 %v19274_v3 }
 0xca8   :  { %14569 = vmatprep.subr.bf16.mxu0 %v19274_v3 }
 0xca9   :  { %13342 = vmatmul.mubr.msk.f32.vlgmr.msra.gmra.mrb[152].mxu1 %vm785_vm1, %v19359_v27  ;;  %13398 = vmatmul.mubr.msk.f32.gmra.mrb[150].mxu0 %vm785_vm1, %v19360_v59 }
 0xcaa   :  { %13344 = vmatprep.mubr.msk.f32.mxu1 %vm15449_vm3, %v19275_v22  ;;  %13416 = vmatprep.mubr.msk.f32.mxu0 %vm15449_vm3, %v19275_v22 }
 0xcad   :  { %13345 = vmatmul.mubr.msk.f32.gmra.mrb[154].mxu1 %vm785_vm1, %v19361_v44 }
 0xcae   :  { %13347 = vmatprep.mubr.msk.f32.mxu1 %vm15449_vm3, %v19275_v22 }
 0xcaf   :  { %14540 = vmatpush3.bf16.xpose.msk.msra.mxu1 %vm16550_vm6, %v19364_v28  ;;  %14572 = vmatpush3.bf16.xpose.msk.msra.mxu0 %vm16550_vm6, %v19365_v13 }
 0xcb0   :  { %14541 = vmatprep.subr.bf16.mxu1 %v19274_v3  ;;  %14573 = vmatprep.subr.bf16.mxu0 %v19274_v3 }
 0xcb1   :  { %13348 = vmatmul.mubr.msk.f32.gmra.mrb[156].mxu1 %vm785_vm1, %v19366_v49 }
 0xcb2   :  { %13366 = vmatprep.mubr.msk.f32.mxu1 %vm15449_vm3, %v19275_v22 }
 0xcb7   :  { %14544 = vmatpush3.bf16.xpose.msk.msra.mxu1 %vm16550_vm6, %v19367_v61  ;;  %14576 = vmatpush3.bf16.xpose.msk.msra.mxu0 %vm16550_vm6, %v19368_v2 }
 0xcb8   :  { %14545 = vmatprep.subr.bf16.mxu1 %v19274_v3  ;;  %14577 = vmatprep.subr.bf16.mxu0 %v19274_v3 }
 0xcbf   :  { %14548 = vmatpush3.bf16.xpose.msk.msra.mxu1 %vm16550_vm6, %v19369_v6  ;;  %14580 = vmatpush3.bf16.xpose.msk.msra.mxu0 %vm16550_vm6, %v19370_v56 }
 0xcc0   :  { %14549 = vmatprep.subr.bf16.mxu1 %v19274_v3 }
 0xcc7   :  { %14552 = vmatpush3.bf16.xpose.msk.msra.mxu1 %vm16550_vm6, %v19371_v0 }
 0xd63   :  { %v17190_v8 = vpop.f32.mrb[140].mxu0 }
 0xd64   :  { %v15140_v20 = vpack.i.bf16 %v17190_v8, %v19372_v31  ;;  %v13318_v23 = vpop.f32.mrb[141].mxu0 }
 0xd67   :  { %v17194_v32 = vpop.f32.mrb[142].mxu0 }
 0xd68   :  { %v15145_v14 = vpack.i.bf16 %v17194_v32, %v19373_v53  ;;  %v13321_v63 = vpop.f32.mrb[143].mxu0 }
 0xd6b   :  { %v17198_v51 = vpop.f32.mrb[146].mxu1 }
 0xd6c   :  { %v17200_v33 = vpop.f32.mrb[144].mxu0  ;;  %v13268_v24 = vpop.f32.mrb[147].mxu1 }
 0xd6d   :  { %v15160_v19 = vpack.i.bf16 %v17200_v33, %v19374_v39  ;;  %v13324_v10 = vpop.f32.mrb[145].mxu0  ;;  %v19375_v39 = vld [vmem:[#allocation50_spill] sm:$0xff] }
 0xd70   :  { %v17204_v48 = vpop.f32.mrb[148].mxu1 }
 0xd71   :  { %v13271_v62 = vpop.f32.mrb[149].mxu1 }
 0xd74   :  { %v4901_v29 = vpop.f32.mrb[146].mxu0  ;;  %v17206_v37 = vpop.f32.mrb[150].mxu1 }
 0xd75   :  { %v4915_v43 = vmul.f32 0.125, %v4901_v29  ;;  %v13393_v52 = vpop.f32.mrb[147].mxu0  ;;  %v13274_v38 = vpop.f32.mrb[151].mxu1 }
 0xd77   :  { %v4918_v11 = vsel %vm1390_vm4, %v4915_v43, -1e+30 }
 0xd78   :  { %v4906_v12 = vpop.f32.mrb[148].mxu0  ;;  %v4921_v58 = vsel %vm3233_vm5, %v4918_v11, -inf }
 0xd79   :  { %v4916_v46 = vmul.f32 0.125, %v4906_v12  ;;  %4922 = vmax.xlane.f32.xlu0 %v4921_v58  ;;  %v13396_v50 = vpop.f32.mrb[149].mxu0 }
 0xd7b   :  { %v4919_v5 = vsel %vm1390_vm4, %v4916_v46, -1e+30 }
 0xd7c   :  { %v4660_v18 = vpop.f32.mrb[152].mxu1  ;;  %v4911_v30 = vpop.f32.mrb[150].mxu0  ;;  %v4924_v42 = vsel %vm3233_vm5, %v4919_v5, -inf }
 0xd7d   :  { %v4674_v1 = vmul.f32 0.125, %v4660_v18  ;;  %v4917_v45 = vmul.f32 0.125, %v4911_v30  ;;  %v13343_v15 = vpop.f32.mrb[153].mxu1  ;;  %4925 = vmax.xlane.f32.xlu1 %v4924_v42  ;;  %v13399_v16 = vpop.f32.mrb[151].mxu0 }
 0xd7f   :  { %v4677_v9 = vsel %vm1390_vm4, %v4674_v1, -1e+30  ;;  %v4920_v21 = vsel %vm1390_vm4, %v4917_v45, -1e+30 }
 0xd80   :  { %v4665_v55 = vpop.f32.mrb[154].mxu1  ;;  %v4680_v57 = vsel %vm3233_vm5, %v4677_v9, -inf  ;;  %v4927_v7 = vsel %vm3233_vm5, %v4920_v21, -inf }
 0xd81   :  { %v4675_v60 = vmul.f32 0.125, %v4665_v55  ;;  %v13346_v4 = vpop.f32.mrb[155].mxu1  ;;  %4681 = vmax.xlane.f32.xlu1 %v4680_v57  ;;  %4928 = vmax.xlane.f32.xlu0 %v4927_v7 }
 0xd83   :  { %v4678_v27 = vsel %vm1390_vm4, %v4675_v60, -1e+30 }
 0xd84   :  { %v4670_v59 = vpop.f32.mrb[156].mxu1  ;;  %v4683_v44 = vsel %vm3233_vm5, %v4678_v27, -inf }
 0xd85   :  { %v4676_v34 = vmul.f32 0.125, %v4670_v59  ;;  %v13349_v26 = vpop.f32.mrb[157].mxu1  ;;  %4684 = vmax.xlane.f32.xlu0 %v4683_v44 }
 0xd87   :  { %v4679_v28 = vsel %vm1390_vm4, %v4676_v34, -1e+30 }
 0xd88   :  { %v4686_v13 = vsel %vm3233_vm5, %v4679_v28, -inf }
 0xd89   :  { %4687 = vmax.xlane.f32.xlu1 %v4686_v13 }
 0xe06   :  { %v4923_v49 = vpop.xlane.xlu0 %4922 }
 0xe07   :  { %v4930_v61 = vsub.f32 %v4918_v11, %v4923_v49 }
 0xe09   :  { %v4933_v2 = vmul.f32 1.442695, %v4930_v61 }
 0xe0a   :  { %v4926_v6 = vpop.xlane.xlu1 %4925 }
 0xe0b   :  { %15273 = vpow2.f32 %v4933_v2  ;;  %v4931_v56 = vsub.f32 %v4919_v5, %v4926_v6  ;;  %v5143_v6 = vld [vmem:[%s17254_s8 + $0x80] sm:$0xff] }
 0xe0d   :  { %v4935_v0 = vmul.f32 1.442695, %v4931_v56  ;;  %v5144_v56 = vld [vmem:[%s17254_s8 + $0x88] sm:$0xff] }
 0xe0e   :  { %v4682_v23 = vpop.xlane.xlu1 %4681  ;;  %v4929_v63 = vpop.xlane.xlu0 %4928 }
 0xe0f   :  { %15275 = vpow2.f32 %v4935_v0  ;;  %v4689_v24 = vsub.f32 %v4677_v9, %v4682_v23  ;;  %v4932_v10 = vsub.f32 %v4920_v21, %v4929_v63  ;;  %v5175_v0 = vld [vmem:[%s17254_s8 + $0x180] sm:$0xff]  ;;  %v14581_v23 = vpack.c.bf16 %v5144_v56, %v5143_v6  ;;  %v5176_v63 = vld [vmem:[%s17254_s8 + $0x188] sm:$0xff]  ;;  %v5166_v6 = vld [vmem:[%s17254_s8 + $0x138] sm:$0xff] }
 0xe10   :  { %v5151_v56 = vld [vmem:[%s17254_s8 + $0xc0] sm:$0xff] }
 0xe11   :  { %v4692_v62 = vmul.f32 1.442695, %v4689_v24  ;;  %v4937_v29 = vmul.f32 1.442695, %v4932_v10  ;;  %v5127_v24 = vld [vmem:[%s17254_s8] sm:$0xff]  ;;  %v5128_v10 = vld [vmem:[%s17254_s8 + $0x8] sm:$0xff]  ;;  %14582 = vmatprep.subr.bf16.mxu1 %v14581_v23 }
 0xe12   :  { %v4685_v43 = vpop.xlane.xlu0 %4684  ;;  %v5183_v23 = vld [vmem:[%s17254_s8 + $0x1c0] sm:$0xff] }
 0xe13   :  { %15277 = vpow2.f32 %v4692_v62  ;;  %v4690_v52 = vsub.f32 %v4678_v27, %v4685_v43  ;;  %v14613_v62 = vpack.c.bf16 %v5176_v63, %v5175_v0  ;;  %v5159_v43 = vld [vmem:[%s17254_s8 + $0x100] sm:$0xff]  ;;  %v5152_v0 = vld [vmem:[%s17254_s8 + $0xc8] sm:$0xff] }
 0xe14   :  { %15279 = vpow2.f32 %v4937_v29  ;;  %v14583_v29 = vpack.c.bf16 %v5128_v10, %v5127_v24  ;;  %v5184_v63 = vld [vmem:[%s17254_s8 + $0x1c8] sm:$0xff] }
 0xe15   :  { %v15274_v38 = vpop.eup %15273  ;;  %v4694_v12 = vmul.f32 1.442695, %v4690_v52  ;;  %v5160_v52 = vld [vmem:[%s17254_s8 + $0x108] sm:$0xff]  ;;  %14614 = vmatprep.subr.bf16.mxu0 %v14613_v62  ;;  %v14597_v62 = vpack.c.bf16 %v5152_v0, %v5151_v56 }
 0xe16   :  { %v4688_v58 = vpop.xlane.xlu1 %4687  ;;  %v4939_v11 = vsel %vm3233_vm5, %v15274_v38, 0.0 }
 0xe17   :  { %15281 = vpow2.f32 %v4694_v12  ;;  %v4691_v46 = vsub.f32 %v4679_v28, %v4688_v58  ;;  %4940 = vadd.xlane.f32.xlu0 %v4939_v11  ;;  %v14615_v12 = vpack.c.bf16 %v5160_v52, %v5159_v43  ;;  %v5146_v58 = vld [vmem:[%s17254_s8 + $0x98] sm:$0xff]  ;;  %v5177_v11 = vld [vmem:[%s17254_s8 + $0x190] sm:$0xff]  ;;  %v5136_v43 = vld [vmem:[%s17254_s8 + $0x48] sm:$0xff] }
 0xe18   :  { %v5167_v52 = vld [vmem:[%s17254_s8 + $0x140] sm:$0xff] }
 0xe19   :  { %v15276_v50 = vpop.eup %15275  ;;  %v4696_v5 = vmul.f32 1.442695, %v4691_v46  ;;  %v5178_v46 = vld [vmem:[%s17254_s8 + $0x198] sm:$0xff] }
 0xe1a   :  { %v4942_v18 = vsel %vm3233_vm5, %v15276_v50, 0.0 }
 0xe1b   :  { %15283 = vpow2.f32 %v4696_v5  ;;  %4943 = vadd.xlane.f32.xlu1 %v4942_v18  ;;  %v14617_v5 = vpack.c.bf16 %v5178_v46, %v5177_v11  ;;  %v5129_v18 = vld [vmem:[%s17254_s8 + $0x10] sm:$0xff]  ;;  %v5154_v11 = vld [vmem:[%s17254_s8 + $0xd8] sm:$0xff] }
 0xe1c   :  { %v5185_v46 = vld [vmem:[%s17254_s8 + $0x1d0] sm:$0xff] }
 0xe1d   :  { %v15278_v30 = vpop.eup %15277 }
 0xe1e   :  { %v15280_v42 = vpop.eup %15279  ;;  %v4698_v1 = vsel %vm3233_vm5, %v15278_v30, 0.0 }
 0xe1f   :  { %4699 = vadd.xlane.f32.xlu1 %v4698_v1  ;;  %v4945_v45 = vsel %vm3233_vm5, %v15280_v42, 0.0 }
 0xe20   :  { %4946 = vadd.xlane.f32.xlu0 %v4945_v45  ;;  %v5162_v45 = vld [vmem:[%s17254_s8 + $0x118] sm:$0xff] }
 0xe21   :  { %v15282_v15 = vpop.eup %15281 }
 0xe22   :  { %v4701_v16 = vsel %vm3233_vm5, %v15282_v15, 0.0 }
 0xe24   :  { %4702 = vadd.xlane.f32.xlu0 %v4701_v16  ;;  %v5148_v16 = vld [vmem:[%s17254_s8 + $0xa8] sm:$0xff] }
 0xe25   :  { %v15284_v9 = vpop.eup %15283 }
 0xe26   :  { %v4704_v21 = vsel %vm3233_vm5, %v15284_v9, 0.0 }
 0xe27   :  { %4705 = vadd.xlane.f32.xlu1 %v4704_v21 }
 0xe38   :  { %15141 = vrot.lane.b32.xlu1 %v15140_v20, %s15451_s3 }
 0xea4   :  { %v4941_v55 = vpop.xlane.xlu0 %4940 }
 0xea5   :  { %15285 = vrcp.f32 %v4941_v55  ;;  %v5179_v55 = vld [vmem:[%s17254_s8 + $0x1a0] sm:$0xff] }
 0xea8   :  { %v4944_v57 = vpop.xlane.xlu1 %4943 }
 0xea9   :  { %15287 = vrcp.f32 %v4944_v57  ;;  %v5180_v57 = vld [vmem:[%s17254_s8 + $0x1a8] sm:$0xff] }
 0xeac   :  { %v4700_v7 = vpop.xlane.xlu1 %4699 }
 0xead   :  { %15289 = vrcp.f32 %v4700_v7  ;;  %v4947_v60 = vpop.xlane.xlu0 %4946  ;;  %v5131_v7 = vld [vmem:[%s17254_s8 + $0x20] sm:$0xff] }
 0xeae   :  { %15291 = vrcp.f32 %v4947_v60  ;;  %v14621_v60 = vpack.c.bf16 %v5180_v57, %v5179_v55  ;;  %v5187_v55 = vld [vmem:[%s17254_s8 + $0x1e0] sm:$0xff]  ;;  %v5188_v57 = vld [vmem:[%s17254_s8 + $0x1e8] sm:$0xff] }
 0xeaf   :  { %v15286_v4 = vpop.eup %15285 }
 0xeb0   :  { %v4951_v27 = vmul.f32 %v15286_v4, %v15274_v38  ;;  %v5145_v38 = vld [vmem:[%s17254_s8 + $0x90] sm:$0xff]  ;;  %v5132_v4 = vld [vmem:[%s17254_s8 + $0x28] sm:$0xff] }
 0xeb1   :  { %v4703_v59 = vpop.xlane.xlu0 %4702 }
 0xeb2   :  { %15293 = vrcp.f32 %v4703_v59  ;;  %13417 = vmatmul.mubr.msk.f32.vlgmr.msra.gmra.mrb[152].mxu0 %vm3233_vm5, %v4951_v27  ;;  %v5163_v27 = vld [vmem:[%s17254_s8 + $0x120] sm:$0xff]  ;;  %v5164_v59 = vld [vmem:[%s17254_s8 + $0x128] sm:$0xff] }
 0xeb3   :  { %v15288_v44 = vpop.eup %15287  ;;  %13419 = vmatprep.mubr.msk.f32.mxu0 %vm15449_vm3, %v19275_v22  ;;  %14616 = vmatpush3.bf16.msra.mxu0 %v14615_v12  ;;  %v5168_v12 = vld [vmem:[%s17254_s8 + $0x148] sm:$0xff] }
 0xeb4   :  { %v4706_v8 = vpop.xlane.xlu1 %4705  ;;  %v4952_v31 = vmul.f32 %v15288_v44, %v15276_v50  ;;  %v14585_v50 = vpack.c.bf16 %v5146_v58, %v5145_v38  ;;  %14618 = vmatprep.subr.bf16.mxu0 %v14617_v5  ;;  %v14591_v44 = vpack.c.bf16 %v5132_v4, %v5131_v7  ;;  %v14629_v38 = vpack.c.bf16 %v5184_v63, %v5183_v23  ;;  %v5153_v58 = vld [vmem:[%s17254_s8 + $0xd0] sm:$0xff]  ;;  %v5174_v63 = vld [vmem:[%s17254_s8 + $0x178] sm:$0xff] }
 0xeb5   :  { %15295 = vrcp.f32 %v4706_v8  ;;  %v5149_v8 = vld [vmem:[%s17254_s8 + $0xb0] sm:$0xff] }
 0xeb6   :  { %13420 = vmatmul.mubr.msk.f32.gmra.mrb[154].mxu0 %vm3233_vm5, %v4952_v31  ;;  %v5150_v31 = vld [vmem:[%s17254_s8 + $0xb8] sm:$0xff]  ;;  %v5173_v23 = vld [vmem:[%s17254_s8 + $0x170] sm:$0xff] }
 0xeb7   :  { %v15290_v20 = vpop.eup %15289  ;;  %13422 = vmatprep.mubr.msk.f32.mxu0 %vm15449_vm3, %v19275_v22 }
 0xeb8   :  { %v15292_v34 = vpop.eup %15291  ;;  %v4710_v26 = vmul.f32 %v15290_v20, %v15278_v30  ;;  %v5130_v30 = vld [vmem:[%s17254_s8 + $0x18] sm:$0xff]  ;;  %v5181_v20 = vld [vmem:[%s17254_s8 + $0x1b0] sm:$0xff]  ;;  %v15142_v53 = vpop.permute.xlu1 %15141 }
 0xeb9   :  { %v4953_v28 = vmul.f32 %v15292_v34, %v15280_v42  ;;  %v5161_v42 = vld [vmem:[%s17254_s8 + $0x110] sm:$0xff]  ;;  %v14587_v1 = vpack.c.bf16 %v5130_v30, %v5129_v18  ;;  %v14623_v34 = vpack.c.bf16 %v5164_v59, %v5163_v27  ;;  %v14631_v18 = vpack.c.bf16 %v5168_v12, %v5167_v52  ;;  %v5139_v27 = vld [vmem:[%s17254_s8 + $0x60] sm:$0xff]  ;;  %v5140_v59 = vld [vmem:[%s17254_s8 + $0x68] sm:$0xff] }
 0xeba   :  { %13367 = vmatmul.mubr.msk.f32.vlgmr.msra.gmra.mrb[158].mxu1 %vm3233_vm5, %v4710_v26  ;;  %v14593_v26 = vpack.c.bf16 %v5150_v31, %v5149_v8  ;;  %v14601_v30 = vpack.c.bf16 %v5154_v11, %v5153_v58  ;;  %v5171_v8 = vld [vmem:[%s17254_s8 + $0x160] sm:$0xff]  ;;  %v5172_v31 = vld [vmem:[%s17254_s8 + $0x168] sm:$0xff] }
 0xebb   :  { %13423 = vmatmul.mubr.msk.f32.gmra.mrb[156].mxu0 %vm3233_vm5, %v4953_v28  ;;  %13369 = vmatprep.mubr.msk.f32.mxu1 %vm15449_vm3, %v19275_v22  ;;  %v5182_v28 = vld [vmem:[%s17254_s8 + $0x1b8] sm:$0xff] }
 0xebc   :  { %v15294_v13 = vpop.eup %15293  ;;  %14584 = vmatpush3.bf16.msra.mxu1 %v14583_v29  ;;  %v5135_v29 = vld [vmem:[%s17254_s8 + $0x40] sm:$0xff] }
 0xebd   :  { %v4711_v49 = vmul.f32 %v15294_v13, %v15282_v15  ;;  %v5147_v15 = vld [vmem:[%s17254_s8 + $0xa0] sm:$0xff]  ;;  %14586 = vmatprep.subr.bf16.mxu1 %v14585_v50  ;;  %v5133_v13 = vld [vmem:[%s17254_s8 + $0x30] sm:$0xff]  ;;  %v5186_v50 = vld [vmem:[%s17254_s8 + $0x1d8] sm:$0xff]  ;;  %v14599_v5 = vpack.c.bf16 %v5136_v43, %v5135_v29 }
 0xebe   :  { %v14589_v21 = vpack.c.bf16 %v5148_v16, %v5147_v15  ;;  %v14633_v15 = vpack.c.bf16 %v5186_v50, %v5185_v46  ;;  %v5170_v16 = vld [vmem:[%s17254_s8 + $0x158] sm:$0xff] }
 0xebf   :  { %v15296_v61 = vpop.eup %15295  ;;  %13370 = vmatmul.mubr.msk.f32.gmra.mrb[160].mxu1 %vm3233_vm5, %v4711_v49  ;;  %v5134_v49 = vld [vmem:[%s17254_s8 + $0x38] sm:$0xff] }
 0xec0   :  { %13372 = vmatprep.mubr.msk.f32.mxu1 %vm15449_vm3, %v19275_v22  ;;  %v4712_v2 = vmul.f32 %v15296_v61, %v15284_v9  ;;  %v14619_v9 = vpack.c.bf16 %v5162_v45, %v5161_v42  ;;  %14588 = vmatpush3.bf16.msra.mxu1 %v14587_v1  ;;  %v14625_v61 = vpack.c.bf16 %v5182_v28, %v5181_v20  ;;  %v5137_v42 = vld [vmem:[%s17254_s8 + $0x50] sm:$0xff]  ;;  %v5138_v1 = vld [vmem:[%s17254_s8 + $0x58] sm:$0xff] }
 0xec1   :  { %14590 = vmatprep.subr.bf16.mxu1 %v14589_v21  ;;  %v14595_v24 = vpack.c.bf16 %v5134_v49, %v5133_v13  ;;  %v5169_v45 = vld [vmem:[%s17254_s8 + $0x150] sm:$0xff]  ;;  %v5156_v21 = vld [vmem:[%s17254_s8 + $0xe8] sm:$0xff]  ;;  %v14603_v7 = vpack.c.bf16 %v5138_v1, %v5137_v42  ;;  %v14607_v20 = vpack.c.bf16 %v5140_v59, %v5139_v27  ;;  %v5158_v28 = vld [vmem:[%s17254_s8 + $0xf8] sm:$0xff] }
 0xec2   :  { %14620 = vmatpush3.bf16.msra.mxu0 %v14619_v9  ;;  %v5155_v9 = vld [vmem:[%s17254_s8 + $0xe0] sm:$0xff]  ;;  %v5189_v13 = vld [vmem:[%s17254_s8 + $0x1f0] sm:$0xff] }
 0xec3   :  { %13373 = vmatmul.mubr.msk.f32.gmra.mrb[162].mxu1 %vm3233_vm5, %v4712_v2  ;;  %14622 = vmatprep.subr.bf16.mxu0 %v14621_v60  ;;  %v5165_v2 = vld [vmem:[%s17254_s8 + $0x130] sm:$0xff]  ;;  %v14635_v60 = vpack.c.bf16 %v5170_v16, %v5169_v45  ;;  %v14605_v4 = vpack.c.bf16 %v5156_v21, %v5155_v9 }
 0xec4   :  { %14592 = vmatpush3.bf16.msra.mxu1 %v14591_v44  ;;  %v14627_v10 = vpack.c.bf16 %v5166_v6, %v5165_v2  ;;  %v14637_v44 = vpack.c.bf16 %v5188_v57, %v5187_v55  ;;  %v5141_v2 = vld [vmem:[%s17254_s8 + $0x70] sm:$0xff]  ;;  %v5142_v6 = vld [vmem:[%s17254_s8 + $0x78] sm:$0xff] }
 0xec5   :  { %14594 = vmatprep.subr.bf16.mxu1 %v14593_v26  ;;  %v5157_v26 = vld [vmem:[%s17254_s8 + $0xf0] sm:$0xff]  ;;  %v14611_v0 = vpack.c.bf16 %v5142_v6, %v5141_v2 }
 0xec6   :  { %14624 = vmatpush3.bf16.msra.mxu0 %v14623_v34  ;;  %v14639_v34 = vpack.c.bf16 %v5172_v31, %v5171_v8  ;;  %v14609_v49 = vpack.c.bf16 %v5158_v28, %v5157_v26 }
 0xec7   :  { %14626 = vmatprep.subr.bf16.mxu0 %v14625_v61  ;;  %v5190_v61 = vld [vmem:[%s17254_s8 + $0x1f8] sm:$0xff] }
 0xec8   :  { %14596 = vmatpush3.bf16.msra.mxu1 %v14595_v24  ;;  %v14641_v56 = vpack.c.bf16 %v5190_v61, %v5189_v13  ;;  %v14643_v24 = vpack.c.bf16 %v5174_v63, %v5173_v23 }
 0xec9   :  { %14598 = vmatprep.subr.bf16.mxu1 %v14597_v62 }
 0xeca   :  { %14628 = vmatpush3.bf16.msra.mxu0 %v14627_v10 }
 0xecb   :  { %14630 = vmatprep.subr.bf16.mxu0 %v14629_v38 }
 0xecc   :  { %14600 = vmatpush3.bf16.msra.mxu1 %v14599_v5 }
 0xecd   :  { %14602 = vmatprep.subr.bf16.mxu1 %v14601_v30 }
 0xece   :  { %14632 = vmatpush3.bf16.msra.mxu0 %v14631_v18  ;;  %v15143_v18 = vunpack.i.l.bf16 %v15142_v53 }
 0xecf   :  { %14634 = vmatprep.subr.bf16.mxu0 %v14633_v15 }
 0xed0   :  { %14604 = vmatpush3.bf16.msra.mxu1 %v14603_v7 }
 0xed1   :  { %14606 = vmatprep.subr.bf16.mxu1 %v14605_v4 }
 0xed2   :  { %14636 = vmatpush3.bf16.msra.mxu0 %v14635_v60  ;;  %v19376_v60 = vld [vmem:[#allocation51_spill] sm:$0xff] }
 0xed3   :  { %14638 = vmatprep.subr.bf16.mxu0 %v14637_v44 }
 0xed4   :  { %14608 = vmatpush3.bf16.msra.mxu1 %v14607_v20 }
 0xed5   :  { %14610 = vmatprep.subr.bf16.mxu1 %v14609_v49 }
 0xed6   :  { %14640 = vmatpush3.bf16.msra.mxu0 %v14639_v34  ;;  %v19377_v34 = vld [vmem:[#allocation52_spill] sm:$0xff] }
 0xed7   :  { %14642 = vmatprep.subr.bf16.mxu0 %v14641_v56 }
 0xed8   :  { %14612 = vmatpush3.bf16.msra.mxu1 %v14611_v0 }
 0xed9   :  { %14645 = vmatprep.subr.bf16.mxu1 %v19274_v3 }
 0xeda   :  { %14644 = vmatpush3.bf16.msra.mxu0 %v14643_v24  ;;  %v11516_v24 = vld [vmem:[%s11112_s12] ss:$0 sm:$0xff] }
 0xf85   :  { %v5053_v10 = vpop.f32.mrb[152].mxu0 }
 0xf86   :  { %v15135_v62 = vpack.i.bf16 %v5053_v10, %v17034_v47  ;;  %v13418_v29 = vpop.f32.mrb[153].mxu0  ;;  %v19378_v10 = vld [vmem:[#allocation7_spill] sm:$0xff] }
 0xf88   :  { %15136 = vrot.lane.b32.xlu0 %v15135_v62, %s15451_s3 }
 0xf89   :  { %v5058_v43 = vpop.f32.mrb[154].mxu0 }
 0xf8a   :  { %v15150_v52 = vpack.i.bf16 %v5058_v43, %v17036_v40  ;;  %v13421_v38 = vpop.f32.mrb[155].mxu0 }
 0xf8c   :  { %15146 = vrot.lane.b32.xlu0 %v15145_v14, %s15451_s3  ;;  %15151 = vrot.lane.b32.xlu1 %v15150_v52, %s15451_s3  ;;  %v15144_v14 = vunpack.i.h.bf16 %v15142_v53 }
 0xf8d   :  { %v4812_v12 = vpop.f32.mrb[158].mxu1 }
 0xf8e   :  { %v5063_v58 = vpop.f32.mrb[156].mxu0  ;;  %v13368_v11 = vpop.f32.mrb[159].mxu1  ;;  %v5121_v16 = vsel %vm785_vm1, %v17198_v51, %v15144_v14 }
 0xf8f   :  { %v15155_v46 = vpack.i.bf16 %v5063_v58, %v17040_v35  ;;  %v13424_v47 = vpop.f32.mrb[157].mxu0  ;;  %v19379_v11 = vld [vmem:[#allocation8_spill] sm:$0xff] }
 0xf90   :  { %15161 = vrot.lane.b32.xlu0 %v15160_v19, %s15451_s3  ;;  %v5115_v19 = vsel %vm785_vm1, %v19375_v39, %v15143_v18 }
 0xf91   :  { %15156 = vrot.lane.b32.xlu1 %v15155_v46, %s15451_s3 }
 0xf92   :  { %v4817_v40 = vpop.f32.mrb[160].mxu1 }
 0xf93   :  { %v13371_v50 = vpop.f32.mrb[161].mxu1 }
 0xf96   :  { %v4822_v5 = vpop.f32.mrb[162].mxu1 }
 0xf97   :  { %v13374_v32 = vpop.f32.mrb[163].mxu1 }
 0xffa   :  { %v15137_v30 = vpop.permute.xlu0 %15136 }
 0xffb   :  { %v15139_v42 = vunpack.i.h.bf16 %v15137_v30  ;;  %v15138_v1 = vunpack.i.l.bf16 %v15137_v30  ;;  %v19380_v30 = vld [vmem:[#allocation9_spill] sm:$0xff] }
 0xffd   :  { %v5118_v35 = vsel %vm785_vm1, %v17038_v17, %v15138_v1  ;;  %v5124_v45 = vsel %vm785_vm1, %v4812_v12, %v15139_v42 }
 0xffe   :  { %v15147_v15 = vpop.permute.xlu0 %15146  ;;  %5255 = vmatprep.mubr.f32.mxu1 %v5118_v35  ;;  %5335 = vmatprep.mubr.f32.mxu0 %v5124_v45  ;;  %v15152_v33 = vpop.permute.xlu1 %15151 }
 0xfff   :  { %v15149_v9 = vunpack.i.h.bf16 %v15147_v15  ;;  %v15148_v21 = vunpack.i.l.bf16 %v15147_v15  ;;  %v15154_v55 = vunpack.i.h.bf16 %v15152_v33  ;;  %v15153_v57 = vunpack.i.l.bf16 %v15152_v33  ;;  %5256 = vmatmul.mubr.f32.vlgmr.msra.gmra.mrb[164].mxu1 %v5115_v19  ;;  %5336 = vmatmul.mubr.f32.vlgmr.msra.gmra.mrb[158].mxu0 %v5121_v16 }
0x1001   :  { %v5119_v17 = vsel %vm785_vm1, %v17042_v25, %v15153_v57  ;;  %v5125_v7 = vsel %vm785_vm1, %v4817_v40, %v15154_v55  ;;  %v5116_v4 = vsel %vm785_vm1, %v19376_v60, %v15148_v21  ;;  %v5122_v27 = vsel %vm785_vm1, %v17204_v48, %v15149_v9 }
0x1002   :  { %v15162_v59 = vpop.permute.xlu0 %15161  ;;  %5260 = vmatprep.mubr.f32.mxu1 %v5119_v17  ;;  %5340 = vmatprep.mubr.f32.mxu0 %v5125_v7 }
0x1003   :  { %v15164_v51 = vunpack.i.h.bf16 %v15162_v59  ;;  %v15163_v44 = vunpack.i.l.bf16 %v15162_v59  ;;  %v15157_v8 = vpop.permute.xlu1 %15156  ;;  %5261 = vmatmul.mubr.f32.gmra.mrb[166].mxu1 %v5116_v4  ;;  %5341 = vmatmul.mubr.f32.gmra.mrb[160].mxu0 %v5122_v27  ;;  %v5423_v59 = vld [vmem:[%s11115_s16] sm:$0xff] }
0x1004   :  { %v15159_v31 = vunpack.i.h.bf16 %v15157_v8  ;;  %v15158_v20 = vunpack.i.l.bf16 %v15157_v8  ;;  %v5425_v8 = vld [vmem:[%s11115_s16 + $0x10] sm:$0xff] }
0x1005   :  { %v5117_v25 = vsel %vm785_vm1, %v19377_v34, %v15163_v44  ;;  %v5123_v26 = vsel %vm785_vm1, %v17206_v37, %v15164_v51  ;;  %v5424_v51 = vld [vmem:[%s11115_s16 + $0x8] sm:$0xff]  ;;  %v5427_v34 = vld [vmem:[%s11115_s16 + $0x20] sm:$0xff] }
0x1006   :  { %v5120_v28 = vsel %vm785_vm1, %v17044_v36, %v15158_v20  ;;  %v5126_v48 = vsel %vm785_vm1, %v4822_v5, %v15159_v31  ;;  %v14646_v44 = vpack.c.bf16 %v5424_v51, %v5423_v59  ;;  %v5426_v31 = vld [vmem:[%s11115_s16 + $0x18] sm:$0xff] }
0x1007   :  { %5265 = vmatprep.mubr.f32.mxu1 %v5120_v28  ;;  %5345 = vmatprep.mubr.f32.mxu0 %v5126_v48  ;;  %v14649_v20 = vpack.c.bf16 %v5426_v31, %v5425_v8  ;;  %v5429_v28 = vld [vmem:[%s11115_s16 + $0x30] sm:$0xff]  ;;  %v5430_v48 = vld [vmem:[%s11115_s16 + $0x38] sm:$0xff] }
0x1008   :  { %5266 = vmatmul.mubr.f32.gmra.mrb[168].mxu1 %v5117_v25  ;;  %5346 = vmatmul.mubr.f32.gmra.mrb[162].mxu0 %v5123_v26  ;;  %v5428_v25 = vld [vmem:[%s11115_s16 + $0x28] sm:$0xff]  ;;  %s11128_s16 = sld [smem:[%s19143_s0 + %s15468_s13]]   ;;  %s15485_s13 = smov 41  }
0x1009   :  { %13441 = vmatprep.mubr.msk.f32.mxu1 %vm15449_vm3, %v19275_v22  ;;  %5859 = vmatprep.mubr.f32.mxu0 %v19275_v22  ;;  %v14652_v26 = vpack.c.bf16 %v5428_v25, %v5427_v34 }
0x100a   :  { %14647 = vmatpush3.bf16.msra.mxu1 %v14646_v44 }
0x100b   :  { %14648 = vmatprep.subr.bf16.mxu1 %v19274_v3 }
0x100e   :  { %14650 = vmatpush3.bf16.msra.mxu1 %v14649_v20 }
0x100f   :  { %14651 = vmatprep.subr.bf16.mxu1 %v19274_v3 }
0x1012   :  { %14653 = vmatpush3.bf16.msra.mxu1 %v14652_v26 }
0x1013   :  { %14654 = vmatprep.subr.bf16.mxu1 %v19274_v3 }
0x10d2   :  { %v12347_v37 = vpop.f32.mrb[164].mxu1  ;;  %v12388_v13 = vpop.f32.mrb[158].mxu0 }
0x10d3   :  { %v12348_v36 = vpop.f32.mrb[165].mxu1  ;;  %v12389_v49 = vpop.f32.mrb[159].mxu0 }
0x10d4   :  { %v12349_v61 = vadd.f32 %v12348_v36, %v12347_v37  ;;  %v12390_v2 = vadd.f32 %v12389_v49, %v12388_v13  ;;  %v14655_v37 = vpack.c.bf16 %v5430_v48, %v5429_v28 }
0x10d6   :  { %v5338_v6 = vadd.f32 %v12390_v2, %v12349_v61  ;;  %v12350_v56 = vpop.f32.mrb[166].mxu1  ;;  %v12391_v0 = vpop.f32.mrb[160].mxu0  ;;  %14656 = vmatpush3.bf16.msra.mxu1 %v14655_v37 }
0x10d7   :  { %v12351_v23 = vpop.f32.mrb[167].mxu1  ;;  %v12392_v63 = vpop.f32.mrb[161].mxu0  ;;  %14657 = vmatprep.subr.bf16.mxu1 %v19274_v3 }
0x10d8   :  { %v5351_v62 = vadd.f32 %v5338_v6, %v19378_v10  ;;  %v12352_v29 = vadd.f32 %v12351_v23, %v12350_v56  ;;  %v12393_v43 = vadd.f32 %v12392_v63, %v12391_v0 }
0x10da   :  { %v5343_v52 = vadd.f32 %v12393_v43, %v12352_v29  ;;  %v17364_v38 = vadd.f32 %v11516_v24, %v5351_v62  ;;  %v11518_v62 = vld [vmem:[%s11114_s24] ss:$0 sm:$0xff]  ;;  %s15464_s24 = smov 26  }
0x10db   :  { %v12353_v12 = vpop.f32.mrb[168].mxu1  ;;  %v12394_v58 = vpop.f32.mrb[162].mxu0  ;;  %s17566_s27 = sld [smem:[%s19143_s0 + %s15464_s24]]   ;;  %s15477_s24 = smov 38  }
0x10dc   :  { %v5352_v46 = vadd.f32 %v5343_v52, %v19379_v11  ;;  %v12354_v47 = vpop.f32.mrb[169].mxu1  ;;  %v12395_v40 = vpop.f32.mrb[163].mxu0  ;;  %v5366_v50 = vsel %vm785_vm1, %v17364_v38, 0.0 }
0x10dd   :  { %v12355_v5 = vadd.f32 %v12354_v47, %v12353_v12  ;;  %v12396_v32 = vadd.f32 %v12395_v40, %v12394_v58  ;;  %5367 = vadd.xlane.f32.xlu1 %v5366_v50 }
0x10de   :  { %v17369_v53 = vadd.f32 %v11516_v24, %v5352_v46 }
0x10df   :  { %v5348_v14 = vadd.f32 %v12396_v32, %v12355_v5  ;;  %v5554_v5 = vld [vmem:[%s11117_s28] sm:$0xff]  ;;  %v5555_v32 = vld [vmem:[%s11117_s28 + $0x8] sm:$0xf]  ;;  %s15465_s28 = smov 27  }
0x10e0   :  { %v5369_v18 = vsel %vm785_vm1, %v17369_v53, 0.0  ;;  %s17930_s1 = sld [smem:[%s19143_s0 + %s15465_s28]]   ;;  %s15478_s28 = smov 40  }
0x10e1   :  { %v5353_v42 = vadd.f32 %v5348_v14, %v19380_v30  ;;  %5370 = vadd.xlane.f32.xlu0 %v5369_v18  ;;  %v14658_v14 = vpack.c.bf16 %v5555_v32, %v5554_v5  ;;  %v19381_v18 = vmov 0  ;;  %v11519_v30 = vld [vmem:[%s11116_s2] ss:$0 sm:$0xff]  ;;  %s15466_s2 = smov 28  }
0x10e2   :  { %v19382_v18 = vsel %vm17411_vm9, 4294967295, %v19381_v18  ;;  %s18786_s8 = sld [smem:[%s19143_s0 + %s15466_s2]]   ;;  %s15479_s2 = smov 127  }
0x10e3   :  { %v17374_v1 = vadd.f32 %v11516_v24, %v5353_v42  ;;  %v11517_v24 = vld [vmem:[%s11113_s20] ss:$0 sm:$0xff]  ;;  %19383 = vst [vmem:[#allocation12_spill] sm:$0xff] %v19382_v18  ;;  %s15463_s20 = smov 24  }
0x10e4   :  { %s11120_s23 = sld [smem:[%s19143_s0 + %s15463_s20]]   ;;  %s15476_s20 = smov 37  }
0x10e5   :  { %v5372_v35 = vsel %vm785_vm1, %v17374_v1, 0.0 }
0x10e6   :  { %5373 = vadd.xlane.f32.xlu0 %v5372_v35 }
0x116a   :  { %v5368_v45 = vpop.xlane.xlu1 %5367 }
0x116b   :  { %v5375_v15 = vmul.f32 0.015625, %v5368_v45 }
0x116d   :  { %v5378_v33 = vsub.f32 %v17364_v38, %v5375_v15 }
0x116e   :  { %v5371_v39 = vpop.xlane.xlu0 %5370 }
0x116f   :  { %v5376_v19 = vmul.f32 0.015625, %v5371_v39  ;;  %v5381_v16 = vmul.f32 %v5378_v33, %v5378_v33 }
0x1171   :  { %v5379_v9 = vsub.f32 %v17369_v53, %v5376_v19  ;;  %v5384_v21 = vsel %vm785_vm1, %v5381_v16, 0.0 }
0x1172   :  { %5385 = vadd.xlane.f32.xlu1 %v5384_v21 }
0x1173   :  { %v5374_v55 = vpop.xlane.xlu0 %5373  ;;  %v5382_v57 = vmul.f32 %v5379_v9, %v5379_v9 }
0x1174   :  { %v5377_v17 = vmul.f32 0.015625, %v5374_v55 }
0x1175   :  { %v5387_v7 = vsel %vm785_vm1, %v5382_v57, 0.0 }
0x1176   :  { %v5380_v60 = vsub.f32 %v17374_v1, %v5377_v17  ;;  %5388 = vadd.xlane.f32.xlu0 %v5387_v7 }
0x1178   :  { %v5383_v4 = vmul.f32 %v5380_v60, %v5380_v60 }
0x117a   :  { %v5390_v27 = vsel %vm785_vm1, %v5383_v4, 0.0 }
0x117b   :  { %5391 = vadd.xlane.f32.xlu1 %v5390_v27 }
0x11ff   :  { %v5386_v13 = vpop.xlane.xlu1 %5385 }
0x1200   :  { %v5393_v36 = vmul.f32 0.015625, %v5386_v13 }
0x1202   :  { %v5396_v49 = vadd.f32 1e-05, %v5393_v36 }
0x1203   :  { %v5389_v61 = vpop.xlane.xlu0 %5388 }
0x1204   :  { %15297 = vrsqrt.f32 %v5396_v49  ;;  %v5394_v2 = vmul.f32 0.015625, %v5389_v61 }
0x1206   :  { %v5397_v6 = vadd.f32 1e-05, %v5394_v2 }
0x1208   :  { %15299 = vrsqrt.f32 %v5397_v6  ;;  %v5392_v56 = vpop.xlane.xlu1 %5391 }
0x1209   :  { %v5395_v0 = vmul.f32 0.015625, %v5392_v56 }
0x120b   :  { %v5398_v23 = vadd.f32 1e-05, %v5395_v0 }
0x120d   :  { %15301 = vrsqrt.f32 %v5398_v23  ;;  %v11527_v23 = vld [vmem:[%s11118_s10] ss:$0 sm:$0xff]  ;;  %s11131_s10 = sld [smem:[%s19143_s0 + %s15473_s7]]  }
0x120e   :  { %v15298_v63 = vpop.eup %15297 }
0x120f   :  { %v5402_v10 = vmul.f32 %v15298_v63, %v5378_v33 }
0x1211   :  { %v5411_v29 = vmul.f32 %v11517_v24, %v5402_v10 }
0x1212   :  { %v15300_v43 = vpop.eup %15299 }
0x1213   :  { %v5420_v52 = vadd.f32 %v11518_v62, %v5411_v29  ;;  %v5403_v12 = vmul.f32 %v15300_v43, %v5379_v9 }
0x1215   :  { %13442 = vmatmul.mubr.msk.f32.vlgmr.msra.gmra.mrb[170].mxu1 %vm785_vm1, %v5420_v52  ;;  %v5412_v58 = vmul.f32 %v11517_v24, %v5403_v12 }
0x1216   :  { %13444 = vmatprep.mubr.msk.f32.mxu1 %vm15449_vm3, %v19275_v22  ;;  %14660 = vmatpush3.bf16.msk.msra.mxu1 %vm17411_vm9, %v14658_v14 }
0x1217   :  { %v15302_v11 = vpop.eup %15301  ;;  %v5421_v46 = vadd.f32 %v11518_v62, %v5412_v58 }
0x1218   :  { %v5404_v47 = vmul.f32 %v15302_v11, %v5380_v60 }
0x1219   :  { %13445 = vmatmul.mubr.msk.f32.gmra.mrb[172].mxu1 %vm785_vm1, %v5421_v46 }
0x121a   :  { %13447 = vmatprep.mubr.msk.f32.mxu1 %vm15449_vm3, %v19275_v22  ;;  %v5413_v40 = vmul.f32 %v11517_v24, %v5404_v47 }
0x121c   :  { %v5422_v50 = vadd.f32 %v11518_v62, %v5413_v40 }
0x121e   :  { %13448 = vmatmul.mubr.msk.f32.gmra.mrb[174].mxu1 %vm785_vm1, %v5422_v50 }
0x121f   :  { %13454 = vmatprep.mubr.msk.f32.mxu1 %vm15449_vm3, %v19275_v22 }
0x12e8   :  { %v5513_v42 = vpop.f32.mrb[170].mxu1 }
0x12e9   :  { %v5514_v35 = vadd.f32 %v11519_v30, %v5513_v42  ;;  %v13443_v45 = vpop.f32.mrb[171].mxu1 }
0x12eb   :  { %v5530_v15 = vmul.f32 0.044715, %v5514_v35  ;;  %v5527_v26 = vmul.f32 0.5, %v5514_v35 }
0x12ec   :  { %v5518_v33 = vpop.f32.mrb[172].mxu1 }
0x12ed   :  { %v5533_v39 = vmul.f32 %v5530_v15, %v5514_v35  ;;  %v5519_v19 = vadd.f32 %v11519_v30, %v5518_v33  ;;  %v13446_v16 = vpop.f32.mrb[173].mxu1 }
0x12ef   :  { %v5536_v9 = vmul.f32 %v5533_v39, %v5514_v35  ;;  %v5531_v21 = vmul.f32 0.044715, %v5519_v19  ;;  %v5528_v13 = vmul.f32 0.5, %v5519_v19 }
0x12f1   :  { %v5539_v55 = vadd.f32 %v5536_v9, %v5514_v35  ;;  %v5534_v57 = vmul.f32 %v5531_v21, %v5519_v19  ;;  %v5523_v17 = vpop.f32.mrb[174].mxu1  ;;  %v5723_v9 = vld [vmem:[%s17467_s14 + $0x8] sm:$0xff] }
0x12f2   :  { %v5524_v7 = vadd.f32 %v11519_v30, %v5523_v17  ;;  %v13449_v60 = vpop.f32.mrb[175].mxu1  ;;  %v5731_v21 = vld [vmem:[%s17467_s14 + $0x48] sm:$0xff]  ;;  %v5733_v17 = vld [vmem:[%s17467_s14 + $0x58] sm:$0xff] }
0x12f3   :  { %v5542_v4 = vmul.f32 0.7978846, %v5539_v55  ;;  %v5537_v27 = vmul.f32 %v5534_v57, %v5519_v19  ;;  %v5725_v55 = vld [vmem:[%s17467_s14 + $0x18] sm:$0xff]  ;;  %v14661_v57 = vpack.c.bf16 %v5731_v21, %v5723_v9  ;;  %v5730_v60 = vld [vmem:[%s17467_s14 + $0x40] sm:$0xff] }
0x12f4   :  { %v5532_v59 = vmul.f32 0.044715, %v5524_v7  ;;  %v5529_v2 = vmul.f32 0.5, %v5524_v7 }
0x12f5   :  { %15303 = vtanh.f32 %v5542_v4  ;;  %v5540_v51 = vadd.f32 %v5537_v27, %v5519_v19  ;;  %v14677_v4 = vpack.c.bf16 %v5733_v17, %v5725_v55  ;;  %14662 = vmatprep.subr.bf16.mxu0 %v14661_v57 }
0x12f6   :  { %v5535_v44 = vmul.f32 %v5532_v59, %v5524_v7  ;;  %v5724_v59 = vld [vmem:[%s17467_s14 + $0x10] sm:$0xff] }
0x12f7   :  { %v5543_v8 = vmul.f32 0.7978846, %v5540_v51  ;;  %v5732_v51 = vld [vmem:[%s17467_s14 + $0x50] sm:$0xff]  ;;  %14678 = vmatprep.subr.bf16.mxu1 %v14677_v4 }
0x12f8   :  { %v5538_v31 = vmul.f32 %v5535_v44, %v5524_v7  ;;  %v14679_v44 = vpack.c.bf16 %v5732_v51, %v5724_v59 }
0x12f9   :  { %15305 = vtanh.f32 %v5543_v8  ;;  %v5739_v8 = vld [vmem:[%s17467_s14 + $0x88] sm:$0xff] }
0x12fa   :  { %v5541_v20 = vadd.f32 %v5538_v31, %v5524_v7  ;;  %v5722_v7 = vld [vmem:[%s17467_s14] sm:$0xff]  ;;  %v5747_v31 = vld [vmem:[%s17467_s14 + $0xc8] sm:$0xff] }
0x12fb   :  { %v14663_v27 = vpack.c.bf16 %v5730_v60, %v5722_v7 }
0x12fc   :  { %v5544_v34 = vmul.f32 0.7978846, %v5541_v20  ;;  %v5741_v20 = vld [vmem:[%s17467_s14 + $0x98] sm:$0xff] }
0x12fd   :  { %14664 = vmatpush1.bf16.msra.mxu0 %v14663_v27 }
0x12fe   :  { %15307 = vtanh.f32 %v5544_v34  ;;  %v14665_v34 = vpack.c.bf16 %v5747_v31, %v5739_v8  ;;  %v5726_v8 = vld [vmem:[%s17467_s14 + $0x20] sm:$0xff] }
0x12ff   :  { %v15304_v25 = vpop.eup %15303 }
0x1300   :  { %v5548_v28 = vadd.f32 1.0, %v15304_v25  ;;  %v5749_v25 = vld [vmem:[%s17467_s14 + $0xd8] sm:$0xff]  ;;  %14666 = vmatprep.subr.bf16.mxu0 %v14665_v34  ;;  %v5728_v34 = vld [vmem:[%s17467_s14 + $0x30] sm:$0xff] }
0x1302   :  { %v5551_v48 = vmul.f32 %v5548_v28, %v5527_v26  ;;  %v5738_v26 = vld [vmem:[%s17467_s14 + $0x80] sm:$0xff] }
0x1303   :  { %v15306_v37 = vpop.eup %15305  ;;  %v5746_v28 = vld [vmem:[%s17467_s14 + $0xc0] sm:$0xff] }
0x1304   :  { %13455 = vmatmul.mubr.msk.f32.vlgmr.msra.gmra.mrb[176].mxu1 %vm5556_vm10, %v5551_v48  ;;  %v5549_v36 = vadd.f32 1.0, %v15306_v37  ;;  %v14681_v48 = vpack.c.bf16 %v5749_v25, %v5741_v20  ;;  %v14667_v37 = vpack.c.bf16 %v5746_v28, %v5738_v26  ;;  %v5734_v20 = vld [vmem:[%s17467_s14 + $0x60] sm:$0xff]  ;;  %v5736_v25 = vld [vmem:[%s17467_s14 + $0x70] sm:$0xff]  ;;  %v5743_v28 = vld [vmem:[%s17467_s14 + $0xa8] sm:$0xff] }
0x1305   :  { %13457 = vmatprep.mubr.msk.f32.mxu1 %vm15449_vm3, %v19275_v22  ;;  %14680 = vmatpush1.bf16.msra.mxu1 %v14679_v44  ;;  %v11528_v44 = vld [vmem:[%s11119_s19] ss:$0 sm:$0xff]  ;;  %s11132_s19 = sld [smem:[%s19143_s0 + %s15475_s15]]  }
0x1306   :  { %v5552_v49 = vmul.f32 %v5549_v36, %v5528_v13  ;;  %v5740_v13 = vld [vmem:[%s17467_s14 + $0x90] sm:$0xff]  ;;  %14682 = vmatprep.subr.bf16.mxu1 %v14681_v48  ;;  %14668 = vmatpush1.bf16.msra.mxu0 %v14667_v37  ;;  %v11529_v26 = vld [vmem:[%s11120_s23] ss:$0 sm:$0xff]  ;;  %v5751_v37 = vld [vmem:[%s17467_s14 + $0xe8] sm:$0xff]  ;;  %s11133_s23 = sld [smem:[%s19143_s0 + %s15476_s20]]  }
0x1307   :  { %v5748_v36 = vld [vmem:[%s17467_s14 + $0xd0] sm:$0xff] }
0x1308   :  { %v15308_v61 = vpop.eup %15307  ;;  %13458 = vmatmul.mubr.msk.f32.gmra.mrb[178].mxu1 %vm5556_vm10, %v5552_v49  ;;  %v14683_v49 = vpack.c.bf16 %v5748_v36, %v5740_v13  ;;  %v5745_v13 = vld [vmem:[%s17467_s14 + $0xb8] sm:$0xff] }
0x1309   :  { %13460 = vmatprep.mubr.msk.f32.mxu1 %vm15449_vm3, %v19275_v22  ;;  %v5550_v6 = vadd.f32 1.0, %v15308_v61  ;;  %v5755_v61 = vld [vmem:[%s17467_s14 + $0x108] sm:$0xff]  ;;  %v5753_v36 = vld [vmem:[%s17467_s14 + $0xf8] sm:$0xff] }
0x130a   :  { %14684 = vmatpush1.bf16.msra.mxu1 %v14683_v49 }
0x130b   :  { %v5553_v56 = vmul.f32 %v5550_v6, %v5529_v2  ;;  %v5763_v2 = vld [vmem:[%s17467_s14 + $0x148] sm:$0xff]  ;;  %v5757_v6 = vld [vmem:[%s17467_s14 + $0x118] sm:$0xff] }
0x130d   :  { %13461 = vmatmul.mubr.msk.f32.gmra.mrb[180].mxu1 %vm5556_vm10, %v5553_v56  ;;  %v14669_v56 = vpack.c.bf16 %v5763_v2, %v5755_v61  ;;  %v14695_v61 = vpack.c.bf16 %v5734_v20, %v5726_v8  ;;  %v14711_v2 = vpack.c.bf16 %v5736_v25, %v5728_v34  ;;  %v6127_v8 = vld [vmem:[%s17566_s27] sm:$0xff]  ;;  %v6129_v20 = vld [vmem:[%s17566_s27 + $0x10] sm:$0xff]  ;;  %v6130_v34 = vld [vmem:[%s17566_s27 + $0x18] sm:$0xff] }
0x130e   :  { %5942 = vmatprep.mubr.f32.mxu1 %v19275_v22  ;;  %v6131_v25 = vld [vmem:[%s17566_s27 + $0x20] sm:$0xff] }
0x130f   :  { %14670 = vmatprep.subr.bf16.mxu0 %v14669_v56 }
0x13d7   :  { %v5636_v0 = vpop.f32.mrb[176].mxu1 }
0x13d8   :  { %v5650_v63 = vadd.f32 %v5636_v0, %v17364_v38  ;;  %v13456_v24 = vpop.f32.mrb[177].mxu1  ;;  %v5765_v0 = vld [vmem:[%s17467_s14 + $0x158] sm:$0xff] }
0x13d9   :  { %v14685_v24 = vpack.c.bf16 %v5765_v0, %v5757_v6  ;;  %v5750_v0 = vld [vmem:[%s17467_s14 + $0xe0] sm:$0xff] }
0x13da   :  { %v17432_v10 = vadd.f32 %v11527_v23, %v5650_v63  ;;  %v5762_v63 = vld [vmem:[%s17467_s14 + $0x140] sm:$0xff] }
0x13db   :  { %v5641_v62 = vpop.f32.mrb[178].mxu1  ;;  %14686 = vmatprep.subr.bf16.mxu1 %v14685_v24  ;;  %v14697_v24 = vpack.c.bf16 %v5751_v37, %v5743_v28  ;;  %v6133_v28 = vld [vmem:[%s17566_s27 + $0x30] sm:$0xff]  ;;  %v6135_v37 = vld [vmem:[%s17566_s27 + $0x40] sm:$0xff] }
0x13dc   :  { %19384 = vst [vmem:[#allocation23_spill] sm:$0xff] %v17432_v10  ;;  %v5651_v29 = vadd.f32 %v5641_v62, %v17369_v53  ;;  %v13459_v43 = vpop.f32.mrb[179].mxu1  ;;  %v5665_v52 = vsel %vm785_vm1, %v17432_v10, 0.0 }
0x13dd   :  { %5666 = vadd.xlane.f32.xlu0 %v5665_v52  ;;  %v5764_v43 = vld [vmem:[%s17467_s14 + $0x150] sm:$0xff] }
0x13de   :  { %v17437_v12 = vadd.f32 %v11527_v23, %v5651_v29  ;;  %v5756_v29 = vld [vmem:[%s17467_s14 + $0x110] sm:$0xff] }
0x13df   :  { %v14687_v52 = vpack.c.bf16 %v5764_v43, %v5756_v29  ;;  %v5759_v29 = vld [vmem:[%s17467_s14 + $0x128] sm:$0xff] }
0x13e0   :  { %19385 = vst [vmem:[#allocation24_spill] sm:$0xff] %v17437_v12  ;;  %v5646_v58 = vpop.f32.mrb[180].mxu1  ;;  %v5668_v11 = vsel %vm785_vm1, %v17437_v12, 0.0 }
0x13e1   :  { %v5652_v46 = vadd.f32 %v5646_v58, %v17374_v1  ;;  %v13462_v38 = vpop.f32.mrb[181].mxu1  ;;  %5669 = vadd.xlane.f32.xlu1 %v5668_v11  ;;  %v5771_v58 = vld [vmem:[%s17467_s14 + $0x188] sm:$0xff]  ;;  %14688 = vmatpush1.bf16.msra.mxu1 %v14687_v52 }
0x13e2   :  { %v5779_v11 = vld [vmem:[%s17467_s14 + $0x1c8] sm:$0xff] }
0x13e3   :  { %v17442_v47 = vadd.f32 %v11527_v23, %v5652_v46  ;;  %v5754_v23 = vld [vmem:[%s17467_s14 + $0x100] sm:$0xff]  ;;  %v5773_v46 = vld [vmem:[%s17467_s14 + $0x198] sm:$0xff]  ;;  %v14673_v38 = vpack.c.bf16 %v5779_v11, %v5771_v58  ;;  %v5767_v52 = vld [vmem:[%s17467_s14 + $0x168] sm:$0xff] }
0x13e4   :  { %v14671_v62 = vpack.c.bf16 %v5762_v63, %v5754_v23  ;;  %v5744_v23 = vld [vmem:[%s17467_s14 + $0xb0] sm:$0xff]  ;;  %v5761_v58 = vld [vmem:[%s17467_s14 + $0x138] sm:$0xff] }
0x13e5   :  { %19386 = vst [vmem:[#allocation14_spill] sm:$0xff] %v17442_v47  ;;  %v5671_v53 = vsel %vm785_vm1, %v17442_v47, 0.0  ;;  %v5752_v63 = vld [vmem:[%s17467_s14 + $0xf0] sm:$0xff]  ;;  %v5769_v11 = vld [vmem:[%s17467_s14 + $0x178] sm:$0xff] }
0x13e6   :  { %5672 = vadd.xlane.f32.xlu0 %v5671_v53  ;;  %14672 = vmatpush1.bf16.msra.mxu0 %v14671_v62  ;;  %v5781_v53 = vld [vmem:[%s17467_s14 + $0x1d8] sm:$0xff]  ;;  %v14713_v62 = vpack.c.bf16 %v5753_v36, %v5745_v13  ;;  %v6136_v13 = vld [vmem:[%s17566_s27 + $0x48] sm:$0xff]  ;;  %v6137_v36 = vld [vmem:[%s17566_s27 + $0x50] sm:$0xff] }
0x13e7   :  { %14674 = vmatprep.subr.bf16.mxu0 %v14673_v38 }
0x146a   :  { %v5667_v40 = vpop.xlane.xlu0 %5666 }
0x146b   :  { %v5674_v50 = vmul.f32 0.015625, %v5667_v40  ;;  %v5770_v40 = vld [vmem:[%s17467_s14 + $0x180] sm:$0xff] }
0x146d   :  { %v17447_v5 = vsub.f32 %v17432_v10, %v5674_v50  ;;  %v5778_v50 = vld [vmem:[%s17467_s14 + $0x1c0] sm:$0xff] }
0x146e   :  { %v5670_v32 = vpop.xlane.xlu1 %5669  ;;  %v6772_v10 = vld [vmem:[%s17930_s1 + $0x20] sm:$0xff] }
0x146f   :  { %v5675_v14 = vmul.f32 0.015625, %v5670_v32  ;;  %v5680_v30 = vmul.f32 %v17447_v5, %v17447_v5  ;;  %v14689_v32 = vpack.c.bf16 %v5781_v53, %v5773_v46  ;;  %v14715_v46 = vpack.c.bf16 %v5752_v63, %v5744_v23  ;;  %v6145_v23 = vld [vmem:[%s17566_s27 + $0x90] sm:$0xff]  ;;  %v6146_v63 = vld [vmem:[%s17566_s27 + $0x98] sm:$0xff] }
0x1471   :  { %v17452_v1 = vsub.f32 %v17437_v12, %v5675_v14  ;;  %v5683_v42 = vsel %vm785_vm1, %v5680_v30, 0.0  ;;  %v14675_v14 = vpack.c.bf16 %v5778_v50, %v5770_v40  ;;  %v5772_v30 = vld [vmem:[%s17467_s14 + $0x190] sm:$0xff]  ;;  %14690 = vmatprep.subr.bf16.mxu1 %v14689_v32  ;;  %v5758_v40 = vld [vmem:[%s17467_s14 + $0x120] sm:$0xff] }
0x1472   :  { %5684 = vadd.xlane.f32.xlu1 %v5683_v42  ;;  %v5780_v42 = vld [vmem:[%s17467_s14 + $0x1d0] sm:$0xff]  ;;  %v5766_v50 = vld [vmem:[%s17467_s14 + $0x160] sm:$0xff] }
0x1473   :  { %v5673_v35 = vpop.xlane.xlu0 %5672  ;;  %v5681_v45 = vmul.f32 %v17452_v1, %v17452_v1  ;;  %14676 = vmatpush1.bf16.msra.mxu0 %v14675_v14  ;;  %v14701_v14 = vpack.c.bf16 %v5767_v52, %v5759_v29  ;;  %v6149_v29 = vld [vmem:[%s17566_s27 + $0xb0] sm:$0xff]  ;;  %v6151_v52 = vld [vmem:[%s17566_s27 + $0xc0] sm:$0xff] }
0x1474   :  { %v5676_v15 = vmul.f32 0.015625, %v5673_v35  ;;  %v14691_v35 = vpack.c.bf16 %v5780_v42, %v5772_v30  ;;  %v14717_v30 = vpack.c.bf16 %v5769_v11, %v5761_v58  ;;  %v5760_v42 = vld [vmem:[%s17467_s14 + $0x130] sm:$0xff]  ;;  %v6152_v58 = vld [vmem:[%s17566_s27 + $0xc8] sm:$0xff] }
0x1475   :  { %v5686_v33 = vsel %vm785_vm1, %v5681_v45, 0.0  ;;  %v5727_v45 = vld [vmem:[%s17467_s14 + $0x28] sm:$0xff]  ;;  %v6153_v11 = vld [vmem:[%s17566_s27 + $0xd0] sm:$0xff] }
0x1476   :  { %v17459_v39 = vsub.f32 %v17442_v47, %v5676_v15  ;;  %5687 = vadd.xlane.f32.xlu0 %v5686_v33  ;;  %v5735_v15 = vld [vmem:[%s17467_s14 + $0x68] sm:$0xff]  ;;  %v5729_v33 = vld [vmem:[%s17467_s14 + $0x38] sm:$0xff]  ;;  %14692 = vmatpush1.bf16.msra.mxu1 %v14691_v35  ;;  %v5768_v35 = vld [vmem:[%s17467_s14 + $0x170] sm:$0xff] }
0x1477   :  { %v6770_v12 = vld [vmem:[%s17930_s1 + $0x10] sm:$0xff] }
0x1478   :  { %v5682_v19 = vmul.f32 %v17459_v39, %v17459_v39 }
0x147a   :  { %v5689_v16 = vsel %vm785_vm1, %v5682_v19, 0.0  ;;  %v14693_v19 = vpack.c.bf16 %v5735_v15, %v5727_v45  ;;  %v5775_v45 = vld [vmem:[%s17467_s14 + $0x1a8] sm:$0xff] }
0x147b   :  { %5690 = vadd.xlane.f32.xlu1 %v5689_v16  ;;  %v5737_v16 = vld [vmem:[%s17467_s14 + $0x78] sm:$0xff]  ;;  %v5783_v15 = vld [vmem:[%s17467_s14 + $0x1e8] sm:$0xff] }
0x147c   :  { %v14709_v9 = vpack.c.bf16 %v5737_v16, %v5729_v33  ;;  %14694 = vmatprep.subr.bf16.mxu0 %v14693_v19  ;;  %v5777_v33 = vld [vmem:[%s17467_s14 + $0x1b8] sm:$0xff] }
0x147d   :  { %v5785_v19 = vld [vmem:[%s17467_s14 + $0x1f8] sm:$0xff] }
0x147e   :  { %14710 = vmatprep.subr.bf16.mxu1 %v14709_v9  ;;  %v14719_v9 = vpack.c.bf16 %v5768_v35, %v5760_v42  ;;  %v6163_v42 = vld [vmem:[%s17566_s27 + $0x120] sm:$0xff]  ;;  %v6164_v35 = vld [vmem:[%s17566_s27 + $0x128] sm:$0xff] }
0x14ff   :  { %v5685_v21 = vpop.xlane.xlu1 %5684 }
0x1500   :  { %v5692_v55 = vmul.f32 0.015625, %v5685_v21  ;;  %v5774_v21 = vld [vmem:[%s17467_s14 + $0x1a0] sm:$0xff] }
0x1502   :  { %v5695_v57 = vadd.f32 1e-05, %v5692_v55 }
0x1503   :  { %v5688_v17 = vpop.xlane.xlu0 %5687 }
0x1504   :  { %15309 = vrsqrt.f32 %v5695_v57  ;;  %v5693_v7 = vmul.f32 0.015625, %v5688_v17  ;;  %v14705_v57 = vpack.c.bf16 %v5783_v15, %v5775_v45  ;;  %v14721_v17 = vpack.c.bf16 %v5785_v19, %v5777_v33  ;;  %v6165_v45 = vld [vmem:[%s17566_s27 + $0x130] sm:$0xff]  ;;  %v6166_v15 = vld [vmem:[%s17566_s27 + $0x138] sm:$0xff]  ;;  %v6167_v33 = vld [vmem:[%s17566_s27 + $0x140] sm:$0xff] }
0x1505   :  { %v6168_v19 = vld [vmem:[%s17566_s27 + $0x148] sm:$0xff] }
0x1506   :  { %v5696_v60 = vadd.f32 1e-05, %v5693_v7  ;;  %v5782_v7 = vld [vmem:[%s17467_s14 + $0x1e0] sm:$0xff] }
0x1508   :  { %15311 = vrsqrt.f32 %v5696_v60  ;;  %v5691_v4 = vpop.xlane.xlu1 %5690  ;;  %v5776_v60 = vld [vmem:[%s17467_s14 + $0x1b0] sm:$0xff] }
0x1509   :  { %v5694_v27 = vmul.f32 0.015625, %v5691_v4  ;;  %v5784_v4 = vld [vmem:[%s17467_s14 + $0x1f0] sm:$0xff] }
0x150b   :  { %v5697_v59 = vadd.f32 1e-05, %v5694_v27  ;;  %v14707_v27 = vpack.c.bf16 %v5782_v7, %v5774_v21  ;;  %v6172_v21 = vld [vmem:[%s17566_s27 + $0x168] sm:$0xff] }
0x150c   :  { %v6176_v7 = vld [vmem:[%s17566_s27 + $0x188] sm:$0xff] }
0x150d   :  { %15313 = vrsqrt.f32 %v5697_v59  ;;  %v14723_v59 = vpack.c.bf16 %v5784_v4, %v5776_v60  ;;  %v6177_v60 = vld [vmem:[%s17566_s27 + $0x190] sm:$0xff]  ;;  %v6178_v4 = vld [vmem:[%s17566_s27 + $0x198] sm:$0xff] }
0x150e   :  { %v15310_v51 = vpop.eup %15309 }
0x150f   :  { %v5701_v31 = vmul.f32 %v15310_v51, %v17447_v5  ;;  %v5742_v5 = vld [vmem:[%s17467_s14 + $0xa0] sm:$0xff]  ;;  %s11135_s14 = sld [smem:[%s19143_s0 + %s15474_s11]]  }
0x1511   :  { %v5710_v48 = vmul.f32 %v11528_v44, %v5701_v31  ;;  %v6128_v31 = vld [vmem:[%s17566_s27 + $0x8] sm:$0xff] }
0x1512   :  { %v15312_v49 = vpop.eup %15311 }
0x1513   :  { %v17521_v6 = vadd.f32 %v11529_v26, %v5710_v48  ;;  %v5702_v56 = vmul.f32 %v15312_v49, %v17452_v1  ;;  %v14699_v1 = vpack.c.bf16 %v5750_v0, %v5742_v5  ;;  %v6134_v48 = vld [vmem:[%s17566_s27 + $0x38] sm:$0xff]  ;;  %v6141_v5 = vld [vmem:[%s17566_s27 + $0x70] sm:$0xff]  ;;  %v6144_v0 = vld [vmem:[%s17566_s27 + $0x88] sm:$0xff] }
0x1514   :  { %v6138_v49 = vld [vmem:[%s17566_s27 + $0x58] sm:$0xff] }
0x1515   :  { %11530 = vmatmul.mubr.msk.f32.vlgmr.msra.gmra.mrb[164].mxu0 %vm785_vm1, %v17521_v6  ;;  %11533 = vmatmul.mubr.msk.f32.vlgmr.msra.gmra.mrb[182].mxu1 %vm785_vm1, %v17521_v6  ;;  %v5711_v43 = vmul.f32 %v11528_v44, %v5702_v56  ;;  %v6143_v56 = vld [vmem:[%s17566_s27 + $0x80] sm:$0xff] }
0x1516   :  { %14696 = vmatpush1.bf16.msra.mxu0 %v14695_v61  ;;  %14712 = vmatpush1.bf16.msra.mxu1 %v14711_v2  ;;  %v6139_v61 = vld [vmem:[%s17566_s27 + $0x60] sm:$0xff]  ;;  %v6140_v2 = vld [vmem:[%s17566_s27 + $0x68] sm:$0xff] }
0x1517   :  { %v15314_v38 = vpop.eup %15313  ;;  %5865 = vmatprep.mubr.f32.mxu0 %v19275_v22  ;;  %5948 = vmatprep.mubr.f32.mxu1 %v19275_v22  ;;  %v5720_v53 = vadd.f32 %v11529_v26, %v5711_v43  ;;  %v6150_v43 = vld [vmem:[%s17566_s27 + $0xb8] sm:$0xff] }
0x1518   :  { %v5703_v32 = vmul.f32 %v15314_v38, %v17459_v39  ;;  %14698 = vmatprep.subr.bf16.mxu0 %v14697_v24  ;;  %14714 = vmatprep.subr.bf16.mxu1 %v14713_v62  ;;  %v14703_v39 = vpack.c.bf16 %v5766_v50, %v5758_v40  ;;  %v6147_v24 = vld [vmem:[%s17566_s27 + $0xa0] sm:$0xff]  ;;  %v6148_v62 = vld [vmem:[%s17566_s27 + $0xa8] sm:$0xff]  ;;  %v6158_v40 = vld [vmem:[%s17566_s27 + $0xf8] sm:$0xff] }
0x1519   :  { %11531 = vmatmul.mubr.msk.f32.gmra.mrb[166].mxu0 %vm785_vm1, %v5720_v53  ;;  %11534 = vmatmul.mubr.msk.f32.gmra.mrb[184].mxu1 %vm785_vm1, %v5720_v53  ;;  %v14725_v51 = vpack.c.bf16 %v5720_v53, %v17521_v6  ;;  %v6156_v38 = vld [vmem:[%s17566_s27 + $0xe8] sm:$0xff]  ;;  %v6159_v50 = vld [vmem:[%s17566_s27 + $0x100] sm:$0xff] }
0x151a   :  { %v5712_v16 = vmul.f32 %v11528_v44, %v5703_v32  ;;  %14700 = vmatpush1.bf16.msra.mxu0 %v14699_v1  ;;  %14716 = vmatpush1.bf16.msra.mxu1 %v14715_v46  ;;  %v6154_v1 = vld [vmem:[%s17566_s27 + $0xd8] sm:$0xff]  ;;  %v6155_v46 = vld [vmem:[%s17566_s27 + $0xe0] sm:$0xff]  ;;  %v6160_v32 = vld [vmem:[%s17566_s27 + $0x108] sm:$0xff] }
0x151b   :  { %5871 = vmatprep.mubr.f32.mxu0 %v19275_v22  ;;  %5954 = vmatprep.mubr.f32.mxu1 %v19275_v22  ;;  %v6182_v44 = vld [vmem:[%s17566_s27 + $0x1b8] sm:$0xff] }
0x151c   :  { %v5721_v55 = vadd.f32 %v11529_v26, %v5712_v16  ;;  %14702 = vmatprep.subr.bf16.mxu0 %v14701_v14  ;;  %14718 = vmatprep.subr.bf16.mxu1 %v14717_v30  ;;  %v6132_v26 = vld [vmem:[%s17566_s27 + $0x28] sm:$0xff]  ;;  %v6161_v14 = vld [vmem:[%s17566_s27 + $0x110] sm:$0xff]  ;;  %v6162_v30 = vld [vmem:[%s17566_s27 + $0x118] sm:$0xff] }
0x151d   :  { %v6169_v16 = vld [vmem:[%s17566_s27 + $0x150] sm:$0xff] }
0x151e   :  { %11532 = vmatmul.mubr.msk.f32.gmra.mrb[168].mxu0 %vm785_vm1, %v5721_v55  ;;  %11535 = vmatmul.mubr.msk.f32.gmra.mrb[186].mxu1 %vm785_vm1, %v5721_v55 }
0x151f   :  { %14704 = vmatpush1.bf16.msra.mxu0 %v14703_v39  ;;  %14720 = vmatpush1.bf16.msra.mxu1 %v14719_v9  ;;  %v6170_v39 = vld [vmem:[%s17566_s27 + $0x158] sm:$0xff]  ;;  %v6171_v9 = vld [vmem:[%s17566_s27 + $0x160] sm:$0xff] }
0x1520   :  { %14706 = vmatprep.subr.bf16.mxu0 %v14705_v57  ;;  %14722 = vmatprep.subr.bf16.mxu1 %v14721_v17  ;;  %v6174_v57 = vld [vmem:[%s17566_s27 + $0x178] sm:$0xff]  ;;  %v6175_v17 = vld [vmem:[%s17566_s27 + $0x180] sm:$0xff] }
0x1521   :  { %6025 = vmatprep.mubr.f32.mxu0 %v19275_v22  ;;  %6108 = vmatprep.mubr.f32.mxu1 %v19275_v22 }
0x1523   :  { %14708 = vmatpush1.bf16.msra.mxu0 %v14707_v27  ;;  %14724 = vmatpush1.bf16.msra.mxu1 %v14723_v59  ;;  %v6179_v27 = vld [vmem:[%s17566_s27 + $0x1a0] sm:$0xff]  ;;  %v6180_v59 = vld [vmem:[%s17566_s27 + $0x1a8] sm:$0xff] }
0x1524   :  { %14727 = vmatprep.subr.msk.bf16.mxu0 %vm15971_vm2, %v14725_v51  ;;  %14733 = vmatprep.subr.msk.bf16.mxu1 %vm15971_vm2, %v14725_v51 }
0x1526   :  { %11536 = vmatmul.mubr.msk.f32.vlgmr.msra.gmra.mrb[170].mxu0 %vm785_vm1, %v17521_v6  ;;  %11539 = vmatmul.mubr.msk.f32.vlgmr.msra.gmra.mrb[188].mxu1 %vm785_vm1, %v17521_v6  ;;  %v6142_v6 = vld [vmem:[%s17566_s27 + $0x78] sm:$0xff] }
0x1527   :  { %6031 = vmatprep.mubr.f32.mxu0 %v19275_v22  ;;  %6114 = vmatprep.mubr.f32.mxu1 %v19275_v22 }
0x152a   :  { %11537 = vmatmul.mubr.msk.f32.gmra.mrb[172].mxu0 %vm785_vm1, %v5720_v53  ;;  %11540 = vmatmul.mubr.msk.f32.gmra.mrb[190].mxu1 %vm785_vm1, %v5720_v53  ;;  %v6157_v53 = vld [vmem:[%s17566_s27 + $0xf0] sm:$0xff] }
0x152b   :  { %6037 = vmatprep.mubr.f32.mxu0 %v19275_v22  ;;  %6120 = vmatprep.mubr.f32.mxu1 %v19275_v22 }
0x152c   :  { %14730 = vmatpush3.bf16.xpose.msk.msra.mxu0 %vm15971_vm2, %v14725_v51  ;;  %14736 = vmatpush3.bf16.xpose.msk.msra.mxu1 %vm15971_vm2, %v14725_v51  ;;  %v6181_v51 = vld [vmem:[%s17566_s27 + $0x1b0] sm:$0xff]  ;;  %vm10765_vm2 = vcmp.lt.s32.totalorder %v16426_v41, 112 }
0x152d   :  { %13467 = vmatprep.subr.msk.mxu0 %vm785_vm1, %v5721_v55  ;;  %13569 = vmatprep.subr.msk.mxu1 %vm785_vm1, %v5721_v55 }
0x152e   :  { %11538 = vmatmul.mubr.msk.f32.gmra.mrb[174].mxu0 %vm785_vm1, %v5721_v55  ;;  %11541 = vmatmul.mubr.msk.f32.gmra.mrb[192].mxu1 %vm785_vm1, %v5721_v55 }
0x152f   :  { %13469 = vmatprep.mubr.msk.f32.mxu0 %vm785_vm1, %v6127_v8  ;;  %v6183_v8 = vld [vmem:[%s17566_s27 + $0x1c0] sm:$0xff] }
0x1534   :  { %13468 = vmatpush3.xpose.msk.msra.mxu0 %vm785_vm1, %v5721_v55  ;;  %13570 = vmatpush3.xpose.msk.msra.mxu1 %vm785_vm1, %v5721_v55  ;;  %v6173_v55 = vld [vmem:[%s17566_s27 + $0x170] sm:$0xff] }
0x1535   :  { %14737 = vmatprep.subr.bf16.mxu0 %v19274_v3  ;;  %14749 = vmatprep.subr.bf16.mxu1 %v19274_v3 }
0x1537   :  { %13470 = vmatmul.mubr.msk.f32.vlgmr.msra.gmra.mrb[176].mxu0 %vm785_vm1, %v6128_v31  ;;  %v6184_v31 = vld [vmem:[%s17566_s27 + $0x1c8] sm:$0xff] }
0x1538   :  { %13472 = vmatprep.mubr.msk.f32.mxu0 %vm785_vm1, %v6129_v20  ;;  %v6185_v20 = vld [vmem:[%s17566_s27 + $0x1d0] sm:$0xff] }
0x153b   :  { %13473 = vmatmul.mubr.msk.f32.gmra.mrb[178].mxu0 %vm785_vm1, %v6130_v34  ;;  %v6186_v34 = vld [vmem:[%s17566_s27 + $0x1d8] sm:$0xff] }
0x153c   :  { %13475 = vmatprep.mubr.msk.f32.mxu0 %vm785_vm1, %v6131_v25  ;;  %v6187_v25 = vld [vmem:[%s17566_s27 + $0x1e0] sm:$0xff] }
0x153f   :  { %13476 = vmatmul.mubr.msk.f32.gmra.mrb[180].mxu0 %vm785_vm1, %v6132_v26  ;;  %v6188_v26 = vld [vmem:[%s17566_s27 + $0x1e8] sm:$0xff] }
0x1540   :  { %13478 = vmatprep.mubr.msk.f32.mxu0 %vm785_vm1, %v6133_v28  ;;  %v6189_v28 = vld [vmem:[%s17566_s27 + $0x1f0] sm:$0xff] }
0x1543   :  { %13479 = vmatmul.mubr.msk.f32.gmra.mrb[182].mxu0 %vm785_vm1, %v6134_v48  ;;  %v6190_v48 = vld [vmem:[%s17566_s27 + $0x1f8] sm:$0xff]  ;;  %s11134_s27 = sld [smem:[%s19143_s0 + %s15477_s24]]  }
0x1544   :  { %13481 = vmatprep.mubr.msk.f32.mxu0 %vm785_vm1, %v6135_v37 }
0x1547   :  { %13482 = vmatmul.mubr.msk.f32.gmra.mrb[184].mxu0 %vm785_vm1, %v6136_v13 }
0x1548   :  { %13484 = vmatprep.mubr.msk.f32.mxu0 %vm785_vm1, %v6137_v36 }
0x154b   :  { %13485 = vmatmul.mubr.msk.f32.gmra.mrb[186].mxu0 %vm785_vm1, %v6138_v49 }
0x154c   :  { %13487 = vmatprep.mubr.msk.f32.mxu0 %vm785_vm1, %v6139_v61 }
0x154f   :  { %13488 = vmatmul.mubr.msk.f32.gmra.mrb[188].mxu0 %vm785_vm1, %v6140_v2 }
0x1550   :  { %13490 = vmatprep.mubr.msk.f32.mxu0 %vm785_vm1, %v6141_v5 }
0x1553   :  { %13491 = vmatmul.mubr.msk.f32.gmra.mrb[190].mxu0 %vm785_vm1, %v6142_v6 }
0x1554   :  { %13493 = vmatprep.mubr.msk.f32.mxu0 %vm785_vm1, %v6143_v56 }
0x1557   :  { %13494 = vmatmul.mubr.msk.f32.gmra.mrb[192].mxu0 %vm785_vm1, %v6144_v0 }
0x1558   :  { %13496 = vmatprep.mubr.msk.f32.mxu0 %vm785_vm1, %v6145_v23 }
0x155b   :  { %13497 = vmatmul.mubr.msk.f32.gmra.mrb[194].mxu0 %vm785_vm1, %v6146_v63 }
0x155c   :  { %13499 = vmatprep.mubr.msk.f32.mxu0 %vm785_vm1, %v6147_v24 }
0x155f   :  { %13500 = vmatmul.mubr.msk.f32.gmra.mrb[196].mxu0 %vm785_vm1, %v6148_v62 }
0x1560   :  { %13502 = vmatprep.mubr.msk.f32.mxu0 %vm785_vm1, %v6149_v29 }
0x1563   :  { %13503 = vmatmul.mubr.msk.f32.gmra.mrb[198].mxu0 %vm785_vm1, %v6150_v43 }
0x1564   :  { %13505 = vmatprep.mubr.msk.f32.mxu0 %vm785_vm1, %v6151_v52 }
0x1567   :  { %13506 = vmatmul.mubr.msk.f32.gmra.mrb[200].mxu0 %vm785_vm1, %v6152_v58 }
0x1568   :  { %13508 = vmatprep.mubr.msk.f32.mxu0 %vm785_vm1, %v6153_v11 }
0x156b   :  { %13509 = vmatmul.mubr.msk.f32.gmra.mrb[202].mxu0 %vm785_vm1, %v6154_v1 }
0x156c   :  { %13511 = vmatprep.mubr.msk.f32.mxu0 %vm785_vm1, %v6155_v46 }
0x156f   :  { %13512 = vmatmul.mubr.msk.f32.gmra.mrb[204].mxu0 %vm785_vm1, %v6156_v38 }
0x1570   :  { %13514 = vmatprep.mubr.msk.f32.mxu0 %vm785_vm1, %v6157_v53 }
0x1573   :  { %13515 = vmatmul.mubr.msk.f32.gmra.mrb[206].mxu0 %vm785_vm1, %v6158_v40 }
0x1574   :  { %13517 = vmatprep.mubr.msk.f32.mxu0 %vm785_vm1, %v6159_v50 }
0x1577   :  { %13518 = vmatmul.mubr.msk.f32.gmra.mrb[208].mxu0 %vm785_vm1, %v6160_v32 }
0x1578   :  { %13520 = vmatprep.mubr.msk.f32.mxu0 %vm785_vm1, %v6161_v14 }
0x157b   :  { %13521 = vmatmul.mubr.msk.f32.gmra.mrb[210].mxu0 %vm785_vm1, %v6162_v30 }
0x157c   :  { %13523 = vmatprep.mubr.msk.f32.mxu0 %vm785_vm1, %v6163_v42 }
0x157f   :  { %13524 = vmatmul.mubr.msk.f32.gmra.mrb[212].mxu0 %vm785_vm1, %v6164_v35 }
0x1580   :  { %13526 = vmatprep.mubr.msk.f32.mxu0 %vm785_vm1, %v6165_v45 }
0x1583   :  { %13527 = vmatmul.mubr.msk.f32.gmra.mrb[214].mxu0 %vm785_vm1, %v6166_v15 }
0x1584   :  { %13529 = vmatprep.mubr.msk.f32.mxu0 %vm785_vm1, %v6167_v33 }
0x1587   :  { %13530 = vmatmul.mubr.msk.f32.gmra.mrb[216].mxu0 %vm785_vm1, %v6168_v19 }
0x1588   :  { %13532 = vmatprep.mubr.msk.f32.mxu0 %vm785_vm1, %v6169_v16 }
0x158b   :  { %13533 = vmatmul.mubr.msk.f32.gmra.mrb[218].mxu0 %vm785_vm1, %v6170_v39 }
0x158c   :  { %13535 = vmatprep.mubr.msk.f32.mxu0 %vm785_vm1, %v6171_v9 }
0x158f   :  { %13536 = vmatmul.mubr.msk.f32.gmra.mrb[220].mxu0 %vm785_vm1, %v6172_v21 }
0x1590   :  { %13538 = vmatprep.mubr.msk.f32.mxu0 %vm785_vm1, %v6173_v55 }
0x1593   :  { %13539 = vmatmul.mubr.msk.f32.gmra.mrb[222].mxu0 %vm785_vm1, %v6174_v57 }
0x1594   :  { %13541 = vmatprep.mubr.msk.f32.mxu0 %vm785_vm1, %v6175_v17 }
0x1597   :  { %13542 = vmatmul.mubr.msk.f32.gmra.mrb[224].mxu0 %vm785_vm1, %v6176_v7 }
0x1598   :  { %13544 = vmatprep.mubr.msk.f32.mxu0 %vm785_vm1, %v6177_v60 }
0x159b   :  { %13545 = vmatmul.mubr.msk.f32.gmra.mrb[226].mxu0 %vm785_vm1, %v6178_v4 }
0x159c   :  { %13547 = vmatprep.mubr.msk.f32.mxu0 %vm785_vm1, %v6179_v27 }
0x159f   :  { %13548 = vmatmul.mubr.msk.f32.gmra.mrb[228].mxu0 %vm785_vm1, %v6180_v59 }
0x15a0   :  { %13550 = vmatprep.mubr.msk.f32.mxu0 %vm785_vm1, %v6181_v51 }
0x15a3   :  { %13551 = vmatmul.mubr.msk.f32.gmra.mrb[230].mxu0 %vm785_vm1, %v6182_v44 }
0x15a4   :  { %13553 = vmatprep.mubr.msk.f32.mxu0 %vm785_vm1, %v6183_v8 }
0x15a7   :  { %13554 = vmatmul.mubr.msk.f32.gmra.mrb[232].mxu0 %vm785_vm1, %v6184_v31 }
0x15a8   :  { %13556 = vmatprep.mubr.msk.f32.mxu0 %vm785_vm1, %v6185_v20 }
0x15ab   :  { %13557 = vmatmul.mubr.msk.f32.gmra.mrb[234].mxu0 %vm785_vm1, %v6186_v34 }
0x15ac   :  { %13559 = vmatprep.mubr.msk.f32.mxu0 %vm785_vm1, %v6187_v25 }
0x15af   :  { %13560 = vmatmul.mubr.msk.f32.gmra.mrb[236].mxu0 %vm785_vm1, %v6188_v26 }
0x15b0   :  { %13562 = vmatprep.mubr.msk.f32.mxu0 %vm785_vm1, %v6189_v28 }
0x15b3   :  { %13563 = vmatmul.mubr.msk.f32.gmra.mrb[238].mxu0 %vm785_vm1, %v6190_v48 }
0x15b4   :  { %13683 = vmatprep.mubr.msk.f32.mxu0 %vm15449_vm3, %v19275_v22 }
0x15e8   :  { %v5861_v37 = vpop.f32.mrb[164].mxu0  ;;  %v17720_v13 = vpop.f32.mrb[182].mxu1 }
0x15e9   :  { %v17722_v36 = vpop.f32.mrb[165].mxu0  ;;  %v17724_v49 = vpop.f32.mrb[183].mxu1 }
0x15ec   :  { %v5867_v61 = vpop.f32.mrb[166].mxu0  ;;  %v17726_v2 = vpop.f32.mrb[184].mxu1 }
0x15ed   :  { %v17728_v5 = vpop.f32.mrb[167].mxu0  ;;  %v17730_v6 = vpop.f32.mrb[185].mxu1 }
0x15f1   :  { %v5873_v56 = vpop.f32.mrb[168].mxu0  ;;  %v17732_v0 = vpop.f32.mrb[186].mxu1 }
0x15f2   :  { %v17734_v23 = vpop.f32.mrb[169].mxu0  ;;  %v17736_v63 = vpop.f32.mrb[187].mxu1 }
0x15f9   :  { %v17738_v24 = vpop.f32.mrb[170].mxu0  ;;  %v17740_v62 = vpop.f32.mrb[188].mxu1 }
0x15fa   :  { %19388 = vst [vmem:[#allocation25_spill] sm:$0xff] %v17738_v24  ;;  %19389 = vst [vmem:[#allocation26_spill] sm:$0xff] %v17740_v62  ;;  %v17742_v29 = vpop.f32.mrb[171].mxu0  ;;  %v17744_v43 = vpop.f32.mrb[189].mxu1 }
0x15fb   :  { %19390 = vst [vmem:[#allocation11_spill] sm:$0xff] %v17742_v29  ;;  %19391 = vst [vmem:[#allocation16_spill] sm:$0xff] %v17744_v43  ;;  %v6785_v43 = vld [vmem:[%s17930_s1 + $0x88] sm:$0xff] }
0x15fd   :  { %v17746_v52 = vpop.f32.mrb[172].mxu0  ;;  %v17748_v58 = vpop.f32.mrb[190].mxu1 }
0x15fe   :  { %19392 = vst [vmem:[#allocation13_spill] sm:$0xff] %v17746_v52  ;;  %19393 = vst [vmem:[#allocation43_spill] sm:$0xff] %v17748_v58  ;;  %v17750_v11 = vpop.f32.mrb[173].mxu0  ;;  %v17752_v1 = vpop.f32.mrb[191].mxu1  ;;  %v6774_v58 = vld [vmem:[%s17930_s1 + $0x30] sm:$0xff] }
0x15ff   :  { %19394 = vst [vmem:[#allocation15_spill] sm:$0xff] %v17750_v11  ;;  %19395 = vst [vmem:[#allocation44_spill] sm:$0xff] %v17752_v1 }
0x1601   :  { %v17754_v46 = vpop.f32.mrb[174].mxu0  ;;  %v17756_v38 = vpop.f32.mrb[192].mxu1 }
0x1602   :  { %19396 = vst [vmem:[#allocation45_spill] sm:$0xff] %v17754_v46  ;;  %19397 = vst [vmem:[#allocation46_spill] sm:$0xff] %v17756_v38  ;;  %v17758_v53 = vpop.f32.mrb[175].mxu0  ;;  %v17760_v40 = vpop.f32.mrb[193].mxu1  ;;  %v6773_v38 = vld [vmem:[%s17930_s1 + $0x28] sm:$0xff] }
0x1603   :  { %19398 = vst [vmem:[#allocation47_spill] sm:$0xff] %v17758_v53  ;;  %19399 = vst [vmem:[#allocation35_spill] sm:$0xff] %v17760_v40  ;;  %v6778_v40 = vld [vmem:[%s17930_s1 + $0x50] sm:$0xff] }
0x160a   :  { %v13471_v50 = vpop.f32.mrb[176].mxu0 }
0x160b   :  { %v6449_v32 = vpop.f32.mrb[177].mxu0 }
0x160c   :  { %v14738_v14 = vpack.c.bf16 %v13471_v50, %v6449_v32 }
0x160e   :  { %v13474_v30 = vpop.f32.mrb[178].mxu0  ;;  %14739 = vmatpush3.bf16.msra.mxu0 %v14738_v14 }
0x160f   :  { %v6459_v42 = vpop.f32.mrb[179].mxu0  ;;  %14740 = vmatprep.subr.bf16.mxu0 %v19274_v3 }
0x1610   :  { %v14741_v35 = vpack.c.bf16 %v13474_v30, %v6459_v42 }
0x1612   :  { %v13477_v45 = vpop.f32.mrb[180].mxu0  ;;  %14742 = vmatpush3.bf16.msra.mxu0 %v14741_v35 }
0x1613   :  { %v6469_v15 = vpop.f32.mrb[181].mxu0  ;;  %14743 = vmatprep.subr.bf16.mxu0 %v19274_v3 }
0x1614   :  { %v14744_v33 = vpack.c.bf16 %v13477_v45, %v6469_v15 }
0x1616   :  { %v13480_v19 = vpop.f32.mrb[182].mxu0  ;;  %14745 = vmatpush3.bf16.msra.mxu0 %v14744_v33 }
0x1617   :  { %v6479_v16 = vpop.f32.mrb[183].mxu0  ;;  %14746 = vmatprep.subr.bf16.mxu0 %v19274_v3 }
0x1618   :  { %v14747_v39 = vpack.c.bf16 %v13480_v19, %v6479_v16 }
0x161a   :  { %v13483_v9 = vpop.f32.mrb[184].mxu0  ;;  %14748 = vmatpush3.bf16.msra.mxu0 %v14747_v39 }
0x161b   :  { %v6489_v21 = vpop.f32.mrb[185].mxu0  ;;  %14765 = vmatprep.subr.bf16.mxu0 %v19274_v3 }
0x161c   :  { %v14766_v55 = vpack.c.bf16 %v13483_v9, %v6489_v21 }
0x161d   :  { %13684 = vmatmul.mubr.msk.f32.vlgmr.msra.gmra.mrb[240].mxu0 %vm785_vm1, %v5861_v37 }
0x161e   :  { %v13486_v57 = vpop.f32.mrb[186].mxu0  ;;  %14767 = vmatpush3.bf16.msra.mxu0 %v14766_v55  ;;  %13686 = vmatprep.mubr.msk.f32.mxu0 %vm15449_vm3, %v19275_v22 }
0x161f   :  { %v6499_v17 = vpop.f32.mrb[187].mxu0  ;;  %14768 = vmatprep.subr.bf16.mxu0 %v19274_v3 }
0x1620   :  { %v14769_v7 = vpack.c.bf16 %v13486_v57, %v6499_v17 }
0x1621   :  { %13687 = vmatmul.mubr.msk.f32.gmra.mrb[242].mxu0 %vm785_vm1, %v5867_v61 }
0x1622   :  { %v13489_v60 = vpop.f32.mrb[188].mxu0  ;;  %14770 = vmatpush3.bf16.msra.mxu0 %v14769_v7  ;;  %13689 = vmatprep.mubr.msk.f32.mxu0 %vm15449_vm3, %v19275_v22 }
0x1623   :  { %v6509_v4 = vpop.f32.mrb[189].mxu0  ;;  %14771 = vmatprep.subr.bf16.mxu0 %v19274_v3 }
0x1624   :  { %v14772_v27 = vpack.c.bf16 %v13489_v60, %v6509_v4  ;;  %v6771_v60 = vld [vmem:[%s17930_s1 + $0x18] sm:$0xff] }
0x1625   :  { %13690 = vmatmul.mubr.msk.f32.gmra.mrb[244].mxu0 %vm785_vm1, %v5873_v56 }
0x1626   :  { %v13492_v59 = vpop.f32.mrb[190].mxu0  ;;  %14773 = vmatpush3.bf16.msra.mxu0 %v14772_v27  ;;  %13733 = vmatprep.mubr.msk.f32.mxu0 %vm15449_vm3, %v19275_v22 }
0x1627   :  { %v6519_v51 = vpop.f32.mrb[191].mxu0  ;;  %14774 = vmatprep.subr.bf16.mxu0 %v19274_v3 }
0x1628   :  { %v14775_v44 = vpack.c.bf16 %v13492_v59, %v6519_v51 }
0x162a   :  { %v13495_v8 = vpop.f32.mrb[192].mxu0  ;;  %14776 = vmatpush3.bf16.msra.mxu0 %v14775_v44 }
0x162b   :  { %v6529_v31 = vpop.f32.mrb[193].mxu0  ;;  %14793 = vmatprep.subr.bf16.mxu0 %v19274_v3 }
0x162c   :  { %v14794_v20 = vpack.c.bf16 %v13495_v8, %v6529_v31 }
0x162d   :  { %13734 = vmatmul.mubr.msk.f32.vlgmr.msra.gmra.mrb[246].mxu0 %vm785_vm1, %v17722_v36 }
0x162e   :  { %v13498_v34 = vpop.f32.mrb[194].mxu0  ;;  %14795 = vmatpush3.bf16.msra.mxu0 %v14794_v20  ;;  %13736 = vmatprep.mubr.msk.f32.mxu0 %vm15449_vm3, %v19275_v22 }
0x162f   :  { %v6539_v25 = vpop.f32.mrb[195].mxu0  ;;  %14796 = vmatprep.subr.bf16.mxu0 %v19274_v3 }
0x1630   :  { %v14797_v26 = vpack.c.bf16 %v13498_v34, %v6539_v25 }
0x1631   :  { %13737 = vmatmul.mubr.msk.f32.gmra.mrb[248].mxu0 %vm785_vm1, %v17728_v5 }
0x1632   :  { %v13501_v28 = vpop.f32.mrb[196].mxu0  ;;  %14798 = vmatpush3.bf16.msra.mxu0 %v14797_v26  ;;  %13739 = vmatprep.mubr.msk.f32.mxu0 %vm15449_vm3, %v19275_v22 }
0x1633   :  { %v6549_v48 = vpop.f32.mrb[197].mxu0  ;;  %14799 = vmatprep.subr.bf16.mxu0 %v19274_v3 }
0x1634   :  { %v14800_v37 = vpack.c.bf16 %v13501_v28, %v6549_v48  ;;  %v6769_v28 = vld [vmem:[%s17930_s1 + $0x8] sm:$0xff] }
0x1635   :  { %13740 = vmatmul.mubr.msk.f32.gmra.mrb[250].mxu0 %vm785_vm1, %v17734_v23 }
0x1636   :  { %v13504_v36 = vpop.f32.mrb[198].mxu0  ;;  %14801 = vmatpush3.bf16.msra.mxu0 %v14800_v37  ;;  %13783 = vmatprep.mubr.msk.f32.mxu0 %vm15449_vm3, %v19275_v22 }
0x1637   :  { %v6559_v61 = vpop.f32.mrb[199].mxu0  ;;  %14802 = vmatprep.subr.bf16.mxu0 %v19274_v3 }
0x1638   :  { %v14803_v5 = vpack.c.bf16 %v13504_v36, %v6559_v61  ;;  %v6768_v36 = vld [vmem:[%s17930_s1] sm:$0xff] }
0x1639   :  { %13571 = vmatprep.mubr.msk.f32.mxu1 %vm785_vm1, %v6768_v36  ;;  %v6775_v36 = vld [vmem:[%s17930_s1 + $0x38] sm:$0xff] }
0x163a   :  { %14804 = vmatpush3.bf16.msra.mxu0 %v14803_v5  ;;  %v17794_v56 = vpop.f32.mrb[200].mxu0  ;;  %13572 = vmatmul.mubr.msk.f32.vlgmr.msra.gmra.mrb[194].mxu1 %vm785_vm1, %v6769_v28  ;;  %v6776_v28 = vld [vmem:[%s17930_s1 + $0x40] sm:$0xff] }
0x163b   :  { %v17796_v50 = vpop.f32.mrb[201].mxu0  ;;  %14805 = vmatprep.subr.bf16.mxu0 %v19274_v3  ;;  %13574 = vmatprep.mubr.msk.f32.mxu1 %vm785_vm1, %v6770_v12  ;;  %v6777_v12 = vld [vmem:[%s17930_s1 + $0x48] sm:$0xff] }
0x163d   :  { %13784 = vmatmul.mubr.msk.f32.vlgmr.msra.gmra.mrb[252].mxu0 %vm785_vm1, %v17720_v13 }
0x163e   :  { %13786 = vmatprep.mubr.msk.f32.mxu0 %vm15449_vm3, %v19275_v22  ;;  %v17805_v23 = vpop.f32.mrb[202].mxu0  ;;  %13575 = vmatmul.mubr.msk.f32.gmra.mrb[196].mxu1 %vm785_vm1, %v6771_v60  ;;  %v6780_v60 = vld [vmem:[%s17930_s1 + $0x60] sm:$0xff] }
0x163f   :  { %v17807_v14 = vpop.f32.mrb[203].mxu0  ;;  %13577 = vmatprep.mubr.msk.f32.mxu1 %vm785_vm1, %v6772_v10  ;;  %v6779_v10 = vld [vmem:[%s17930_s1 + $0x58] sm:$0xff] }
0x1641   :  { %13787 = vmatmul.mubr.msk.f32.gmra.mrb[254].mxu0 %vm785_vm1, %v17726_v2 }
0x1642   :  { %13789 = vmatprep.mubr.msk.f32.mxu0 %vm15449_vm3, %v19275_v22  ;;  %v17815_v42 = vpop.f32.mrb[204].mxu0  ;;  %13578 = vmatmul.mubr.msk.f32.gmra.mrb[198].mxu1 %vm785_vm1, %v6773_v38  ;;  %v6782_v38 = vld [vmem:[%s17930_s1 + $0x70] sm:$0xff] }
0x1643   :  { %v17817_v35 = vpop.f32.mrb[205].mxu0  ;;  %13580 = vmatprep.mubr.msk.f32.mxu1 %vm785_vm1, %v6774_v58  ;;  %v6781_v58 = vld [vmem:[%s17930_s1 + $0x68] sm:$0xff] }
0x1645   :  { %13790 = vmatmul.mubr.msk.f32.gmra.mrb[0].mxu0 %vm785_vm1, %v17732_v0 }
0x1646   :  { %v17823_v45 = vpop.f32.mrb[206].mxu0  ;;  %13808 = vmatprep.mubr.msk.f32.mxu0 %vm15449_vm3, %v19275_v22  ;;  %13581 = vmatmul.mubr.msk.f32.gmra.mrb[200].mxu1 %vm785_vm1, %v6775_v36  ;;  %v6783_v36 = vld [vmem:[%s17930_s1 + $0x78] sm:$0xff] }
0x1647   :  { %v17827_v15 = vpop.f32.mrb[207].mxu0  ;;  %13583 = vmatprep.mubr.msk.f32.mxu1 %vm785_vm1, %v6776_v28 }
0x164a   :  { %v17831_v33 = vpop.f32.mrb[208].mxu0  ;;  %13584 = vmatmul.mubr.msk.f32.gmra.mrb[202].mxu1 %vm785_vm1, %v6777_v12 }
0x164b   :  { %v17833_v19 = vpop.f32.mrb[209].mxu0  ;;  %13586 = vmatprep.mubr.msk.f32.mxu1 %vm785_vm1, %v6778_v40 }
0x164e   :  { %v17837_v39 = vpop.f32.mrb[210].mxu0  ;;  %13587 = vmatmul.mubr.msk.f32.gmra.mrb[204].mxu1 %vm785_vm1, %v6779_v10 }
0x164f   :  { %v17839_v0 = vpop.f32.mrb[211].mxu0  ;;  %13589 = vmatprep.mubr.msk.f32.mxu1 %vm785_vm1, %v6780_v60 }
0x1652   :  { %v17843_v21 = vpop.f32.mrb[212].mxu0  ;;  %13590 = vmatmul.mubr.msk.f32.gmra.mrb[206].mxu1 %vm785_vm1, %v6781_v58 }
0x1653   :  { %19400 = vst [vmem:[#allocation36_spill] sm:$0xff] %v17843_v21  ;;  %v17845_v55 = vpop.f32.mrb[213].mxu0  ;;  %13592 = vmatprep.mubr.msk.f32.mxu1 %vm785_vm1, %v6782_v38 }
0x1654   :  { %19401 = vst [vmem:[#allocation37_spill] sm:$0xff] %v17845_v55 }
0x1656   :  { %v17849_v17 = vpop.f32.mrb[214].mxu0  ;;  %13593 = vmatmul.mubr.msk.f32.gmra.mrb[208].mxu1 %vm785_vm1, %v6783_v36 }
0x1657   :  { %19402 = vst [vmem:[#allocation38_spill] sm:$0xff] %v17849_v17  ;;  %v17851_v7 = vpop.f32.mrb[215].mxu0 }
0x1658   :  { %19403 = vst [vmem:[#allocation27_spill] sm:$0xff] %v17851_v7 }
0x165a   :  { %v17855_v4 = vpop.f32.mrb[216].mxu0 }
0x165b   :  { %v17857_v27 = vpop.f32.mrb[217].mxu0 }
0x165e   :  { %v17861_v51 = vpop.f32.mrb[218].mxu0 }
0x165f   :  { %v17863_v44 = vpop.f32.mrb[219].mxu0 }
0x1662   :  { %v17867_v31 = vpop.f32.mrb[220].mxu0 }
0x1663   :  { %v17869_v20 = vpop.f32.mrb[221].mxu0 }
0x1666   :  { %v17873_v25 = vpop.f32.mrb[222].mxu0 }
0x1667   :  { %v17875_v26 = vpop.f32.mrb[223].mxu0 }
0x166a   :  { %v17879_v48 = vpop.f32.mrb[224].mxu0 }
0x166b   :  { %19404 = vst [vmem:[#allocation28_spill] sm:$0xff] %v17879_v48  ;;  %v17881_v37 = vpop.f32.mrb[225].mxu0 }
0x166c   :  { %19405 = vst [vmem:[#allocation39_spill] sm:$0xff] %v17881_v37 }
0x166e   :  { %v17885_v61 = vpop.f32.mrb[226].mxu0 }
0x166f   :  { %19406 = vst [vmem:[#allocation40_spill] sm:$0xff] %v17885_v61  ;;  %v17887_v5 = vpop.f32.mrb[227].mxu0 }
0x1670   :  { %19407 = vst [vmem:[#allocation29_spill] sm:$0xff] %v17887_v5  ;;  %v6824_v5 = vld [vmem:[%s17930_s1 + $0x1c0] sm:$0xff] }
0x1672   :  { %v17891_v57 = vpop.f32.mrb[228].mxu0 }
0x1673   :  { %19408 = vst [vmem:[#allocation30_spill] sm:$0xff] %v17891_v57  ;;  %v17893_v9 = vpop.f32.mrb[229].mxu0 }
0x1674   :  { %19409 = vst [vmem:[#allocation41_spill] sm:$0xff] %v17893_v9 }
0x1676   :  { %v17897_v34 = vpop.f32.mrb[230].mxu0 }
0x1677   :  { %19410 = vst [vmem:[#allocation42_spill] sm:$0xff] %v17897_v34  ;;  %v17899_v16 = vpop.f32.mrb[231].mxu0 }
0x1678   :  { %19411 = vst [vmem:[#allocation18_spill] sm:$0xff] %v17899_v16 }
0x167a   :  { %v17903_v8 = vpop.f32.mrb[232].mxu0 }
0x167b   :  { %19412 = vst [vmem:[#allocation31_spill] sm:$0xff] %v17903_v8  ;;  %v17905_v59 = vpop.f32.mrb[233].mxu0 }
0x167c   :  { %19413 = vst [vmem:[#allocation32_spill] sm:$0xff] %v17905_v59 }
0x167e   :  { %v17909_v2 = vpop.f32.mrb[234].mxu0 }
0x167f   :  { %19414 = vst [vmem:[#allocation20_spill] sm:$0xff] %v17909_v2  ;;  %v17911_v13 = vpop.f32.mrb[235].mxu0 }
0x1680   :  { %19415 = vst [vmem:[#allocation33_spill] sm:$0xff] %v17911_v13 }
0x1682   :  { %v17915_v30 = vpop.f32.mrb[236].mxu0 }
0x1683   :  { %19416 = vst [vmem:[#allocation34_spill] sm:$0xff] %v17915_v30  ;;  %v17917_v32 = vpop.f32.mrb[237].mxu0 }
0x1684   :  { %19417 = vst [vmem:[#allocation17_spill] sm:$0xff] %v17917_v32 }
0x1686   :  { %v17921_v18 = vpop.f32.mrb[238].mxu0 }
0x1687   :  { %19418 = vst [vmem:[#allocation22_spill] sm:$0xff] %v17921_v18  ;;  %v17923_v47 = vpop.f32.mrb[239].mxu0  ;;  %v6820_v18 = vld [vmem:[%s17930_s1 + $0x1a0] sm:$0xff] }
0x1688   :  { %19419 = vst [vmem:[#allocation19_spill] sm:$0xff] %v17923_v47  ;;  %v6786_v47 = vld [vmem:[%s17930_s1 + $0x90] sm:$0xff] }
0x16f0   :  { %v7484_v28 = vpop.f32.mrb[240].mxu0 }
0x16f1   :  { %v7498_v62 = vmul.f32 0.125, %v7484_v28  ;;  %v13685_v12 = vpop.f32.mrb[241].mxu0 }
0x16f3   :  { %v17966_v40 = vsel %vm1390_vm4, %v7498_v62, -1e+30 }
0x16f4   :  { %v7489_v16 = vpop.f32.mrb[242].mxu0  ;;  %v7504_v10 = vsel %vm3233_vm5, %v17966_v40, -inf }
0x16f5   :  { %v7499_v60 = vmul.f32 0.125, %v7489_v16  ;;  %7505 = vmax.xlane.f32.xlu0 %v7504_v10  ;;  %v13688_v34 = vpop.f32.mrb[243].mxu0 }
0x16f7   :  { %v17972_v58 = vsel %vm1390_vm4, %v7499_v60, -1e+30 }
0x16f8   :  { %v7494_v38 = vpop.f32.mrb[244].mxu0  ;;  %v7507_v36 = vsel %vm3233_vm5, %v17972_v58, -inf }
0x16f9   :  { %v7500_v28 = vmul.f32 0.125, %v7494_v38  ;;  %7508 = vmax.xlane.f32.xlu1 %v7507_v36  ;;  %v13691_v12 = vpop.f32.mrb[245].mxu0 }
0x16fb   :  { %v17978_v62 = vsel %vm1390_vm4, %v7500_v28, -1e+30 }
0x16fc   :  { %v7510_v16 = vsel %vm3233_vm5, %v17978_v62, -inf }
0x16fd   :  { %7511 = vmax.xlane.f32.xlu0 %v7510_v16 }
0x1700   :  { %v7725_v34 = vpop.f32.mrb[246].mxu0 }
0x1701   :  { %v7739_v10 = vmul.f32 0.125, %v7725_v34  ;;  %v13735_v1 = vpop.f32.mrb[247].mxu0 }
0x1703   :  { %v17984_v60 = vsel %vm1390_vm4, %v7739_v10, -1e+30 }
0x1704   :  { %v7730_v9 = vpop.f32.mrb[248].mxu0  ;;  %v7745_v38 = vsel %vm3233_vm5, %v17984_v60, -inf }
0x1705   :  { %v7740_v36 = vmul.f32 0.125, %v7730_v9  ;;  %7746 = vmax.xlane.f32.xlu1 %v7745_v38  ;;  %v13738_v12 = vpop.f32.mrb[249].mxu0 }
0x1707   :  { %v17990_v28 = vsel %vm1390_vm4, %v7740_v36, -1e+30 }
0x1708   :  { %v7735_v16 = vpop.f32.mrb[250].mxu0  ;;  %v7748_v1 = vsel %vm3233_vm5, %v17990_v28, -inf }
0x1709   :  { %v7741_v34 = vmul.f32 0.125, %v7735_v16  ;;  %7749 = vmax.xlane.f32.xlu0 %v7748_v1  ;;  %v13741_v10 = vpop.f32.mrb[251].mxu0 }
0x170b   :  { %v17996_v9 = vsel %vm1390_vm4, %v7741_v34, -1e+30  ;;  %v6784_v34 = vld [vmem:[%s17930_s1 + $0x80] sm:$0xff] }
0x170c   :  { %v7751_v38 = vsel %vm3233_vm5, %v17996_v9, -inf  ;;  %13595 = vmatprep.mubr.msk.f32.mxu1 %vm785_vm1, %v6784_v34  ;;  %v6791_v34 = vld [vmem:[%s17930_s1 + $0xb8] sm:$0xff] }
0x170d   :  { %7752 = vmax.xlane.f32.xlu1 %v7751_v38  ;;  %13596 = vmatmul.mubr.msk.f32.gmra.mrb[210].mxu1 %vm785_vm1, %v6785_v43  ;;  %v6787_v38 = vld [vmem:[%s17930_s1 + $0x98] sm:$0xff]  ;;  %v6792_v43 = vld [vmem:[%s17930_s1 + $0xc0] sm:$0xff] }
0x170e   :  { %13598 = vmatprep.mubr.msk.f32.mxu1 %vm785_vm1, %v6786_v47  ;;  %v6793_v47 = vld [vmem:[%s17930_s1 + $0xc8] sm:$0xff] }
0x1710   :  { %v18000_v36 = vpop.f32.mrb[252].mxu0 }
0x1711   :  { %v13785_v12 = vpop.f32.mrb[253].mxu0  ;;  %13599 = vmatmul.mubr.msk.f32.gmra.mrb[212].mxu1 %vm785_vm1, %v6787_v38  ;;  %v6794_v38 = vld [vmem:[%s17930_s1 + $0xd0] sm:$0xff] }
0x1712   :  { %v6788_v12 = vld [vmem:[%s17930_s1 + $0xa0] sm:$0xff] }
0x1713   :  { %13601 = vmatprep.mubr.msk.f32.mxu1 %vm785_vm1, %v6788_v12  ;;  %v6795_v12 = vld [vmem:[%s17930_s1 + $0xd8] sm:$0xff] }
0x1714   :  { %v18002_v57 = vpop.f32.mrb[254].mxu0 }
0x1715   :  { %v13788_v16 = vpop.f32.mrb[255].mxu0 }
0x1716   :  { %v6789_v16 = vld [vmem:[%s17930_s1 + $0xa8] sm:$0xff] }
0x1717   :  { %13602 = vmatmul.mubr.msk.f32.gmra.mrb[214].mxu1 %vm785_vm1, %v6789_v16  ;;  %v6796_v16 = vld [vmem:[%s17930_s1 + $0xe0] sm:$0xff] }
0x1718   :  { %v18004_v1 = vpop.f32.mrb[0].mxu0 }
0x1719   :  { %v13791_v10 = vpop.f32.mrb[1].mxu0 }
0x171a   :  { %v6790_v10 = vld [vmem:[%s17930_s1 + $0xb0] sm:$0xff] }
0x171b   :  { %13604 = vmatprep.mubr.msk.f32.mxu1 %vm785_vm1, %v6790_v10  ;;  %v6797_v10 = vld [vmem:[%s17930_s1 + $0xe8] sm:$0xff] }
0x171c   :  { %13605 = vmatmul.mubr.msk.f32.gmra.mrb[216].mxu1 %vm785_vm1, %v6791_v34  ;;  %v6798_v34 = vld [vmem:[%s17930_s1 + $0xf0] sm:$0xff] }
0x171d   :  { %13607 = vmatprep.mubr.msk.f32.mxu1 %vm785_vm1, %v6792_v43  ;;  %v6799_v43 = vld [vmem:[%s17930_s1 + $0xf8] sm:$0xff] }
0x1720   :  { %13608 = vmatmul.mubr.msk.f32.gmra.mrb[218].mxu1 %vm785_vm1, %v6793_v47  ;;  %v6800_v47 = vld [vmem:[%s17930_s1 + $0x100] sm:$0xff] }
0x1721   :  { %13610 = vmatprep.mubr.msk.f32.mxu1 %vm785_vm1, %v6794_v38  ;;  %v6801_v38 = vld [vmem:[%s17930_s1 + $0x108] sm:$0xff] }
0x1724   :  { %13611 = vmatmul.mubr.msk.f32.gmra.mrb[220].mxu1 %vm785_vm1, %v6795_v12  ;;  %v6802_v12 = vld [vmem:[%s17930_s1 + $0x110] sm:$0xff] }
0x1725   :  { %13613 = vmatprep.mubr.msk.f32.mxu1 %vm785_vm1, %v6796_v16  ;;  %v6803_v16 = vld [vmem:[%s17930_s1 + $0x118] sm:$0xff] }
0x1728   :  { %13614 = vmatmul.mubr.msk.f32.gmra.mrb[222].mxu1 %vm785_vm1, %v6797_v10  ;;  %v6804_v10 = vld [vmem:[%s17930_s1 + $0x120] sm:$0xff] }
0x1729   :  { %13616 = vmatprep.mubr.msk.f32.mxu1 %vm785_vm1, %v6798_v34  ;;  %v6805_v34 = vld [vmem:[%s17930_s1 + $0x128] sm:$0xff] }
0x172c   :  { %13617 = vmatmul.mubr.msk.f32.gmra.mrb[224].mxu1 %vm785_vm1, %v6799_v43  ;;  %v6806_v43 = vld [vmem:[%s17930_s1 + $0x130] sm:$0xff] }
0x172d   :  { %13619 = vmatprep.mubr.msk.f32.mxu1 %vm785_vm1, %v6800_v47  ;;  %v6807_v47 = vld [vmem:[%s17930_s1 + $0x138] sm:$0xff] }
0x1730   :  { %13620 = vmatmul.mubr.msk.f32.gmra.mrb[226].mxu1 %vm785_vm1, %v6801_v38  ;;  %v6808_v38 = vld [vmem:[%s17930_s1 + $0x140] sm:$0xff] }
0x1731   :  { %13622 = vmatprep.mubr.msk.f32.mxu1 %vm785_vm1, %v6802_v12  ;;  %v6809_v12 = vld [vmem:[%s17930_s1 + $0x148] sm:$0xff] }
0x1734   :  { %13623 = vmatmul.mubr.msk.f32.gmra.mrb[228].mxu1 %vm785_vm1, %v6803_v16  ;;  %v6810_v16 = vld [vmem:[%s17930_s1 + $0x150] sm:$0xff] }
0x1735   :  { %13625 = vmatprep.mubr.msk.f32.mxu1 %vm785_vm1, %v6804_v10  ;;  %v6811_v10 = vld [vmem:[%s17930_s1 + $0x158] sm:$0xff] }
0x1738   :  { %13626 = vmatmul.mubr.msk.f32.gmra.mrb[230].mxu1 %vm785_vm1, %v6805_v34  ;;  %v6812_v34 = vld [vmem:[%s17930_s1 + $0x160] sm:$0xff] }
0x1739   :  { %13628 = vmatprep.mubr.msk.f32.mxu1 %vm785_vm1, %v6806_v43  ;;  %v6813_v43 = vld [vmem:[%s17930_s1 + $0x168] sm:$0xff] }
0x173c   :  { %13629 = vmatmul.mubr.msk.f32.gmra.mrb[232].mxu1 %vm785_vm1, %v6807_v47  ;;  %v6814_v47 = vld [vmem:[%s17930_s1 + $0x170] sm:$0xff] }
0x173d   :  { %13631 = vmatprep.mubr.msk.f32.mxu1 %vm785_vm1, %v6808_v38  ;;  %v6815_v38 = vld [vmem:[%s17930_s1 + $0x178] sm:$0xff] }
0x1740   :  { %13632 = vmatmul.mubr.msk.f32.gmra.mrb[234].mxu1 %vm785_vm1, %v6809_v12  ;;  %v6816_v12 = vld [vmem:[%s17930_s1 + $0x180] sm:$0xff] }
0x1741   :  { %13634 = vmatprep.mubr.msk.f32.mxu1 %vm785_vm1, %v6810_v16  ;;  %v6817_v16 = vld [vmem:[%s17930_s1 + $0x188] sm:$0xff] }
0x1744   :  { %13635 = vmatmul.mubr.msk.f32.gmra.mrb[236].mxu1 %vm785_vm1, %v6811_v10  ;;  %v6818_v10 = vld [vmem:[%s17930_s1 + $0x190] sm:$0xff] }
0x1745   :  { %13637 = vmatprep.mubr.msk.f32.mxu1 %vm785_vm1, %v6812_v34  ;;  %v6819_v34 = vld [vmem:[%s17930_s1 + $0x198] sm:$0xff] }
0x1748   :  { %13638 = vmatmul.mubr.msk.f32.gmra.mrb[238].mxu1 %vm785_vm1, %v6813_v43  ;;  %v6821_v43 = vld [vmem:[%s17930_s1 + $0x1a8] sm:$0xff] }
0x1749   :  { %13640 = vmatprep.mubr.msk.f32.mxu1 %vm785_vm1, %v6814_v47  ;;  %v6822_v47 = vld [vmem:[%s17930_s1 + $0x1b0] sm:$0xff] }
0x174c   :  { %13641 = vmatmul.mubr.msk.f32.gmra.mrb[240].mxu1 %vm785_vm1, %v6815_v38  ;;  %v6823_v38 = vld [vmem:[%s17930_s1 + $0x1b8] sm:$0xff] }
0x174d   :  { %13643 = vmatprep.mubr.msk.f32.mxu1 %vm785_vm1, %v6816_v12  ;;  %v13573_v12 = vpop.f32.mrb[194].mxu1 }
0x174e   :  { %v7090_v61 = vpop.f32.mrb[195].mxu1 }
0x1750   :  { %13644 = vmatmul.mubr.msk.f32.gmra.mrb[242].mxu1 %vm785_vm1, %v6817_v16  ;;  %v14750_v16 = vpack.c.bf16 %v13573_v12, %v7090_v61 }
0x1751   :  { %13646 = vmatprep.mubr.msk.f32.mxu1 %vm785_vm1, %v6818_v10  ;;  %v6825_v10 = vld [vmem:[%s17930_s1 + $0x1c8] sm:$0xff] }
0x1752   :  { %14752 = vmatpush3.bf16.xpose.msk.msra.mxu1 %vm16550_vm6, %v14750_v16 }
0x1753   :  { %14753 = vmatprep.subr.bf16.mxu1 %v19274_v3 }
0x1754   :  { %13647 = vmatmul.mubr.msk.f32.gmra.mrb[244].mxu1 %vm785_vm1, %v6819_v34 }
0x1755   :  { %13649 = vmatprep.mubr.msk.f32.mxu1 %vm785_vm1, %v6820_v18  ;;  %v13576_v18 = vpop.f32.mrb[196].mxu1 }
0x1756   :  { %v7100_v34 = vpop.f32.mrb[197].mxu1 }
0x1758   :  { %13650 = vmatmul.mubr.msk.f32.gmra.mrb[246].mxu1 %vm785_vm1, %v6821_v43  ;;  %v14754_v43 = vpack.c.bf16 %v13576_v18, %v7100_v34 }
0x1759   :  { %13652 = vmatprep.mubr.msk.f32.mxu1 %vm785_vm1, %v6822_v47  ;;  %v13579_v47 = vpop.f32.mrb[198].mxu1 }
0x175a   :  { %v7110_v32 = vpop.f32.mrb[199].mxu1  ;;  %14756 = vmatpush3.bf16.xpose.msk.msra.mxu1 %vm16550_vm6, %v14754_v43 }
0x175b   :  { %v14758_v30 = vpack.c.bf16 %v13579_v47, %v7110_v32  ;;  %14757 = vmatprep.subr.bf16.mxu1 %v19274_v3 }
0x175c   :  { %13653 = vmatmul.mubr.msk.f32.gmra.mrb[248].mxu1 %vm785_vm1, %v6823_v38 }
0x175d   :  { %13655 = vmatprep.mubr.msk.f32.mxu1 %vm785_vm1, %v6824_v5 }
0x1760   :  { %13656 = vmatmul.mubr.msk.f32.gmra.mrb[250].mxu1 %vm785_vm1, %v6825_v10 }
0x1762   :  { %14760 = vmatpush3.bf16.xpose.msk.msra.mxu1 %vm16550_vm6, %v14758_v30 }
0x1763   :  { %14761 = vmatprep.subr.bf16.mxu1 %v19274_v3 }
0x1782   :  { %v7506_v37 = vpop.xlane.xlu0 %7505 }
0x1783   :  { %v7513_v61 = vsub.f32 %v17966_v40, %v7506_v37 }
0x1785   :  { %v7516_v5 = vmul.f32 1.442695, %v7513_v61 }
0x1786   :  { %v7509_v38 = vpop.xlane.xlu1 %7508 }
0x1787   :  { %15315 = vpow2.f32 %v7516_v5  ;;  %v7514_v12 = vsub.f32 %v17972_v58, %v7509_v38 }
0x1789   :  { %v7518_v16 = vmul.f32 1.442695, %v7514_v12 }
0x178a   :  { %v7512_v18 = vpop.xlane.xlu0 %7511 }
0x178b   :  { %15317 = vpow2.f32 %v7518_v16  ;;  %v7515_v10 = vsub.f32 %v17978_v62, %v7512_v18 }
0x178d   :  { %v7520_v32 = vmul.f32 1.442695, %v7515_v10  ;;  %v6826_v10 = vld [vmem:[%s17930_s1 + $0x1d0] sm:$0xff] }
0x178e   :  { %13658 = vmatprep.mubr.msk.f32.mxu1 %vm785_vm1, %v6826_v10 }
0x178f   :  { %15319 = vpow2.f32 %v7520_v32 }
0x1791   :  { %v18102_v37 = vpop.eup %15315 }
0x1792   :  { %v7747_v40 = vpop.xlane.xlu1 %7746  ;;  %v7522_v34 = vsel %vm3233_vm5, %v18102_v37, 0.0 }
0x1793   :  { %v7754_v58 = vsub.f32 %v17984_v60, %v7747_v40  ;;  %7523 = vadd.xlane.f32.xlu0 %v7522_v34  ;;  %v13582_v40 = vpop.f32.mrb[200].mxu1 }
0x1795   :  { %v18107_v43 = vpop.eup %15317  ;;  %v7757_v62 = vmul.f32 1.442695, %v7754_v58  ;;  %v7120_v58 = vpop.f32.mrb[201].mxu1 }
0x1796   :  { %v7750_v47 = vpop.xlane.xlu0 %7749  ;;  %v7525_v30 = vsel %vm3233_vm5, %v18107_v43, 0.0 }
0x1797   :  { %15321 = vpow2.f32 %v7757_v62  ;;  %v7755_v61 = vsub.f32 %v17990_v28, %v7750_v47  ;;  %7526 = vadd.xlane.f32.xlu1 %v7525_v30  ;;  %v6827_v28 = vld [vmem:[%s17930_s1 + $0x1d8] sm:$0xff]  ;;  %v6828_v62 = vld [vmem:[%s17930_s1 + $0x1e0] sm:$0xff]  ;;  %v6829_v47 = vld [vmem:[%s17930_s1 + $0x1e8] sm:$0xff] }
0x1798   :  { %13659 = vmatmul.mubr.msk.f32.gmra.mrb[252].mxu1 %vm785_vm1, %v6827_v28 }
0x1799   :  { %v18112_v5 = vpop.eup %15319  ;;  %v7759_v38 = vmul.f32 1.442695, %v7755_v61  ;;  %13661 = vmatprep.mubr.msk.f32.mxu1 %vm785_vm1, %v6828_v62 }
0x179a   :  { %v7753_v12 = vpop.xlane.xlu1 %7752  ;;  %v7528_v60 = vsel %vm3233_vm5, %v18112_v5, 0.0 }
0x179b   :  { %15323 = vpow2.f32 %v7759_v38  ;;  %v7756_v16 = vsub.f32 %v17996_v9, %v7753_v12  ;;  %7529 = vadd.xlane.f32.xlu0 %v7528_v60  ;;  %v14762_v9 = vpack.c.bf16 %v13582_v40, %v7120_v58  ;;  %v6830_v38 = vld [vmem:[%s17930_s1 + $0x1f0] sm:$0xff]  ;;  %v6831_v12 = vld [vmem:[%s17930_s1 + $0x1f8] sm:$0xff]  ;;  %s11136_s1 = sld [smem:[%s19143_s0 + %s15478_s28]]  }
0x179c   :  { %13662 = vmatmul.mubr.msk.f32.gmra.mrb[254].mxu1 %vm785_vm1, %v6829_v47 }
0x179d   :  { %v7761_v18 = vmul.f32 1.442695, %v7756_v16  ;;  %14764 = vmatpush3.bf16.xpose.msk.msra.mxu1 %vm16550_vm6, %v14762_v9  ;;  %13664 = vmatprep.mubr.msk.f32.mxu1 %vm785_vm1, %v6830_v38  ;;  %v18141_v16 = vpop.f32.mrb[202].mxu1 }
0x179e   :  { %14777 = vmatprep.subr.bf16.mxu1 %v19274_v3  ;;  %v18146_v10 = vpop.f32.mrb[203].mxu1 }
0x179f   :  { %15325 = vpow2.f32 %v7761_v18  ;;  %v18152_v40 = vpop.f32.mrb[204].mxu1 }
0x17a0   :  { %13665 = vmatmul.mubr.msk.f32.gmra.mrb[0].mxu1 %vm785_vm1, %v6831_v12 }
0x17a1   :  { %v18120_v32 = vpop.eup %15321  ;;  %13708 = vmatprep.mubr.msk.f32.mxu1 %vm15449_vm3, %v19275_v22 }
0x17a2   :  { %v7763_v34 = vsel %vm3233_vm5, %v18120_v32, 0.0 }
0x17a3   :  { %7764 = vadd.xlane.f32.xlu1 %v7763_v34  ;;  %v18154_v34 = vpop.f32.mrb[205].mxu1 }
0x17a4   :  { %v18158_v9 = vpop.f32.mrb[206].mxu1 }
0x17a5   :  { %v18128_v30 = vpop.eup %15323  ;;  %v18160_v62 = vpop.f32.mrb[207].mxu1 }
0x17a6   :  { %v7766_v61 = vsel %vm3233_vm5, %v18128_v30, 0.0 }
0x17a7   :  { %7767 = vadd.xlane.f32.xlu0 %v7766_v61  ;;  %v18164_v61 = vpop.f32.mrb[208].mxu1 }
0x17a8   :  { %v18166_v38 = vpop.f32.mrb[209].mxu1 }
0x17a9   :  { %v18139_v60 = vpop.eup %15325 }
0x17aa   :  { %v7769_v18 = vsel %vm3233_vm5, %v18139_v60, 0.0 }
0x17ab   :  { %7770 = vadd.xlane.f32.xlu1 %v7769_v18 }
0x17e0   :  { %v13597_v18 = vpop.f32.mrb[210].mxu1 }
0x17e1   :  { %v7170_v28 = vpop.f32.mrb[211].mxu1 }
0x17e2   :  { %v14806_v48 = vpack.c.bf16 %v13597_v18, %v7170_v28 }
0x17e4   :  { %v13600_v13 = vpop.f32.mrb[212].mxu1  ;;  %14808 = vmatpush3.bf16.xpose.msk.msra.mxu0 %vm16550_vm6, %v14806_v48 }
0x17e5   :  { %v7180_v58 = vpop.f32.mrb[213].mxu1  ;;  %14809 = vmatprep.subr.bf16.mxu0 %v19274_v3 }
0x17e6   :  { %v14810_v2 = vpack.c.bf16 %v13600_v13, %v7180_v58 }
0x17ea   :  { %v13603_v59 = vpop.f32.mrb[214].mxu1 }
0x17eb   :  { %v7190_v47 = vpop.f32.mrb[215].mxu1 }
0x17ec   :  { %v14814_v8 = vpack.c.bf16 %v13603_v59, %v7190_v47  ;;  %14812 = vmatpush3.bf16.xpose.msk.msra.mxu0 %vm16550_vm6, %v14810_v2 }
0x17ed   :  { %14813 = vmatprep.subr.bf16.mxu0 %v19274_v3 }
0x17ef   :  { %v13606_v46 = vpop.f32.mrb[216].mxu1 }
0x17f0   :  { %v7200_v52 = vpop.f32.mrb[217].mxu1 }
0x17f1   :  { %v14818_v12 = vpack.c.bf16 %v13606_v46, %v7200_v52 }
0x17f3   :  { %v18176_v28 = vpop.f32.mrb[218].mxu1 }
0x17f4   :  { %v18178_v18 = vpop.f32.mrb[219].mxu1  ;;  %14816 = vmatpush3.bf16.xpose.msk.msra.mxu0 %vm16550_vm6, %v14814_v8 }
0x17f5   :  { %14817 = vmatprep.subr.bf16.mxu0 %v19274_v3 }
0x17f7   :  { %v18182_v53 = vpop.f32.mrb[220].mxu1 }
0x17f8   :  { %v18186_v13 = vpop.f32.mrb[221].mxu1 }
0x17fb   :  { %v18191_v52 = vpop.f32.mrb[222].mxu1 }
0x17fc   :  { %v18193_v46 = vpop.f32.mrb[223].mxu1  ;;  %14820 = vmatpush3.bf16.xpose.msk.msra.mxu0 %vm16550_vm6, %v14818_v12 }
0x17fd   :  { %14849 = vmatprep.subr.bf16.mxu0 %v19274_v3 }
0x17ff   :  { %v18197_v58 = vpop.f32.mrb[224].mxu1 }
0x1800   :  { %v18201_v8 = vpop.f32.mrb[225].mxu1 }
0x1803   :  { %v18206_v48 = vpop.f32.mrb[226].mxu1 }
0x1804   :  { %v18208_v24 = vpop.f32.mrb[227].mxu1 }
0x1805   :  { %19420 = vst [vmem:[#allocation48_spill] sm:$0xff] %v18208_v24 }
0x1807   :  { %v18212_v17 = vpop.f32.mrb[228].mxu1 }
0x1808   :  { %v18214_v12 = vpop.f32.mrb[229].mxu1 }
0x1809   :  { %19421 = vst [vmem:[#allocation49_spill] sm:$0xff] %v18214_v12 }
0x180b   :  { %v18218_v47 = vpop.f32.mrb[230].mxu1 }
0x180c   :  { %v18220_v21 = vpop.f32.mrb[231].mxu1 }
0x180d   :  { %19422 = vst [vmem:[#allocation21_spill] sm:$0xff] %v18220_v21 }
0x180f   :  { %v18225_v24 = vpop.f32.mrb[232].mxu1 }
0x1810   :  { %19423 = vst [vmem:[#allocation53_spill] sm:$0xff] %v18225_v24 }
0x1820   :  { %v7524_v2 = vpop.xlane.xlu0 %7523 }
0x1821   :  { %15327 = vrcp.f32 %v7524_v2 }
0x1824   :  { %v7527_v7 = vpop.xlane.xlu1 %7526 }
0x1825   :  { %15329 = vrcp.f32 %v7527_v7  ;;  %v18227_v7 = vpop.f32.mrb[233].mxu1 }
0x1826   :  { %19424 = vst [vmem:[#allocation54_spill] sm:$0xff] %v18227_v7 }
0x1828   :  { %v7530_v55 = vpop.xlane.xlu0 %7529 }
0x1829   :  { %15331 = vrcp.f32 %v7530_v55  ;;  %v19425_v55 = vpack.c.bf16 %v18141_v16, %v18146_v10 }
0x182b   :  { %v15328_v29 = vpop.eup %15327 }
0x182c   :  { %v7534_v59 = vmul.f32 %v15328_v29, %v18102_v37  ;;  %v18241_v37 = vpop.f32.mrb[234].mxu1 }
0x182e   :  { %13709 = vmatmul.mubr.msk.f32.vlgmr.msra.gmra.mrb[2].mxu1 %vm3233_vm5, %v7534_v59  ;;  %v18243_v59 = vpop.f32.mrb[235].mxu1 }
0x182f   :  { %v15330_v12 = vpop.eup %15329  ;;  %14780 = vmatpush3.bf16.xpose.msk.msra.mxu1 %vm16550_vm6, %v19425_v55  ;;  %13711 = vmatprep.mubr.msk.f32.mxu1 %vm15449_vm3, %v19275_v22  ;;  %v18251_v55 = vpop.f32.mrb[236].mxu1 }
0x1830   :  { %v7535_v29 = vmul.f32 %v15330_v12, %v18107_v43  ;;  %14781 = vmatprep.subr.bf16.mxu1 %v19274_v3  ;;  %v18253_v43 = vpop.f32.mrb[237].mxu1  ;;  %v7765_v2 = vpop.xlane.xlu1 %7764 }
0x1831   :  { %15333 = vrcp.f32 %v7765_v2 }
0x1832   :  { %13712 = vmatmul.mubr.msk.f32.gmra.mrb[4].mxu1 %vm3233_vm5, %v7535_v29  ;;  %v19426_v29 = vpack.c.bf16 %v18152_v40, %v18154_v34  ;;  %v19427_v34 = vpack.c.bf16 %v18158_v9, %v18160_v62  ;;  %v19431_v62 = vpack.c.bf16 %v18164_v61, %v18166_v38  ;;  %v19432_v38 = vpack.c.bf16 %v17794_v56, %v17796_v50 }
0x1833   :  { %v15332_v16 = vpop.eup %15331  ;;  %13714 = vmatprep.mubr.msk.f32.mxu1 %vm15449_vm3, %v19275_v22  ;;  %v19433_v56 = vpack.c.bf16 %v17805_v23, %v17807_v14  ;;  %v19435_v23 = vpack.c.bf16 %v17823_v45, %v17827_v15  ;;  %v19436_v14 = vpack.c.bf16 %v18176_v28, %v18178_v18  ;;  %v19439_v28 = vpack.c.bf16 %v18197_v58, %v18201_v8 }
0x1834   :  { %v7536_v10 = vmul.f32 %v15332_v16, %v18112_v5  ;;  %v18266_v5 = vpop.f32.mrb[238].mxu1 }
0x1835   :  { %v18268_v16 = vpop.f32.mrb[239].mxu1 }
0x1836   :  { %13715 = vmatmul.mubr.msk.f32.gmra.mrb[6].mxu1 %vm3233_vm5, %v7536_v10  ;;  %v18272_v12 = vpop.f32.mrb[240].mxu1 }
0x1837   :  { %14784 = vmatpush3.bf16.xpose.msk.msra.mxu1 %vm16550_vm6, %v19426_v29  ;;  %13758 = vmatprep.mubr.msk.f32.mxu1 %vm15449_vm3, %v19275_v22  ;;  %v18274_v11 = vpop.f32.mrb[241].mxu1  ;;  %v7768_v29 = vpop.xlane.xlu0 %7767 }
0x1838   :  { %14785 = vmatprep.subr.bf16.mxu1 %v19274_v3  ;;  %v18284_v7 = vpop.f32.mrb[242].mxu1  ;;  %15335 = vrcp.f32 %v7768_v29  ;;  %v7771_v21 = vpop.xlane.xlu1 %7770 }
0x1839   :  { %19428 = vst [vmem:[#allocation55_spill] sm:$0xff] %v18284_v7  ;;  %v18286_v10 = vpop.f32.mrb[243].mxu1  ;;  %15337 = vrcp.f32 %v7771_v21 }
0x183a   :  { %19429 = vst [vmem:[#allocation50_spill] sm:$0xff] %v18286_v10  ;;  %v18290_v40 = vpop.f32.mrb[244].mxu1 }
0x183b   :  { %v18292_v2 = vpop.f32.mrb[245].mxu1  ;;  %v15334_v29 = vpop.eup %15333 }
0x183c   :  { %19430 = vst [vmem:[#allocation51_spill] sm:$0xff] %v18292_v2  ;;  %v7775_v7 = vmul.f32 %v15334_v29, %v18120_v32 }
0x183f   :  { %14788 = vmatpush3.bf16.xpose.msk.msra.mxu1 %vm16550_vm6, %v19427_v34  ;;  %v18302_v34 = vpop.f32.mrb[246].mxu1 }
0x1840   :  { %14789 = vmatprep.subr.bf16.mxu1 %v19274_v3  ;;  %v18304_v24 = vpop.f32.mrb[247].mxu1 }
0x1841   :  { %v18309_v9 = vpop.f32.mrb[248].mxu1 }
0x1842   :  { %v15336_v21 = vpop.eup %15335  ;;  %v18311_v2 = vpop.f32.mrb[249].mxu1 }
0x1843   :  { %v18323_v32 = vpop.f32.mrb[250].mxu1  ;;  %v15338_v29 = vpop.eup %15337 }
0x1844   :  { %v18325_v10 = vpop.f32.mrb[251].mxu1  ;;  %v7777_v50 = vmul.f32 %v15338_v29, %v18139_v60 }
0x1847   :  { %14792 = vmatpush3.bf16.xpose.msk.msra.mxu1 %vm16550_vm6, %v19431_v62  ;;  %v7776_v62 = vmul.f32 %v15336_v21, %v18128_v30  ;;  %v19434_v30 = vpack.c.bf16 %v17815_v42, %v17817_v35  ;;  %v19438_v42 = vpack.c.bf16 %v18191_v52, %v18193_v46 }
0x1848   :  { %14821 = vmatprep.subr.bf16.mxu1 %v19274_v3 }
0x184e   :  { %13759 = vmatmul.mubr.msk.f32.vlgmr.msra.gmra.mrb[8].mxu1 %vm3233_vm5, %v7775_v7 }
0x184f   :  { %14823 = vmatpush3.bf16.msra.mxu1 %v19432_v38  ;;  %13761 = vmatprep.mubr.msk.f32.mxu1 %vm15449_vm3, %v19275_v22 }
0x1850   :  { %14824 = vmatprep.subr.bf16.mxu1 %v19274_v3 }
0x1852   :  { %13762 = vmatmul.mubr.msk.f32.gmra.mrb[10].mxu1 %vm3233_vm5, %v7776_v62 }
0x1853   :  { %14826 = vmatpush3.bf16.msra.mxu1 %v19433_v56  ;;  %13764 = vmatprep.mubr.msk.f32.mxu1 %vm15449_vm3, %v19275_v22 }
0x1854   :  { %14827 = vmatprep.subr.bf16.mxu1 %v19274_v3 }
0x1856   :  { %13765 = vmatmul.mubr.msk.f32.gmra.mrb[12].mxu1 %vm3233_vm5, %v7777_v50 }
0x1857   :  { %14829 = vmatpush3.bf16.msra.mxu1 %v19434_v30  ;;  %13833 = vmatprep.mubr.msk.f32.mxu1 %vm15449_vm3, %v19275_v22 }
0x1858   :  { %14830 = vmatprep.subr.bf16.mxu1 %v19274_v3 }
0x185b   :  { %14832 = vmatpush3.bf16.msra.mxu1 %v19435_v23 }
0x185c   :  { %14833 = vmatprep.subr.bf16.mxu1 %v19274_v3 }
0x185e   :  { %13834 = vmatmul.mubr.msk.f32.vlgmr.msra.gmra.mrb[14].mxu1 %vm785_vm1, %v17724_v49  ;;  %v19437_v49 = vpack.c.bf16 %v18182_v53, %v18186_v13 }
0x185f   :  { %13836 = vmatprep.mubr.msk.f32.mxu1 %vm15449_vm3, %v19275_v22 }
0x1862   :  { %13837 = vmatmul.mubr.msk.f32.gmra.mrb[16].mxu1 %vm785_vm1, %v17730_v6 }
0x1863   :  { %13839 = vmatprep.mubr.msk.f32.mxu1 %vm15449_vm3, %v19275_v22 }
0x1864   :  { %14836 = vmatpush3.bf16.xpose.msk.msra.mxu1 %vm16550_vm6, %v19436_v14 }
0x1865   :  { %14837 = vmatprep.subr.bf16.mxu1 %v19274_v3 }
0x1866   :  { %13840 = vmatmul.mubr.msk.f32.gmra.mrb[18].mxu1 %vm785_vm1, %v17736_v63 }
0x1867   :  { %13858 = vmatprep.mubr.msk.f32.mxu1 %vm15449_vm3, %v19275_v22 }
0x186b   :  { %v18372_v6 = vpop.f32.mrb[252].mxu1 }
0x186c   :  { %14840 = vmatpush3.bf16.xpose.msk.msra.mxu1 %vm16550_vm6, %v19437_v49  ;;  %v18379_v63 = vpop.f32.mrb[253].mxu1 }
0x186d   :  { %14841 = vmatprep.subr.bf16.mxu1 %v19274_v3 }
0x186f   :  { %v18384_v35 = vpop.f32.mrb[254].mxu1 }
0x1870   :  { %v18386_v45 = vpop.f32.mrb[255].mxu1 }
0x1873   :  { %v18390_v60 = vpop.f32.mrb[0].mxu1 }
0x1874   :  { %14844 = vmatpush3.bf16.xpose.msk.msra.mxu1 %vm16550_vm6, %v19438_v42  ;;  %v18397_v18 = vpop.f32.mrb[1].mxu1 }
0x1875   :  { %14845 = vmatprep.subr.bf16.mxu1 %v19274_v3 }
0x187c   :  { %14848 = vmatpush3.bf16.xpose.msk.msra.mxu1 %vm16550_vm6, %v19439_v28 }
0x187d   :  { %14877 = vmatprep.subr.bf16.mxu1 %v19274_v3 }
0x1901   :  { %v18402_v52 = vpop.f32.mrb[2].mxu1 }
0x1902   :  { %19440 = vst [vmem:[#allocation52_spill] sm:$0xff] %v18402_v52  ;;  %v13710_v46 = vpop.f32.mrb[3].mxu1 }
0x1905   :  { %v18404_v21 = vpop.f32.mrb[4].mxu1 }
0x1906   :  { %19441 = vst [vmem:[#allocation7_spill] sm:$0xff] %v18404_v21  ;;  %v13713_v38 = vpop.f32.mrb[5].mxu1 }
0x1909   :  { %v18406_v62 = vpop.f32.mrb[6].mxu1 }
0x190a   :  { %19442 = vst [vmem:[#allocation8_spill] sm:$0xff] %v18406_v62  ;;  %v13716_v29 = vpop.f32.mrb[7].mxu1 }
0x190b   :  { %v7980_v29 = vmul.f32 0.125, %v18000_v36 }
0x1921   :  { %v18408_v58 = vpop.f32.mrb[8].mxu1 }
0x1922   :  { %v13760_v8 = vpop.f32.mrb[9].mxu1 }
0x1925   :  { %v18410_v56 = vpop.f32.mrb[10].mxu1 }
0x1926   :  { %19443 = vst [vmem:[#allocation9_spill] sm:$0xff] %v18410_v56  ;;  %v13763_v50 = vpop.f32.mrb[11].mxu1 }
0x1929   :  { %v18412_v30 = vpop.f32.mrb[12].mxu1 }
0x192a   :  { %19444 = vst [vmem:[#allocation10_spill] sm:$0xff] %v18412_v30  ;;  %v13766_v23 = vpop.f32.mrb[13].mxu1 }
0x1931   :  { %v8207_v14 = vpop.f32.mrb[14].mxu1 }
0x1932   :  { %v8221_v49 = vmul.f32 0.125, %v8207_v14  ;;  %v13835_v42 = vpop.f32.mrb[15].mxu1  ;;  %v7983_v14 = vsel %vm1390_vm4, %v7980_v29, -1e+30 }
0x1933   :  { %v7981_v42 = vmul.f32 0.125, %v18002_v57 }
0x1934   :  { %v8224_v28 = vsel %vm1390_vm4, %v8221_v49, -1e+30  ;;  %v7982_v49 = vmul.f32 0.125, %v18004_v1 }
0x1935   :  { %v8212_v46 = vpop.f32.mrb[16].mxu1  ;;  %v8227_v38 = vsel %vm3233_vm5, %v8224_v28, -inf }
0x1936   :  { %v8222_v61 = vmul.f32 0.125, %v8212_v46  ;;  %8228 = vmax.xlane.f32.xlu0 %v8227_v38  ;;  %v13838_v8 = vpop.f32.mrb[17].mxu1  ;;  %v7986_v46 = vsel %vm3233_vm5, %v7983_v14, -inf  ;;  %v7984_v38 = vsel %vm1390_vm4, %v7981_v42, -1e+30 }
0x1937   :  { %v7985_v29 = vsel %vm1390_vm4, %v7982_v49, -1e+30  ;;  %v7989_v1 = vsel %vm3233_vm5, %v7984_v38, -inf }
0x1938   :  { %v8225_v50 = vsel %vm1390_vm4, %v8222_v61, -1e+30  ;;  %v7992_v57 = vsel %vm3233_vm5, %v7985_v29, -inf }
0x1939   :  { %v8217_v13 = vpop.f32.mrb[18].mxu1  ;;  %v8230_v23 = vsel %vm3233_vm5, %v8225_v50, -inf }
0x193a   :  { %v8223_v15 = vmul.f32 0.125, %v8217_v13  ;;  %8231 = vmax.xlane.f32.xlu1 %v8230_v23  ;;  %v13841_v53 = vpop.f32.mrb[19].mxu1 }
0x193c   :  { %v8226_v36 = vsel %vm1390_vm4, %v8223_v15, -1e+30 }
0x193d   :  { %v8233_v61 = vsel %vm3233_vm5, %v8226_v36, -inf }
0x193e   :  { %7987 = vmax.xlane.f32.xlu1 %v7986_v46  ;;  %8234 = vmax.xlane.f32.xlu0 %v8233_v61 }
0x1942   :  { %7993 = vmax.xlane.f32.xlu1 %v7992_v57  ;;  %7990 = vmax.xlane.f32.xlu0 %v7989_v1 }
0x19c3   :  { %v8229_v53 = vpop.xlane.xlu0 %8228 }
0x19c4   :  { %v8236_v15 = vsub.f32 %v8224_v28, %v8229_v53 }
0x19c6   :  { %v8239_v13 = vmul.f32 1.442695, %v8236_v15 }
0x19c7   :  { %v8232_v8 = vpop.xlane.xlu1 %8231 }
0x19c8   :  { %15339 = vpow2.f32 %v8239_v13  ;;  %v8237_v23 = vsub.f32 %v8225_v50, %v8232_v8 }
0x19ca   :  { %v8241_v7 = vmul.f32 1.442695, %v8237_v23 }
0x19cb   :  { %v7988_v62 = vpop.xlane.xlu1 %7987  ;;  %v8235_v42 = vpop.xlane.xlu0 %8234 }
0x19cc   :  { %15341 = vpow2.f32 %v8241_v7  ;;  %v7995_v21 = vsub.f32 %v7983_v14, %v7988_v62  ;;  %v8238_v49 = vsub.f32 %v8226_v36, %v8235_v42 }
0x19ce   :  { %v7998_v46 = vmul.f32 1.442695, %v7995_v21  ;;  %v8243_v61 = vmul.f32 1.442695, %v8238_v49 }
0x19cf   :  { %v7994_v52 = vpop.xlane.xlu1 %7993  ;;  %v7991_v30 = vpop.xlane.xlu0 %7990 }
0x19d0   :  { %15343 = vpow2.f32 %v7998_v46  ;;  %v7997_v56 = vsub.f32 %v7985_v29, %v7994_v52  ;;  %v7996_v57 = vsub.f32 %v7984_v38, %v7991_v30 }
0x19d1   :  { %15345 = vpow2.f32 %v8243_v61 }
0x19d2   :  { %v15340_v1 = vpop.eup %15339  ;;  %v8002_v28 = vmul.f32 1.442695, %v7997_v56  ;;  %v8000_v53 = vmul.f32 1.442695, %v7996_v57 }
0x19d3   :  { %v8245_v15 = vsel %vm3233_vm5, %v15340_v1, 0.0 }
0x19d4   :  { %15347 = vpow2.f32 %v8002_v28  ;;  %8246 = vadd.xlane.f32.xlu0 %v8245_v15  ;;  %v19445_v28 = vpack.c.bf16 %v17855_v4, %v17857_v27  ;;  %v19446_v15 = vpack.c.bf16 %v17861_v51, %v17863_v44  ;;  %v19448_v51 = vpack.c.bf16 %v17867_v31, %v17869_v20  ;;  %v19451_v20 = vld [vmem:[#allocation11_spill] sm:$0xff] }
0x19d5   :  { %15349 = vpow2.f32 %v8000_v53 }
0x19d6   :  { %v15342_v50 = vpop.eup %15341 }
0x19d7   :  { %v8248_v7 = vsel %vm3233_vm5, %v15342_v50, 0.0 }
0x19d8   :  { %8249 = vadd.xlane.f32.xlu1 %v8248_v7 }
0x19da   :  { %v15344_v21 = vpop.eup %15343 }
0x19db   :  { %v15346_v62 = vpop.eup %15345  ;;  %v8004_v14 = vsel %vm3233_vm5, %v15344_v21, 0.0 }
0x19dc   :  { %8005 = vadd.xlane.f32.xlu1 %v8004_v14  ;;  %v8251_v52 = vsel %vm3233_vm5, %v15346_v62, 0.0 }
0x19dd   :  { %8252 = vadd.xlane.f32.xlu0 %v8251_v52  ;;  %v19457_v52 = vld [vmem:[#allocation27_spill] sm:$0xff] }
0x19de   :  { %v15348_v30 = vpop.eup %15347 }
0x19df   :  { %v15350_v56 = vpop.eup %15349  ;;  %v8010_v36 = vsel %vm3233_vm5, %v15348_v30, 0.0 }
0x19e0   :  { %8011 = vadd.xlane.f32.xlu1 %v8010_v36  ;;  %v8007_v38 = vsel %vm3233_vm5, %v15350_v56, 0.0  ;;  %v19460_v36 = vld [vmem:[#allocation25_spill] sm:$0xff] }
0x19e1   :  { %8008 = vadd.xlane.f32.xlu0 %v8007_v38  ;;  %v19461_v38 = vld [vmem:[#allocation47_spill] sm:$0xff] }
0x1a61   :  { %v8247_v29 = vpop.xlane.xlu0 %8246 }
0x1a62   :  { %15351 = vrcp.f32 %v8247_v29 }
0x1a65   :  { %v8250_v13 = vpop.xlane.xlu1 %8249 }
0x1a66   :  { %15353 = vrcp.f32 %v8250_v13  ;;  %v19465_v13 = vpack.c.bf16 %v18251_v55, %v18253_v43  ;;  %v19469_v55 = vpack.c.bf16 %v18266_v5, %v18268_v16  ;;  %v19470_v43 = vld [vmem:[#allocation21_spill] sm:$0xff]  ;;  %v19474_v16 = vld [vmem:[#allocation54_spill] sm:$0xff] }
0x1a67   :  { %v19473_v5 = vld [vmem:[#allocation53_spill] sm:$0xff] }
0x1a69   :  { %v8006_v8 = vpop.xlane.xlu1 %8005 }
0x1a6a   :  { %15355 = vrcp.f32 %v8006_v8  ;;  %v8253_v23 = vpop.xlane.xlu0 %8252  ;;  %v19466_v8 = vld [vmem:[#allocation45_spill] sm:$0xff] }
0x1a6b   :  { %15357 = vrcp.f32 %v8253_v23 }
0x1a6c   :  { %v15352_v42 = vpop.eup %15351 }
0x1a6d   :  { %v8257_v49 = vmul.f32 %v15352_v42, %v15340_v1  ;;  %v8012_v46 = vpop.xlane.xlu1 %8011  ;;  %v19471_v42 = vpack.c.bf16 %v18218_v47, %v19470_v43 }
0x1a6e   :  { %v8009_v61 = vpop.xlane.xlu0 %8008 }
0x1a6f   :  { %15359 = vrcp.f32 %v8009_v61  ;;  %13859 = vmatmul.mubr.msk.f32.vlgmr.msra.gmra.mrb[20].mxu1 %vm3233_vm5, %v8257_v49  ;;  %v19475_v49 = vpack.c.bf16 %v19473_v5, %v19474_v16 }
0x1a70   :  { %v15354_v57 = vpop.eup %15353  ;;  %14879 = vmatpush3.bf16.msra.mxu1 %v19445_v28  ;;  %13861 = vmatprep.mubr.msk.f32.mxu1 %vm15449_vm3, %v19275_v22  ;;  %15361 = vrcp.f32 %v8012_v46 }
0x1a71   :  { %v8258_v53 = vmul.f32 %v15354_v57, %v15342_v50  ;;  %14880 = vmatprep.subr.bf16.mxu1 %v19274_v3  ;;  %v19447_v50 = vpack.c.bf16 %v17831_v33, %v17833_v19  ;;  %v19449_v33 = vpack.c.bf16 %v17837_v39, %v17839_v0  ;;  %v19450_v19 = vpack.c.bf16 %v17873_v25, %v17875_v26  ;;  %v19453_v39 = vld [vmem:[#allocation37_spill] sm:$0xff]  ;;  %v19455_v25 = vld [vmem:[#allocation15_spill] sm:$0xff]  ;;  %v19456_v26 = vld [vmem:[#allocation38_spill] sm:$0xff] }
0x1a73   :  { %13862 = vmatmul.mubr.msk.f32.gmra.mrb[22].mxu1 %vm3233_vm5, %v8258_v53 }
0x1a74   :  { %v15356_v1 = vpop.eup %15355  ;;  %14882 = vmatpush3.bf16.msra.mxu1 %v19446_v15  ;;  %13864 = vmatprep.mubr.msk.f32.mxu1 %vm15449_vm3, %v19275_v22 }
0x1a75   :  { %v15358_v7 = vpop.eup %15357  ;;  %v8016_v4 = vmul.f32 %v15356_v1, %v15344_v21  ;;  %14883 = vmatprep.subr.bf16.mxu1 %v19274_v3 }
0x1a76   :  { %v8259_v27 = vmul.f32 %v15358_v7, %v15346_v62  ;;  %v19452_v62 = vld [vmem:[#allocation36_spill] sm:$0xff] }
0x1a77   :  { %13809 = vmatmul.mubr.msk.f32.vlgmr.msra.gmra.mrb[2].mxu0 %vm3233_vm5, %v8016_v4  ;;  %v19454_v0 = vpack.c.bf16 %v19452_v62, %v19453_v39 }
0x1a78   :  { %13865 = vmatmul.mubr.msk.f32.gmra.mrb[24].mxu1 %vm3233_vm5, %v8259_v27  ;;  %14851 = vmatpush3.bf16.msra.mxu0 %v19447_v50 }
0x1a79   :  { %v15360_v14 = vpop.eup %15359  ;;  %14885 = vmatpush3.bf16.msra.mxu1 %v19448_v51  ;;  %13811 = vmatprep.mubr.msk.f32.mxu0 %vm15449_vm3, %v19275_v22 }
0x1a7a   :  { %v8017_v44 = vmul.f32 %v15360_v14, %v15350_v56  ;;  %14852 = vmatprep.subr.bf16.mxu0 %v19274_v3  ;;  %14886 = vmatprep.subr.bf16.mxu1 %v19274_v3  ;;  %v15362_v21 = vpop.eup %15361  ;;  %v19459_v56 = vpack.c.bf16 %v18241_v37, %v18243_v59  ;;  %v19462_v37 = vld [vmem:[#allocation13_spill] sm:$0xff]  ;;  %v19463_v59 = vld [vmem:[#allocation48_spill] sm:$0xff] }
0x1a7b   :  { %13933 = vmatprep.mubr.msk.f32.mxu1 %vm15449_vm3, %v19275_v22  ;;  %v8018_v31 = vmul.f32 %v15362_v21, %v15348_v30  ;;  %v19458_v30 = vpack.c.bf16 %v19456_v26, %v19457_v52  ;;  %v19464_v29 = vpack.c.bf16 %v18206_v48, %v19463_v59  ;;  %v19467_v48 = vld [vmem:[#allocation49_spill] sm:$0xff] }
0x1a7c   :  { %13812 = vmatmul.mubr.msk.f32.gmra.mrb[4].mxu0 %vm3233_vm5, %v8017_v44  ;;  %v19468_v23 = vpack.c.bf16 %v18212_v17, %v19467_v48  ;;  %v19472_v17 = vpack.c.bf16 %v18272_v12, %v18274_v11 }
0x1a7d   :  { %14854 = vmatpush3.bf16.msra.mxu0 %v19449_v33  ;;  %14888 = vmatpush3.bf16.msra.mxu1 %v19450_v19 }
0x1a7e   :  { %13814 = vmatprep.mubr.msk.f32.mxu0 %vm15449_vm3, %v19275_v22  ;;  %14855 = vmatprep.subr.bf16.mxu0 %v19274_v3 }
0x1a7f   :  { %14889 = vmatprep.subr.bf16.mxu1 %v19274_v3 }
0x1a80   :  { %13934 = vmatmul.mubr.msk.f32.vlgmr.msra.gmra.mrb[26].mxu1 %vm785_vm1, %v19451_v20  ;;  %13815 = vmatmul.mubr.msk.f32.gmra.mrb[6].mxu0 %vm3233_vm5, %v8018_v31 }
0x1a81   :  { %14857 = vmatpush3.bf16.msra.mxu0 %v19454_v0  ;;  %13936 = vmatprep.mubr.msk.f32.mxu1 %vm15449_vm3, %v19275_v22 }
0x1a82   :  { %14858 = vmatprep.subr.bf16.mxu0 %v19274_v3  ;;  %13883 = vmatprep.mubr.msk.f32.mxu0 %vm15449_vm3, %v19275_v22 }
0x1a84   :  { %13937 = vmatmul.mubr.msk.f32.gmra.mrb[28].mxu1 %vm785_vm1, %v19455_v25 }
0x1a85   :  { %14860 = vmatpush3.bf16.msra.mxu0 %v19458_v30  ;;  %13939 = vmatprep.mubr.msk.f32.mxu1 %vm15449_vm3, %v19275_v22 }
0x1a86   :  { %14892 = vmatpush3.bf16.xpose.msk.msra.mxu1 %vm16550_vm6, %v19459_v56  ;;  %14861 = vmatprep.subr.bf16.mxu0 %v19274_v3 }
0x1a87   :  { %14893 = vmatprep.subr.bf16.mxu1 %v19274_v3 }
0x1a88   :  { %13884 = vmatmul.mubr.msk.f32.vlgmr.msra.gmra.mrb[8].mxu0 %vm785_vm1, %v19460_v36  ;;  %13940 = vmatmul.mubr.msk.f32.gmra.mrb[30].mxu1 %vm785_vm1, %v19461_v38 }
0x1a89   :  { %13886 = vmatprep.mubr.msk.f32.mxu0 %vm15449_vm3, %v19275_v22  ;;  %13958 = vmatprep.mubr.msk.f32.mxu1 %vm15449_vm3, %v19275_v22 }
0x1a8c   :  { %13887 = vmatmul.mubr.msk.f32.gmra.mrb[10].mxu0 %vm785_vm1, %v19462_v37 }
0x1a8d   :  { %13889 = vmatprep.mubr.msk.f32.mxu0 %vm15449_vm3, %v19275_v22 }
0x1a8e   :  { %14864 = vmatpush3.bf16.xpose.msk.msra.mxu0 %vm16550_vm6, %v19464_v29  ;;  %14896 = vmatpush3.bf16.xpose.msk.msra.mxu1 %vm16550_vm6, %v19465_v13 }
0x1a8f   :  { %14865 = vmatprep.subr.bf16.mxu0 %v19274_v3  ;;  %14897 = vmatprep.subr.bf16.mxu1 %v19274_v3 }
0x1a90   :  { %13890 = vmatmul.mubr.msk.f32.gmra.mrb[12].mxu0 %vm785_vm1, %v19466_v8 }
0x1a91   :  { %13908 = vmatprep.mubr.msk.f32.mxu0 %vm15449_vm3, %v19275_v22 }
0x1a96   :  { %14868 = vmatpush3.bf16.xpose.msk.msra.mxu0 %vm16550_vm6, %v19468_v23  ;;  %14900 = vmatpush3.bf16.xpose.msk.msra.mxu1 %vm16550_vm6, %v19469_v55 }
0x1a97   :  { %14869 = vmatprep.subr.bf16.mxu0 %v19274_v3  ;;  %14901 = vmatprep.subr.bf16.mxu1 %v19274_v3 }
0x1a9e   :  { %14872 = vmatpush3.bf16.xpose.msk.msra.mxu0 %vm16550_vm6, %v19471_v42  ;;  %14904 = vmatpush3.bf16.xpose.msk.msra.mxu1 %vm16550_vm6, %v19472_v17 }
0x1a9f   :  { %14873 = vmatprep.subr.bf16.mxu0 %v19274_v3  ;;  %14933 = vmatprep.subr.bf16.mxu1 %v19274_v3 }
0x1aa6   :  { %14876 = vmatpush3.bf16.xpose.msk.msra.mxu0 %vm16550_vm6, %v19475_v49 }
0x1aa7   :  { %14905 = vmatprep.subr.bf16.mxu0 %v19274_v3 }
0x1b42   :  { %v18563_v47 = vpop.f32.mrb[20].mxu1 }
0x1b43   :  { %v13860_v46 = vpop.f32.mrb[21].mxu1 }
0x1b46   :  { %v18565_v61 = vpop.f32.mrb[22].mxu1 }
0x1b47   :  { %v13863_v11 = vpop.f32.mrb[23].mxu1 }
0x1b4a   :  { %v18567_v12 = vpop.f32.mrb[2].mxu0 }
0x1b4b   :  { %v18569_v57 = vpop.f32.mrb[24].mxu1  ;;  %v13810_v28 = vpop.f32.mrb[3].mxu0 }
0x1b4c   :  { %v13866_v53 = vpop.f32.mrb[25].mxu1 }
0x1b4f   :  { %v18571_v1 = vpop.f32.mrb[4].mxu0 }
0x1b50   :  { %v13813_v15 = vpop.f32.mrb[5].mxu0 }
0x1b53   :  { %v8689_v7 = vpop.f32.mrb[26].mxu1  ;;  %v18573_v4 = vpop.f32.mrb[6].mxu0 }
0x1b54   :  { %v8703_v27 = vmul.f32 0.125, %v8689_v7  ;;  %v13935_v50 = vpop.f32.mrb[27].mxu1  ;;  %v13816_v14 = vpop.f32.mrb[7].mxu0 }
0x1b56   :  { %v8706_v51 = vsel %vm1390_vm4, %v8703_v27, -1e+30 }
0x1b57   :  { %v8694_v44 = vpop.f32.mrb[28].mxu1  ;;  %v8709_v21 = vsel %vm3233_vm5, %v8706_v51, -inf }
0x1b58   :  { %v8704_v33 = vmul.f32 0.125, %v8694_v44  ;;  %8710 = vmax.xlane.f32.xlu0 %v8709_v21  ;;  %v13938_v19 = vpop.f32.mrb[29].mxu1 }
0x1b5a   :  { %v8707_v31 = vsel %vm1390_vm4, %v8704_v33, -1e+30 }
0x1b5b   :  { %v8448_v20 = vpop.f32.mrb[8].mxu0  ;;  %v8699_v62 = vpop.f32.mrb[30].mxu1  ;;  %v8712_v39 = vsel %vm3233_vm5, %v8707_v31, -inf }
0x1b5c   :  { %v8462_v0 = vmul.f32 0.125, %v8448_v20  ;;  %v8705_v25 = vmul.f32 0.125, %v8699_v62  ;;  %v13885_v26 = vpop.f32.mrb[9].mxu0  ;;  %8713 = vmax.xlane.f32.xlu1 %v8712_v39  ;;  %v13941_v52 = vpop.f32.mrb[31].mxu1 }
0x1b5e   :  { %v8465_v30 = vsel %vm1390_vm4, %v8462_v0, -1e+30  ;;  %v8708_v56 = vsel %vm1390_vm4, %v8705_v25, -1e+30 }
0x1b5f   :  { %v8453_v36 = vpop.f32.mrb[10].mxu0  ;;  %v8468_v38 = vsel %vm3233_vm5, %v8465_v30, -inf  ;;  %v8715_v37 = vsel %vm3233_vm5, %v8708_v56, -inf }
0x1b60   :  { %v8463_v59 = vmul.f32 0.125, %v8453_v36  ;;  %v13888_v29 = vpop.f32.mrb[11].mxu0  ;;  %8469 = vmax.xlane.f32.xlu1 %v8468_v38  ;;  %8716 = vmax.xlane.f32.xlu0 %v8715_v37 }
0x1b62   :  { %v8466_v13 = vsel %vm1390_vm4, %v8463_v59, -1e+30 }
0x1b63   :  { %v8458_v8 = vpop.f32.mrb[12].mxu0  ;;  %v8471_v48 = vsel %vm3233_vm5, %v8466_v13, -inf }
0x1b64   :  { %v8464_v23 = vmul.f32 0.125, %v8458_v8  ;;  %v13891_v55 = vpop.f32.mrb[13].mxu0  ;;  %8472 = vmax.xlane.f32.xlu0 %v8471_v48 }
0x1b66   :  { %v8467_v43 = vsel %vm1390_vm4, %v8464_v23, -1e+30 }
0x1b67   :  { %v8474_v42 = vsel %vm3233_vm5, %v8467_v43, -inf }
0x1b68   :  { %8475 = vmax.xlane.f32.xlu1 %v8474_v42  ;;  %v19477_v42 = vld [vmem:[#allocation32_spill] sm:$0xff] }
0x1be5   :  { %v8711_v17 = vpop.xlane.xlu0 %8710 }
0x1be6   :  { %v8718_v5 = vsub.f32 %v8706_v51, %v8711_v17 }
0x1be8   :  { %v8721_v16 = vmul.f32 1.442695, %v8718_v5 }
0x1be9   :  { %v8714_v49 = vpop.xlane.xlu1 %8713 }
0x1bea   :  { %15363 = vpow2.f32 %v8721_v16  ;;  %v8719_v46 = vsub.f32 %v8707_v31, %v8714_v49 }
0x1bec   :  { %v8723_v11 = vmul.f32 1.442695, %v8719_v46  ;;  %v19479_v46 = vld [vmem:[#allocation20_spill] sm:$0xff] }
0x1bed   :  { %v8470_v28 = vpop.xlane.xlu1 %8469  ;;  %v8717_v53 = vpop.xlane.xlu0 %8716 }
0x1bee   :  { %15365 = vpow2.f32 %v8723_v11  ;;  %v8477_v15 = vsub.f32 %v8465_v30, %v8470_v28  ;;  %v8720_v7 = vsub.f32 %v8708_v56, %v8717_v53  ;;  %v19480_v11 = vld [vmem:[#allocation33_spill] sm:$0xff] }
0x1bef   :  { %v19481_v28 = vpack.c.bf16 %v19479_v46, %v19480_v11 }
0x1bf0   :  { %v8480_v27 = vmul.f32 1.442695, %v8477_v15  ;;  %v8725_v50 = vmul.f32 1.442695, %v8720_v7 }
0x1bf1   :  { %v8473_v14 = vpop.xlane.xlu0 %8472 }
0x1bf2   :  { %15367 = vpow2.f32 %v8480_v27  ;;  %v8478_v44 = vsub.f32 %v8466_v13, %v8473_v14  ;;  %v19482_v27 = vld [vmem:[#allocation28_spill] sm:$0xff] }
0x1bf3   :  { %15369 = vpow2.f32 %v8725_v50  ;;  %v19483_v50 = vld [vmem:[#allocation39_spill] sm:$0xff] }
0x1bf4   :  { %v15364_v21 = vpop.eup %15363  ;;  %v8482_v33 = vmul.f32 1.442695, %v8478_v44  ;;  %v19484_v14 = vpack.c.bf16 %v19482_v27, %v19483_v50 }
0x1bf5   :  { %v8476_v19 = vpop.xlane.xlu1 %8475  ;;  %v8727_v51 = vsel %vm3233_vm5, %v15364_v21, 0.0 }
0x1bf6   :  { %15371 = vpow2.f32 %v8482_v33  ;;  %v8479_v20 = vsub.f32 %v8467_v43, %v8476_v19  ;;  %8728 = vadd.xlane.f32.xlu0 %v8727_v51  ;;  %v19476_v43 = vld [vmem:[#allocation31_spill] sm:$0xff]  ;;  %v19486_v33 = vld [vmem:[#allocation17_spill] sm:$0xff] }
0x1bf7   :  { %v19478_v17 = vpack.c.bf16 %v19476_v43, %v19477_v42  ;;  %v19509_v42 = vpack.c.bf16 %v18372_v6, %v18379_v63  ;;  %v19513_v6 = vpack.c.bf16 %v18384_v35, %v18386_v45  ;;  %v19514_v63 = vpack.c.bf16 %v18302_v34, %v18304_v24 }
0x1bf8   :  { %v15366_v31 = vpop.eup %15365  ;;  %v8484_v62 = vmul.f32 1.442695, %v8479_v20  ;;  %v19516_v35 = vpack.c.bf16 %v18309_v9, %v18311_v2  ;;  %v19518_v9 = vld [vmem:[#allocation10_spill] sm:$0xff] }
0x1bf9   :  { %v8730_v39 = vsel %vm3233_vm5, %v15366_v31, 0.0 }
0x1bfa   :  { %15373 = vpow2.f32 %v8484_v62  ;;  %8731 = vadd.xlane.f32.xlu1 %v8730_v39  ;;  %v19488_v62 = vld [vmem:[#allocation40_spill] sm:$0xff]  ;;  %v19489_v39 = vld [vmem:[#allocation29_spill] sm:$0xff] }
0x1bfc   :  { %v15368_v0 = vpop.eup %15367 }
0x1bfd   :  { %v15370_v25 = vpop.eup %15369  ;;  %v8486_v26 = vsel %vm3233_vm5, %v15368_v0, 0.0 }
0x1bfe   :  { %8487 = vadd.xlane.f32.xlu1 %v8486_v26  ;;  %v8733_v52 = vsel %vm3233_vm5, %v15370_v25, 0.0  ;;  %v19492_v26 = vld [vmem:[#allocation19_spill] sm:$0xff] }
0x1bff   :  { %8734 = vadd.xlane.f32.xlu0 %v8733_v52 }
0x1c00   :  { %v15372_v30 = vpop.eup %15371 }
0x1c01   :  { %v8489_v56 = vsel %vm3233_vm5, %v15372_v30, 0.0 }
0x1c03   :  { %8490 = vadd.xlane.f32.xlu0 %v8489_v56  ;;  %v19495_v56 = vld [vmem:[#allocation30_spill] sm:$0xff] }
0x1c04   :  { %v15374_v36 = vpop.eup %15373 }
0x1c05   :  { %v8492_v38 = vsel %vm3233_vm5, %v15374_v36, 0.0 }
0x1c06   :  { %8493 = vadd.xlane.f32.xlu1 %v8492_v38 }
0x1c83   :  { %v8729_v37 = vpop.xlane.xlu0 %8728 }
0x1c84   :  { %15375 = vrcp.f32 %v8729_v37  ;;  %v19498_v37 = vld [vmem:[#allocation44_spill] sm:$0xff] }
0x1c87   :  { %v8732_v59 = vpop.xlane.xlu1 %8731 }
0x1c88   :  { %15377 = vrcp.f32 %v8732_v59  ;;  %v19499_v59 = vld [vmem:[#allocation42_spill] sm:$0xff] }
0x1c8b   :  { %v8488_v29 = vpop.xlane.xlu1 %8487 }
0x1c8c   :  { %15379 = vrcp.f32 %v8488_v29  ;;  %v8735_v13 = vpop.xlane.xlu0 %8734  ;;  %v19500_v29 = vld [vmem:[#allocation18_spill] sm:$0xff] }
0x1c8d   :  { %15381 = vrcp.f32 %v8735_v13  ;;  %v19501_v13 = vpack.c.bf16 %v19499_v59, %v19500_v29 }
0x1c8e   :  { %v15376_v8 = vpop.eup %15375 }
0x1c8f   :  { %v8739_v48 = vmul.f32 %v15376_v8, %v15364_v21  ;;  %v19485_v21 = vld [vmem:[#allocation34_spill] sm:$0xff]  ;;  %v19502_v8 = vpack.c.bf16 %v18323_v32, %v18325_v10  ;;  %v19505_v10 = vld [vmem:[#allocation43_spill] sm:$0xff] }
0x1c90   :  { %v8491_v23 = vpop.xlane.xlu0 %8490  ;;  %v19487_v19 = vpack.c.bf16 %v19485_v21, %v19486_v33  ;;  %v19506_v32 = vld [vmem:[#allocation55_spill] sm:$0xff] }
0x1c91   :  { %15383 = vrcp.f32 %v8491_v23  ;;  %13959 = vmatmul.mubr.msk.f32.vlgmr.msra.gmra.mrb[32].mxu1 %vm3233_vm5, %v8739_v48  ;;  %v19503_v48 = vld [vmem:[#allocation26_spill] sm:$0xff]  ;;  %v19504_v23 = vld [vmem:[#allocation35_spill] sm:$0xff] }
0x1c92   :  { %v15378_v55 = vpop.eup %15377  ;;  %14935 = vmatpush3.bf16.msra.mxu1 %v19478_v17  ;;  %13961 = vmatprep.mubr.msk.f32.mxu1 %vm15449_vm3, %v19275_v22  ;;  %v19510_v17 = vld [vmem:[#allocation46_spill] sm:$0xff] }
0x1c93   :  { %v8740_v5 = vmul.f32 %v15378_v55, %v15366_v31  ;;  %v8494_v16 = vpop.xlane.xlu1 %8493  ;;  %14936 = vmatprep.subr.bf16.mxu1 %v19274_v3  ;;  %v19507_v55 = vld [vmem:[#allocation50_spill] sm:$0xff] }
0x1c94   :  { %15385 = vrcp.f32 %v8494_v16  ;;  %v19508_v43 = vpack.c.bf16 %v19506_v32, %v19507_v55 }
0x1c95   :  { %13962 = vmatmul.mubr.msk.f32.gmra.mrb[34].mxu1 %vm3233_vm5, %v8740_v5  ;;  %v19511_v5 = vld [vmem:[#allocation51_spill] sm:$0xff] }
0x1c96   :  { %v15380_v49 = vpop.eup %15379  ;;  %14938 = vmatpush3.bf16.msra.mxu1 %v19481_v28  ;;  %13964 = vmatprep.mubr.msk.f32.mxu1 %vm15449_vm3, %v19275_v22  ;;  %v19512_v16 = vpack.c.bf16 %v18290_v40, %v19511_v5  ;;  %v19515_v40 = vpack.c.bf16 %v18390_v60, %v18397_v18  ;;  %v19517_v60 = vld [vmem:[#allocation9_spill] sm:$0xff] }
0x1c97   :  { %v15382_v53 = vpop.eup %15381  ;;  %v8498_v15 = vmul.f32 %v15380_v49, %v15368_v0  ;;  %14939 = vmatprep.subr.bf16.mxu1 %v19274_v3  ;;  %v19490_v0 = vpack.c.bf16 %v19488_v62, %v19489_v39 }
0x1c98   :  { %v8741_v7 = vmul.f32 %v15382_v53, %v15370_v25  ;;  %v19491_v25 = vld [vmem:[#allocation22_spill] sm:$0xff] }
0x1c99   :  { %13909 = vmatmul.mubr.msk.f32.vlgmr.msra.gmra.mrb[14].mxu0 %vm3233_vm5, %v8498_v15  ;;  %v19493_v52 = vpack.c.bf16 %v19491_v25, %v19492_v26 }
0x1c9a   :  { %13965 = vmatmul.mubr.msk.f32.gmra.mrb[36].mxu1 %vm3233_vm5, %v8741_v7  ;;  %14907 = vmatpush3.bf16.msra.mxu0 %v19484_v14 }
0x1c9b   :  { %v15384_v44 = vpop.eup %15383  ;;  %14941 = vmatpush3.bf16.msra.mxu1 %v19487_v19  ;;  %13911 = vmatprep.mubr.msk.f32.mxu0 %vm15449_vm3, %v19275_v22 }
0x1c9c   :  { %v8499_v51 = vmul.f32 %v15384_v44, %v15372_v30  ;;  %14908 = vmatprep.subr.bf16.mxu0 %v19274_v3  ;;  %14942 = vmatprep.subr.bf16.mxu1 %v19274_v3  ;;  %v19494_v30 = vld [vmem:[#allocation16_spill] sm:$0xff] }
0x1c9d   :  { %14033 = vmatprep.mubr.msk.f32.mxu1 %vm15449_vm3, %v19275_v22 }
0x1c9e   :  { %v15386_v20 = vpop.eup %15385  ;;  %13912 = vmatmul.mubr.msk.f32.gmra.mrb[16].mxu0 %vm3233_vm5, %v8499_v51 }
0x1c9f   :  { %v8500_v31 = vmul.f32 %v15386_v20, %v15374_v36  ;;  %14910 = vmatpush3.bf16.msra.mxu0 %v19490_v0  ;;  %14944 = vmatpush3.bf16.msra.mxu1 %v19493_v52  ;;  %v19496_v36 = vld [vmem:[#allocation41_spill] sm:$0xff] }
0x1ca0   :  { %13914 = vmatprep.mubr.msk.f32.mxu0 %vm15449_vm3, %v19275_v22  ;;  %14911 = vmatprep.subr.bf16.mxu0 %v19274_v3  ;;  %v19497_v38 = vpack.c.bf16 %v19495_v56, %v19496_v36 }
0x1ca1   :  { %14945 = vmatprep.subr.bf16.mxu1 %v19274_v3 }
0x1ca2   :  { %14034 = vmatmul.mubr.msk.f32.vlgmr.msra.gmra.mrb[38].mxu1 %vm785_vm1, %v19494_v30  ;;  %13915 = vmatmul.mubr.msk.f32.gmra.mrb[18].mxu0 %vm3233_vm5, %v8500_v31 }
0x1ca3   :  { %14913 = vmatpush3.bf16.msra.mxu0 %v19497_v38  ;;  %14036 = vmatprep.mubr.msk.f32.mxu1 %vm15449_vm3, %v19275_v22 }
0x1ca4   :  { %14914 = vmatprep.subr.bf16.mxu0 %v19274_v3  ;;  %13983 = vmatprep.mubr.msk.f32.mxu0 %vm15449_vm3, %v19275_v22 }
0x1ca6   :  { %14037 = vmatmul.mubr.msk.f32.gmra.mrb[40].mxu1 %vm785_vm1, %v19498_v37 }
0x1ca7   :  { %14916 = vmatpush3.bf16.msra.mxu0 %v19501_v13  ;;  %14039 = vmatprep.mubr.msk.f32.mxu1 %vm15449_vm3, %v19275_v22 }
0x1ca8   :  { %14948 = vmatpush3.bf16.xpose.msk.msra.mxu1 %vm16550_vm6, %v19502_v8  ;;  %14917 = vmatprep.subr.bf16.mxu0 %v19274_v3 }
0x1ca9   :  { %14949 = vmatprep.subr.bf16.mxu1 %v19274_v3 }
0x1caa   :  { %13984 = vmatmul.mubr.msk.f32.vlgmr.msra.gmra.mrb[20].mxu0 %vm785_vm1, %v19503_v48  ;;  %14040 = vmatmul.mubr.msk.f32.gmra.mrb[42].mxu1 %vm785_vm1, %v19504_v23 }
0x1cab   :  { %13986 = vmatprep.mubr.msk.f32.mxu0 %vm15449_vm3, %v19275_v22  ;;  %14058 = vmatprep.mubr.msk.f32.mxu1 %vm15449_vm3, %v19275_v22 }
0x1cae   :  { %13987 = vmatmul.mubr.msk.f32.gmra.mrb[22].mxu0 %vm785_vm1, %v19505_v10 }
0x1caf   :  { %13989 = vmatprep.mubr.msk.f32.mxu0 %vm15449_vm3, %v19275_v22 }
0x1cb0   :  { %14920 = vmatpush3.bf16.xpose.msk.msra.mxu0 %vm16550_vm6, %v19508_v43  ;;  %14952 = vmatpush3.bf16.xpose.msk.msra.mxu1 %vm16550_vm6, %v19509_v42 }
0x1cb1   :  { %14921 = vmatprep.subr.bf16.mxu0 %v19274_v3  ;;  %14953 = vmatprep.subr.bf16.mxu1 %v19274_v3 }
0x1cb2   :  { %13990 = vmatmul.mubr.msk.f32.gmra.mrb[24].mxu0 %vm785_vm1, %v19510_v17 }
0x1cb3   :  { %14008 = vmatprep.mubr.msk.f32.mxu0 %vm15449_vm3, %v19275_v22 }
0x1cb8   :  { %14924 = vmatpush3.bf16.xpose.msk.msra.mxu0 %vm16550_vm6, %v19512_v16  ;;  %14956 = vmatpush3.bf16.xpose.msk.msra.mxu1 %vm16550_vm6, %v19513_v6 }
0x1cb9   :  { %14925 = vmatprep.subr.bf16.mxu0 %v19274_v3  ;;  %14957 = vmatprep.subr.bf16.mxu1 %v19274_v3 }
0x1cc0   :  { %14928 = vmatpush3.bf16.xpose.msk.msra.mxu0 %vm16550_vm6, %v19514_v63  ;;  %14960 = vmatpush3.bf16.xpose.msk.msra.mxu1 %vm16550_vm6, %v19515_v40 }
0x1cc1   :  { %14929 = vmatprep.subr.bf16.mxu0 %v19274_v3 }
0x1cc8   :  { %14932 = vmatpush3.bf16.xpose.msk.msra.mxu0 %vm16550_vm6, %v19516_v35 }
0x1d64   :  { %v18719_v45 = vpop.f32.mrb[32].mxu1 }
0x1d65   :  { %v15170_v24 = vpack.i.bf16 %v18719_v45, %v18408_v58  ;;  %v13960_v34 = vpop.f32.mrb[33].mxu1  ;;  %v9414_v58 = vld [vmem:[%s18786_s8 + $0x88] sm:$0xff]  ;;  %v9445_v45 = vld [vmem:[%s18786_s8 + $0x180] sm:$0xff] }
0x1d68   :  { %v18723_v49 = vpop.f32.mrb[34].mxu1 }
0x1d69   :  { %v15175_v18 = vpack.i.bf16 %v18723_v49, %v19517_v60  ;;  %v13963_v46 = vpop.f32.mrb[35].mxu1  ;;  %v19519_v60 = vld [vmem:[#allocation52_spill] sm:$0xff] }
0x1d6c   :  { %v18727_v11 = vpop.f32.mrb[14].mxu0 }
0x1d6d   :  { %v18729_v28 = vpop.f32.mrb[36].mxu1  ;;  %v13910_v2 = vpop.f32.mrb[15].mxu0 }
0x1d6e   :  { %v15190_v54 = vpack.i.bf16 %v18729_v28, %v19518_v9  ;;  %v13966_v53 = vpop.f32.mrb[37].mxu1 }
0x1d71   :  { %v18733_v15 = vpop.f32.mrb[16].mxu0 }
0x1d72   :  { %v13913_v7 = vpop.f32.mrb[17].mxu0 }
0x1d75   :  { %v9171_v27 = vpop.f32.mrb[38].mxu1  ;;  %v18735_v50 = vpop.f32.mrb[18].mxu0 }
0x1d76   :  { %v9185_v14 = vmul.f32 0.125, %v9171_v27  ;;  %v14035_v44 = vpop.f32.mrb[39].mxu1  ;;  %v13916_v21 = vpop.f32.mrb[19].mxu0 }
0x1d78   :  { %v9188_v33 = vsel %vm1390_vm4, %v9185_v14, -1e+30 }
0x1d79   :  { %v9176_v19 = vpop.f32.mrb[40].mxu1  ;;  %v9191_v51 = vsel %vm3233_vm5, %v9188_v33, -inf }
0x1d7a   :  { %9192 = vmax.xlane.f32.xlu0 %v9191_v51  ;;  %v14038_v20 = vpop.f32.mrb[41].mxu1  ;;  %v9186_v23 = vmul.f32 0.125, %v9176_v19 }
0x1d7c   :  { %v9189_v55 = vsel %vm1390_vm4, %v9186_v23, -1e+30  ;;  %v9446_v23 = vld [vmem:[%s18786_s8 + $0x188] sm:$0xff] }
0x1d7d   :  { %v8930_v31 = vpop.f32.mrb[20].mxu0  ;;  %v9181_v62 = vpop.f32.mrb[42].mxu1  ;;  %v9194_v42 = vsel %vm3233_vm5, %v9189_v55, -inf }
0x1d7e   :  { %v8944_v39 = vmul.f32 0.125, %v8930_v31  ;;  %v13985_v0 = vpop.f32.mrb[21].mxu0  ;;  %v14041_v25 = vpop.f32.mrb[43].mxu1  ;;  %v9187_v17 = vmul.f32 0.125, %v9181_v62 }
0x1d80   :  { %v8947_v26 = vsel %vm1390_vm4, %v8944_v39, -1e+30  ;;  %v9190_v40 = vsel %vm1390_vm4, %v9187_v17, -1e+30  ;;  %v9430_v17 = vld [vmem:[%s18786_s8 + $0x108] sm:$0xff] }
0x1d81   :  { %v8935_v52 = vpop.f32.mrb[22].mxu0  ;;  %v8950_v30 = vsel %vm3233_vm5, %v8947_v26, -inf  ;;  %v9197_v34 = vsel %vm3233_vm5, %v9190_v40, -inf }
0x1d82   :  { %8951 = vmax.xlane.f32.xlu1 %v8950_v30  ;;  %v13988_v56 = vpop.f32.mrb[23].mxu0  ;;  %v8945_v43 = vmul.f32 0.125, %v8935_v52 }
0x1d84   :  { %v8948_v5 = vsel %vm1390_vm4, %v8945_v43, -1e+30 }
0x1d85   :  { %v8940_v36 = vpop.f32.mrb[24].mxu0  ;;  %v8953_v63 = vsel %vm3233_vm5, %v8948_v5, -inf }
0x1d86   :  { %v13991_v38 = vpop.f32.mrb[25].mxu0  ;;  %v8946_v35 = vmul.f32 0.125, %v8940_v36 }
0x1d88   :  { %v8949_v46 = vsel %vm1390_vm4, %v8946_v35, -1e+30 }
0x1d89   :  { %v8956_v2 = vsel %vm3233_vm5, %v8949_v46, -inf }
0x1e07   :  { %v9193_v37 = vpop.xlane.xlu0 %9192 }
0x1e08   :  { %v9200_v59 = vsub.f32 %v9188_v33, %v9193_v37 }
0x1e0a   :  { %v9203_v29 = vmul.f32 1.442695, %v9200_v59 }
0x1e0c   :  { %15387 = vpow2.f32 %v9203_v29 }
0x1e0f   :  { %v8952_v13 = vpop.xlane.xlu1 %8951 }
0x1e10   :  { %v8959_v8 = vsub.f32 %v8947_v26, %v8952_v13 }
0x1e12   :  { %v8962_v48 = vmul.f32 1.442695, %v8959_v8 }
0x1e14   :  { %15389 = vpow2.f32 %v8962_v48  ;;  %v9413_v48 = vld [vmem:[%s18786_s8 + $0x80] sm:$0xff] }
0x1e16   :  { %v15388_v10 = vpop.eup %15387 }
0x1e17   :  { %v9209_v32 = vsel %vm3233_vm5, %v15388_v10, 0.0 }
0x1e18   :  { %9210 = vadd.xlane.f32.xlu0 %v9209_v32  ;;  %v9398_v32 = vld [vmem:[%s18786_s8 + $0x8] sm:$0xff] }
0x1e1c   :  { %9195 = vmax.xlane.f32.xlu0 %v9194_v42  ;;  %v9429_v42 = vld [vmem:[%s18786_s8 + $0x100] sm:$0xff] }
0x1e1e   :  { %v15390_v16 = vpop.eup %15389 }
0x1e1f   :  { %v8968_v6 = vsel %vm3233_vm5, %v15390_v16, 0.0 }
0x1e20   :  { %8969 = vadd.xlane.f32.xlu1 %v8968_v6  ;;  %8954 = vmax.xlane.f32.xlu0 %v8953_v63  ;;  %v9416_v6 = vld [vmem:[%s18786_s8 + $0x98] sm:$0xff]  ;;  %v9447_v63 = vld [vmem:[%s18786_s8 + $0x190] sm:$0xff] }
0x1e24   :  { %9198 = vmax.xlane.f32.xlu1 %v9197_v34 }
0x1e28   :  { %8957 = vmax.xlane.f32.xlu1 %v8956_v2  ;;  %v9400_v2 = vld [vmem:[%s18786_s8 + $0x18] sm:$0xff] }
0x1ea5   :  { %v9211_v53 = vpop.xlane.xlu0 %9210 }
0x1ea6   :  { %15391 = vrcp.f32 %v9211_v53  ;;  %v9431_v53 = vld [vmem:[%s18786_s8 + $0x110] sm:$0xff] }
0x1ea9   :  { %v9196_v7 = vpop.xlane.xlu0 %9195 }
0x1eaa   :  { %v9201_v27 = vsub.f32 %v9189_v55, %v9196_v7  ;;  %v14993_v55 = vpack.c.bf16 %v9446_v23, %v9445_v45  ;;  %v9435_v45 = vld [vmem:[%s18786_s8 + $0x130] sm:$0xff]  ;;  %v9421_v23 = vld [vmem:[%s18786_s8 + $0xc0] sm:$0xff] }
0x1eac   :  { %v9205_v14 = vmul.f32 1.442695, %v9201_v27  ;;  %14994 = vmatprep.subr.bf16.mxu1 %v14993_v55  ;;  %v9432_v27 = vld [vmem:[%s18786_s8 + $0x118] sm:$0xff]  ;;  %v9454_v55 = vld [vmem:[%s18786_s8 + $0x1c8] sm:$0xff] }
0x1ead   :  { %v8970_v44 = vpop.xlane.xlu1 %8969  ;;  %v8955_v21 = vpop.xlane.xlu0 %8954 }
0x1eae   :  { %15393 = vpow2.f32 %v9205_v14  ;;  %v8960_v33 = vsub.f32 %v8948_v5, %v8955_v21  ;;  %v9415_v5 = vld [vmem:[%s18786_s8 + $0x90] sm:$0xff]  ;;  %v9417_v14 = vld [vmem:[%s18786_s8 + $0xa0] sm:$0xff]  ;;  %v14999_v21 = vpack.c.bf16 %v9432_v27, %v9431_v53 }
0x1eaf   :  { %15395 = vrcp.f32 %v8970_v44  ;;  %v14965_v35 = vpack.c.bf16 %v9416_v6, %v9415_v5  ;;  %v9418_v44 = vld [vmem:[%s18786_s8 + $0xa8] sm:$0xff]  ;;  %v9405_v5 = vld [vmem:[%s18786_s8 + $0x40] sm:$0xff] }
0x1eb0   :  { %v15392_v19 = vpop.eup %15391  ;;  %v8964_v51 = vmul.f32 1.442695, %v8960_v33  ;;  %v14969_v33 = vpack.c.bf16 %v9418_v44, %v9417_v14  ;;  %v9437_v6 = vld [vmem:[%s18786_s8 + $0x140] sm:$0xff]  ;;  %v9407_v14 = vld [vmem:[%s18786_s8 + $0x50] sm:$0xff]  ;;  %v9408_v44 = vld [vmem:[%s18786_s8 + $0x58] sm:$0xff] }
0x1eb1   :  { %v9221_v20 = vmul.f32 %v15392_v19, %v15388_v10  ;;  %v9199_v31 = vpop.xlane.xlu1 %9198  ;;  %v9397_v10 = vld [vmem:[%s18786_s8] sm:$0xff] }
0x1eb2   :  { %15397 = vpow2.f32 %v8964_v51  ;;  %v9202_v62 = vsub.f32 %v9190_v40, %v9199_v31  ;;  %v14963_v43 = vpack.c.bf16 %v9398_v32, %v9397_v10  ;;  %v9448_v40 = vld [vmem:[%s18786_s8 + $0x198] sm:$0xff]  ;;  %v9449_v19 = vld [vmem:[%s18786_s8 + $0x1a0] sm:$0xff]  ;;  %v9450_v51 = vld [vmem:[%s18786_s8 + $0x1a8] sm:$0xff] }
0x1eb3   :  { %14059 = vmatmul.mubr.msk.f32.vlgmr.msra.gmra.mrb[44].mxu1 %vm3233_vm5, %v9221_v20  ;;  %v14997_v34 = vpack.c.bf16 %v9448_v40, %v9447_v63  ;;  %v9401_v20 = vld [vmem:[%s18786_s8 + $0x20] sm:$0xff]  ;;  %v15001_v31 = vpack.c.bf16 %v9450_v51, %v9449_v19  ;;  %v9422_v10 = vld [vmem:[%s18786_s8 + $0xc8] sm:$0xff]  ;;  %v9440_v19 = vld [vmem:[%s18786_s8 + $0x158] sm:$0xff] }
0x1eb4   :  { %v9207_v39 = vmul.f32 1.442695, %v9202_v62  ;;  %14061 = vmatprep.mubr.msk.f32.mxu1 %vm15449_vm3, %v19275_v22  ;;  %v9402_v62 = vld [vmem:[%s18786_s8 + $0x28] sm:$0xff]  ;;  %v9453_v32 = vld [vmem:[%s18786_s8 + $0x1c0] sm:$0xff] }
0x1eb5   :  { %v8958_v0 = vpop.xlane.xlu1 %8957  ;;  %v15009_v63 = vpack.c.bf16 %v9454_v55, %v9453_v32  ;;  %v9438_v40 = vld [vmem:[%s18786_s8 + $0x148] sm:$0xff]  ;;  %v9425_v51 = vld [vmem:[%s18786_s8 + $0xe0] sm:$0xff] }
0x1eb6   :  { %15399 = vpow2.f32 %v9207_v39  ;;  %v8961_v25 = vsub.f32 %v8949_v46, %v8958_v0  ;;  %v9399_v46 = vld [vmem:[%s18786_s8 + $0x10] sm:$0xff]  ;;  %v9433_v39 = vld [vmem:[%s18786_s8 + $0x120] sm:$0xff]  ;;  %v9434_v0 = vld [vmem:[%s18786_s8 + $0x128] sm:$0xff] }
0x1eb7   :  { %v14967_v7 = vpack.c.bf16 %v9400_v2, %v9399_v46  ;;  %v9455_v46 = vld [vmem:[%s18786_s8 + $0x1d0] sm:$0xff]  ;;  %v9456_v2 = vld [vmem:[%s18786_s8 + $0x1d8] sm:$0xff] }
0x1eb8   :  { %v18760_v26 = vpop.eup %15393  ;;  %v8966_v52 = vmul.f32 1.442695, %v8961_v25  ;;  %v14971_v25 = vpack.c.bf16 %v9402_v62, %v9401_v20  ;;  %v9426_v20 = vld [vmem:[%s18786_s8 + $0xe8] sm:$0xff] }
0x1eb9   :  { %v15396_v30 = vpop.eup %15395  ;;  %v9212_v56 = vsel %vm3233_vm5, %v18760_v26, 0.0  ;;  %v9458_v62 = vld [vmem:[%s18786_s8 + $0x1e8] sm:$0xff] }
0x1eba   :  { %v8980_v36 = vmul.f32 %v15396_v30, %v15390_v16  ;;  %15401 = vpow2.f32 %v8966_v52  ;;  %9213 = vadd.xlane.f32.xlu0 %v9212_v56  ;;  %v14995_v16 = vpack.c.bf16 %v9430_v17, %v9429_v42  ;;  %v9419_v52 = vld [vmem:[%s18786_s8 + $0xb0] sm:$0xff]  ;;  %v9420_v30 = vld [vmem:[%s18786_s8 + $0xb8] sm:$0xff]  ;;  %v14977_v17 = vpack.c.bf16 %v9422_v10, %v9421_v23 }
0x1ebb   :  { %v9451_v56 = vld [vmem:[%s18786_s8 + $0x1b0] sm:$0xff] }
0x1ebc   :  { %v18764_v38 = vpop.eup %15397  ;;  %14009 = vmatmul.mubr.msk.f32.vlgmr.msra.gmra.mrb[26].mxu0 %vm3233_vm5, %v8980_v36  ;;  %14996 = vmatpush3.bf16.msra.mxu1 %v14995_v16  ;;  %v15003_v36 = vpack.c.bf16 %v9434_v0, %v9433_v39  ;;  %v9406_v16 = vld [vmem:[%s18786_s8 + $0x48] sm:$0xff]  ;;  %v14983_v39 = vpack.c.bf16 %v9408_v44, %v9407_v14 }
0x1ebd   :  { %v8971_v37 = vsel %vm3233_vm5, %v18764_v38, 0.0  ;;  %14011 = vmatprep.mubr.msk.f32.mxu0 %vm15449_vm3, %v19275_v22  ;;  %14998 = vmatprep.subr.bf16.mxu1 %v14997_v34  ;;  %v9424_v34 = vld [vmem:[%s18786_s8 + $0xd8] sm:$0xff]  ;;  %v14979_v53 = vpack.c.bf16 %v9406_v16, %v9405_v5  ;;  %v9427_v5 = vld [vmem:[%s18786_s8 + $0xf0] sm:$0xff] }
0x1ebe   :  { %8972 = vadd.xlane.f32.xlu0 %v8971_v37  ;;  %v14973_v37 = vpack.c.bf16 %v9420_v30, %v9419_v52  ;;  %v9409_v52 = vld [vmem:[%s18786_s8 + $0x60] sm:$0xff]  ;;  %v9410_v30 = vld [vmem:[%s18786_s8 + $0x68] sm:$0xff]  ;;  %v9428_v16 = vld [vmem:[%s18786_s8 + $0xf8] sm:$0xff] }
0x1ec0   :  { %v18771_v59 = vpop.eup %15399  ;;  %15000 = vmatpush3.bf16.msra.mxu1 %v14999_v21  ;;  %v9439_v21 = vld [vmem:[%s18786_s8 + $0x150] sm:$0xff] }
0x1ec1   :  { %v9215_v29 = vsel %vm3233_vm5, %v18771_v59, 0.0  ;;  %15002 = vmatprep.subr.bf16.mxu1 %v15001_v31  ;;  %v9457_v31 = vld [vmem:[%s18786_s8 + $0x1e0] sm:$0xff]  ;;  %v15015_v0 = vpack.c.bf16 %v9440_v19, %v9439_v21 }
0x1ec2   :  { %9216 = vadd.xlane.f32.xlu1 %v9215_v29  ;;  %v9452_v29 = vld [vmem:[%s18786_s8 + $0x1b8] sm:$0xff] }
0x1ec4   :  { %v18775_v13 = vpop.eup %15401  ;;  %15004 = vmatpush3.bf16.msra.mxu1 %v15003_v36  ;;  %v9441_v36 = vld [vmem:[%s18786_s8 + $0x160] sm:$0xff] }
0x1ec5   :  { %v8974_v8 = vsel %vm3233_vm5, %v18775_v13, 0.0 }
0x1ec6   :  { %8975 = vadd.xlane.f32.xlu1 %v8974_v8  ;;  %v9403_v8 = vld [vmem:[%s18786_s8 + $0x30] sm:$0xff] }
0x1ed7   :  { %15171 = vrot.lane.b32.xlu1 %v15170_v24, %s15451_s3  ;;  %v14961_v24 = vpack.c.bf16 %v9414_v58, %v9413_v48  ;;  %v9404_v48 = vld [vmem:[%s18786_s8 + $0x38] sm:$0xff]  ;;  %v15005_v58 = vpack.c.bf16 %v9452_v29, %v9451_v56  ;;  %v15017_v56 = vpack.c.bf16 %v9458_v62, %v9457_v31  ;;  %v14987_v29 = vpack.c.bf16 %v9410_v30, %v9409_v52 }
0x1ed9   :  { %14962 = vmatprep.subr.bf16.mxu0 %v14961_v24  ;;  %v9436_v24 = vld [vmem:[%s18786_s8 + $0x138] sm:$0xff]  ;;  %15006 = vmatprep.subr.bf16.mxu1 %v15005_v58 }
0x1eda   :  { %14964 = vmatpush3.bf16.msra.mxu0 %v14963_v43  ;;  %v14975_v43 = vpack.c.bf16 %v9404_v48, %v9403_v8  ;;  %v15007_v42 = vpack.c.bf16 %v9436_v24, %v9435_v45 }
0x1edb   :  { %14966 = vmatprep.subr.bf16.mxu0 %v14965_v35  ;;  %v9423_v35 = vld [vmem:[%s18786_s8 + $0xd0] sm:$0xff] }
0x1edc   :  { %15008 = vmatpush3.bf16.msra.mxu1 %v15007_v42  ;;  %v14981_v27 = vpack.c.bf16 %v9424_v34, %v9423_v35  ;;  %v9412_v35 = vld [vmem:[%s18786_s8 + $0x78] sm:$0xff] }
0x1edd   :  { %15010 = vmatprep.subr.bf16.mxu1 %v15009_v63  ;;  %v9460_v63 = vld [vmem:[%s18786_s8 + $0x1f8] sm:$0xff] }
0x1ede   :  { %14968 = vmatpush3.bf16.msra.mxu0 %v14967_v7  ;;  %v15011_v7 = vpack.c.bf16 %v9438_v40, %v9437_v6  ;;  %v14989_v6 = vpack.c.bf16 %v9428_v16, %v9427_v5  ;;  %v9411_v40 = vld [vmem:[%s18786_s8 + $0x70] sm:$0xff] }
0x1edf   :  { %14970 = vmatprep.subr.bf16.mxu0 %v14969_v33  ;;  %v15013_v33 = vpack.c.bf16 %v9456_v2, %v9455_v46  ;;  %v14991_v46 = vpack.c.bf16 %v9412_v35, %v9411_v40  ;;  %v9443_v2 = vld [vmem:[%s18786_s8 + $0x170] sm:$0xff] }
0x1ee0   :  { %15012 = vmatpush3.bf16.msra.mxu1 %v15011_v7 }
0x1ee1   :  { %15014 = vmatprep.subr.bf16.mxu1 %v15013_v33 }
0x1ee2   :  { %14972 = vmatpush3.bf16.msra.mxu0 %v14971_v25  ;;  %v14985_v25 = vpack.c.bf16 %v9426_v20, %v9425_v51 }
0x1ee3   :  { %14974 = vmatprep.subr.bf16.mxu0 %v14973_v37  ;;  %v9442_v37 = vld [vmem:[%s18786_s8 + $0x168] sm:$0xff] }
0x1ee4   :  { %15016 = vmatpush3.bf16.msra.mxu1 %v15015_v0  ;;  %v15019_v8 = vpack.c.bf16 %v9442_v37, %v9441_v36 }
0x1ee5   :  { %15018 = vmatprep.subr.bf16.mxu1 %v15017_v56 }
0x1ee6   :  { %14976 = vmatpush3.bf16.msra.mxu0 %v14975_v43 }
0x1ee7   :  { %14978 = vmatprep.subr.bf16.mxu0 %v14977_v17 }
0x1ee8   :  { %15020 = vmatpush3.bf16.msra.mxu1 %v15019_v8 }
0x1eea   :  { %14980 = vmatpush3.bf16.msra.mxu0 %v14979_v53  ;;  %v9444_v53 = vld [vmem:[%s18786_s8 + $0x178] sm:$0xff] }
0x1eeb   :  { %14982 = vmatprep.subr.bf16.mxu0 %v14981_v27 }
0x1eee   :  { %14984 = vmatpush3.bf16.msra.mxu0 %v14983_v39 }
0x1eef   :  { %14986 = vmatprep.subr.bf16.mxu0 %v14985_v25 }
0x1ef2   :  { %14988 = vmatpush3.bf16.msra.mxu0 %v14987_v29 }
0x1ef3   :  { %14990 = vmatprep.subr.bf16.mxu0 %v14989_v6 }
0x1ef6   :  { %14992 = vmatpush3.bf16.msra.mxu0 %v14991_v46 }
0x1ef7   :  { %15025 = vmatprep.subr.bf16.mxu0 %v19274_v3 }
0x1f47   :  { %v9214_v48 = vpop.xlane.xlu0 %9213 }
0x1f48   :  { %15403 = vrcp.f32 %v9214_v48 }
0x1f4b   :  { %v8973_v58 = vpop.xlane.xlu0 %8972 }
0x1f4c   :  { %15405 = vrcp.f32 %v8973_v58 }
0x1f4f   :  { %v9217_v45 = vpop.xlane.xlu1 %9216 }
0x1f50   :  { %15407 = vrcp.f32 %v9217_v45  ;;  %v19520_v45 = vld [vmem:[#allocation7_spill] sm:$0xff] }
0x1f52   :  { %v15404_v24 = vpop.eup %15403 }
0x1f53   :  { %v9222_v23 = vmul.f32 %v15404_v24, %v18760_v26  ;;  %v8976_v10 = vpop.xlane.xlu1 %8975 }
0x1f54   :  { %15409 = vrcp.f32 %v8976_v10 }
0x1f55   :  { %14062 = vmatmul.mubr.msk.f32.gmra.mrb[46].mxu1 %vm3233_vm5, %v9222_v23 }
0x1f56   :  { %v15406_v32 = vpop.eup %15405  ;;  %14064 = vmatprep.mubr.msk.f32.mxu1 %vm15449_vm3, %v19275_v22 }
0x1f57   :  { %v8981_v55 = vmul.f32 %v15406_v32, %v18764_v38  ;;  %v9459_v38 = vld [vmem:[%s18786_s8 + $0x1f0] sm:$0xff]  ;;  %v15172_v21 = vpop.permute.xlu1 %15171  ;;  %s15482_s8 = smov 112  }
0x1f58   :  { %v15021_v34 = vpack.c.bf16 %v9460_v63, %v9459_v38  ;;  %v15174_v33 = vunpack.i.h.bf16 %v15172_v21  ;;  %v15173_v19 = vunpack.i.l.bf16 %v15172_v21 }
0x1f59   :  { %14012 = vmatmul.mubr.msk.f32.gmra.mrb[28].mxu0 %vm3233_vm5, %v8981_v55 }
0x1f5a   :  { %v15408_v43 = vpop.eup %15407  ;;  %14014 = vmatprep.mubr.msk.f32.mxu0 %vm15449_vm3, %v19275_v22  ;;  %15022 = vmatprep.subr.bf16.mxu1 %v15021_v34  ;;  %v9391_v49 = vsel %vm785_vm1, %v18727_v11, %v15174_v33  ;;  %v19522_v34 = vld [vmem:[#allocation23_spill] sm:$0xff] }
0x1f5b   :  { %v9223_v26 = vmul.f32 %v15408_v43, %v18771_v59  ;;  %v15023_v59 = vpack.c.bf16 %v9444_v53, %v9443_v2 }
0x1f5d   :  { %14065 = vmatmul.mubr.msk.f32.gmra.mrb[48].mxu1 %vm3233_vm5, %v9223_v26 }
0x1f5e   :  { %v15410_v42 = vpop.eup %15409  ;;  %15024 = vmatpush3.bf16.msra.mxu1 %v15023_v59 }
0x1f5f   :  { %v8982_v17 = vmul.f32 %v15410_v42, %v18775_v13 }
0x1f61   :  { %14015 = vmatmul.mubr.msk.f32.gmra.mrb[30].mxu0 %vm3233_vm5, %v8982_v17  ;;  %v19521_v17 = vld [vmem:[#allocation8_spill] sm:$0xff] }
0x1f86   :  { %v9323_v13 = vpop.f32.mrb[44].mxu1 }
0x1f87   :  { %v15165_v7 = vpack.i.bf16 %v9323_v13, %v18563_v47  ;;  %v14060_v27 = vpop.f32.mrb[45].mxu1 }
0x1f89   :  { %15166 = vrot.lane.b32.xlu0 %v15165_v7, %s15451_s3 }
0x1f8d   :  { %15176 = vrot.lane.b32.xlu0 %v15175_v18, %s15451_s3  ;;  %v9385_v18 = vsel %vm785_vm1, %v19519_v60, %v15173_v19 }
0x1f8f   :  { %v9082_v14 = vpop.f32.mrb[26].mxu0 }
0x1f90   :  { %v14010_v44 = vpop.f32.mrb[27].mxu0 }
0x1f91   :  { %15191 = vrot.lane.b32.xlu0 %v15190_v54, %s15451_s3 }
0x1ffb   :  { %v15167_v51 = vpop.permute.xlu0 %15166 }
0x1ffc   :  { %v15169_v47 = vunpack.i.h.bf16 %v15167_v51  ;;  %v15168_v20 = vunpack.i.l.bf16 %v15167_v51 }
0x1ffe   :  { %v9388_v31 = vsel %vm785_vm1, %v18567_v12, %v15168_v20  ;;  %v9394_v62 = vsel %vm785_vm1, %v9082_v14, %v15169_v47 }
0x1fff   :  { %9525 = vmatprep.mubr.f32.mxu0 %v9388_v31  ;;  %9605 = vmatprep.mubr.f32.mxu1 %v9394_v62  ;;  %v15177_v56 = vpop.permute.xlu0 %15176  ;;  %v19523_v31 = vld [vmem:[#allocation24_spill] sm:$0xff] }
0x2000   :  { %9526 = vmatmul.mubr.f32.vlgmr.msra.gmra.mrb[32].mxu0 %v9385_v18  ;;  %9606 = vmatmul.mubr.f32.vlgmr.msra.gmra.mrb[50].mxu1 %v9391_v49  ;;  %v15179_v36 = vunpack.i.h.bf16 %v15177_v56  ;;  %v15178_v37 = vunpack.i.l.bf16 %v15177_v56  ;;  %v9694_v56 = vld [vmem:[%s11128_s16 + $0x8] sm:$0xff] }
0x2002   :  { %v9392_v24 = vsel %vm785_vm1, %v18733_v15, %v15179_v36 }
0x2003   :  { %v15192_v23 = vpop.permute.xlu0 %15191 }
0x2004   :  { %v15194_v10 = vunpack.i.h.bf16 %v15192_v23  ;;  %v15193_v32 = vunpack.i.l.bf16 %v15192_v23 }
0x2006   :  { %v9387_v5 = vsel %vm785_vm1, %v19521_v17, %v15193_v32  ;;  %v9393_v15 = vsel %vm785_vm1, %v18735_v50, %v15194_v10 }
0x2028   :  { %v9328_v28 = vpop.f32.mrb[46].mxu1 }
0x2029   :  { %v15180_v9 = vpack.i.bf16 %v9328_v28, %v18565_v61  ;;  %v14063_v54 = vpop.f32.mrb[47].mxu1 }
0x202b   :  { %15181 = vrot.lane.b32.xlu1 %v15180_v9, %s15451_s3 }
0x202c   :  { %v9087_v39 = vpop.f32.mrb[28].mxu0 }
0x202d   :  { %v14013_v12 = vpop.f32.mrb[29].mxu0 }
0x2030   :  { %v9333_v0 = vpop.f32.mrb[48].mxu1 }
0x2031   :  { %v15185_v25 = vpack.i.bf16 %v9333_v0, %v18569_v57  ;;  %v14066_v52 = vpop.f32.mrb[49].mxu1  ;;  %v9386_v57 = vsel %vm785_vm1, %v19520_v45, %v15178_v37 }
0x2033   :  { %15186 = vrot.lane.b32.xlu1 %v15185_v25, %s15451_s3  ;;  %s15467_s3 = smov 29   ;;  %v19524_v25 = vld [vmem:[#allocation14_spill] sm:$0xff] }
0x2034   :  { %v9092_v11 = vpop.f32.mrb[30].mxu0  ;;  %s11125_s12 = sld [smem:[%s19143_s0 + %s15467_s3]]   ;;  %s15484_s3 = smov 43  }
0x2035   :  { %v14016_v30 = vpop.f32.mrb[31].mxu0 }
0x2036   :  { %v9693_v30 = vld [vmem:[%s11128_s16] sm:$0xff] }
0x2037   :  { %v15026_v36 = vpack.c.bf16 %v9694_v56, %v9693_v30 }
0x2039   :  { %15027 = vmatpush3.bf16.msra.mxu0 %v15026_v36 }
0x203a   :  { %v11788_v50 = vld [vmem:[%s11125_s12] ss:$0 sm:$0xff]  ;;  %15028 = vmatprep.subr.bf16.mxu0 %v19274_v3  ;;  %s19014_s12 = sld [smem:[%s19143_s0 + %s15484_s3]]  }
0x209d   :  { %v15182_v29 = vpop.permute.xlu1 %15181 }
0x209e   :  { %v15184_v8 = vunpack.i.h.bf16 %v15182_v29  ;;  %v15183_v48 = vunpack.i.l.bf16 %v15182_v29  ;;  %v9695_v29 = vld [vmem:[%s11128_s16 + $0x10] sm:$0xff] }
0x20a0   :  { %v9389_v61 = vsel %vm785_vm1, %v18571_v1, %v15183_v48  ;;  %v9395_v58 = vsel %vm785_vm1, %v9087_v39, %v15184_v8  ;;  %v9696_v8 = vld [vmem:[%s11128_s16 + $0x18] sm:$0xff] }
0x20a1   :  { %9530 = vmatprep.mubr.f32.mxu0 %v9389_v61  ;;  %9610 = vmatprep.mubr.f32.mxu1 %v9395_v58  ;;  %v15029_v48 = vpack.c.bf16 %v9696_v8, %v9695_v29  ;;  %v9697_v61 = vld [vmem:[%s11128_s16 + $0x20] sm:$0xff]  ;;  %v9698_v58 = vld [vmem:[%s11128_s16 + $0x28] sm:$0xff] }
0x20a2   :  { %9531 = vmatmul.mubr.f32.gmra.mrb[34].mxu0 %v9386_v57  ;;  %9611 = vmatmul.mubr.f32.gmra.mrb[52].mxu1 %v9392_v24  ;;  %v15032_v45 = vpack.c.bf16 %v9698_v58, %v9697_v61  ;;  %v9699_v57 = vld [vmem:[%s11128_s16 + $0x30] sm:$0xff]  ;;  %v9700_v24 = vld [vmem:[%s11128_s16 + $0x38] sm:$0xff]  ;;  %s19019_s16 = sld [smem:[%s19143_s0 + %s15485_s13]]  }
0x20a3   :  { %15030 = vmatpush3.bf16.msra.mxu0 %v15029_v48  ;;  %v15035_v23 = vpack.c.bf16 %v9700_v24, %v9699_v57 }
0x20a4   :  { %15031 = vmatprep.subr.bf16.mxu0 %v19274_v3 }
0x20a5   :  { %v15187_v55 = vpop.permute.xlu1 %15186 }
0x20a6   :  { %v15189_v43 = vunpack.i.h.bf16 %v15187_v55  ;;  %v15188_v26 = vunpack.i.l.bf16 %v15187_v55 }
0x20a7   :  { %15033 = vmatpush3.bf16.msra.mxu0 %v15032_v45 }
0x20a8   :  { %v9390_v1 = vsel %vm785_vm1, %v18573_v4, %v15188_v26  ;;  %v9396_v42 = vsel %vm785_vm1, %v9092_v11, %v15189_v43  ;;  %15034 = vmatprep.subr.bf16.mxu0 %v19274_v3 }
0x20a9   :  { %9535 = vmatprep.mubr.f32.mxu0 %v9390_v1  ;;  %9615 = vmatprep.mubr.f32.mxu1 %v9396_v42  ;;  %v11789_v42 = vld [vmem:[%s11126_s21] ss:$0 sm:$0xff]  ;;  %s11140_s21 = sld [smem:[%s19143_s0 + %s15486_s18]]  }
0x20aa   :  { %9536 = vmatmul.mubr.f32.gmra.mrb[36].mxu0 %v9387_v5  ;;  %9616 = vmatmul.mubr.f32.gmra.mrb[54].mxu1 %v9393_v15  ;;  %v11790_v5 = vld [vmem:[%s11127_s25] ss:$0 sm:$0xff]  ;;  %s11141_s25 = sld [smem:[%s19143_s0 + %s15487_s22]]  }
0x20ab   :  { %14083 = vmatprep.mubr.msk.f32.mxu0 %vm15449_vm3, %v19275_v22  ;;  %10044 = vmatprep.mubr.f32.mxu1 %v19275_v22 }
0x20ac   :  { %15036 = vmatpush3.bf16.msra.mxu0 %v15035_v23 }
0x20ad   :  { %15037 = vmatprep.subr.bf16.mxu0 %v19274_v3 }
0x20d3   :  { %v12755_v4 = vpop.f32.mrb[32].mxu0  ;;  %v12796_v16 = vpop.f32.mrb[50].mxu1 }
0x20d4   :  { %v12756_v38 = vpop.f32.mrb[33].mxu0  ;;  %v12797_v6 = vpop.f32.mrb[51].mxu1 }
0x20d5   :  { %v12757_v63 = vadd.f32 %v12756_v38, %v12755_v4  ;;  %v12798_v40 = vadd.f32 %v12797_v6, %v12796_v16 }
0x20d7   :  { %v9608_v35 = vadd.f32 %v12798_v40, %v12757_v63 }
0x20d9   :  { %v9621_v46 = vadd.f32 %v9608_v35, %v19522_v34  ;;  %v9824_v34 = vld [vmem:[%s11130_s29] sm:$0xff] }
0x20db   :  { %v18907_v2 = vadd.f32 %v11788_v50, %v9621_v46  ;;  %v9825_v46 = vld [vmem:[%s11130_s29 + $0x8] sm:$0xf]  ;;  %s11142_s29 = sld [smem:[%s19143_s0 + %s15488_s26]]  }
0x20dd   :  { %v9636_v53 = vsel %vm785_vm1, %v18907_v2, 0.0 }
0x20de   :  { %9637 = vadd.xlane.f32.xlu1 %v9636_v53  ;;  %v15038_v53 = vpack.c.bf16 %v9825_v46, %v9824_v34 }
0x216b   :  { %v9638_v59 = vpop.xlane.xlu1 %9637 }
0x216c   :  { %v9645_v13 = vmul.f32 0.015625, %v9638_v59 }
0x216e   :  { %v9648_v7 = vsub.f32 %v18907_v2, %v9645_v13 }
0x2170   :  { %v9651_v27 = vmul.f32 %v9648_v7, %v9648_v7 }
0x2172   :  { %v9654_v14 = vsel %vm785_vm1, %v9651_v27, 0.0 }
0x2173   :  { %9655 = vadd.xlane.f32.xlu0 %v9654_v14 }
0x2175   :  { %v12758_v44 = vpop.f32.mrb[34].mxu0  ;;  %v12799_v21 = vpop.f32.mrb[52].mxu1 }
0x2176   :  { %v12759_v33 = vpop.f32.mrb[35].mxu0  ;;  %v12800_v19 = vpop.f32.mrb[53].mxu1 }
0x2177   :  { %v12760_v51 = vadd.f32 %v12759_v33, %v12758_v44  ;;  %v12801_v47 = vadd.f32 %v12800_v19, %v12799_v21 }
0x2179   :  { %v9613_v20 = vadd.f32 %v12801_v47, %v12760_v51 }
0x217b   :  { %v9622_v62 = vadd.f32 %v9613_v20, %v19523_v31 }
0x217d   :  { %v12761_v49 = vpop.f32.mrb[36].mxu0  ;;  %v12802_v60 = vpop.f32.mrb[54].mxu1  ;;  %v9632_v18 = vadd.f32 %v11788_v50, %v9622_v62 }
0x217e   :  { %v12762_v28 = vpop.f32.mrb[37].mxu0  ;;  %v12803_v9 = vpop.f32.mrb[55].mxu1 }
0x217f   :  { %v12763_v54 = vadd.f32 %v12762_v28, %v12761_v49  ;;  %v12804_v39 = vadd.f32 %v12803_v9, %v12802_v60  ;;  %v9639_v12 = vsel %vm785_vm1, %v9632_v18, 0.0  ;;  %v11791_v60 = vld [vmem:[%s11129_s5] ss:$0 sm:$0xff] }
0x2180   :  { %9640 = vadd.xlane.f32.xlu0 %v9639_v12 }
0x2181   :  { %v9618_v0 = vadd.f32 %v12804_v39, %v12763_v54 }
0x2183   :  { %v9623_v52 = vadd.f32 %v9618_v0, %v19524_v25 }
0x2185   :  { %v9633_v11 = vadd.f32 %v11788_v50, %v9623_v52 }
0x2187   :  { %v9642_v37 = vsel %vm785_vm1, %v9633_v11, 0.0 }
0x2188   :  { %9643 = vadd.xlane.f32.xlu1 %v9642_v37 }
0x2200   :  { %v9656_v10 = vpop.xlane.xlu0 %9655 }
0x2201   :  { %v9663_v32 = vmul.f32 0.015625, %v9656_v10 }
0x2203   :  { %v9666_v55 = vadd.f32 1e-05, %v9663_v32 }
0x2205   :  { %15411 = vrsqrt.f32 %v9666_v55 }
0x220d   :  { %v9641_v43 = vpop.xlane.xlu0 %9640 }
0x220e   :  { %v9646_v26 = vmul.f32 0.015625, %v9641_v43 }
0x220f   :  { %v15412_v1 = vpop.eup %15411 }
0x2210   :  { %v9672_v17 = vmul.f32 %v15412_v1, %v9648_v7  ;;  %v9649_v3 = vsub.f32 %v9632_v18, %v9646_v26 }
0x2212   :  { %v9681_v15 = vmul.f32 %v11789_v42, %v9672_v17  ;;  %v9652_v4 = vmul.f32 %v9649_v3, %v9649_v3 }
0x2214   :  { %v9690_v16 = vadd.f32 %v11790_v5, %v9681_v15  ;;  %v9657_v38 = vsel %vm785_vm1, %v9652_v4, 0.0 }
0x2215   :  { %9658 = vadd.xlane.f32.xlu0 %v9657_v38  ;;  %v9644_v6 = vpop.xlane.xlu1 %9643 }
0x2216   :  { %v9647_v63 = vmul.f32 0.015625, %v9644_v6  ;;  %14084 = vmatmul.mubr.msk.f32.vlgmr.msra.gmra.mrb[38].mxu0 %vm785_vm1, %v9690_v16  ;;  %v11799_v6 = vld [vmem:[%s11131_s10] ss:$0 sm:$0xff] }
0x2217   :  { %14086 = vmatprep.mubr.msk.f32.mxu0 %vm15449_vm3, %v19275_v22  ;;  %15040 = vmatpush3.bf16.msk.msra.mxu0 %vm17411_vm9, %v15038_v53 }
0x2218   :  { %v9650_v40 = vsub.f32 %v9633_v11, %v9647_v63 }
0x221a   :  { %v9653_v35 = vmul.f32 %v9650_v40, %v9650_v40 }
0x221c   :  { %v9660_v50 = vsel %vm785_vm1, %v9653_v35, 0.0 }
0x221d   :  { %9661 = vadd.xlane.f32.xlu1 %v9660_v50 }
0x22a2   :  { %v9659_v13 = vpop.xlane.xlu0 %9658 }
0x22a3   :  { %v9664_v7 = vmul.f32 0.015625, %v9659_v13 }
0x22a5   :  { %v9667_v27 = vadd.f32 1e-05, %v9664_v7 }
0x22a7   :  { %15413 = vrsqrt.f32 %v9667_v27 }
0x22aa   :  { %v9662_v14 = vpop.xlane.xlu1 %9661 }
0x22ab   :  { %v9665_v44 = vmul.f32 0.015625, %v9662_v14 }
0x22ad   :  { %v9668_v21 = vadd.f32 1e-05, %v9665_v44  ;;  %v9950_v44 = vld [vmem:[%s11135_s14 + $0x8] sm:$0xff] }
0x22af   :  { %15415 = vrsqrt.f32 %v9668_v21  ;;  %v9952_v21 = vld [vmem:[%s11135_s14 + $0x18] sm:$0xff] }
0x22b1   :  { %v15414_v33 = vpop.eup %15413 }
0x22b2   :  { %v9673_v19 = vmul.f32 %v15414_v33, %v9649_v3  ;;  %v15041_v33 = vpack.c.bf16 %v9952_v21, %v9950_v44 }
0x22b4   :  { %v9682_v51 = vmul.f32 %v11789_v42, %v9673_v19  ;;  %v9949_v19 = vld [vmem:[%s11135_s14] sm:$0xff]  ;;  %15042 = vmatprep.subr.bf16.mxu1 %v15041_v33 }
0x22b6   :  { %v9691_v47 = vadd.f32 %v11790_v5, %v9682_v51  ;;  %v9951_v51 = vld [vmem:[%s11135_s14 + $0x10] sm:$0xff] }
0x22b8   :  { %14087 = vmatmul.mubr.msk.f32.gmra.mrb[40].mxu0 %vm785_vm1, %v9691_v47  ;;  %v15043_v47 = vpack.c.bf16 %v9951_v51, %v9949_v19  ;;  %v19528_v19 = vld [vmem:[#allocation5_spill] sm:$0xff] }
0x22b9   :  { %v15416_v20 = vpop.eup %15415  ;;  %14089 = vmatprep.mubr.msk.f32.mxu0 %vm15449_vm3, %v19275_v22 }
0x22ba   :  { %v9674_v31 = vmul.f32 %v15416_v20, %v9650_v40  ;;  %15044 = vmatpush1.bf16.msra.mxu1 %v15043_v47  ;;  %v9954_v20 = vld [vmem:[%s11135_s14 + $0x28] sm:$0xff] }
0x22bc   :  { %v9683_v62 = vmul.f32 %v11789_v42, %v9674_v31  ;;  %v9956_v31 = vld [vmem:[%s11135_s14 + $0x38] sm:$0xff] }
0x22be   :  { %v9692_v49 = vadd.f32 %v11790_v5, %v9683_v62  ;;  %v15045_v62 = vpack.c.bf16 %v9956_v31, %v9954_v20 }
0x22c0   :  { %14090 = vmatmul.mubr.msk.f32.gmra.mrb[42].mxu0 %vm785_vm1, %v9692_v49  ;;  %v9953_v49 = vld [vmem:[%s11135_s14 + $0x20] sm:$0xff]  ;;  %15046 = vmatprep.subr.bf16.mxu1 %v15045_v62 }
0x22c1   :  { %14096 = vmatprep.mubr.msk.f32.mxu0 %vm15449_vm3, %v19275_v22 }
0x22e9   :  { %v9783_v18 = vpop.f32.mrb[38].mxu0 }
0x22ea   :  { %v9784_v28 = vadd.f32 %v11791_v60, %v9783_v18  ;;  %v14085_v9 = vpop.f32.mrb[39].mxu0 }
0x22eb   :  { %v9960_v9 = vld [vmem:[%s11135_s14 + $0x58] sm:$0xff] }
0x22ec   :  { %v9800_v54 = vmul.f32 0.044715, %v9784_v28  ;;  %v9797_v11 = vmul.f32 0.5, %v9784_v28 }
0x22ee   :  { %v9803_v39 = vmul.f32 %v9800_v54, %v9784_v28 }
0x22f0   :  { %v9806_v12 = vmul.f32 %v9803_v39, %v9784_v28  ;;  %v9957_v39 = vld [vmem:[%s11135_s14 + $0x40] sm:$0xff] }
0x22f2   :  { %v9809_v0 = vadd.f32 %v9806_v12, %v9784_v28  ;;  %v9958_v28 = vld [vmem:[%s11135_s14 + $0x48] sm:$0xff]  ;;  %v9959_v12 = vld [vmem:[%s11135_s14 + $0x50] sm:$0xff] }
0x22f3   :  { %v15049_v54 = vpack.c.bf16 %v9960_v9, %v9958_v28 }
0x22f4   :  { %v9812_v25 = vmul.f32 0.7978846, %v9809_v0  ;;  %v15051_v0 = vpack.c.bf16 %v9959_v12, %v9957_v39 }
0x22f6   :  { %15417 = vtanh.f32 %v9812_v25  ;;  %v9962_v25 = vld [vmem:[%s11135_s14 + $0x68] sm:$0xff] }
0x2300   :  { %v15418_v52 = vpop.eup %15417 }
0x2301   :  { %v9818_v30 = vadd.f32 1.0, %v15418_v52  ;;  %v9964_v52 = vld [vmem:[%s11135_s14 + $0x78] sm:$0xff] }
0x2303   :  { %v9821_v56 = vmul.f32 %v9818_v30, %v9797_v11  ;;  %v15053_v11 = vpack.c.bf16 %v9964_v52, %v9962_v25  ;;  %v9961_v30 = vld [vmem:[%s11135_s14 + $0x60] sm:$0xff] }
0x2304   :  { %v19530_v52 = vld [vmem:[#allocation2_spill] sm:$0xff] }
0x2305   :  { %14097 = vmatmul.mubr.msk.f32.vlgmr.msra.gmra.mrb[44].mxu0 %vm5556_vm10, %v9821_v56  ;;  %v9963_v56 = vld [vmem:[%s11135_s14 + $0x70] sm:$0xff] }
0x2306   :  { %14099 = vmatprep.mubr.msk.f32.mxu0 %vm15449_vm3, %v19275_v22 }
0x238b   :  { %v9788_v36 = vpop.f32.mrb[40].mxu0 }
0x238c   :  { %v9789_v37 = vadd.f32 %v11791_v60, %v9788_v36  ;;  %v14088_v29 = vpop.f32.mrb[41].mxu0  ;;  %v15055_v36 = vpack.c.bf16 %v9963_v56, %v9961_v30 }
0x238e   :  { %v9801_v8 = vmul.f32 0.044715, %v9789_v37  ;;  %v9798_v42 = vmul.f32 0.5, %v9789_v37 }
0x2390   :  { %v9804_v48 = vmul.f32 %v9801_v8, %v9789_v37 }
0x2392   :  { %v9807_v61 = vmul.f32 %v9804_v48, %v9789_v37 }
0x2393   :  { %v9793_v58 = vpop.f32.mrb[42].mxu0 }
0x2394   :  { %v9810_v45 = vadd.f32 %v9807_v61, %v9789_v37  ;;  %v9794_v57 = vadd.f32 %v11791_v60, %v9793_v58  ;;  %v14091_v24 = vpop.f32.mrb[43].mxu0  ;;  %v9955_v60 = vld [vmem:[%s11135_s14 + $0x30] sm:$0xff]  ;;  %v9925_v61 = vld [vmem:[%s11132_s19] sm:$0x1] }
0x2395   :  { %v15047_v18 = vpack.c.bf16 %v9955_v60, %v9953_v49 }
0x2396   :  { %v9813_v23 = vmul.f32 0.7978846, %v9810_v45  ;;  %v9802_v10 = vmul.f32 0.044715, %v9794_v57  ;;  %v9799_v15 = vmul.f32 0.5, %v9794_v57 }
0x2397   :  { %15048 = vmatpush1.bf16.msra.mxu1 %v15047_v18  ;;  %v9926_v45 = vld [vmem:[%s11133_s23] sm:$0x1] }
0x2398   :  { %15419 = vtanh.f32 %v9813_v23  ;;  %v9805_v32 = vmul.f32 %v9802_v10, %v9794_v57  ;;  %15050 = vmatprep.subr.bf16.mxu1 %v15049_v54  ;;  %v9943_v23 = vld [vmem:[%s11134_s27] sm:$0xf]  ;;  %v19526_v10 = vld [vmem:[#allocation3_spill] sm:$0xff]  ;;  %v11804_v54 = vld [vmem:[%s19019_s16 + $0x4] sm:$0xf] }
0x2399   :  { %v19529_v18 = vld [vmem:[#allocation6_spill] sm:$0xff] }
0x239a   :  { %v9808_v55 = vmul.f32 %v9805_v32, %v9794_v57 }
0x239b   :  { %15052 = vmatpush1.bf16.msra.mxu1 %v15051_v0 }
0x239c   :  { %v9811_v43 = vadd.f32 %v9808_v55, %v9794_v57  ;;  %15054 = vmatprep.subr.bf16.mxu1 %v15053_v11  ;;  %v10469_v11 = vsub.s32 4, %v19530_v52 }
0x239e   :  { %v9814_v26 = vmul.f32 0.7978846, %v9811_v43  ;;  %v9965_v43 = vld [vmem:[%s11136_s1] sm:$0x3] }
0x239f   :  { %15056 = vmatpush1.bf16.msra.mxu1 %v15055_v36 }
0x23a0   :  { %15421 = vtanh.f32 %v9814_v26  ;;  %v9970_v26 = vrot.slane %v9965_v43, %v19526_v10 }
0x23a2   :  { %v15420_v1 = vpop.eup %15419 }
0x23a3   :  { %v9819_v17 = vadd.f32 1.0, %v15420_v1  ;;  %v19527_v1 = vld [vmem:[#allocation4_spill] sm:$0xff] }
0x23a5   :  { %v9822_v3 = vmul.f32 %v9819_v17, %v9798_v42  ;;  %v9974_v42 = vrot.slane %v9965_v43, %v19527_v1 }
0x23a7   :  { %14100 = vmatmul.mubr.msk.f32.gmra.mrb[46].mxu0 %vm5556_vm10, %v9822_v3 }
0x23a8   :  { %14102 = vmatprep.mubr.msk.f32.mxu0 %vm15449_vm3, %v19275_v22  ;;  %vm10866_vm3 = vcmp.lt.s32.totalorder %v16426_v41, 111 }
0x23aa   :  { %v15422_v5 = vpop.eup %15421 }
0x23ab   :  { %v9820_v4 = vadd.f32 1.0, %v15422_v5 }
0x23ad   :  { %v9823_v16 = vmul.f32 %v9820_v4, %v9799_v15 }
0x23af   :  { %14103 = vmatmul.mubr.msk.f32.gmra.mrb[48].mxu0 %vm5556_vm10, %v9823_v16  ;;  %v19022_v16 = vld [vmem:[%s19014_s12] sm:$0xff] }
0x23b0   :  { %10153 = vmatprep.mubr.f32.mxu0 %v19275_v22  ;;  %v10275_v31 = vrot.slane %v19022_v16, %v19528_v19  ;;  %v10376_v30 = vrot.slane %v19022_v16, %v19529_v18 }
0x23d8   :  { %v9904_v38 = vpop.f32.mrb[44].mxu0 }
0x23d9   :  { %v9916_v63 = vadd.f32 %v9904_v38, %v18907_v2  ;;  %v14098_v40 = vpop.f32.mrb[45].mxu0  ;;  %v19025_v38 = vld [vmem:[%s19014_s12 + $0x8] sm:$0xff] }
0x23da   :  { %v10279_v51 = vrot.slane %v19025_v38, %v19528_v19  ;;  %v10380_v28 = vrot.slane %v19025_v38, %v19529_v18  ;;  %v10474_v36 = vrot.slane %v19025_v38, %v10469_v11 }
0x23db   :  { %v9924_v35 = vadd.f32 %v11799_v6, %v9916_v63  ;;  %v10072_v6 = vrot.slane %v19022_v16, %v19526_v10  ;;  %v10076_v63 = vrot.slane %v19025_v38, %v19526_v10 }
0x23dd   :  { %v9928_v50 = vsel %vm9927_vm11, %v9924_v35, 0.0 }
0x23de   :  { %9929 = vadd.xlane.f32.xlu0 %v9928_v50 }
0x246b   :  { %v9930_v34 = vpop.xlane.xlu0 %9929 }
0x246c   :  { %v9931_v46 = vmul.f32 0.015625, %v9930_v34 }
0x246e   :  { %v9932_v53 = vsub.f32 %v9924_v35, %v9931_v46 }
0x2470   :  { %v9933_v59 = vmul.f32 %v9932_v53, %v9932_v53 }
0x2472   :  { %v9934_v13 = vsel %vm9927_vm11, %v9933_v59, 0.0  ;;  %v10174_v59 = vrot.slane %v19022_v16, %v19527_v1 }
0x2473   :  { %9935 = vadd.xlane.f32.xlu1 %v9934_v13  ;;  %v10178_v13 = vrot.slane %v19025_v38, %v19527_v1 }
0x247a   :  { %v9909_v7 = vpop.f32.mrb[46].mxu0 }
0x247b   :  { %v14101_v27 = vpop.f32.mrb[47].mxu0 }
0x247c   :  { %v10068_v27 = vld [vmem:[%s19019_s16] sm:$0xf] }
0x2482   :  { %v9913_v14 = vpop.f32.mrb[48].mxu0 }
0x2483   :  { %v14104_v2 = vpop.f32.mrb[49].mxu0 }
0x2500   :  { %v9936_v37 = vpop.xlane.xlu1 %9935 }
0x2501   :  { %v9937_v29 = vmul.f32 0.015625, %v9936_v37  ;;  %v11808_v37 = vld [vmem:[%s19019_s16 + $0x8] sm:$0xf] }
0x2503   :  { %v9938_v8 = vadd.f32 1e-05, %v9937_v29 }
0x2505   :  { %15423 = vrsqrt.f32 %v9938_v8  ;;  %v10570_v8 = vsub.s32 5, %v19530_v52 }
0x2507   :  { %v10571_v1 = vrot.slane %v19022_v16, %v10570_v8 }
0x250f   :  { %v15424_v48 = vpop.eup %15423 }
0x2510   :  { %v9940_v58 = vmul.f32 %v15424_v48, %v9932_v53 }
0x2512   :  { %v9941_v57 = vmul.f32 %v9940_v58, %v9925_v61 }
0x2514   :  { %v9942_v24 = vadd.f32 %v9941_v57, %v9926_v45  ;;  %v10470_v45 = vrot.slane %v19022_v16, %v10469_v11  ;;  %v10575_v57 = vrot.slane %v19025_v38, %v10570_v8 }
0x2516   :  { %v9947_v32 = vrot.slane %v9942_v24, %v19526_v10 }
0x2518   :  { %v9948_v55 = vmul.f32 %v9947_v32, %v9943_v23  ;;  %v11812_v23 = vld [vmem:[%s19019_s16 + $0xc] sm:$0xf] }
0x251a   :  { %11800 = vmatmul.mubr.msk.f32.vlgmr.msra.gmra.mrb[56].mxu1 %vm785_vm1, %v9948_v55  ;;  %v10671_v55 = vsub.s32 6, %v19530_v52  ;;  %vm10664_vm1 = vcmp.lt.s32.totalorder %v16426_v41, 113  ;;  %v11832_v41 = vld [vmem:[%s19019_s16 + $0x20] sm:$0xf] }
0x25ed   :  { %v10046_v17 = vpop.f32.mrb[56].mxu1 }
0x25ee   :  { %v18980_v3 = vadd.f32 %v10046_v17, %v9970_v26  ;;  %v10048_v5 = vpop.f32.mrb[57].mxu1  ;;  %v10676_v17 = vrot.slane %v19025_v38, %v10671_v55 }
0x25ef   :  { %v18982_v15 = vadd.f32 %v10048_v5, %v9974_v42  ;;  %v11816_v5 = vld [vmem:[%s19019_s16 + $0x10] sm:$0xf] }
0x25f0   :  { %10062 = vrot.lane.b32.xlu0 %v18980_v3, %s15455_s17  ;;  %v10475_v10 = vmul.f32 %v10470_v45, %v18980_v3 }
0x25f1   :  { %10064 = vrot.lane.b32.xlu1 %v18982_v15, %s15455_s17  ;;  %s15480_s17 = smov 113   ;;  %v10476_v48 = vmul.f32 %v10474_v36, %v18982_v15 }
0x25f4   :  { %10164 = vrot.lane.b32.xlu0 %v18982_v15, %s15453_s9 }
0x25f5   :  { %10162 = vrot.lane.b32.xlu1 %v18980_v3, %s15453_s9  ;;  %s15481_s9 = smov 42  }
0x25f8   :  { %10265 = vrot.lane.b32.xlu0 %v18982_v15, %s15452_s4 }
0x25f9   :  { %10263 = vrot.lane.b32.xlu1 %v18980_v3, %s15452_s4  ;;  %s11138_s4 = sld [smem:[%s19143_s0 + %s15481_s9]]  }
0x25fc   :  { %10366 = vrot.lane.b32.xlu0 %v18982_v15, %s15434_s6 }
0x25fd   :  { %10364 = vrot.lane.b32.xlu1 %v18980_v3, %s15434_s6  ;;  %s15483_s6 = smov 111  }
0x25ff   :  { %v10051_v4 = vld [vmem:[%s11138_s4] sm:$0xf] }
0x2600   :  { %10561 = vrot.lane.b32.xlu0 %v18982_v15, %s15479_s2 }
0x2601   :  { %10559 = vrot.lane.b32.xlu1 %v18980_v3, %s15479_s2 }
0x2604   :  { %10662 = vrot.lane.b32.xlu0 %v18982_v15, %s15480_s17 }
0x2605   :  { %10660 = vrot.lane.b32.xlu1 %v18980_v3, %s15480_s17 }
0x2608   :  { %10763 = vrot.lane.b32.xlu0 %v18982_v15, %s15482_s8 }
0x2609   :  { %10761 = vrot.lane.b32.xlu1 %v18980_v3, %s15482_s8 }
0x260c   :  { %10864 = vrot.lane.b32.xlu0 %v18982_v15, %s15483_s6 }
0x260d   :  { %10862 = vrot.lane.b32.xlu1 %v18980_v3, %s15483_s6 }
0x2611   :  { %10054 = vperm.xlu1 %15134, %v10051_v4  }
0x2662   :  { %v10063_v40 = vpop.permute.xlu0 %10062 }
0x2663   :  { %v10065_v35 = vpop.permute.xlu1 %10064 }
0x2664   :  { %v10066_v50 = vsel %vm1390_vm4, %v10063_v40, %v10065_v35  ;;  %v10067_v34 = vsel %vm1390_vm4, %v10065_v35, %v10063_v40  ;;  %v10672_v35 = vrot.slane %v19022_v16, %v10671_v55 }
0x2665   :  { %v10077_v46 = vmul.f32 %v10072_v6, %v10067_v34  ;;  %v10078_v53 = vmul.f32 %v10076_v63, %v10066_v50  ;;  %v10772_v6 = vsub.s32 7, %v19530_v52 }
0x2666   :  { %v10165_v7 = vpop.permute.xlu0 %10164 }
0x2667   :  { %v10163_v14 = vpop.permute.xlu1 %10162  ;;  %11801 = vmatprep.subr.msk.mxu0 %vm5566_vm7, %v10078_v53  ;;  %v10777_v34 = vrot.slane %v19025_v38, %v10772_v6  ;;  %v11820_v53 = vld [vmem:[%s19019_s16 + $0x14] sm:$0xf]  ;;  %v10773_v38 = vrot.slane %v19022_v16, %v10772_v6  ;;  %v11828_v16 = vld [vmem:[%s19019_s16 + $0x1c] sm:$0xf] }
0x2668   :  { %v10167_v2 = vsel %vm10166_vm12, %v10163_v14, %v10165_v7  ;;  %v10168_v44 = vsel %vm10166_vm12, %v10165_v7, %v10163_v14  ;;  %11802 = vmatpush1.msk.msra.mxu0 %vm5566_vm7, %v10077_v46 }
0x2669   :  { %v10179_v21 = vmul.f32 %v10174_v59, %v10168_v44  ;;  %v10180_v33 = vmul.f32 %v10178_v13, %v10167_v2  ;;  %11803 = vmatmul.mubr.msk.f32.vlgmr.msra.gmra.mrb[50].mxu0 %vm10079_vm13, %v10068_v27  ;;  %v11834_v2 = vld [vmem:[%s19014_s12 + $0x18] ss:$0 sm:$0xff] }
0x266a   :  { %v10266_v47 = vpop.permute.xlu0 %10265  ;;  %10254 = vmatprep.mubr.f32.mxu0 %v19275_v22 }
0x266b   :  { %v10264_v20 = vpop.permute.xlu1 %10263  ;;  %11805 = vmatprep.subr.msk.mxu0 %vm5566_vm7, %v10180_v33 }
0x266c   :  { %v10268_v62 = vsel %vm10267_vm14, %v10264_v20, %v10266_v47  ;;  %11806 = vmatpush1.msk.msra.mxu0 %vm5566_vm7, %v10179_v21  ;;  %v10269_v49 = vsel %vm10267_vm14, %v10266_v47, %v10264_v20  ;;  %v11824_v21 = vld [vmem:[%s19019_s16 + $0x18] sm:$0xf] }
0x266d   :  { %v10281_v60 = vmul.f32 %v10279_v51, %v10268_v62  ;;  %v10280_v12 = vmul.f32 %v10275_v31, %v10269_v49  ;;  %v11833_v51 = vld [vmem:[%s19014_s12 + $0x10] ss:$0 sm:$0xff] }
0x266e   :  { %v10367_v9 = vpop.permute.xlu0 %10366 }
0x266f   :  { %v10365_v39 = vpop.permute.xlu1 %10364  ;;  %11809 = vmatprep.subr.msk.mxu0 %vm5566_vm7, %v10281_v60 }
0x2670   :  { %v10369_v0 = vsel %vm10368_vm15, %v10365_v39, %v10367_v9  ;;  %v10370_v56 = vsel %vm10368_vm15, %v10367_v9, %v10365_v39 }
0x2671   :  { %v10382_v25 = vmul.f32 %v10380_v28, %v10369_v0  ;;  %11807 = vmatmul.mubr.msk.f32.vlgmr.msra.gmra.mrb[50].mxu0 %vm10079_vm13, %v11804_v54  ;;  %v10381_v29 = vmul.f32 %v10376_v30, %v10370_v56 }
0x2672   :  { %11810 = vmatpush1.msk.msra.mxu0 %vm5566_vm7, %v10280_v12  ;;  %10355 = vmatprep.mubr.f32.mxu0 %v19275_v22  ;;  %v10562_v61 = vpop.permute.xlu0 %10561 }
0x2673   :  { %11813 = vmatprep.subr.msk.mxu0 %vm5566_vm7, %v10382_v25  ;;  %v10560_v58 = vpop.permute.xlu1 %10559 }
0x2674   :  { %v10565_v24 = vsel %vm10563_vm0, %v10562_v61, %v10560_v58  ;;  %v10564_v42 = vsel %vm10563_vm0, %v10560_v58, %v10562_v61 }
0x2675   :  { %v10577_v32 = vmul.f32 %v10575_v57, %v10565_v24  ;;  %v10576_v15 = vmul.f32 %v10571_v1, %v10564_v42 }
0x2676   :  { %v10663_v43 = vpop.permute.xlu0 %10662 }
0x2677   :  { %v10661_v26 = vpop.permute.xlu1 %10660 }
0x2678   :  { %v10666_v3 = vsel %vm10664_vm1, %v10663_v43, %v10661_v26  ;;  %v10665_v50 = vsel %vm10664_vm1, %v10661_v26, %v10663_v43 }
0x2679   :  { %11811 = vmatmul.mubr.msk.f32.vlgmr.msra.gmra.mrb[50].mxu0 %vm10079_vm13, %v11808_v37  ;;  %v10678_v4 = vmul.f32 %v10676_v17, %v10666_v3  ;;  %v10677_v59 = vmul.f32 %v10672_v35, %v10665_v50  ;;  %v11006_v35 = vld [vmem:[%s11140_s21] sm:$0xff] }
0x267a   :  { %11814 = vmatpush1.msk.msra.mxu0 %vm5566_vm7, %v10381_v29  ;;  %10456 = vmatprep.mubr.f32.mxu0 %v19275_v22  ;;  %v10764_v63 = vpop.permute.xlu0 %10763 }
0x267b   :  { %11817 = vmatprep.subr.msk.mxu0 %vm5566_vm7, %v10476_v48  ;;  %v10762_v40 = vpop.permute.xlu1 %10761 }
0x267c   :  { %v10767_v46 = vsel %vm10765_vm2, %v10764_v63, %v10762_v40  ;;  %v10766_v14 = vsel %vm10765_vm2, %v10762_v40, %v10764_v63 }
0x267d   :  { %v10779_v13 = vmul.f32 %v10777_v34, %v10767_v46  ;;  %v10778_v33 = vmul.f32 %v10773_v38, %v10766_v14 }
0x267e   :  { %v10865_v7 = vpop.permute.xlu0 %10864 }
0x267f   :  { %v10863_v27 = vpop.permute.xlu1 %10862 }
0x2680   :  { %v10868_v44 = vsel %vm10866_vm3, %v10865_v7, %v10863_v27  ;;  %v10867_v47 = vsel %vm10866_vm3, %v10863_v27, %v10865_v7 }
0x2681   :  { %11815 = vmatmul.mubr.msk.f32.vlgmr.msra.gmra.mrb[50].mxu0 %vm10079_vm13, %v11812_v23  ;;  %v10880_v19 = vmul.f32 %v11834_v2, %v10868_v44  ;;  %v10879_v20 = vmul.f32 %v11833_v51, %v10867_v47 }
0x2682   :  { %11818 = vmatpush1.msk.msra.mxu0 %vm5566_vm7, %v10475_v10  ;;  %10550 = vmatprep.mubr.f32.mxu0 %v19275_v22 }
0x2683   :  { %11821 = vmatprep.subr.msk.mxu0 %vm5566_vm7, %v10577_v32 }
0x2689   :  { %11819 = vmatmul.mubr.msk.f32.vlgmr.msra.gmra.mrb[50].mxu0 %vm10079_vm13, %v11816_v5 }
0x268a   :  { %11822 = vmatpush1.msk.msra.mxu0 %vm5566_vm7, %v10576_v15  ;;  %10651 = vmatprep.mubr.f32.mxu0 %v19275_v22 }
0x268b   :  { %11825 = vmatprep.subr.msk.mxu0 %vm5566_vm7, %v10678_v4 }
0x2690   :  { %v10055_v31 = vpop.permute.xlu1 %10054 }
0x2691   :  { %11823 = vmatmul.mubr.msk.f32.vlgmr.msra.gmra.mrb[50].mxu0 %vm10079_vm13, %v11820_v53 }
0x2692   :  { %11826 = vmatpush1.msk.msra.mxu0 %vm5566_vm7, %v10677_v59  ;;  %10752 = vmatprep.mubr.f32.mxu0 %v19275_v22 }
0x2693   :  { %11829 = vmatprep.subr.msk.mxu0 %vm5566_vm7, %v10779_v13 }
0x2699   :  { %11827 = vmatmul.mubr.msk.f32.vlgmr.msra.gmra.mrb[50].mxu0 %vm10079_vm13, %v11824_v21 }
0x269a   :  { %11830 = vmatpush1.msk.msra.mxu0 %vm5566_vm7, %v10778_v33  ;;  %10853 = vmatprep.mubr.f32.mxu0 %v19275_v22 }
0x269b   :  { %11835 = vmatprep.subr.msk.mxu0 %vm5566_vm7, %v10880_v19 }
0x26a1   :  { %11831 = vmatmul.mubr.msk.f32.vlgmr.msra.gmra.mrb[50].mxu0 %vm10079_vm13, %v11828_v16 }
0x26a2   :  { %11836 = vmatpush1.msk.msra.mxu0 %vm5566_vm7, %v10879_v20  ;;  %10954 = vmatprep.mubr.f32.mxu0 %v19275_v22 }
0x26a9   :  { %11837 = vmatmul.mubr.msk.f32.vlgmr.msra.gmra.mrb[50].mxu0 %vm10079_vm13, %v11832_v41 }
0x26aa   :  { %11078 = vmatprep.mubr.f32.mxu0 %v19275_v22 }
0x277c   :  { %v10956_v62 = vpop.f32.mrb[50].mxu0 }
0x277d   :  { %v15059_v49 = vadd.f32 %v10956_v62, %v10055_v31  ;;  %v10958_v60 = vpop.f32.mrb[51].mxu0 }
0x277e   :  { %v15060_v18 = vadd.f32 %v10958_v60, %v10055_v31 }
0x277f   :  { %v10963_v28 = vsel %vm5566_vm7, %v15059_v49, -inf }
0x2780   :  { %v10964_v9 = vrot.slane %v10963_v28, 4  ;;  %v10970_v54 = vsel %vm5566_vm7, %v15060_v18, -inf }
0x2781   :  { %v10971_v39 = vrot.slane %v10970_v54, 4 }
0x2782   :  { %v10965_v12 = vmax.f32 %v10963_v28, %v10964_v9 }
0x2783   :  { %v10972_v0 = vmax.f32 %v10970_v54, %v10971_v39 }
0x2784   :  { %v10966_v25 = vrot.slane %v10965_v12, 2 }
0x2785   :  { %v10973_v52 = vrot.slane %v10972_v0, 2 }
0x2786   :  { %v10967_v11 = vmax.f32 %v10965_v12, %v10966_v25 }
0x2787   :  { %v10974_v30 = vmax.f32 %v10972_v0, %v10973_v52 }
0x2788   :  { %v10968_v56 = vrot.slane %v10967_v11, 1 }
0x2789   :  { %v10975_v36 = vrot.slane %v10974_v30, 1 }
0x278a   :  { %v10969_v22 = vmax.f32 %v10967_v11, %v10968_v56 }
0x278b   :  { %v10976_v37 = vmax.f32 %v10974_v30, %v10975_v36 }
0x278c   :  { %v10977_v29 = vsub.f32 %v15059_v49, %v10969_v22 }
0x278d   :  { %v10978_v8 = vsub.f32 %v15060_v18, %v10976_v37 }
0x278e   :  { %v10979_v48 = vmul.f32 1.442695, %v10977_v29 }
0x278f   :  { %v10981_v61 = vmul.f32 1.442695, %v10978_v8 }
0x2790   :  { %15425 = vpow2.f32 %v10979_v48 }
0x2791   :  { %15427 = vpow2.f32 %v10981_v61 }
0x279a   :  { %v15426_v58 = vpop.eup %15425 }
0x279b   :  { %v15428_v45 = vpop.eup %15427  ;;  %v10983_v57 = vsel %vm5566_vm7, %v15426_v58, 0.0 }
0x279c   :  { %v10984_v24 = vrot.slane %v10983_v57, 4  ;;  %v10990_v23 = vsel %vm5566_vm7, %v15428_v45, 0.0 }
0x279d   :  { %v10991_v10 = vrot.slane %v10990_v23, 4 }
0x279e   :  { %v10985_v32 = vadd.f32 %v10984_v24, %v10983_v57 }
0x279f   :  { %v10992_v55 = vadd.f32 %v10991_v10, %v10990_v23 }
0x27a0   :  { %v10986_v43 = vrot.slane %v10985_v32, 2 }
0x27a1   :  { %v10993_v26 = vrot.slane %v10992_v55, 2 }
0x27a2   :  { %v10987_v1 = vadd.f32 %v10986_v43, %v10985_v32 }
0x27a3   :  { %v10994_v42 = vadd.f32 %v10993_v26, %v10992_v55 }
0x27a4   :  { %v10988_v17 = vrot.slane %v10987_v1, 1 }
0x27a5   :  { %v10995_v3 = vrot.slane %v10994_v42, 1 }
0x27a6   :  { %v10989_v5 = vadd.f32 %v10988_v17, %v10987_v1 }
0x27a7   :  { %v10996_v15 = vadd.f32 %v10995_v3, %v10994_v42 }
0x27a8   :  { %15429 = vrcp.f32 %v10989_v5 }
0x27a9   :  { %15431 = vrcp.f32 %v10996_v15 }
0x27b2   :  { %v15430_v4 = vpop.eup %15429 }
0x27b3   :  { %v15432_v6 = vpop.eup %15431  ;;  %v10999_v63 = vmul.f32 %v15430_v4, %v15426_v58 }
0x27b4   :  { %v11000_v40 = vmul.f32 %v15432_v6, %v15428_v45 }
0x27b6   :  { %v11003_v50 = vcombine.low %v10999_v63, %v11000_v40  ;;  %11838 = vmatprep.subr.msk.mxu0 %vm5566_vm7, %v11000_v40 }
0x27b7   :  { %11839 = vmatpush1.msk.msra.mxu0 %vm5566_vm7, %v10999_v63 }
0x27b8   :  { %11005 = vst [vmem:[%s11141_s25] sm:$0xff] %v11003_v50  ;;  %11840 = vmatmul.mubr.msk.f32.vlgmr.msra.gmra.mrb[52].mxu0 %vm10079_vm13, %v11006_v35 }
0x288b   :  { %v11080_v34 = vpop.f32.mrb[52].mxu0 }
0x288c   :  { %v11085_v46 = vmax.f32 %v11080_v34, 0.0  ;;  %v11082_v53 = vpop.f32.mrb[53].mxu0 }
0x288d   :  { %v11086_v59 = vmax.f32 %v11082_v53, 0.0 }
0x288e   :  { %11087 = vst [vmem:[%s11142_s29] sm:$0xff] %v11085_v46 }
0x288f   :  { %11088 = vst [vmem:[%s11142_s29 + $0x8] sm:$0xff] %v11086_v59 }

</bundles_post_ra>
